<compile_context>
chip_gen: v5e
topology: v5e:2x2
jax: 0.10.0
libtpu: 0.0.40
codegen_flags: <defaults>
</compile_context>

<pallas_src>
import math

import numpy as np
import jax
import jax.numpy as jnp
from jax.experimental import pallas as pl
from jax.experimental.pallas import tpu as pltpu

# ----------------------------- configuration --------------------------------
NUM_POINTS = 64       # N points per cloud
DIM_MODEL = 32        # d_model (also becomes the "sequence length" after PE broadcast)
NUM_HEADS = 4
NUM_ENC_LAYERS = 2
HIDDEN_DIM = 64       # feed-forward hidden dim
NUM_CLASSES = 3
NUM_PROPOSALS = 4

BN_EPS = 1e-5
LN_EPS = 1e-5

_P4 = NUM_PROPOSALS * 4
_PC = NUM_PROPOSALS * NUM_CLASSES
OUT_SLAB = max(8, ((_P4 + _PC + 7) // 8) * 8)   # packed (bbox | scores | pad) lanes

FC3_PAD = 128   # TNet fc3 output (k*k = 9) padded to one full lane tile


def _round_up(x, m):
    return ((x + m - 1) // m) * m


# --------------------- packed bias / affine slab layout ----------------------
def _slab_entries():
    D = DIM_MODEL
    ents = [
        ("t_b1", 64), ("t_b2", 128), ("t_b3", 1024),
        ("t_fb1", 512), ("t_fb2", 256), ("t_fb3", FC3_PAD),
        ("e_b1", 64), ("e_g1", 64), ("e_be1", 64),
        ("e_b2", 128), ("e_g2", 128), ("e_be2", 128),
        ("e_b3", D), ("e_g3", D), ("e_be3", D),
    ]
    for l in range(NUM_ENC_LAYERS):
        ents += [
            (f"bqkv_{l}", 3 * D), (f"bo_{l}", D),
            (f"ln1g_{l}", D), (f"ln1b_{l}", D),
            (f"bf1_{l}", HIDDEN_DIM), (f"bf2_{l}", D),
            (f"ln2g_{l}", D), (f"ln2b_{l}", D),
        ]
    ents += [("h_b1", 256), ("h_b2", 128), ("h_bout", OUT_SLAB)]
    return ents


SLAB_OFF = {}
SLAB_W = {}
_off = 0
for _name, _w in _slab_entries():
    SLAB_OFF[_name] = _off          # every vector starts on a 128-lane boundary
    SLAB_W[_name] = _w
    _off += _round_up(_w, 128)
SLAB_WIDTH = _off                    # multiple of 128

# input ordering: x=0, slab=1, t_w1=2, t_w2=3, t_w3=4, t_f1=5, t_f2=6, t_f3=7, ...
_HBM_INPUT_IDX = (5, 6)              # TNet fc1/fc2 weights stay in HBM, manual DMA


# ----------------------------- helpers --------------------------------------
def _dot(a, b):
    return jnp.dot(a, b, preferred_element_type=jnp.float32)


# ----------------------------- the fused kernel ------------------------------
def lidar_fused_kernel(
    x_ref, slab_ref,
    # --- TNet weights ---
    t_w1, t_w2, t_w3, t_f1_hbm, t_f2_hbm, t_f3,
    # --- PointNet embedding weights ---
    e_w1, e_w2, e_w3,
    # --- positional encoding (already sliced to (D, D)) ---
    pe_ref,
    # --- encoder stack (weights stacked on a leading L axis) ---
    wqkv_ref, wo_ref, wf1_ref, wf2_ref,
    # --- detection head (pre-transposed so all matmuls are x @ W) ---
    h_w1t, h_w2t, h_wct,
    # --- output ---
    out_ref,
    # --- scratch ---
    f1_buf, f2_buf, dma_sem,
):
    # -------- manual prefetch of the big TNet fc weights (overlaps conv compute) -----
    cp1 = pltpu.make_async_copy(t_f1_hbm, f1_buf, dma_sem.at[0])
    cp2 = pltpu.make_async_copy(t_f2_hbm, f2_buf, dma_sem.at[1])
    cp1.start()
    cp2.start()

    def sv(name):
        # (1, width) slice of the packed bias/affine slab; static, 128-aligned offsets.
        off = SLAB_OFF[name]
        return slab_ref[:, off:off + SLAB_W[name]]

    x = x_ref[...]                                                # (N, 3)

    # ------------------------------- TNet -----------------------------------
    h = jnp.maximum(_dot(x, t_w1[...]) + sv("t_b1"), 0.0)         # (N, 64)
    h = jnp.maximum(_dot(h, t_w2[...]) + sv("t_b2"), 0.0)         # (N, 128)
    # conv3 with bf16 weights (f32 accumulate); ReLU moved after the max-pool
    # (identical numerics: relu∘max == max∘relu).
    h3 = _dot(h.astype(jnp.bfloat16), t_w3[...]) + sv("t_b3")     # (N, 1024)
    g = jnp.maximum(jnp.max(h3, axis=0, keepdims=True), 0.0)      # (1, 1024) MaxPool1d(N)

    cp1.wait()
    g = jnp.maximum(_dot(g.astype(jnp.bfloat16), f1_buf[...]) + sv("t_fb1"), 0.0)  # (1, 512)
    cp2.wait()
    g = jnp.maximum(_dot(g.astype(jnp.bfloat16), f2_buf[...]) + sv("t_fb2"), 0.0)  # (1, 256)
    t9 = _dot(g, t_f3[...]) + sv("t_fb3")                         # (1, 128); lanes 0..8 valid
    # ("+ identity" of TNet.forward is folded into the fc3 bias in prepare_params)

    # x @ trans(3x3) without materializing the matrix: trans[i, j] = t9[3*i + j].
    xe = (x[:, 0:1] * t9[:, 0:3]
          + x[:, 1:2] * t9[:, 3:6]
          + x[:, 2:3] * t9[:, 6:9])                               # (N, 3)

    # -------------- PointNet embedding: (1x1 conv + train-mode BN + ReLU) x3 ---------
    def conv_bn_relu(v, w_ref, bname, gname, bename):
        v = _dot(v, w_ref[...]) + sv(bname)
        # BatchNorm1d (training mode, batch=1): stats over the length axis, biased var.
        mean = jnp.mean(v, axis=0, keepdims=True)
        var = jnp.mean((v - mean) ** 2, axis=0, keepdims=True)
        v = (v - mean) * jax.lax.rsqrt(var + BN_EPS) * sv(gname) + sv(bename)
        return jnp.maximum(v, 0.0)

    he = conv_bn_relu(xe, e_w1, "e_b1", "e_g1", "e_be1")          # (N, 64)
    he = conv_bn_relu(he, e_w2, "e_b2", "e_g2", "e_be2")          # (N, 128)
    he = conv_bn_relu(he, e_w3, "e_b3", "e_g3", "e_be3")          # (N, D)
    emb = jnp.max(he, axis=0, keepdims=True)                      # (1, D)  MaxPool1d(N)

    # -------------------------- positional encoding --------------------------
    D = DIM_MODEL
    seq = emb * math.sqrt(float(D)) + pe_ref[...]                 # (S=D, D) broadcast add

    # ------------------------ transformer encoder stack ----------------------
    dep = D // NUM_HEADS
    inv_sqrt_dk = 1.0 / math.sqrt(float(dep))

    def layer_norm(v, gamma, beta):
        mean = jnp.mean(v, axis=-1, keepdims=True)
        var = jnp.mean((v - mean) ** 2, axis=-1, keepdims=True)
        return (v - mean) * jax.lax.rsqrt(var + LN_EPS) * gamma + beta

    hx = seq
    for l in range(NUM_ENC_LAYERS):     # static unroll; weights indexed with ref[l]
        # fused lane-dense QKV projection: one (S,D)x(D,3D) MXU push
        qkv = _dot(hx, wqkv_ref[l]) + sv(f"bqkv_{l}")             # (S, 3D)

        heads = []
        for hh in range(NUM_HEADS):
            lo = hh * dep
            q = qkv[:, lo:lo + dep]                               # (S, dep)
            k = qkv[:, D + lo:D + lo + dep]                       # (S, dep)
            v = qkv[:, 2 * D + lo:2 * D + lo + dep]               # (S, dep)
            logits = jax.lax.dot_general(
                q, k, (((1,), (1,)), ((), ())),
                preferred_element_type=jnp.float32) * inv_sqrt_dk  # (S, S)
            logits = logits - jnp.max(logits, axis=-1, keepdims=True)
            e = jnp.exp(logits)
            attn = e * pl.reciprocal(jnp.sum(e, axis=-1, keepdims=True), approx=True)
            heads.append(_dot(attn, v))                           # (S, dep)
        concat = jnp.concatenate(heads, axis=-1)                  # (S, D)
        attn_out = _dot(concat, wo_ref[l]) + sv(f"bo_{l}")        # single fused Wo matmul

        x1 = layer_norm(hx + attn_out, sv(f"ln1g_{l}"), sv(f"ln1b_{l}"))
        ff = jnp.maximum(_dot(x1, wf1_ref[l]) + sv(f"bf1_{l}"), 0.0)
        ff = _dot(ff, wf2_ref[l]) + sv(f"bf2_{l}")
        hx = layer_norm(x1 + ff, sv(f"ln2g_{l}"), sv(f"ln2b_{l}"))  # (S, D)

    # --------------------------- object detection head -----------------------
    # Conv1d in the reference treats the sequence axis of hx as channels. Computed in
    # the length-major layout (contract over hx axis 0, no activation transpose) so all
    # biases are lane-dense rows and the output is a lane-dense (1, OUT_SLAB) row.
    d1 = jnp.maximum(
        jax.lax.dot_general(hx, h_w1t[...], (((0,), (0,)), ((), ())),
                            preferred_element_type=jnp.float32) + sv("h_b1"), 0.0)  # (L, 256)
    d2 = jnp.maximum(_dot(d1, h_w2t[...]) + sv("h_b2"), 0.0)      # (L, 128)
    pooled = jnp.max(d2, axis=0, keepdims=True)                   # (1, 128) adaptive max-pool(1)
    out_ref[...] = _dot(pooled, h_wct[...]) + sv("h_bout")        # (1, OUT_SLAB) bbox|scores|pad


# ----------------------------- parameters / buffers --------------------------
def make_positional_encoding(d_model, max_len=5000):
    # Exactly reproduces PositionalEncoding3D.__init__ (exponent 2*i/d with even i).
    pe = np.zeros((max_len, d_model), dtype=np.float32)
    pos = np.arange(max_len, dtype=np.float64)[:, None]
    i = np.arange(0, d_model, 2, dtype=np.float64)[None, :]
    div = np.power(10000.0, 2.0 * i / d_model)
    pe[:, 0::2] = np.sin(pos / div)
    pe[:, 1::2] = np.cos(pos / div)        # d_model is even
    return jnp.asarray(pe)


def init_params(key):
    D, Hff = DIM_MODEL, HIDDEN_DIM
    keys = iter(jax.random.split(key, 64))

    def lin(out_dim, in_dim, scale=0.05):
        w = scale * jax.random.normal(next(keys), (out_dim, in_dim), dtype=jnp.float32)
        b = scale * jax.random.normal(next(keys), (out_dim,), dtype=jnp.float32)
        return {"w": w, "b": b}

    params = {}
    # TNet (fc3 is deterministically zero-weight / identity-bias per initialize_weights)
    params["tnet"] = {
        "conv1": lin(64, 3), "conv2": lin(128, 64), "conv3": lin(1024, 128),
        "fc1": lin(512, 1024), "fc2": lin(256, 512),
        "fc3": {"w": jnp.zeros((9, 256), jnp.float32),
                "b": jnp.eye(3, dtype=jnp.float32).reshape(-1)},
    }
    # Robust PointNet embedding (BatchNorm affine params at PyTorch defaults)
    params["embed"] = {
        "conv1": lin(64, 3), "conv2": lin(128, 64), "conv3": lin(D, 128),
        "bn1": {"g": jnp.ones((64,), jnp.float32), "b": jnp.zeros((64,), jnp.float32)},
        "bn2": {"g": jnp.ones((128,), jnp.float32), "b": jnp.zeros((128,), jnp.float32)},
        "bn3": {"g": jnp.ones((D,), jnp.float32), "b": jnp.zeros((D,), jnp.float32)},
    }
    params["pe"] = make_positional_encoding(D, max_len=5000)
    # Transformer encoder layers (LayerNorm at defaults gamma=1, beta=0)
    enc = []
    for _ in range(NUM_ENC_LAYERS):
        enc.append({
            "wq": lin(D, D), "wk": lin(D, D), "wv": lin(D, D), "wo": lin(D, D),
            "ln1": {"g": jnp.ones((D,), jnp.float32), "b": jnp.zeros((D,), jnp.float32)},
            "ff1": lin(Hff, D), "ff2": lin(D, Hff),
            "ln2": {"g": jnp.ones((D,), jnp.float32), "b": jnp.zeros((D,), jnp.float32)},
        })
    params["enc"] = enc
    # Object detection head
    params["head"] = {
        "conv1": lin(256, D), "conv2": lin(128, 256),
        "bbox": lin(_P4, 128),
        "cls": lin(_PC, 128),
    }
    return params


def prepare_params(params):
    """One-time weight layout prep (transposes / stacking / bf16 cast / slab packing),
    done OUTSIDE the jitted forward."""
    D = DIM_MODEL
    tp, ep, hp = params["tnet"], params["embed"], params["head"]
    enc = params["enc"]

    def wt(p):            # PyTorch (out, in) -> (in, out) so kernels compute x @ W + b
        return p["w"].T

    # --- packed bias / BN / LN slab (one DMA instead of ~35 tiny ones) ---
    slab = np.zeros((1, SLAB_WIDTH), np.float32)

    def put(name, vec):
        v = np.asarray(vec, np.float32).reshape(-1)
        assert v.size <= SLAB_W[name], name
        slab[0, SLAB_OFF[name]:SLAB_OFF[name] + v.size] = v

    put("t_b1", tp["conv1"]["b"]); put("t_b2", tp["conv2"]["b"]); put("t_b3", tp["conv3"]["b"])
    put("t_fb1", tp["fc1"]["b"]); put("t_fb2", tp["fc2"]["b"])
    # fold the "+ identity" of TNet.forward into the fc3 bias (bias is itself I at init,
    # matching PyTorch's initialize_weights + forward => effective 2*I at init).
    put("t_fb3", np.asarray(tp["fc3"]["b"]) + np.eye(3, dtype=np.float32).reshape(-1))
    put("e_b1", ep["conv1"]["b"]); put("e_g1", ep["bn1"]["g"]); put("e_be1", ep["bn1"]["b"])
    put("e_b2", ep["conv2"]["b"]); put("e_g2", ep["bn2"]["g"]); put("e_be2", ep["bn2"]["b"])
    put("e_b3", ep["conv3"]["b"]); put("e_g3", ep["bn3"]["g"]); put("e_be3", ep["bn3"]["b"])
    for l, lp in enumerate(enc):
        put(f"bqkv_{l}", np.concatenate([np.asarray(lp["wq"]["b"]),
                                         np.asarray(lp["wk"]["b"]),
                                         np.asarray(lp["wv"]["b"])]))
        put(f"bo_{l}", lp["wo"]["b"])
        put(f"ln1g_{l}", lp["ln1"]["g"]); put(f"ln1b_{l}", lp["ln1"]["b"])
        put(f"bf1_{l}", lp["ff1"]["b"]); put(f"bf2_{l}", lp["ff2"]["b"])
        put(f"ln2g_{l}", lp["ln2"]["g"]); put(f"ln2b_{l}", lp["ln2"]["b"])
    put("h_b1", hp["conv1"]["b"]); put("h_b2", hp["conv2"]["b"])
    put("h_bout", np.concatenate([np.asarray(hp["bbox"]["b"]), np.asarray(hp["cls"]["b"])]))
    slab = jnp.asarray(slab)

    # --- TNet weights; the three big ones cast to bf16 (f32 accumulation in kernel) ---
    t_w1 = wt(tp["conv1"])                                  # (3, 64)    f32
    t_w2 = wt(tp["conv2"])                                  # (64, 128)  f32
    t_w3 = wt(tp["conv3"]).astype(jnp.bfloat16)             # (128, 1024) bf16
    t_f1 = wt(tp["fc1"]).astype(jnp.bfloat16)               # (1024, 512) bf16, stays in HBM
    t_f2 = wt(tp["fc2"]).astype(jnp.bfloat16)               # (512, 256)  bf16, stays in HBM
    f3w = np.zeros((256, FC3_PAD), np.float32)              # fc3 padded to a full lane tile
    f3w[:, :9] = np.asarray(wt(tp["fc3"]))
    t_f3 = jnp.asarray(f3w)

    # --- PointNet embedding weights ---
    e_w1 = wt(ep["conv1"]); e_w2 = wt(ep["conv2"]); e_w3 = wt(ep["conv3"])

    # --- positional encoding, sliced to the (D, D) window actually used ---
    pe = params["pe"][:D, :]

    # --- encoder layers, stacked on a leading (L, ...) axis ---
    wqkv = jnp.stack([jnp.concatenate([wt(lp["wq"]), wt(lp["wk"]), wt(lp["wv"])], axis=1)
                      for lp in enc])                       # (L, D, 3D)
    wo = jnp.stack([wt(lp["wo"]) for lp in enc])            # (L, D, D)  full fused Wo
    wf1 = jnp.stack([wt(lp["ff1"]) for lp in enc])          # (L, D, Hff)
    wf2 = jnp.stack([wt(lp["ff2"]) for lp in enc])          # (L, Hff, D)

    # --- detection head, pre-transposed; bbox+cls packed and transposed (lane-dense out) ---
    h_w1t = hp["conv1"]["w"].T                              # (D, 256)
    h_w2t = hp["conv2"]["w"].T                              # (256, 128)
    pad = OUT_SLAB - (_P4 + _PC)
    wc = np.concatenate([np.asarray(hp["bbox"]["w"]),
                         np.asarray(hp["cls"]["w"]),
                         np.zeros((pad, 128), np.float32)], axis=0)   # (OUT_SLAB, 128)
    h_wct = jnp.asarray(wc.T)                               # (128, OUT_SLAB)

    return (slab, t_w1, t_w2, t_w3, t_f1, t_f2, t_f3,
            e_w1, e_w2, e_w3, pe,
            wqkv, wo, wf1, wf2,
            h_w1t, h_w2t, h_wct)


# ----------------------------- full forward ----------------------------------
@jax.jit
def lidar_transformer_forward(x, prep):
    # x: (1, N, 3)  single point cloud; reference semantics only defined for batch == 1.
    x_nc = x[0]
    n_in = 1 + len(prep)
    in_specs = [
        pl.BlockSpec(memory_space=pl.ANY) if i in _HBM_INPUT_IDX
        else pl.BlockSpec(memory_space=pltpu.MemorySpace.VMEM)
        for i in range(n_in)
    ]
    out = pl.pallas_call(
        lidar_fused_kernel,
        out_shape=jax.ShapeDtypeStruct((1, OUT_SLAB), jnp.float32),
        in_specs=in_specs,
        out_specs=pl.BlockSpec(memory_space=pltpu.MemorySpace.VMEM),
        scratch_shapes=[
            pltpu.VMEM((1024, 512), jnp.bfloat16),   # TNet fc1 weight landing buffer
            pltpu.VMEM((512, 256), jnp.bfloat16),    # TNet fc2 weight landing buffer
            pltpu.SemaphoreType.DMA((2,)),
        ],
        cost_estimate=pl.CostEstimate(
            flops=26_000_000, transcendentals=10_000, bytes_accessed=2_200_000),
    )(x_nc, *prep)
    bbox = out[:, :_P4].reshape(1, NUM_PROPOSALS, 4)
    scores = out[:, _P4:_P4 + _PC].reshape(1, NUM_PROPOSALS, NUM_CLASSES)
    return bbox, scores


# TODO(synk): BatchNorm running-statistics updates (training side effect) are not modeled;
#             only the forward normalization (train-mode batch stats) is reproduced.

if __name__ == "__main__":
    key = jax.random.PRNGKey(0)
    pkey, xkey = jax.random.split(key)
    params = init_params(pkey)
    prep = prepare_params(params)          # one-time layout prep, outside the jitted forward
    x = jax.random.normal(xkey, (1, NUM_POINTS, 3), dtype=jnp.float32)

    bbox, scores = lidar_transformer_forward(x, prep)
    jax.block_until_ready((bbox, scores))

    assert bbox.shape == (1, NUM_PROPOSALS, 4)
    assert scores.shape == (1, NUM_PROPOSALS, NUM_CLASSES)
    assert bool(jnp.all(jnp.isfinite(bbox))) and bool(jnp.all(jnp.isfinite(scores)))
    print("KERNEL_OK")
</pallas_src>

<mosaic_0001>
module attributes {stable_mosaic.version = 11 : i64} {
  func.func @lidar_fused_kernel(%arg0: memref<64x3xf32, #tpu.memory_space<vmem>>, %arg1: memref<1x5888xf32, #tpu.memory_space<vmem>>, %arg2: memref<3x64xf32, #tpu.memory_space<vmem>>, %arg3: memref<64x128xf32, #tpu.memory_space<vmem>>, %arg4: memref<128x1024xbf16, #tpu.memory_space<vmem>>, %arg5: memref<1024x512xbf16, #tpu.memory_space<any>>, %arg6: memref<512x256xbf16, #tpu.memory_space<any>>, %arg7: memref<256x128xf32, #tpu.memory_space<vmem>>, %arg8: memref<3x64xf32, #tpu.memory_space<vmem>>, %arg9: memref<64x128xf32, #tpu.memory_space<vmem>>, %arg10: memref<128x32xf32, #tpu.memory_space<vmem>>, %arg11: memref<32x32xf32, #tpu.memory_space<vmem>>, %arg12: memref<2x32x96xf32, #tpu.memory_space<vmem>>, %arg13: memref<2x32x32xf32, #tpu.memory_space<vmem>>, %arg14: memref<2x32x64xf32, #tpu.memory_space<vmem>>, %arg15: memref<2x64x32xf32, #tpu.memory_space<vmem>>, %arg16: memref<32x256xf32, #tpu.memory_space<vmem>>, %arg17: memref<256x128xf32, #tpu.memory_space<vmem>>, %arg18: memref<128x32xf32, #tpu.memory_space<vmem>>, %arg19: memref<1x32xf32, #tpu.memory_space<vmem>>, %arg20: memref<1024x512xbf16, #tpu.memory_space<vmem>>, %arg21: memref<512x256xbf16, #tpu.memory_space<vmem>>, %arg22: memref<2x!tpu.dma_semaphore, #tpu.memory_space<semaphore_mem>>) attributes {dimension_semantics = [], scalar_prefetch = 0 : i64, scratch_operands = 3 : i64, tpu.core_type = #tpu.core_type<tc>} {
    %c0_i32 = arith.constant 0 : i32
    %0 = tpu.memref_slice %arg22[%c0_i32] : memref<2x!tpu.dma_semaphore, #tpu.memory_space<semaphore_mem>> -> memref<1x!tpu.dma_semaphore, #tpu.memory_space<semaphore_mem>>
    %1 = tpu.memref_squeeze %0 : memref<1x!tpu.dma_semaphore, #tpu.memory_space<semaphore_mem>> -> memref<!tpu.dma_semaphore, #tpu.memory_space<semaphore_mem>>
    tpu.enqueue_dma source(%arg5 : memref<1024x512xbf16, #tpu.memory_space<any>>) target(%arg20 : memref<1024x512xbf16, #tpu.memory_space<vmem>>) target_semaphore(%1 : memref<!tpu.dma_semaphore, #tpu.memory_space<semaphore_mem>>)
    %c1_i32 = arith.constant 1 : i32
    %2 = tpu.memref_slice %arg22[%c1_i32] : memref<2x!tpu.dma_semaphore, #tpu.memory_space<semaphore_mem>> -> memref<1x!tpu.dma_semaphore, #tpu.memory_space<semaphore_mem>>
    %3 = tpu.memref_squeeze %2 : memref<1x!tpu.dma_semaphore, #tpu.memory_space<semaphore_mem>> -> memref<!tpu.dma_semaphore, #tpu.memory_space<semaphore_mem>>
    tpu.enqueue_dma source(%arg6 : memref<512x256xbf16, #tpu.memory_space<any>>) target(%arg21 : memref<512x256xbf16, #tpu.memory_space<vmem>>) target_semaphore(%3 : memref<!tpu.dma_semaphore, #tpu.memory_space<semaphore_mem>>)
    %c0 = arith.constant 0 : index
    %c0_0 = arith.constant 0 : index
    %4 = vector.load %arg0[%c0, %c0_0] : memref<64x3xf32, #tpu.memory_space<vmem>>, vector<64x3xf32>
    %c0_1 = arith.constant 0 : index
    %c0_2 = arith.constant 0 : index
    %5 = vector.load %arg2[%c0_1, %c0_2] : memref<3x64xf32, #tpu.memory_space<vmem>>, vector<3x64xf32>
    %cst = arith.constant dense<0.000000e+00> : vector<64x64xf32>
    %6 = tpu.matmul %4, %5, %cst {dimension_numbers = #tpu.dot_dimension_numbers<[1], [0], [0], [1], [0, 0, 1, 1], [], []>} : vector<64x3xf32>, vector<3x64xf32>, vector<64x64xf32> -> vector<64x64xf32>
    %c0_3 = arith.constant 0 : index
    %c0_4 = arith.constant 0 : index
    %7 = vector.load %arg1[%c0_3, %c0_4] : memref<1x5888xf32, #tpu.memory_space<vmem>>, vector<1x64xf32>
    %8 = vector.broadcast %7 : vector<1x64xf32> to vector<64x64xf32>
    %9 = arith.addf %6, %8 : vector<64x64xf32>
    %cst_5 = arith.constant 0.000000e+00 : f32
    %10 = vector.broadcast %cst_5 : f32 to vector<64x64xf32>
    %11 = arith.maximumf %9, %10 : vector<64x64xf32>
    %c0_6 = arith.constant 0 : index
    %c0_7 = arith.constant 0 : index
    %12 = vector.load %arg3[%c0_6, %c0_7] : memref<64x128xf32, #tpu.memory_space<vmem>>, vector<64x128xf32>
    %cst_8 = arith.constant dense<0.000000e+00> : vector<64x128xf32>
    %13 = tpu.matmul %11, %12, %cst_8 {dimension_numbers = #tpu.dot_dimension_numbers<[1], [0], [0], [1], [0, 0, 1, 1], [], []>} : vector<64x64xf32>, vector<64x128xf32>, vector<64x128xf32> -> vector<64x128xf32>
    %c0_9 = arith.constant 0 : index
    %c128 = arith.constant 128 : index
    %14 = vector.load %arg1[%c0_9, %c128] : memref<1x5888xf32, #tpu.memory_space<vmem>>, vector<1x128xf32>
    %15 = vector.broadcast %14 : vector<1x128xf32> to vector<64x128xf32>
    %16 = arith.addf %13, %15 : vector<64x128xf32>
    %cst_10 = arith.constant 0.000000e+00 : f32
    %17 = vector.broadcast %cst_10 : f32 to vector<64x128xf32>
    %18 = arith.maximumf %16, %17 : vector<64x128xf32>
    %19 = arith.truncf %18 : vector<64x128xf32> to vector<64x128xbf16>
    %c0_11 = arith.constant 0 : index
    %c0_12 = arith.constant 0 : index
    %20 = vector.load %arg4[%c0_11, %c0_12] : memref<128x1024xbf16, #tpu.memory_space<vmem>>, vector<128x1024xbf16>
    %cst_13 = arith.constant dense<0.000000e+00> : vector<64x1024xf32>
    %21 = tpu.matmul %19, %20, %cst_13 {dimension_numbers = #tpu.dot_dimension_numbers<[1], [0], [0], [1], [0, 0, 1, 1], [], []>} : vector<64x128xbf16>, vector<128x1024xbf16>, vector<64x1024xf32> -> vector<64x1024xf32>
    %c0_14 = arith.constant 0 : index
    %c256 = arith.constant 256 : index
    %22 = vector.load %arg1[%c0_14, %c256] : memref<1x5888xf32, #tpu.memory_space<vmem>>, vector<1x1024xf32>
    %23 = vector.broadcast %22 : vector<1x1024xf32> to vector<64x1024xf32>
    %24 = arith.addf %21, %23 : vector<64x1024xf32>
    %cst_15 = arith.constant dense<0xFF800000> : vector<1024xf32>
    %25 = vector.multi_reduction <maximumf>, %24, %cst_15 [0] : vector<64x1024xf32> to vector<1024xf32>
    %26 = vector.shape_cast %25 : vector<1024xf32> to vector<1x1024xf32>
    %cst_16 = arith.constant 0.000000e+00 : f32
    %27 = vector.broadcast %cst_16 : f32 to vector<1x1024xf32>
    %28 = arith.maximumf %26, %27 : vector<1x1024xf32>
    %c0_i32_17 = arith.constant 0 : i32
    %29 = tpu.memref_slice %arg22[%c0_i32_17] : memref<2x!tpu.dma_semaphore, #tpu.memory_space<semaphore_mem>> -> memref<1x!tpu.dma_semaphore, #tpu.memory_space<semaphore_mem>>
    %30 = tpu.memref_squeeze %29 : memref<1x!tpu.dma_semaphore, #tpu.memory_space<semaphore_mem>> -> memref<!tpu.dma_semaphore, #tpu.memory_space<semaphore_mem>>
    tpu.wait_dma2 semaphore(%30 : memref<!tpu.dma_semaphore, #tpu.memory_space<semaphore_mem>>) src(%arg5 : memref<1024x512xbf16, #tpu.memory_space<any>>) dst(%arg20 : memref<1024x512xbf16, #tpu.memory_space<vmem>>)
    %31 = arith.truncf %28 : vector<1x1024xf32> to vector<1x1024xbf16>
    %c0_18 = arith.constant 0 : index
    %c0_19 = arith.constant 0 : index
    %32 = vector.load %arg20[%c0_18, %c0_19] : memref<1024x512xbf16, #tpu.memory_space<vmem>>, vector<1024x512xbf16>
    %cst_20 = arith.constant dense<0.000000e+00> : vector<1x512xf32>
    %33 = tpu.matmul %31, %32, %cst_20 {dimension_numbers = #tpu.dot_dimension_numbers<[1], [0], [0], [1], [0, 0, 1, 1], [], []>} : vector<1x1024xbf16>, vector<1024x512xbf16>, vector<1x512xf32> -> vector<1x512xf32>
    %c0_21 = arith.constant 0 : index
    %c1280 = arith.constant 1280 : index
    %34 = vector.load %arg1[%c0_21, %c1280] : memref<1x5888xf32, #tpu.memory_space<vmem>>, vector<1x512xf32>
    %35 = arith.addf %33, %34 : vector<1x512xf32>
    %cst_22 = arith.constant 0.000000e+00 : f32
    %36 = vector.broadcast %cst_22 : f32 to vector<1x512xf32>
    %37 = arith.maximumf %35, %36 : vector<1x512xf32>
    %c1_i32_23 = arith.constant 1 : i32
    %38 = tpu.memref_slice %arg22[%c1_i32_23] : memref<2x!tpu.dma_semaphore, #tpu.memory_space<semaphore_mem>> -> memref<1x!tpu.dma_semaphore, #tpu.memory_space<semaphore_mem>>
    %39 = tpu.memref_squeeze %38 : memref<1x!tpu.dma_semaphore, #tpu.memory_space<semaphore_mem>> -> memref<!tpu.dma_semaphore, #tpu.memory_space<semaphore_mem>>
    tpu.wait_dma2 semaphore(%39 : memref<!tpu.dma_semaphore, #tpu.memory_space<semaphore_mem>>) src(%arg6 : memref<512x256xbf16, #tpu.memory_space<any>>) dst(%arg21 : memref<512x256xbf16, #tpu.memory_space<vmem>>)
    %40 = arith.truncf %37 : vector<1x512xf32> to vector<1x512xbf16>
    %c0_24 = arith.constant 0 : index
    %c0_25 = arith.constant 0 : index
    %41 = vector.load %arg21[%c0_24, %c0_25] : memref<512x256xbf16, #tpu.memory_space<vmem>>, vector<512x256xbf16>
    %cst_26 = arith.constant dense<0.000000e+00> : vector<1x256xf32>
    %42 = tpu.matmul %40, %41, %cst_26 {dimension_numbers = #tpu.dot_dimension_numbers<[1], [0], [0], [1], [0, 0, 1, 1], [], []>} : vector<1x512xbf16>, vector<512x256xbf16>, vector<1x256xf32> -> vector<1x256xf32>
    %c0_27 = arith.constant 0 : index
    %c1792 = arith.constant 1792 : index
    %43 = vector.load %arg1[%c0_27, %c1792] : memref<1x5888xf32, #tpu.memory_space<vmem>>, vector<1x256xf32>
    %44 = arith.addf %42, %43 : vector<1x256xf32>
    %cst_28 = arith.constant 0.000000e+00 : f32
    %45 = vector.broadcast %cst_28 : f32 to vector<1x256xf32>
    %46 = arith.maximumf %44, %45 : vector<1x256xf32>
    %c0_29 = arith.constant 0 : index
    %c0_30 = arith.constant 0 : index
    %47 = vector.load %arg7[%c0_29, %c0_30] : memref<256x128xf32, #tpu.memory_space<vmem>>, vector<256x128xf32>
    %cst_31 = arith.constant dense<0.000000e+00> : vector<1x128xf32>
    %48 = tpu.matmul %46, %47, %cst_31 {dimension_numbers = #tpu.dot_dimension_numbers<[1], [0], [0], [1], [0, 0, 1, 1], [], []>} : vector<1x256xf32>, vector<256x128xf32>, vector<1x128xf32> -> vector<1x128xf32>
    %c0_32 = arith.constant 0 : index
    %c2048 = arith.constant 2048 : index
    %49 = vector.load %arg1[%c0_32, %c2048] : memref<1x5888xf32, #tpu.memory_space<vmem>>, vector<1x128xf32>
    %50 = arith.addf %48, %49 : vector<1x128xf32>
    %51 = vector.extract_strided_slice %4 {offsets = [0, 0], sizes = [64, 1], strides = [1, 1]} : vector<64x3xf32> to vector<64x1xf32>
    %52 = vector.extract_strided_slice %50 {offsets = [0, 0], sizes = [1, 3], strides = [1, 1]} : vector<1x128xf32> to vector<1x3xf32>
    %53 = vector.broadcast %51 : vector<64x1xf32> to vector<64x3xf32>
    %54 = vector.broadcast %52 : vector<1x3xf32> to vector<64x3xf32>
    %55 = arith.mulf %53, %54 : vector<64x3xf32>
    %56 = vector.extract_strided_slice %4 {offsets = [0, 1], sizes = [64, 1], strides = [1, 1]} : vector<64x3xf32> to vector<64x1xf32>
    %57 = vector.extract_strided_slice %50 {offsets = [0, 3], sizes = [1, 3], strides = [1, 1]} : vector<1x128xf32> to vector<1x3xf32>
    %58 = vector.broadcast %56 : vector<64x1xf32> to vector<64x3xf32>
    %59 = vector.broadcast %57 : vector<1x3xf32> to vector<64x3xf32>
    %60 = arith.mulf %58, %59 : vector<64x3xf32>
    %61 = arith.addf %55, %60 : vector<64x3xf32>
    %62 = vector.extract_strided_slice %4 {offsets = [0, 2], sizes = [64, 1], strides = [1, 1]} : vector<64x3xf32> to vector<64x1xf32>
    %63 = vector.extract_strided_slice %50 {offsets = [0, 6], sizes = [1, 3], strides = [1, 1]} : vector<1x128xf32> to vector<1x3xf32>
    %64 = vector.broadcast %62 : vector<64x1xf32> to vector<64x3xf32>
    %65 = vector.broadcast %63 : vector<1x3xf32> to vector<64x3xf32>
    %66 = arith.mulf %64, %65 : vector<64x3xf32>
    %67 = arith.addf %61, %66 : vector<64x3xf32>
    %c0_33 = arith.constant 0 : index
    %c0_34 = arith.constant 0 : index
    %68 = vector.load %arg8[%c0_33, %c0_34] : memref<3x64xf32, #tpu.memory_space<vmem>>, vector<3x64xf32>
    %cst_35 = arith.constant dense<0.000000e+00> : vector<64x64xf32>
    %69 = tpu.matmul %67, %68, %cst_35 {dimension_numbers = #tpu.dot_dimension_numbers<[1], [0], [0], [1], [0, 0, 1, 1], [], []>} : vector<64x3xf32>, vector<3x64xf32>, vector<64x64xf32> -> vector<64x64xf32>
    %c0_36 = arith.constant 0 : index
    %c2176 = arith.constant 2176 : index
    %70 = vector.load %arg1[%c0_36, %c2176] : memref<1x5888xf32, #tpu.memory_space<vmem>>, vector<1x64xf32>
    %71 = vector.broadcast %70 : vector<1x64xf32> to vector<64x64xf32>
    %72 = arith.addf %69, %71 : vector<64x64xf32>
    %cst_37 = arith.constant dense<0.000000e+00> : vector<64xf32>
    %73 = vector.multi_reduction <add>, %72, %cst_37 [0] : vector<64x64xf32> to vector<64xf32>
    %74 = vector.shape_cast %73 : vector<64xf32> to vector<1x64xf32>
    %cst_38 = arith.constant 6.400000e+01 : f32
    %75 = vector.broadcast %cst_38 : f32 to vector<1x64xf32>
    %76 = arith.divf %74, %75 : vector<1x64xf32>
    %77 = vector.broadcast %76 : vector<1x64xf32> to vector<64x64xf32>
    %78 = arith.subf %72, %77 : vector<64x64xf32>
    %79 = arith.mulf %78, %78 : vector<64x64xf32>
    %cst_39 = arith.constant dense<0.000000e+00> : vector<64xf32>
    %80 = vector.multi_reduction <add>, %79, %cst_39 [0] : vector<64x64xf32> to vector<64xf32>
    %81 = vector.shape_cast %80 : vector<64xf32> to vector<1x64xf32>
    %cst_40 = arith.constant 6.400000e+01 : f32
    %82 = vector.broadcast %cst_40 : f32 to vector<1x64xf32>
    %83 = arith.divf %81, %82 : vector<1x64xf32>
    %84 = vector.broadcast %76 : vector<1x64xf32> to vector<64x64xf32>
    %85 = arith.subf %72, %84 : vector<64x64xf32>
    %cst_41 = arith.constant 9.99999974E-6 : f32
    %86 = vector.broadcast %cst_41 : f32 to vector<1x64xf32>
    %87 = arith.addf %83, %86 : vector<1x64xf32>
    %88 = math.rsqrt %87 : vector<1x64xf32>
    %89 = vector.broadcast %88 : vector<1x64xf32> to vector<64x64xf32>
    %90 = arith.mulf %85, %89 : vector<64x64xf32>
    %c0_42 = arith.constant 0 : index
    %c2304 = arith.constant 2304 : index
    %91 = vector.load %arg1[%c0_42, %c2304] : memref<1x5888xf32, #tpu.memory_space<vmem>>, vector<1x64xf32>
    %92 = vector.broadcast %91 : vector<1x64xf32> to vector<64x64xf32>
    %93 = arith.mulf %90, %92 : vector<64x64xf32>
    %c0_43 = arith.constant 0 : index
    %c2432 = arith.constant 2432 : index
    %94 = vector.load %arg1[%c0_43, %c2432] : memref<1x5888xf32, #tpu.memory_space<vmem>>, vector<1x64xf32>
    %95 = vector.broadcast %94 : vector<1x64xf32> to vector<64x64xf32>
    %96 = arith.addf %93, %95 : vector<64x64xf32>
    %cst_44 = arith.constant 0.000000e+00 : f32
    %97 = vector.broadcast %cst_44 : f32 to vector<64x64xf32>
    %98 = arith.maximumf %96, %97 : vector<64x64xf32>
    %c0_45 = arith.constant 0 : index
    %c0_46 = arith.constant 0 : index
    %99 = vector.load %arg9[%c0_45, %c0_46] : memref<64x128xf32, #tpu.memory_space<vmem>>, vector<64x128xf32>
    %cst_47 = arith.constant dense<0.000000e+00> : vector<64x128xf32>
    %100 = tpu.matmul %98, %99, %cst_47 {dimension_numbers = #tpu.dot_dimension_numbers<[1], [0], [0], [1], [0, 0, 1, 1], [], []>} : vector<64x64xf32>, vector<64x128xf32>, vector<64x128xf32> -> vector<64x128xf32>
    %c0_48 = arith.constant 0 : index
    %c2560 = arith.constant 2560 : index
    %101 = vector.load %arg1[%c0_48, %c2560] : memref<1x5888xf32, #tpu.memory_space<vmem>>, vector<1x128xf32>
    %102 = vector.broadcast %101 : vector<1x128xf32> to vector<64x128xf32>
    %103 = arith.addf %100, %102 : vector<64x128xf32>
    %cst_49 = arith.constant dense<0.000000e+00> : vector<128xf32>
    %104 = vector.multi_reduction <add>, %103, %cst_49 [0] : vector<64x128xf32> to vector<128xf32>
    %105 = vector.shape_cast %104 : vector<128xf32> to vector<1x128xf32>
    %cst_50 = arith.constant 6.400000e+01 : f32
    %106 = vector.broadcast %cst_50 : f32 to vector<1x128xf32>
    %107 = arith.divf %105, %106 : vector<1x128xf32>
    %108 = vector.broadcast %107 : vector<1x128xf32> to vector<64x128xf32>
    %109 = arith.subf %103, %108 : vector<64x128xf32>
    %110 = arith.mulf %109, %109 : vector<64x128xf32>
    %cst_51 = arith.constant dense<0.000000e+00> : vector<128xf32>
    %111 = vector.multi_reduction <add>, %110, %cst_51 [0] : vector<64x128xf32> to vector<128xf32>
    %112 = vector.shape_cast %111 : vector<128xf32> to vector<1x128xf32>
    %cst_52 = arith.constant 6.400000e+01 : f32
    %113 = vector.broadcast %cst_52 : f32 to vector<1x128xf32>
    %114 = arith.divf %112, %113 : vector<1x128xf32>
    %115 = vector.broadcast %107 : vector<1x128xf32> to vector<64x128xf32>
    %116 = arith.subf %103, %115 : vector<64x128xf32>
    %cst_53 = arith.constant 9.99999974E-6 : f32
    %117 = vector.broadcast %cst_53 : f32 to vector<1x128xf32>
    %118 = arith.addf %114, %117 : vector<1x128xf32>
    %119 = math.rsqrt %118 : vector<1x128xf32>
    %120 = vector.broadcast %119 : vector<1x128xf32> to vector<64x128xf32>
    %121 = arith.mulf %116, %120 : vector<64x128xf32>
    %c0_54 = arith.constant 0 : index
    %c2688 = arith.constant 2688 : index
    %122 = vector.load %arg1[%c0_54, %c2688] : memref<1x5888xf32, #tpu.memory_space<vmem>>, vector<1x128xf32>
    %123 = vector.broadcast %122 : vector<1x128xf32> to vector<64x128xf32>
    %124 = arith.mulf %121, %123 : vector<64x128xf32>
    %c0_55 = arith.constant 0 : index
    %c2816 = arith.constant 2816 : index
    %125 = vector.load %arg1[%c0_55, %c2816] : memref<1x5888xf32, #tpu.memory_space<vmem>>, vector<1x128xf32>
    %126 = vector.broadcast %125 : vector<1x128xf32> to vector<64x128xf32>
    %127 = arith.addf %124, %126 : vector<64x128xf32>
    %cst_56 = arith.constant 0.000000e+00 : f32
    %128 = vector.broadcast %cst_56 : f32 to vector<64x128xf32>
    %129 = arith.maximumf %127, %128 : vector<64x128xf32>
    %c0_57 = arith.constant 0 : index
    %c0_58 = arith.constant 0 : index
    %130 = vector.load %arg10[%c0_57, %c0_58] : memref<128x32xf32, #tpu.memory_space<vmem>>, vector<128x32xf32>
    %cst_59 = arith.constant dense<0.000000e+00> : vector<64x32xf32>
    %131 = tpu.matmul %129, %130, %cst_59 {dimension_numbers = #tpu.dot_dimension_numbers<[1], [0], [0], [1], [0, 0, 1, 1], [], []>} : vector<64x128xf32>, vector<128x32xf32>, vector<64x32xf32> -> vector<64x32xf32>
    %c0_60 = arith.constant 0 : index
    %c2944 = arith.constant 2944 : index
    %132 = vector.load %arg1[%c0_60, %c2944] : memref<1x5888xf32, #tpu.memory_space<vmem>>, vector<1x32xf32>
    %133 = vector.broadcast %132 : vector<1x32xf32> to vector<64x32xf32>
    %134 = arith.addf %131, %133 : vector<64x32xf32>
    %cst_61 = arith.constant dense<0.000000e+00> : vector<32xf32>
    %135 = vector.multi_reduction <add>, %134, %cst_61 [0] : vector<64x32xf32> to vector<32xf32>
    %136 = vector.shape_cast %135 : vector<32xf32> to vector<1x32xf32>
    %cst_62 = arith.constant 6.400000e+01 : f32
    %137 = vector.broadcast %cst_62 : f32 to vector<1x32xf32>
    %138 = arith.divf %136, %137 : vector<1x32xf32>
    %139 = vector.broadcast %138 : vector<1x32xf32> to vector<64x32xf32>
    %140 = arith.subf %134, %139 : vector<64x32xf32>
    %141 = arith.mulf %140, %140 : vector<64x32xf32>
    %cst_63 = arith.constant dense<0.000000e+00> : vector<32xf32>
    %142 = vector.multi_reduction <add>, %141, %cst_63 [0] : vector<64x32xf32> to vector<32xf32>
    %143 = vector.shape_cast %142 : vector<32xf32> to vector<1x32xf32>
    %cst_64 = arith.constant 6.400000e+01 : f32
    %144 = vector.broadcast %cst_64 : f32 to vector<1x32xf32>
    %145 = arith.divf %143, %144 : vector<1x32xf32>
    %146 = vector.broadcast %138 : vector<1x32xf32> to vector<64x32xf32>
    %147 = arith.subf %134, %146 : vector<64x32xf32>
    %cst_65 = arith.constant 9.99999974E-6 : f32
    %148 = vector.broadcast %cst_65 : f32 to vector<1x32xf32>
    %149 = arith.addf %145, %148 : vector<1x32xf32>
    %150 = math.rsqrt %149 : vector<1x32xf32>
    %151 = vector.broadcast %150 : vector<1x32xf32> to vector<64x32xf32>
    %152 = arith.mulf %147, %151 : vector<64x32xf32>
    %c0_66 = arith.constant 0 : index
    %c3072 = arith.constant 3072 : index
    %153 = vector.load %arg1[%c0_66, %c3072] : memref<1x5888xf32, #tpu.memory_space<vmem>>, vector<1x32xf32>
    %154 = vector.broadcast %153 : vector<1x32xf32> to vector<64x32xf32>
    %155 = arith.mulf %152, %154 : vector<64x32xf32>
    %c0_67 = arith.constant 0 : index
    %c3200 = arith.constant 3200 : index
    %156 = vector.load %arg1[%c0_67, %c3200] : memref<1x5888xf32, #tpu.memory_space<vmem>>, vector<1x32xf32>
    %157 = vector.broadcast %156 : vector<1x32xf32> to vector<64x32xf32>
    %158 = arith.addf %155, %157 : vector<64x32xf32>
    %cst_68 = arith.constant 0.000000e+00 : f32
    %159 = vector.broadcast %cst_68 : f32 to vector<64x32xf32>
    %160 = arith.maximumf %158, %159 : vector<64x32xf32>
    %cst_69 = arith.constant dense<0xFF800000> : vector<32xf32>
    %161 = vector.multi_reduction <maximumf>, %160, %cst_69 [0] : vector<64x32xf32> to vector<32xf32>
    %162 = vector.shape_cast %161 : vector<32xf32> to vector<1x32xf32>
    %cst_70 = arith.constant 5.65685415 : f32
    %163 = vector.broadcast %cst_70 : f32 to vector<1x32xf32>
    %164 = arith.mulf %162, %163 : vector<1x32xf32>
    %c0_71 = arith.constant 0 : index
    %c0_72 = arith.constant 0 : index
    %165 = vector.load %arg11[%c0_71, %c0_72] : memref<32x32xf32, #tpu.memory_space<vmem>>, vector<32x32xf32>
    %166 = vector.broadcast %164 : vector<1x32xf32> to vector<32x32xf32>
    %167 = arith.addf %166, %165 : vector<32x32xf32>
    %c0_73 = arith.constant 0 : index
    %c0_74 = arith.constant 0 : index
    %c0_75 = arith.constant 0 : index
    %168 = vector.load %arg12[%c0_73, %c0_74, %c0_75] : memref<2x32x96xf32, #tpu.memory_space<vmem>>, vector<1x32x96xf32>
    %169 = vector.shape_cast %168 : vector<1x32x96xf32> to vector<32x96xf32>
    %cst_76 = arith.constant dense<0.000000e+00> : vector<32x96xf32>
    %170 = tpu.matmul %167, %169, %cst_76 {dimension_numbers = #tpu.dot_dimension_numbers<[1], [0], [0], [1], [0, 0, 1, 1], [], []>} : vector<32x32xf32>, vector<32x96xf32>, vector<32x96xf32> -> vector<32x96xf32>
    %c0_77 = arith.constant 0 : index
    %c3328 = arith.constant 3328 : index
    %171 = vector.load %arg1[%c0_77, %c3328] : memref<1x5888xf32, #tpu.memory_space<vmem>>, vector<1x96xf32>
    %172 = vector.broadcast %171 : vector<1x96xf32> to vector<32x96xf32>
    %173 = arith.addf %170, %172 : vector<32x96xf32>
    %174 = vector.extract_strided_slice %173 {offsets = [0, 0], sizes = [32, 8], strides = [1, 1]} : vector<32x96xf32> to vector<32x8xf32>
    %175 = vector.extract_strided_slice %173 {offsets = [0, 32], sizes = [32, 8], strides = [1, 1]} : vector<32x96xf32> to vector<32x8xf32>
    %176 = vector.extract_strided_slice %173 {offsets = [0, 64], sizes = [32, 8], strides = [1, 1]} : vector<32x96xf32> to vector<32x8xf32>
    %cst_78 = arith.constant dense<0.000000e+00> : vector<32x32xf32>
    %177 = tpu.matmul %174, %175, %cst_78 {dimension_numbers = #tpu.dot_dimension_numbers<[1], [1], [0], [0], [0, 0, 1, 0], [], []>} : vector<32x8xf32>, vector<32x8xf32>, vector<32x32xf32> -> vector<32x32xf32>
    %cst_79 = arith.constant 0.353553385 : f32
    %178 = vector.broadcast %cst_79 : f32 to vector<32x32xf32>
    %179 = arith.mulf %177, %178 : vector<32x32xf32>
    %cst_80 = arith.constant dense<0xFF800000> : vector<32xf32>
    %180 = vector.multi_reduction <maximumf>, %179, %cst_80 [1] : vector<32x32xf32> to vector<32xf32>
    %181 = vector.shape_cast %180 : vector<32xf32> to vector<32x1xf32>
    %182 = vector.broadcast %181 : vector<32x1xf32> to vector<32x32xf32>
    %183 = arith.subf %179, %182 : vector<32x32xf32>
    %184 = math.exp %183 : vector<32x32xf32>
    %cst_81 = arith.constant dense<0.000000e+00> : vector<32xf32>
    %185 = vector.multi_reduction <add>, %184, %cst_81 [1] : vector<32x32xf32> to vector<32xf32>
    %186 = vector.shape_cast %185 : vector<32xf32> to vector<32x1xf32>
    %187 = tpu.reciprocal %186 {approx = true} : vector<32x1xf32> -> vector<32x1xf32>
    %188 = vector.broadcast %187 : vector<32x1xf32> to vector<32x32xf32>
    %189 = arith.mulf %184, %188 : vector<32x32xf32>
    %cst_82 = arith.constant dense<0.000000e+00> : vector<32x8xf32>
    %190 = tpu.matmul %189, %176, %cst_82 {dimension_numbers = #tpu.dot_dimension_numbers<[1], [0], [0], [1], [0, 0, 1, 1], [], []>} : vector<32x32xf32>, vector<32x8xf32>, vector<32x8xf32> -> vector<32x8xf32>
    %191 = vector.extract_strided_slice %173 {offsets = [0, 8], sizes = [32, 8], strides = [1, 1]} : vector<32x96xf32> to vector<32x8xf32>
    %192 = vector.extract_strided_slice %173 {offsets = [0, 40], sizes = [32, 8], strides = [1, 1]} : vector<32x96xf32> to vector<32x8xf32>
    %193 = vector.extract_strided_slice %173 {offsets = [0, 72], sizes = [32, 8], strides = [1, 1]} : vector<32x96xf32> to vector<32x8xf32>
    %cst_83 = arith.constant dense<0.000000e+00> : vector<32x32xf32>
    %194 = tpu.matmul %191, %192, %cst_83 {dimension_numbers = #tpu.dot_dimension_numbers<[1], [1], [0], [0], [0, 0, 1, 0], [], []>} : vector<32x8xf32>, vector<32x8xf32>, vector<32x32xf32> -> vector<32x32xf32>
    %cst_84 = arith.constant 0.353553385 : f32
    %195 = vector.broadcast %cst_84 : f32 to vector<32x32xf32>
    %196 = arith.mulf %194, %195 : vector<32x32xf32>
    %cst_85 = arith.constant dense<0xFF800000> : vector<32xf32>
    %197 = vector.multi_reduction <maximumf>, %196, %cst_85 [1] : vector<32x32xf32> to vector<32xf32>
    %198 = vector.shape_cast %197 : vector<32xf32> to vector<32x1xf32>
    %199 = vector.broadcast %198 : vector<32x1xf32> to vector<32x32xf32>
    %200 = arith.subf %196, %199 : vector<32x32xf32>
    %201 = math.exp %200 : vector<32x32xf32>
    %cst_86 = arith.constant dense<0.000000e+00> : vector<32xf32>
    %202 = vector.multi_reduction <add>, %201, %cst_86 [1] : vector<32x32xf32> to vector<32xf32>
    %203 = vector.shape_cast %202 : vector<32xf32> to vector<32x1xf32>
    %204 = tpu.reciprocal %203 {approx = true} : vector<32x1xf32> -> vector<32x1xf32>
    %205 = vector.broadcast %204 : vector<32x1xf32> to vector<32x32xf32>
    %206 = arith.mulf %201, %205 : vector<32x32xf32>
    %cst_87 = arith.constant dense<0.000000e+00> : vector<32x8xf32>
    %207 = tpu.matmul %206, %193, %cst_87 {dimension_numbers = #tpu.dot_dimension_numbers<[1], [0], [0], [1], [0, 0, 1, 1], [], []>} : vector<32x32xf32>, vector<32x8xf32>, vector<32x8xf32> -> vector<32x8xf32>
    %208 = vector.extract_strided_slice %173 {offsets = [0, 16], sizes = [32, 8], strides = [1, 1]} : vector<32x96xf32> to vector<32x8xf32>
    %209 = vector.extract_strided_slice %173 {offsets = [0, 48], sizes = [32, 8], strides = [1, 1]} : vector<32x96xf32> to vector<32x8xf32>
    %210 = vector.extract_strided_slice %173 {offsets = [0, 80], sizes = [32, 8], strides = [1, 1]} : vector<32x96xf32> to vector<32x8xf32>
    %cst_88 = arith.constant dense<0.000000e+00> : vector<32x32xf32>
    %211 = tpu.matmul %208, %209, %cst_88 {dimension_numbers = #tpu.dot_dimension_numbers<[1], [1], [0], [0], [0, 0, 1, 0], [], []>} : vector<32x8xf32>, vector<32x8xf32>, vector<32x32xf32> -> vector<32x32xf32>
    %cst_89 = arith.constant 0.353553385 : f32
    %212 = vector.broadcast %cst_89 : f32 to vector<32x32xf32>
    %213 = arith.mulf %211, %212 : vector<32x32xf32>
    %cst_90 = arith.constant dense<0xFF800000> : vector<32xf32>
    %214 = vector.multi_reduction <maximumf>, %213, %cst_90 [1] : vector<32x32xf32> to vector<32xf32>
    %215 = vector.shape_cast %214 : vector<32xf32> to vector<32x1xf32>
    %216 = vector.broadcast %215 : vector<32x1xf32> to vector<32x32xf32>
    %217 = arith.subf %213, %216 : vector<32x32xf32>
    %218 = math.exp %217 : vector<32x32xf32>
    %cst_91 = arith.constant dense<0.000000e+00> : vector<32xf32>
    %219 = vector.multi_reduction <add>, %218, %cst_91 [1] : vector<32x32xf32> to vector<32xf32>
    %220 = vector.shape_cast %219 : vector<32xf32> to vector<32x1xf32>
    %221 = tpu.reciprocal %220 {approx = true} : vector<32x1xf32> -> vector<32x1xf32>
    %222 = vector.broadcast %221 : vector<32x1xf32> to vector<32x32xf32>
    %223 = arith.mulf %218, %222 : vector<32x32xf32>
    %cst_92 = arith.constant dense<0.000000e+00> : vector<32x8xf32>
    %224 = tpu.matmul %223, %210, %cst_92 {dimension_numbers = #tpu.dot_dimension_numbers<[1], [0], [0], [1], [0, 0, 1, 1], [], []>} : vector<32x32xf32>, vector<32x8xf32>, vector<32x8xf32> -> vector<32x8xf32>
    %225 = vector.extract_strided_slice %173 {offsets = [0, 24], sizes = [32, 8], strides = [1, 1]} : vector<32x96xf32> to vector<32x8xf32>
    %226 = vector.extract_strided_slice %173 {offsets = [0, 56], sizes = [32, 8], strides = [1, 1]} : vector<32x96xf32> to vector<32x8xf32>
    %227 = vector.extract_strided_slice %173 {offsets = [0, 88], sizes = [32, 8], strides = [1, 1]} : vector<32x96xf32> to vector<32x8xf32>
    %cst_93 = arith.constant dense<0.000000e+00> : vector<32x32xf32>
    %228 = tpu.matmul %225, %226, %cst_93 {dimension_numbers = #tpu.dot_dimension_numbers<[1], [1], [0], [0], [0, 0, 1, 0], [], []>} : vector<32x8xf32>, vector<32x8xf32>, vector<32x32xf32> -> vector<32x32xf32>
    %cst_94 = arith.constant 0.353553385 : f32
    %229 = vector.broadcast %cst_94 : f32 to vector<32x32xf32>
    %230 = arith.mulf %228, %229 : vector<32x32xf32>
    %cst_95 = arith.constant dense<0xFF800000> : vector<32xf32>
    %231 = vector.multi_reduction <maximumf>, %230, %cst_95 [1] : vector<32x32xf32> to vector<32xf32>
    %232 = vector.shape_cast %231 : vector<32xf32> to vector<32x1xf32>
    %233 = vector.broadcast %232 : vector<32x1xf32> to vector<32x32xf32>
    %234 = arith.subf %230, %233 : vector<32x32xf32>
    %235 = math.exp %234 : vector<32x32xf32>
    %cst_96 = arith.constant dense<0.000000e+00> : vector<32xf32>
    %236 = vector.multi_reduction <add>, %235, %cst_96 [1] : vector<32x32xf32> to vector<32xf32>
    %237 = vector.shape_cast %236 : vector<32xf32> to vector<32x1xf32>
    %238 = tpu.reciprocal %237 {approx = true} : vector<32x1xf32> -> vector<32x1xf32>
    %239 = vector.broadcast %238 : vector<32x1xf32> to vector<32x32xf32>
    %240 = arith.mulf %235, %239 : vector<32x32xf32>
    %cst_97 = arith.constant dense<0.000000e+00> : vector<32x8xf32>
    %241 = tpu.matmul %240, %227, %cst_97 {dimension_numbers = #tpu.dot_dimension_numbers<[1], [0], [0], [1], [0, 0, 1, 1], [], []>} : vector<32x32xf32>, vector<32x8xf32>, vector<32x8xf32> -> vector<32x8xf32>
    %242 = tpu.concatenate %190, %207, %224, %241 in 1 : vector<32x8xf32>, vector<32x8xf32>, vector<32x8xf32>, vector<32x8xf32> -> vector<32x32xf32>
    %c0_98 = arith.constant 0 : index
    %c0_99 = arith.constant 0 : index
    %c0_100 = arith.constant 0 : index
    %243 = vector.load %arg13[%c0_98, %c0_99, %c0_100] : memref<2x32x32xf32, #tpu.memory_space<vmem>>, vector<1x32x32xf32>
    %244 = vector.shape_cast %243 : vector<1x32x32xf32> to vector<32x32xf32>
    %cst_101 = arith.constant dense<0.000000e+00> : vector<32x32xf32>
    %245 = tpu.matmul %242, %244, %cst_101 {dimension_numbers = #tpu.dot_dimension_numbers<[1], [0], [0], [1], [0, 0, 1, 1], [], []>} : vector<32x32xf32>, vector<32x32xf32>, vector<32x32xf32> -> vector<32x32xf32>
    %c0_102 = arith.constant 0 : index
    %c3456 = arith.constant 3456 : index
    %246 = vector.load %arg1[%c0_102, %c3456] : memref<1x5888xf32, #tpu.memory_space<vmem>>, vector<1x32xf32>
    %247 = vector.broadcast %246 : vector<1x32xf32> to vector<32x32xf32>
    %248 = arith.addf %245, %247 : vector<32x32xf32>
    %249 = arith.addf %167, %248 : vector<32x32xf32>
    %c0_103 = arith.constant 0 : index
    %c3584 = arith.constant 3584 : index
    %250 = vector.load %arg1[%c0_103, %c3584] : memref<1x5888xf32, #tpu.memory_space<vmem>>, vector<1x32xf32>
    %c0_104 = arith.constant 0 : index
    %c3712 = arith.constant 3712 : index
    %251 = vector.load %arg1[%c0_104, %c3712] : memref<1x5888xf32, #tpu.memory_space<vmem>>, vector<1x32xf32>
    %cst_105 = arith.constant dense<0.000000e+00> : vector<32xf32>
    %252 = vector.multi_reduction <add>, %249, %cst_105 [1] : vector<32x32xf32> to vector<32xf32>
    %253 = vector.shape_cast %252 : vector<32xf32> to vector<32x1xf32>
    %cst_106 = arith.constant 3.200000e+01 : f32
    %254 = vector.broadcast %cst_106 : f32 to vector<32x1xf32>
    %255 = arith.divf %253, %254 : vector<32x1xf32>
    %256 = vector.broadcast %255 : vector<32x1xf32> to vector<32x32xf32>
    %257 = arith.subf %249, %256 : vector<32x32xf32>
    %258 = arith.mulf %257, %257 : vector<32x32xf32>
    %cst_107 = arith.constant dense<0.000000e+00> : vector<32xf32>
    %259 = vector.multi_reduction <add>, %258, %cst_107 [1] : vector<32x32xf32> to vector<32xf32>
    %260 = vector.shape_cast %259 : vector<32xf32> to vector<32x1xf32>
    %cst_108 = arith.constant 3.200000e+01 : f32
    %261 = vector.broadcast %cst_108 : f32 to vector<32x1xf32>
    %262 = arith.divf %260, %261 : vector<32x1xf32>
    %263 = vector.broadcast %255 : vector<32x1xf32> to vector<32x32xf32>
    %264 = arith.subf %249, %263 : vector<32x32xf32>
    %cst_109 = arith.constant 9.99999974E-6 : f32
    %265 = vector.broadcast %cst_109 : f32 to vector<32x1xf32>
    %266 = arith.addf %262, %265 : vector<32x1xf32>
    %267 = math.rsqrt %266 : vector<32x1xf32>
    %268 = vector.broadcast %267 : vector<32x1xf32> to vector<32x32xf32>
    %269 = arith.mulf %264, %268 : vector<32x32xf32>
    %270 = vector.broadcast %250 : vector<1x32xf32> to vector<32x32xf32>
    %271 = arith.mulf %269, %270 : vector<32x32xf32>
    %272 = vector.broadcast %251 : vector<1x32xf32> to vector<32x32xf32>
    %273 = arith.addf %271, %272 : vector<32x32xf32>
    %c0_110 = arith.constant 0 : index
    %c0_111 = arith.constant 0 : index
    %c0_112 = arith.constant 0 : index
    %274 = vector.load %arg14[%c0_110, %c0_111, %c0_112] : memref<2x32x64xf32, #tpu.memory_space<vmem>>, vector<1x32x64xf32>
    %275 = vector.shape_cast %274 : vector<1x32x64xf32> to vector<32x64xf32>
    %cst_113 = arith.constant dense<0.000000e+00> : vector<32x64xf32>
    %276 = tpu.matmul %273, %275, %cst_113 {dimension_numbers = #tpu.dot_dimension_numbers<[1], [0], [0], [1], [0, 0, 1, 1], [], []>} : vector<32x32xf32>, vector<32x64xf32>, vector<32x64xf32> -> vector<32x64xf32>
    %c0_114 = arith.constant 0 : index
    %c3840 = arith.constant 3840 : index
    %277 = vector.load %arg1[%c0_114, %c3840] : memref<1x5888xf32, #tpu.memory_space<vmem>>, vector<1x64xf32>
    %278 = vector.broadcast %277 : vector<1x64xf32> to vector<32x64xf32>
    %279 = arith.addf %276, %278 : vector<32x64xf32>
    %cst_115 = arith.constant 0.000000e+00 : f32
    %280 = vector.broadcast %cst_115 : f32 to vector<32x64xf32>
    %281 = arith.maximumf %279, %280 : vector<32x64xf32>
    %c0_116 = arith.constant 0 : index
    %c0_117 = arith.constant 0 : index
    %c0_118 = arith.constant 0 : index
    %282 = vector.load %arg15[%c0_116, %c0_117, %c0_118] : memref<2x64x32xf32, #tpu.memory_space<vmem>>, vector<1x64x32xf32>
    %283 = vector.shape_cast %282 : vector<1x64x32xf32> to vector<64x32xf32>
    %cst_119 = arith.constant dense<0.000000e+00> : vector<32x32xf32>
    %284 = tpu.matmul %281, %283, %cst_119 {dimension_numbers = #tpu.dot_dimension_numbers<[1], [0], [0], [1], [0, 0, 1, 1], [], []>} : vector<32x64xf32>, vector<64x32xf32>, vector<32x32xf32> -> vector<32x32xf32>
    %c0_120 = arith.constant 0 : index
    %c3968 = arith.constant 3968 : index
    %285 = vector.load %arg1[%c0_120, %c3968] : memref<1x5888xf32, #tpu.memory_space<vmem>>, vector<1x32xf32>
    %286 = vector.broadcast %285 : vector<1x32xf32> to vector<32x32xf32>
    %287 = arith.addf %284, %286 : vector<32x32xf32>
    %288 = arith.addf %273, %287 : vector<32x32xf32>
    %c0_121 = arith.constant 0 : index
    %c4096 = arith.constant 4096 : index
    %289 = vector.load %arg1[%c0_121, %c4096] : memref<1x5888xf32, #tpu.memory_space<vmem>>, vector<1x32xf32>
    %c0_122 = arith.constant 0 : index
    %c4224 = arith.constant 4224 : index
    %290 = vector.load %arg1[%c0_122, %c4224] : memref<1x5888xf32, #tpu.memory_space<vmem>>, vector<1x32xf32>
    %cst_123 = arith.constant dense<0.000000e+00> : vector<32xf32>
    %291 = vector.multi_reduction <add>, %288, %cst_123 [1] : vector<32x32xf32> to vector<32xf32>
    %292 = vector.shape_cast %291 : vector<32xf32> to vector<32x1xf32>
    %cst_124 = arith.constant 3.200000e+01 : f32
    %293 = vector.broadcast %cst_124 : f32 to vector<32x1xf32>
    %294 = arith.divf %292, %293 : vector<32x1xf32>
    %295 = vector.broadcast %294 : vector<32x1xf32> to vector<32x32xf32>
    %296 = arith.subf %288, %295 : vector<32x32xf32>
    %297 = arith.mulf %296, %296 : vector<32x32xf32>
    %cst_125 = arith.constant dense<0.000000e+00> : vector<32xf32>
    %298 = vector.multi_reduction <add>, %297, %cst_125 [1] : vector<32x32xf32> to vector<32xf32>
    %299 = vector.shape_cast %298 : vector<32xf32> to vector<32x1xf32>
    %cst_126 = arith.constant 3.200000e+01 : f32
    %300 = vector.broadcast %cst_126 : f32 to vector<32x1xf32>
    %301 = arith.divf %299, %300 : vector<32x1xf32>
    %302 = vector.broadcast %294 : vector<32x1xf32> to vector<32x32xf32>
    %303 = arith.subf %288, %302 : vector<32x32xf32>
    %cst_127 = arith.constant 9.99999974E-6 : f32
    %304 = vector.broadcast %cst_127 : f32 to vector<32x1xf32>
    %305 = arith.addf %301, %304 : vector<32x1xf32>
    %306 = math.rsqrt %305 : vector<32x1xf32>
    %307 = vector.broadcast %306 : vector<32x1xf32> to vector<32x32xf32>
    %308 = arith.mulf %303, %307 : vector<32x32xf32>
    %309 = vector.broadcast %289 : vector<1x32xf32> to vector<32x32xf32>
    %310 = arith.mulf %308, %309 : vector<32x32xf32>
    %311 = vector.broadcast %290 : vector<1x32xf32> to vector<32x32xf32>
    %312 = arith.addf %310, %311 : vector<32x32xf32>
    %c1 = arith.constant 1 : index
    %c0_128 = arith.constant 0 : index
    %c0_129 = arith.constant 0 : index
    %313 = vector.load %arg12[%c1, %c0_128, %c0_129] : memref<2x32x96xf32, #tpu.memory_space<vmem>>, vector<1x32x96xf32>
    %314 = vector.shape_cast %313 : vector<1x32x96xf32> to vector<32x96xf32>
    %cst_130 = arith.constant dense<0.000000e+00> : vector<32x96xf32>
    %315 = tpu.matmul %312, %314, %cst_130 {dimension_numbers = #tpu.dot_dimension_numbers<[1], [0], [0], [1], [0, 0, 1, 1], [], []>} : vector<32x32xf32>, vector<32x96xf32>, vector<32x96xf32> -> vector<32x96xf32>
    %c0_131 = arith.constant 0 : index
    %c4352 = arith.constant 4352 : index
    %316 = vector.load %arg1[%c0_131, %c4352] : memref<1x5888xf32, #tpu.memory_space<vmem>>, vector<1x96xf32>
    %317 = vector.broadcast %316 : vector<1x96xf32> to vector<32x96xf32>
    %318 = arith.addf %315, %317 : vector<32x96xf32>
    %319 = vector.extract_strided_slice %318 {offsets = [0, 0], sizes = [32, 8], strides = [1, 1]} : vector<32x96xf32> to vector<32x8xf32>
    %320 = vector.extract_strided_slice %318 {offsets = [0, 32], sizes = [32, 8], strides = [1, 1]} : vector<32x96xf32> to vector<32x8xf32>
    %321 = vector.extract_strided_slice %318 {offsets = [0, 64], sizes = [32, 8], strides = [1, 1]} : vector<32x96xf32> to vector<32x8xf32>
    %cst_132 = arith.constant dense<0.000000e+00> : vector<32x32xf32>
    %322 = tpu.matmul %319, %320, %cst_132 {dimension_numbers = #tpu.dot_dimension_numbers<[1], [1], [0], [0], [0, 0, 1, 0], [], []>} : vector<32x8xf32>, vector<32x8xf32>, vector<32x32xf32> -> vector<32x32xf32>
    %cst_133 = arith.constant 0.353553385 : f32
    %323 = vector.broadcast %cst_133 : f32 to vector<32x32xf32>
    %324 = arith.mulf %322, %323 : vector<32x32xf32>
    %cst_134 = arith.constant dense<0xFF800000> : vector<32xf32>
    %325 = vector.multi_reduction <maximumf>, %324, %cst_134 [1] : vector<32x32xf32> to vector<32xf32>
    %326 = vector.shape_cast %325 : vector<32xf32> to vector<32x1xf32>
    %327 = vector.broadcast %326 : vector<32x1xf32> to vector<32x32xf32>
    %328 = arith.subf %324, %327 : vector<32x32xf32>
    %329 = math.exp %328 : vector<32x32xf32>
    %cst_135 = arith.constant dense<0.000000e+00> : vector<32xf32>
    %330 = vector.multi_reduction <add>, %329, %cst_135 [1] : vector<32x32xf32> to vector<32xf32>
    %331 = vector.shape_cast %330 : vector<32xf32> to vector<32x1xf32>
    %332 = tpu.reciprocal %331 {approx = true} : vector<32x1xf32> -> vector<32x1xf32>
    %333 = vector.broadcast %332 : vector<32x1xf32> to vector<32x32xf32>
    %334 = arith.mulf %329, %333 : vector<32x32xf32>
    %cst_136 = arith.constant dense<0.000000e+00> : vector<32x8xf32>
    %335 = tpu.matmul %334, %321, %cst_136 {dimension_numbers = #tpu.dot_dimension_numbers<[1], [0], [0], [1], [0, 0, 1, 1], [], []>} : vector<32x32xf32>, vector<32x8xf32>, vector<32x8xf32> -> vector<32x8xf32>
    %336 = vector.extract_strided_slice %318 {offsets = [0, 8], sizes = [32, 8], strides = [1, 1]} : vector<32x96xf32> to vector<32x8xf32>
    %337 = vector.extract_strided_slice %318 {offsets = [0, 40], sizes = [32, 8], strides = [1, 1]} : vector<32x96xf32> to vector<32x8xf32>
    %338 = vector.extract_strided_slice %318 {offsets = [0, 72], sizes = [32, 8], strides = [1, 1]} : vector<32x96xf32> to vector<32x8xf32>
    %cst_137 = arith.constant dense<0.000000e+00> : vector<32x32xf32>
    %339 = tpu.matmul %336, %337, %cst_137 {dimension_numbers = #tpu.dot_dimension_numbers<[1], [1], [0], [0], [0, 0, 1, 0], [], []>} : vector<32x8xf32>, vector<32x8xf32>, vector<32x32xf32> -> vector<32x32xf32>
    %cst_138 = arith.constant 0.353553385 : f32
    %340 = vector.broadcast %cst_138 : f32 to vector<32x32xf32>
    %341 = arith.mulf %339, %340 : vector<32x32xf32>
    %cst_139 = arith.constant dense<0xFF800000> : vector<32xf32>
    %342 = vector.multi_reduction <maximumf>, %341, %cst_139 [1] : vector<32x32xf32> to vector<32xf32>
    %343 = vector.shape_cast %342 : vector<32xf32> to vector<32x1xf32>
    %344 = vector.broadcast %343 : vector<32x1xf32> to vector<32x32xf32>
    %345 = arith.subf %341, %344 : vector<32x32xf32>
    %346 = math.exp %345 : vector<32x32xf32>
    %cst_140 = arith.constant dense<0.000000e+00> : vector<32xf32>
    %347 = vector.multi_reduction <add>, %346, %cst_140 [1] : vector<32x32xf32> to vector<32xf32>
    %348 = vector.shape_cast %347 : vector<32xf32> to vector<32x1xf32>
    %349 = tpu.reciprocal %348 {approx = true} : vector<32x1xf32> -> vector<32x1xf32>
    %350 = vector.broadcast %349 : vector<32x1xf32> to vector<32x32xf32>
    %351 = arith.mulf %346, %350 : vector<32x32xf32>
    %cst_141 = arith.constant dense<0.000000e+00> : vector<32x8xf32>
    %352 = tpu.matmul %351, %338, %cst_141 {dimension_numbers = #tpu.dot_dimension_numbers<[1], [0], [0], [1], [0, 0, 1, 1], [], []>} : vector<32x32xf32>, vector<32x8xf32>, vector<32x8xf32> -> vector<32x8xf32>
    %353 = vector.extract_strided_slice %318 {offsets = [0, 16], sizes = [32, 8], strides = [1, 1]} : vector<32x96xf32> to vector<32x8xf32>
    %354 = vector.extract_strided_slice %318 {offsets = [0, 48], sizes = [32, 8], strides = [1, 1]} : vector<32x96xf32> to vector<32x8xf32>
    %355 = vector.extract_strided_slice %318 {offsets = [0, 80], sizes = [32, 8], strides = [1, 1]} : vector<32x96xf32> to vector<32x8xf32>
    %cst_142 = arith.constant dense<0.000000e+00> : vector<32x32xf32>
    %356 = tpu.matmul %353, %354, %cst_142 {dimension_numbers = #tpu.dot_dimension_numbers<[1], [1], [0], [0], [0, 0, 1, 0], [], []>} : vector<32x8xf32>, vector<32x8xf32>, vector<32x32xf32> -> vector<32x32xf32>
    %cst_143 = arith.constant 0.353553385 : f32
    %357 = vector.broadcast %cst_143 : f32 to vector<32x32xf32>
    %358 = arith.mulf %356, %357 : vector<32x32xf32>
    %cst_144 = arith.constant dense<0xFF800000> : vector<32xf32>
    %359 = vector.multi_reduction <maximumf>, %358, %cst_144 [1] : vector<32x32xf32> to vector<32xf32>
    %360 = vector.shape_cast %359 : vector<32xf32> to vector<32x1xf32>
    %361 = vector.broadcast %360 : vector<32x1xf32> to vector<32x32xf32>
    %362 = arith.subf %358, %361 : vector<32x32xf32>
    %363 = math.exp %362 : vector<32x32xf32>
    %cst_145 = arith.constant dense<0.000000e+00> : vector<32xf32>
    %364 = vector.multi_reduction <add>, %363, %cst_145 [1] : vector<32x32xf32> to vector<32xf32>
    %365 = vector.shape_cast %364 : vector<32xf32> to vector<32x1xf32>
    %366 = tpu.reciprocal %365 {approx = true} : vector<32x1xf32> -> vector<32x1xf32>
    %367 = vector.broadcast %366 : vector<32x1xf32> to vector<32x32xf32>
    %368 = arith.mulf %363, %367 : vector<32x32xf32>
    %cst_146 = arith.constant dense<0.000000e+00> : vector<32x8xf32>
    %369 = tpu.matmul %368, %355, %cst_146 {dimension_numbers = #tpu.dot_dimension_numbers<[1], [0], [0], [1], [0, 0, 1, 1], [], []>} : vector<32x32xf32>, vector<32x8xf32>, vector<32x8xf32> -> vector<32x8xf32>
    %370 = vector.extract_strided_slice %318 {offsets = [0, 24], sizes = [32, 8], strides = [1, 1]} : vector<32x96xf32> to vector<32x8xf32>
    %371 = vector.extract_strided_slice %318 {offsets = [0, 56], sizes = [32, 8], strides = [1, 1]} : vector<32x96xf32> to vector<32x8xf32>
    %372 = vector.extract_strided_slice %318 {offsets = [0, 88], sizes = [32, 8], strides = [1, 1]} : vector<32x96xf32> to vector<32x8xf32>
    %cst_147 = arith.constant dense<0.000000e+00> : vector<32x32xf32>
    %373 = tpu.matmul %370, %371, %cst_147 {dimension_numbers = #tpu.dot_dimension_numbers<[1], [1], [0], [0], [0, 0, 1, 0], [], []>} : vector<32x8xf32>, vector<32x8xf32>, vector<32x32xf32> -> vector<32x32xf32>
    %cst_148 = arith.constant 0.353553385 : f32
    %374 = vector.broadcast %cst_148 : f32 to vector<32x32xf32>
    %375 = arith.mulf %373, %374 : vector<32x32xf32>
    %cst_149 = arith.constant dense<0xFF800000> : vector<32xf32>
    %376 = vector.multi_reduction <maximumf>, %375, %cst_149 [1] : vector<32x32xf32> to vector<32xf32>
    %377 = vector.shape_cast %376 : vector<32xf32> to vector<32x1xf32>
    %378 = vector.broadcast %377 : vector<32x1xf32> to vector<32x32xf32>
    %379 = arith.subf %375, %378 : vector<32x32xf32>
    %380 = math.exp %379 : vector<32x32xf32>
    %cst_150 = arith.constant dense<0.000000e+00> : vector<32xf32>
    %381 = vector.multi_reduction <add>, %380, %cst_150 [1] : vector<32x32xf32> to vector<32xf32>
    %382 = vector.shape_cast %381 : vector<32xf32> to vector<32x1xf32>
    %383 = tpu.reciprocal %382 {approx = true} : vector<32x1xf32> -> vector<32x1xf32>
    %384 = vector.broadcast %383 : vector<32x1xf32> to vector<32x32xf32>
    %385 = arith.mulf %380, %384 : vector<32x32xf32>
    %cst_151 = arith.constant dense<0.000000e+00> : vector<32x8xf32>
    %386 = tpu.matmul %385, %372, %cst_151 {dimension_numbers = #tpu.dot_dimension_numbers<[1], [0], [0], [1], [0, 0, 1, 1], [], []>} : vector<32x32xf32>, vector<32x8xf32>, vector<32x8xf32> -> vector<32x8xf32>
    %387 = tpu.concatenate %335, %352, %369, %386 in 1 : vector<32x8xf32>, vector<32x8xf32>, vector<32x8xf32>, vector<32x8xf32> -> vector<32x32xf32>
    %c1_152 = arith.constant 1 : index
    %c0_153 = arith.constant 0 : index
    %c0_154 = arith.constant 0 : index
    %388 = vector.load %arg13[%c1_152, %c0_153, %c0_154] : memref<2x32x32xf32, #tpu.memory_space<vmem>>, vector<1x32x32xf32>
    %389 = vector.shape_cast %388 : vector<1x32x32xf32> to vector<32x32xf32>
    %cst_155 = arith.constant dense<0.000000e+00> : vector<32x32xf32>
    %390 = tpu.matmul %387, %389, %cst_155 {dimension_numbers = #tpu.dot_dimension_numbers<[1], [0], [0], [1], [0, 0, 1, 1], [], []>} : vector<32x32xf32>, vector<32x32xf32>, vector<32x32xf32> -> vector<32x32xf32>
    %c0_156 = arith.constant 0 : index
    %c4480 = arith.constant 4480 : index
    %391 = vector.load %arg1[%c0_156, %c4480] : memref<1x5888xf32, #tpu.memory_space<vmem>>, vector<1x32xf32>
    %392 = vector.broadcast %391 : vector<1x32xf32> to vector<32x32xf32>
    %393 = arith.addf %390, %392 : vector<32x32xf32>
    %394 = arith.addf %312, %393 : vector<32x32xf32>
    %c0_157 = arith.constant 0 : index
    %c4608 = arith.constant 4608 : index
    %395 = vector.load %arg1[%c0_157, %c4608] : memref<1x5888xf32, #tpu.memory_space<vmem>>, vector<1x32xf32>
    %c0_158 = arith.constant 0 : index
    %c4736 = arith.constant 4736 : index
    %396 = vector.load %arg1[%c0_158, %c4736] : memref<1x5888xf32, #tpu.memory_space<vmem>>, vector<1x32xf32>
    %cst_159 = arith.constant dense<0.000000e+00> : vector<32xf32>
    %397 = vector.multi_reduction <add>, %394, %cst_159 [1] : vector<32x32xf32> to vector<32xf32>
    %398 = vector.shape_cast %397 : vector<32xf32> to vector<32x1xf32>
    %cst_160 = arith.constant 3.200000e+01 : f32
    %399 = vector.broadcast %cst_160 : f32 to vector<32x1xf32>
    %400 = arith.divf %398, %399 : vector<32x1xf32>
    %401 = vector.broadcast %400 : vector<32x1xf32> to vector<32x32xf32>
    %402 = arith.subf %394, %401 : vector<32x32xf32>
    %403 = arith.mulf %402, %402 : vector<32x32xf32>
    %cst_161 = arith.constant dense<0.000000e+00> : vector<32xf32>
    %404 = vector.multi_reduction <add>, %403, %cst_161 [1] : vector<32x32xf32> to vector<32xf32>
    %405 = vector.shape_cast %404 : vector<32xf32> to vector<32x1xf32>
    %cst_162 = arith.constant 3.200000e+01 : f32
    %406 = vector.broadcast %cst_162 : f32 to vector<32x1xf32>
    %407 = arith.divf %405, %406 : vector<32x1xf32>
    %408 = vector.broadcast %400 : vector<32x1xf32> to vector<32x32xf32>
    %409 = arith.subf %394, %408 : vector<32x32xf32>
    %cst_163 = arith.constant 9.99999974E-6 : f32
    %410 = vector.broadcast %cst_163 : f32 to vector<32x1xf32>
    %411 = arith.addf %407, %410 : vector<32x1xf32>
    %412 = math.rsqrt %411 : vector<32x1xf32>
    %413 = vector.broadcast %412 : vector<32x1xf32> to vector<32x32xf32>
    %414 = arith.mulf %409, %413 : vector<32x32xf32>
    %415 = vector.broadcast %395 : vector<1x32xf32> to vector<32x32xf32>
    %416 = arith.mulf %414, %415 : vector<32x32xf32>
    %417 = vector.broadcast %396 : vector<1x32xf32> to vector<32x32xf32>
    %418 = arith.addf %416, %417 : vector<32x32xf32>
    %c1_164 = arith.constant 1 : index
    %c0_165 = arith.constant 0 : index
    %c0_166 = arith.constant 0 : index
    %419 = vector.load %arg14[%c1_164, %c0_165, %c0_166] : memref<2x32x64xf32, #tpu.memory_space<vmem>>, vector<1x32x64xf32>
    %420 = vector.shape_cast %419 : vector<1x32x64xf32> to vector<32x64xf32>
    %cst_167 = arith.constant dense<0.000000e+00> : vector<32x64xf32>
    %421 = tpu.matmul %418, %420, %cst_167 {dimension_numbers = #tpu.dot_dimension_numbers<[1], [0], [0], [1], [0, 0, 1, 1], [], []>} : vector<32x32xf32>, vector<32x64xf32>, vector<32x64xf32> -> vector<32x64xf32>
    %c0_168 = arith.constant 0 : index
    %c4864 = arith.constant 4864 : index
    %422 = vector.load %arg1[%c0_168, %c4864] : memref<1x5888xf32, #tpu.memory_space<vmem>>, vector<1x64xf32>
    %423 = vector.broadcast %422 : vector<1x64xf32> to vector<32x64xf32>
    %424 = arith.addf %421, %423 : vector<32x64xf32>
    %cst_169 = arith.constant 0.000000e+00 : f32
    %425 = vector.broadcast %cst_169 : f32 to vector<32x64xf32>
    %426 = arith.maximumf %424, %425 : vector<32x64xf32>
    %c1_170 = arith.constant 1 : index
    %c0_171 = arith.constant 0 : index
    %c0_172 = arith.constant 0 : index
    %427 = vector.load %arg15[%c1_170, %c0_171, %c0_172] : memref<2x64x32xf32, #tpu.memory_space<vmem>>, vector<1x64x32xf32>
    %428 = vector.shape_cast %427 : vector<1x64x32xf32> to vector<64x32xf32>
    %cst_173 = arith.constant dense<0.000000e+00> : vector<32x32xf32>
    %429 = tpu.matmul %426, %428, %cst_173 {dimension_numbers = #tpu.dot_dimension_numbers<[1], [0], [0], [1], [0, 0, 1, 1], [], []>} : vector<32x64xf32>, vector<64x32xf32>, vector<32x32xf32> -> vector<32x32xf32>
    %c0_174 = arith.constant 0 : index
    %c4992 = arith.constant 4992 : index
    %430 = vector.load %arg1[%c0_174, %c4992] : memref<1x5888xf32, #tpu.memory_space<vmem>>, vector<1x32xf32>
    %431 = vector.broadcast %430 : vector<1x32xf32> to vector<32x32xf32>
    %432 = arith.addf %429, %431 : vector<32x32xf32>
    %433 = arith.addf %418, %432 : vector<32x32xf32>
    %c0_175 = arith.constant 0 : index
    %c5120 = arith.constant 5120 : index
    %434 = vector.load %arg1[%c0_175, %c5120] : memref<1x5888xf32, #tpu.memory_space<vmem>>, vector<1x32xf32>
    %c0_176 = arith.constant 0 : index
    %c5248 = arith.constant 5248 : index
    %435 = vector.load %arg1[%c0_176, %c5248] : memref<1x5888xf32, #tpu.memory_space<vmem>>, vector<1x32xf32>
    %cst_177 = arith.constant dense<0.000000e+00> : vector<32xf32>
    %436 = vector.multi_reduction <add>, %433, %cst_177 [1] : vector<32x32xf32> to vector<32xf32>
    %437 = vector.shape_cast %436 : vector<32xf32> to vector<32x1xf32>
    %cst_178 = arith.constant 3.200000e+01 : f32
    %438 = vector.broadcast %cst_178 : f32 to vector<32x1xf32>
    %439 = arith.divf %437, %438 : vector<32x1xf32>
    %440 = vector.broadcast %439 : vector<32x1xf32> to vector<32x32xf32>
    %441 = arith.subf %433, %440 : vector<32x32xf32>
    %442 = arith.mulf %441, %441 : vector<32x32xf32>
    %cst_179 = arith.constant dense<0.000000e+00> : vector<32xf32>
    %443 = vector.multi_reduction <add>, %442, %cst_179 [1] : vector<32x32xf32> to vector<32xf32>
    %444 = vector.shape_cast %443 : vector<32xf32> to vector<32x1xf32>
    %cst_180 = arith.constant 3.200000e+01 : f32
    %445 = vector.broadcast %cst_180 : f32 to vector<32x1xf32>
    %446 = arith.divf %444, %445 : vector<32x1xf32>
    %447 = vector.broadcast %439 : vector<32x1xf32> to vector<32x32xf32>
    %448 = arith.subf %433, %447 : vector<32x32xf32>
    %cst_181 = arith.constant 9.99999974E-6 : f32
    %449 = vector.broadcast %cst_181 : f32 to vector<32x1xf32>
    %450 = arith.addf %446, %449 : vector<32x1xf32>
    %451 = math.rsqrt %450 : vector<32x1xf32>
    %452 = vector.broadcast %451 : vector<32x1xf32> to vector<32x32xf32>
    %453 = arith.mulf %448, %452 : vector<32x32xf32>
    %454 = vector.broadcast %434 : vector<1x32xf32> to vector<32x32xf32>
    %455 = arith.mulf %453, %454 : vector<32x32xf32>
    %456 = vector.broadcast %435 : vector<1x32xf32> to vector<32x32xf32>
    %457 = arith.addf %455, %456 : vector<32x32xf32>
    %c0_182 = arith.constant 0 : index
    %c0_183 = arith.constant 0 : index
    %458 = vector.load %arg16[%c0_182, %c0_183] : memref<32x256xf32, #tpu.memory_space<vmem>>, vector<32x256xf32>
    %cst_184 = arith.constant dense<0.000000e+00> : vector<32x256xf32>
    %459 = tpu.matmul %457, %458, %cst_184 {dimension_numbers = #tpu.dot_dimension_numbers<[0], [0], [1], [1], [0, 1, 1, 1], [], []>} : vector<32x32xf32>, vector<32x256xf32>, vector<32x256xf32> -> vector<32x256xf32>
    %c0_185 = arith.constant 0 : index
    %c5376 = arith.constant 5376 : index
    %460 = vector.load %arg1[%c0_185, %c5376] : memref<1x5888xf32, #tpu.memory_space<vmem>>, vector<1x256xf32>
    %461 = vector.broadcast %460 : vector<1x256xf32> to vector<32x256xf32>
    %462 = arith.addf %459, %461 : vector<32x256xf32>
    %cst_186 = arith.constant 0.000000e+00 : f32
    %463 = vector.broadcast %cst_186 : f32 to vector<32x256xf32>
    %464 = arith.maximumf %462, %463 : vector<32x256xf32>
    %c0_187 = arith.constant 0 : index
    %c0_188 = arith.constant 0 : index
    %465 = vector.load %arg17[%c0_187, %c0_188] : memref<256x128xf32, #tpu.memory_space<vmem>>, vector<256x128xf32>
    %cst_189 = arith.constant dense<0.000000e+00> : vector<32x128xf32>
    %466 = tpu.matmul %464, %465, %cst_189 {dimension_numbers = #tpu.dot_dimension_numbers<[1], [0], [0], [1], [0, 0, 1, 1], [], []>} : vector<32x256xf32>, vector<256x128xf32>, vector<32x128xf32> -> vector<32x128xf32>
    %c0_190 = arith.constant 0 : index
    %c5632 = arith.constant 5632 : index
    %467 = vector.load %arg1[%c0_190, %c5632] : memref<1x5888xf32, #tpu.memory_space<vmem>>, vector<1x128xf32>
    %468 = vector.broadcast %467 : vector<1x128xf32> to vector<32x128xf32>
    %469 = arith.addf %466, %468 : vector<32x128xf32>
    %cst_191 = arith.constant 0.000000e+00 : f32
    %470 = vector.broadcast %cst_191 : f32 to vector<32x128xf32>
    %471 = arith.maximumf %469, %470 : vector<32x128xf32>
    %cst_192 = arith.constant dense<0xFF800000> : vector<128xf32>
    %472 = vector.multi_reduction <maximumf>, %471, %cst_192 [0] : vector<32x128xf32> to vector<128xf32>
    %473 = vector.shape_cast %472 : vector<128xf32> to vector<1x128xf32>
    %c0_193 = arith.constant 0 : index
    %c0_194 = arith.constant 0 : index
    %474 = vector.load %arg18[%c0_193, %c0_194] : memref<128x32xf32, #tpu.memory_space<vmem>>, vector<128x32xf32>
    %cst_195 = arith.constant dense<0.000000e+00> : vector<1x32xf32>
    %475 = tpu.matmul %473, %474, %cst_195 {dimension_numbers = #tpu.dot_dimension_numbers<[1], [0], [0], [1], [0, 0, 1, 1], [], []>} : vector<1x128xf32>, vector<128x32xf32>, vector<1x32xf32> -> vector<1x32xf32>
    %c0_196 = arith.constant 0 : index
    %c5760 = arith.constant 5760 : index
    %476 = vector.load %arg1[%c0_196, %c5760] : memref<1x5888xf32, #tpu.memory_space<vmem>>, vector<1x32xf32>
    %477 = arith.addf %475, %476 : vector<1x32xf32>
    %c0_197 = arith.constant 0 : index
    %c0_198 = arith.constant 0 : index
    %478 = vector.load %arg19[%c0_197, %c0_198] : memref<1x32xf32, #tpu.memory_space<vmem>>, vector<1x32xf32>
    tpu.vector_store %arg19[%c0_197, %c0_198], %477 {strides = array<i32>} : memref<1x32xf32, #tpu.memory_space<vmem>>, vector<1x32xf32>,
    return
  }
}

</mosaic_0001>

<bundles_post_ra>
// kernel: lidar_transformer_forward.1
= control target key start
LH: loop header
LB: loop body
LE: loop exit
PB: predicated region body
PF: predicated region fallthrough
CT: control target
= control target key end

     0   :  { %s11920_s0 = inlined_call_operand.vmem [shape: f32[64,3], index: 0, kind: input, shape index: {}]   ;;  %s11921_s1 = inlined_call_operand.hbm [shape: f32[1,5888], index: 1, kind: input, shape index: {}]   ;;  %s11922_s2 = inlined_call_operand.vmem [shape: f32[3,64], index: 2, kind: input, shape index: {}]   ;;  %s11923_s3 = inlined_call_operand.hbm [shape: f32[64,128], index: 3, kind: input, shape index: {}]   ;;  %s11924_s4 = inlined_call_operand.vmem [shape: bf16[128,1024], index: 4, kind: input, shape index: {}]   ;;  %s11925_s5 = inlined_call_operand.hbm [shape: bf16[1024,512], index: 5, kind: input, shape index: {}]   ;;  %s11926_s6 = inlined_call_operand.hbm [shape: bf16[512,256], index: 6, kind: input, shape index: {}]   ;;  %s11927_s7 = inlined_call_operand.hbm [shape: f32[256,128], index: 7, kind: input, shape index: {}]   ;;  %s11928_s8 = inlined_call_operand.vmem [shape: f32[3,64], index: 8, kind: input, shape index: {}]   ;;  %s11929_s9 = inlined_call_operand.hbm [shape: f32[64,128], index: 9, kind: input, shape index: {}]   ;;  %s11930_s10 = inlined_call_operand.vmem [shape: f32[128,32], index: 10, kind: input, shape index: {}]   ;;  %s11931_s11 = inlined_call_operand.hbm [shape: f32[32,32], index: 11, kind: input, shape index: {}]   ;;  %s11932_s12 = inlined_call_operand.hbm [shape: f32[2,32,96], index: 12, kind: input, shape index: {}]   ;;  %s11933_s13 = inlined_call_operand.hbm [shape: f32[2,32,32], index: 13, kind: input, shape index: {}]   ;;  %s11934_s14 = inlined_call_operand.hbm [shape: f32[2,32,64], index: 14, kind: input, shape index: {}]   ;;  %s11935_s15 = inlined_call_operand.vmem [shape: f32[2,64,32], index: 15, kind: input, shape index: {}]   ;;  %s11936_s16 = inlined_call_operand.hbm [shape: f32[32,256], index: 16, kind: input, shape index: {}]   ;;  %s11937_s17 = inlined_call_operand.hbm [shape: f32[256,128], index: 17, kind: input, shape index: {}]   ;;  %s11938_s18 = inlined_call_operand.vmem [shape: f32[128,32], index: 18, kind: input, shape index: {}]   ;;  %s11939_s19 = inlined_call_operand.vmem [shape: f32[1,32], index: 19, kind: output, shape index: {}]  }
   0x1   :  { %11941 = sst [smem:[#allocation35_spill]] %s11920_s0 }
   0x2   :  { %11942 = sst [smem:[#allocation36_spill]] %s11921_s1 }
   0x3   :  { %11943 = sst [smem:[#allocation37_spill]] %s11922_s2 }
   0x4   :  { %11944 = sst [smem:[#allocation38_spill]] %s11923_s3 }
   0x5   :  { %24 = vsyncpa [#allocation6], 0 }
   0x6   :  { %25 = vsyncpa [#allocation8], 0 }
   0x7   :  { %26 = vsyncpa [#allocation11], 0 }
   0x8   :  { %27 = vsyncpa [#allocation14], 0 }
   0x9   :  { %28 = vsyncpa [#allocation17], 0  ;;  %s11945_s20 = sld [smem:[#allocation38_spill]] }
   0xf   :  { %s49_s21 = sshll.u32 %s11945_s20, 4  ;;  %s50_s21 = int_to_ptr.hbm [resolvable:$true] %s49_s21 }
  0x10   :  { %29 = vsyncpa [#allocation20], 0  ;;  %s9786_s1 = smov [#allocation7]   ;;  %s79_s24 = sshll.u32 %s11929_s9, 4  ;;  %s80_s24 = int_to_ptr.hbm [resolvable:$true] %s79_s24 }
  0x11   :  { %s51_s22 = sshll.u32 %s9786_s1, 4  ;;  %s9787_s25 = smov 128   ;;  %s52_s22 = int_to_ptr.vmem [resolvable:$true] %s51_s22 }
  0x12   :  { %s9788_s3 = smov 8   ;;  %s9789_s26 = smov [#allocation10]  }
  0x13   :  { %57 = dma.hbm_to_vmem [thread:$0]  %s50_s21, 1024, %s52_s22, [#allocation8], %s9787_s25, %s9787_s25, %s9788_s3  }
  0x14   :  { %s81_s27 = sshll.u32 %s9789_s26, 4  ;;  %s107_s0 = sshll.u32 %s11932_s12, 4  ;;  %s82_s27 = int_to_ptr.vmem [resolvable:$true] %s81_s27  ;;  %s108_s0 = int_to_ptr.hbm [resolvable:$true] %s107_s0 }
  0x15   :  { %87 = dma.hbm_to_vmem [thread:$0]  %s80_s24, 1024, %s82_s27, [#allocation11], %s9787_s25, %s9787_s25, %s9788_s3  }
  0x16   :  { %s133_s20 = sshll.u32 %s11934_s14, 4  ;;  %s9790_s1 = smov [#allocation13]   ;;  %s134_s20 = int_to_ptr.hbm [resolvable:$true] %s133_s20 }
  0x17   :  { %s109_s2 = sshll.u32 %s9790_s1, 4  ;;  %s9791_s21 = smov [#allocation16]   ;;  %s110_s2 = int_to_ptr.vmem [resolvable:$true] %s109_s2 }
  0x18   :  { %115 = dma.hbm_to_vmem [thread:$0]  %s108_s0, 1024, %s110_s2, [#allocation14], %s9787_s25, %s9787_s25, %s9788_s3  }
  0x19   :  { %s135_s12 = sshll.u32 %s9791_s21, 4  ;;  %s11946_s26 = sld [smem:[#allocation36_spill]]  ;;  %s136_s12 = int_to_ptr.vmem [resolvable:$true] %s135_s12 }
  0x1a   :  { %141 = dma.hbm_to_vmem [thread:$0]  %s134_s20, 1024, %s136_s12, [#allocation17], %s9787_s25, %s9787_s25, %s9788_s3  }
  0x1b   :  { %s64_s27 = sshll.u32 %s11927_s7, 4  ;;  %s9792_s29 = smov [#allocation5]   ;;  %s65_s27 = int_to_ptr.hbm [resolvable:$true] %s64_s27 }
  0x1c   :  { %s39_s9 = sshll.u32 %s9792_s29, 4  ;;  %s9793_s0 = smov [#allocation9]   ;;  %s40_s9 = int_to_ptr.vmem [resolvable:$true] %s39_s9 }
  0x1d   :  { %s66_s30 = sshll.u32 %s9793_s0, 4  ;;  %s94_s21 = sshll.u32 %s11931_s11, 4  ;;  %s67_s30 = int_to_ptr.vmem [resolvable:$true] %s66_s30  ;;  %s95_s21 = int_to_ptr.hbm [resolvable:$true] %s94_s21 }
  0x1e   :  { %72 = dma.hbm_to_vmem [thread:$0]  %s65_s27, 4096, %s67_s30, [#allocation8], %s9787_s25, %s9787_s25, %s9788_s3  }
  0x1f   :  { %s37_s28 = sshll.u32 %s11946_s26, 4  ;;  %s120_s7 = sshll.u32 %s11933_s13, 4  ;;  %s38_s28 = int_to_ptr.hbm [resolvable:$true] %s37_s28  ;;  %s121_s7 = int_to_ptr.hbm [resolvable:$true] %s120_s7 }
  0x20   :  { %42 = dma.hbm_to_vmem [thread:$0]  %s38_s28, 736, %s40_s9, [#allocation6]  }
  0x21   :  { %s9794_s22 = smov [#allocation12]   ;;  %s9795_s26 = smov [#allocation15]  }
  0x22   :  { %s96_s23 = sshll.u32 %s9794_s22, 4  ;;  %s122_s11 = sshll.u32 %s9795_s26, 4  ;;  %s97_s23 = int_to_ptr.vmem [resolvable:$true] %s96_s23  ;;  %s123_s11 = int_to_ptr.vmem [resolvable:$true] %s122_s11 }
  0x23   :  { %102 = dma.hbm_to_vmem [thread:$0]  %s95_s21, 512, %s97_s23, [#allocation11], %s9787_s25, %s9787_s25, %s9788_s3  }
  0x24   :  { %s148_s24 = sshll.u32 %s11936_s16, 4  ;;  %s9796_s13 = smov [#allocation18]   ;;  %s149_s24 = int_to_ptr.hbm [resolvable:$true] %s148_s24 }
  0x25   :  { %128 = dma.hbm_to_vmem [thread:$0]  %s121_s7, 1024, %s123_s11, [#allocation14], %s9787_s25, %s9787_s25, %s9788_s3  }
  0x26   :  { %s150_s27 = sshll.u32 %s9796_s13, 4  ;;  %s161_s0 = sshll.u32 %s11937_s17, 4  ;;  %s151_s27 = int_to_ptr.vmem [resolvable:$true] %s150_s27  ;;  %s162_s0 = int_to_ptr.hbm [resolvable:$true] %s161_s0 }
  0x27   :  { %s9797_s30 = smov 256   ;;  %s9798_s1 = smov 16  }
  0x28   :  { %156 = dma.hbm_to_vmem [thread:$0]  %s149_s24, 1024, %s151_s27, [#allocation17], %s9797_s30, %s9797_s30, %s9798_s1  }
  0x29   :  { %s9799_s2 = smov [#allocation19]  }
  0x2a   :  { %s163_s16 = sshll.u32 %s9799_s2, 4  ;;  %s164_s16 = int_to_ptr.vmem [resolvable:$true] %s163_s16 }
  0x2b   :  { %169 = dma.hbm_to_vmem [thread:$0]  %s162_s0, 4096, %s164_s16, [#allocation20], %s9787_s25, %s9787_s25, %s9788_s3  }
  0x2c   :  { %9770 = dma.done.wait [#allocation6], 736  }
  0x2d   :  { %9771 = vsyncadd [#allocation6], 4294966560 }
  0x2e   :  { %9772 = dma.done.wait [#allocation8], 5120  }
  0x2f   :  { %9773 = vsyncadd [#allocation8], 4294962176 }
  0x30   :  { %9774 = dma.done.wait [#allocation11], 1536  }
  0x31   :  { %9775 = vsyncadd [#allocation11], 4294965760 }
  0x32   :  { %9776 = dma.done.wait [#allocation14], 2048  }
  0x33   :  { %9777 = vsyncadd [#allocation14], 4294965248 }
  0x34   :  { %9778 = dma.done.wait [#allocation17], 2048  }
  0x35   :  { %9779 = vsyncadd [#allocation17], 4294965248 }
  0x36   :  { %9780 = dma.done.wait [#allocation20], 4096  }
  0x37   :  { %9781 = vsyncadd [#allocation20], 4294963200  ;;  %vm277_vm0 = vcmask 1042432   ;;  %vm252_vm1 = vcmask 23552   ;;  %s11947_s20 = sld [smem:[#allocation37_spill]]  ;;  %v337_v3 = vld [vmem:[#allocation7 + $0x38] sm:$0xff] }
  0x38   :  { %s11948_s7 = sld [smem:[#allocation35_spill]]  ;;  %v336_v4 = vld [vmem:[#allocation7 + $0x30] sm:$0xff]  ;;  %375 = vmatpush.msra.mxu1 %v337_v3  ;;  %v335_v5 = vld [vmem:[#allocation7 + $0x28] sm:$0xff]  ;;  %v334_v8 = vld [vmem:[#allocation7 + $0x20] sm:$0xff]  ;;  %vm342_vm2 = vcmask 523264   ;;  %s219_s25 = sshll.u32 %s11925_s5, 4  ;;  %s220_s25 = int_to_ptr.hbm [resolvable:$true] %s219_s25 }
  0x39   :  { %v333_v9 = vld [vmem:[#allocation7 + $0x18] sm:$0xff]  ;;  %v332_v14 = vld [vmem:[#allocation7 + $0x10] sm:$0xff]  ;;  %v331_v15 = vld [vmem:[#allocation7 + $0x8] sm:$0xff]  ;;  %s233_s11 = sshll.u32 %s11926_s6, 4  ;;  %s9801_s5 = smov [#allocation3]   ;;  %s234_s11 = int_to_ptr.hbm [resolvable:$true] %s233_s11 }
  0x3a   :  { %376 = vmatpush.msra.mxu1 %v336_v4  ;;  %v330_v16 = vld [vmem:[#allocation7] sm:$0xff]  ;;  %v10037_v17 = vld [vmem:[#allocation5] ss:$0 sm:$0xff]  ;;  %v8815_v40 = vld [vmem:[%s11924_s4 + $0x1c4] sm:$0xf]  ;;  %s235_s28 = sshll.u32 %s9801_s5, 4  ;;  %s236_s28 = int_to_ptr.vmem [resolvable:$true] %s235_s28 }
  0x3b   :  { %v8816_v32 = vld [vmem:[%s11924_s4 + $0x1cc] sm:$0xf]  ;;  %v7288_v42 = vld [vmem:[%s11924_s4 + $0x1e0] sm:$0xf0]  ;;  %v7286_v43 = vld [vmem:[%s11924_s4 + $0x1c0] sm:$0xf] }
  0x3c   :  { %377 = vmatpush.msra.mxu1 %v335_v5  ;;  %v7296_v33 = vld [vmem:[%s11924_s4 + $0x1e8] sm:$0xf0]  ;;  %v8819_v44 = vld [vmem:[%s11924_s4 + $0x1dc] sm:$0xf0]  ;;  %v7291_v46 = vor.u32 %v8815_v40, %v7288_v42  ;;  %v7294_v48 = vld [vmem:[%s11924_s4 + $0x1c8] sm:$0xf] }
  0x3d   :  { %v247_v0 = vld [vmem:[%s11947_s20] sm:$0x7]  ;;  %v8808_v34 = vld [vmem:[%s11924_s4 + $0x18c] sm:$0xf]  ;;  %v7299_v36 = vor.u32 %v8816_v32, %v7296_v33  ;;  %v7287_v47 = vor.u32 %v8819_v44, %v7286_v43  ;;  %v8820_v49 = vld [vmem:[%s11924_s4 + $0x1e4] sm:$0xf0] }
  0x3e   :  { %v9982_v1 = vld [vmem:[%s11948_s7] sm:$0xff]  ;;  %7043 = vmatpush.msk.msra.mxu0 %vm277_vm0, %v247_v0  ;;  %9143 = vmatpush.msk.msra.mxu3 %vm277_vm0, %v247_v0  ;;  %v9998_v6 = vld [vmem:[%s11948_s7 + $0x8] sm:$0xff]  ;;  %v10012_v10 = vld [vmem:[%s11948_s7 + $0x10] sm:$0xff]  ;;  %v7295_v50 = vor.u32 %v8820_v49, %v7294_v48 }
  0x3f   :  { %v9989_v2 = vld [vmem:[%s11948_s7 + $0x20] sm:$0xff]  ;;  %7044 = vmatmul.msk.f32.vlgmr.msra.gmra.mxu0 %vm252_vm1, %v9982_v1  ;;  %v10003_v7 = vld [vmem:[%s11948_s7 + $0x28] sm:$0xff]  ;;  %378 = vmatpush.msra.mxu1 %v334_v8  ;;  %v10017_v11 = vld [vmem:[%s11948_s7 + $0x30] sm:$0xff] }
  0x40   :  { %7048 = vmatmul.msk.f32.vlgmr.msra.gmra.mxu3 %vm252_vm1, %v9989_v2  ;;  %v10026_v12 = vld [vmem:[%s11948_s7 + $0x18] sm:$0xff]  ;;  %v7264_v37 = vld [vmem:[%s11924_s4 + $0x1a8] sm:$0xf0]  ;;  %v8807_v51 = vld [vmem:[%s11924_s4 + $0x184] sm:$0xf]  ;;  %822 = vmatpush.bf16.msra.mxu2 %v7287_v47 }
  0x41   :  { %379 = vmatpush.msra.mxu1 %v333_v9  ;;  %v10031_v13 = vld [vmem:[%s11948_s7 + $0x38] sm:$0xff]  ;;  %v8800_v39 = vld [vmem:[%s11924_s4 + $0x14c] sm:$0xf]  ;;  %v7267_v41 = vor.u32 %v8808_v34, %v7264_v37  ;;  %v7256_v52 = vld [vmem:[%s11924_s4 + $0x1a0] sm:$0xf0]  ;;  %851 = vmatpush.bf16.msrb.mxu3 %v7291_v46  ;;  %s9800_s7 = smov [#allocation2]  }
  0x42   :  { %v7232_v45 = vld [vmem:[%s11924_s4 + $0x168] sm:$0xf0]  ;;  %v7254_v53 = vld [vmem:[%s11924_s4 + $0x180] sm:$0xf]  ;;  %v7259_v55 = vor.u32 %v8807_v51, %v7256_v52  ;;  %v7262_v57 = vld [vmem:[%s11924_s4 + $0x188] sm:$0xf]  ;;  %880 = vmatpush.bf16.msrb.mxu0 %v7295_v50 }
  0x43   :  { %380 = vmatpush.msra.mxu1 %v332_v14  ;;  %v8811_v56 = vld [vmem:[%s11924_s4 + $0x19c] sm:$0xf0]  ;;  %v8812_v58 = vld [vmem:[%s11924_s4 + $0x1a4] sm:$0xf0]  ;;  %v7235_v59 = vor.u32 %v8800_v39, %v7232_v45  ;;  %v8792_v60 = vld [vmem:[%s11924_s4 + $0x10c] sm:$0xf] }
  0x44   :  { %v7200_v61 = vld [vmem:[%s11924_s4 + $0x128] sm:$0xf0]  ;;  %v7255_v62 = vor.u32 %v8811_v56, %v7254_v53  ;;  %v7263_v63 = vor.u32 %v8812_v58, %v7262_v57  ;;  %v8799_v0 = vld [vmem:[%s11924_s4 + $0x144] sm:$0xf]  ;;  %v7222_v4 = vld [vmem:[%s11924_s4 + $0x140] sm:$0xf] }
  0x45   :  { %381 = vmatpush.msra.mxu1 %v331_v15  ;;  %v7224_v3 = vld [vmem:[%s11924_s4 + $0x160] sm:$0xf0]  ;;  %v8803_v5 = vld [vmem:[%s11924_s4 + $0x15c] sm:$0xf0]  ;;  %v7230_v8 = vld [vmem:[%s11924_s4 + $0x148] sm:$0xf]  ;;  %852 = vmatpush.bf16.msrb.mxu3 %v7259_v55 }
  0x46   :  { %v8804_v9 = vld [vmem:[%s11924_s4 + $0x164] sm:$0xf0]  ;;  %823 = vmatpush.bf16.msra.mxu2 %v7255_v62  ;;  %v8784_v15 = vld [vmem:[%s11924_s4 + $0xcc] sm:$0xf]  ;;  %881 = vmatpush.bf16.msrb.mxu0 %v7263_v63  ;;  %v8783_v33 = vld [vmem:[%s11924_s4 + $0xc4] sm:$0xf] }
  0x47   :  { %7045 = vmatmul.msk.f32.gmra.mxu0 %vm252_vm1, %v9998_v6  ;;  %382 = vmatpush.msra.mxu1 %v330_v16  ;;  %v7227_v16 = vor.u32 %v8799_v0, %v7224_v3  ;;  %v7160_v34 = vld [vmem:[%s11924_s4 + $0xe0] sm:$0xf0]  ;;  %v7136_v37 = vld [vmem:[%s11924_s4 + $0xa8] sm:$0xf0]  ;;  %v7158_v44 = vld [vmem:[%s11924_s4 + $0xc0] sm:$0xf] }
  0x48   :  { %7049 = vmatmul.msk.f32.gmra.mxu3 %vm252_vm1, %v10003_v7  ;;  %v8787_v45 = vld [vmem:[%s11924_s4 + $0xdc] sm:$0xf0]  ;;  %v7166_v46 = vld [vmem:[%s11924_s4 + $0xc8] sm:$0xf]  ;;  %v8775_v49 = vld [vmem:[%s11924_s4 + $0x84] sm:$0xf] }
  0x49   :  { %909 = vmatpush.bf16.msrb.mxu1 %v7299_v36  ;;  %853 = vmatpush.bf16.msrb.mxu3 %v7227_v16  ;;  %v8776_v36 = vld [vmem:[%s11924_s4 + $0x8c] sm:$0xf]  ;;  %v7159_v47 = vor.u32 %v8787_v45, %v7158_v44  ;;  %v7128_v50 = vld [vmem:[%s11924_s4 + $0xa0] sm:$0xf0]  ;;  %v7126_v51 = vld [vmem:[%s11924_s4 + $0x80] sm:$0xf] }
  0x4a   :  { %v7139_v39 = vor.u32 %v8776_v36, %v7136_v37  ;;  %v7131_v52 = vor.u32 %v8775_v49, %v7128_v50  ;;  %v8779_v53 = vld [vmem:[%s11924_s4 + $0x9c] sm:$0xf0]  ;;  %v8780_v55 = vld [vmem:[%s11924_s4 + $0xa4] sm:$0xf0]  ;;  %v8768_v58 = vld [vmem:[%s11924_s4 + $0x4c] sm:$0xf] }
  0x4b   :  { %v7127_v56 = vor.u32 %v8779_v53, %v7126_v51  ;;  %v7096_v62 = vld [vmem:[%s11924_s4 + $0x60] sm:$0xf0]  ;;  %v7094_v0 = vld [vmem:[%s11924_s4 + $0x40] sm:$0xf]  ;;  %v7312_v37 = vld [vmem:[%s11924_s4 + $0x1f8] sm:$0xf0] }
  0x4c   :  { %v8771_v3 = vld [vmem:[%s11924_s4 + $0x5c] sm:$0xf0]  ;;  %v7278_v45 = vld [vmem:[%s11924_s4 + $0x198] sm:$0xf]  ;;  %v7238_v51 = vld [vmem:[%s11924_s4 + $0x150] sm:$0xf] }
  0x4d   :  { %910 = vmatpush.bf16.msrb.mxu1 %v7267_v41  ;;  %v7062_v16 = vld [vmem:[%s11924_s4] sm:$0xf]  ;;  %v8801_v53 = vld [vmem:[%s11924_s4 + $0x154] sm:$0xf]  ;;  %s221_s22 = sshll.u32 %s9800_s7, 4  ;;  %s222_s22 = int_to_ptr.vmem [resolvable:$true] %s221_s22 }
  0x4e   :  { %224 = dma.hbm_to_vmem [thread:$0]  %s220_s25, 32768, %s222_s22, [#allocation4] }
  0x4f   :  { %7046 = vmatmul.msk.f32.gmra.mxu0 %vm252_vm1, %v10012_v10  ;;  %238 = dma.hbm_to_vmem [thread:$0]  %s234_s11, 8192, %s236_s28, [#allocation4 + $0x1] }
  0x50   :  { %7050 = vmatmul.msk.f32.gmra.mxu3 %vm252_vm1, %v10017_v11 }
  0x51   :  { %911 = vmatpush.bf16.msrb.mxu1 %v7235_v59  ;;  %v7104_v59 = vld [vmem:[%s11924_s4 + $0x68] sm:$0xf0] }
  0x57   :  { %7047 = vmatmul.msk.f32.gmra.mxu0 %vm252_vm1, %v10026_v12 }
  0x58   :  { %7051 = vmatmul.msk.f32.gmra.mxu3 %vm252_vm1, %v10031_v13 }
  0xbc   :  { %v298_v18 = vpop.f32.mrf.mxu0 }
  0xbd   :  { %v299_v19 = vadd.f32 %v10037_v17, %v298_v18  ;;  %v7223_v18 = vor.u32 %v8803_v5, %v7222_v4  ;;  %v7102_v4 = vld [vmem:[%s11924_s4 + $0x48] sm:$0xf]  ;;  %v7095_v5 = vor.u32 %v8771_v3, %v7094_v0  ;;  %v8797_v3 = vld [vmem:[%s11924_s4 + $0x12c] sm:$0xf0] }
  0xbf   :  { %v322_v20 = vmax.f32 %v299_v19, 0.0  ;;  %v8791_v19 = vld [vmem:[%s11924_s4 + $0x104] sm:$0xf]  ;;  %824 = vmatpush.bf16.msra.mxu2 %v7223_v18 }
  0xc1   :  { %7052 = vmatmul.msk.f32.vlgmr.msra.gmra.mxu1 %vm342_vm2, %v322_v20 }
  0xc3   :  { %v310_v27 = vpop.f32.mrf.mxu3 }
  0xc4   :  { %v301_v21 = vpop.f32.mrf.mxu0  ;;  %v311_v31 = vadd.f32 %v10037_v17, %v310_v27  ;;  %v7198_v27 = vld [vmem:[%s11924_s4 + $0x108] sm:$0xf] }
  0xc5   :  { %v302_v22 = vadd.f32 %v10037_v17, %v301_v21  ;;  %v7203_v21 = vor.u32 %v8792_v60, %v7200_v61  ;;  %v8767_v60 = vld [vmem:[%s11924_s4 + $0x44] sm:$0xf]  ;;  %v7107_v61 = vor.u32 %v8768_v58, %v7104_v59  ;;  %v7246_v58 = vld [vmem:[%s11924_s4 + $0x158] sm:$0xf] }
  0xc6   :  { %v326_v38 = vmax.f32 %v311_v31, 0.0  ;;  %v7099_v63 = vor.u32 %v8767_v60, %v7096_v62  ;;  %v8806_v59 = vld [vmem:[%s11924_s4 + $0x174] sm:$0xf0]  ;;  %v7248_v62 = vld [vmem:[%s11924_s4 + $0x178] sm:$0xf0] }
  0xc7   :  { %v323_v23 = vmax.f32 %v302_v22, 0.0  ;;  %v7231_v22 = vor.u32 %v8804_v9, %v7230_v8  ;;  %912 = vmatpush.bf16.msrb.mxu1 %v7203_v21  ;;  %v8772_v8 = vld [vmem:[%s11924_s4 + $0x64] sm:$0xf0]  ;;  %v7247_v60 = vor.u32 %v8806_v59, %v7246_v58  ;;  %v7110_v59 = vld [vmem:[%s11924_s4 + $0x50] sm:$0xf] }
  0xc8   :  { %v7103_v9 = vor.u32 %v8772_v8, %v7102_v4  ;;  %v8764_v21 = vld [vmem:[%s11924_s4 + $0x24] sm:$0xf0]  ;;  %v8793_v4 = vld [vmem:[%s11924_s4 + $0x114] sm:$0xf] }
  0xc9   :  { %7053 = vmatmul.msk.f32.gmra.mxu1 %vm342_vm2, %v323_v23  ;;  %v7192_v23 = vld [vmem:[%s11924_s4 + $0x120] sm:$0xf0]  ;;  %882 = vmatpush.bf16.msrb.mxu0 %v7231_v22 }
  0xcb   :  { %v313_v35 = vpop.f32.mrf.mxu3 }
  0xcc   :  { %v304_v24 = vpop.f32.mrf.mxu0  ;;  %v314_v54 = vadd.f32 %v10037_v17, %v313_v35 }
  0xcd   :  { %v305_v25 = vadd.f32 %v10037_v17, %v304_v24  ;;  %v7190_v24 = vld [vmem:[%s11924_s4 + $0x100] sm:$0xf] }
  0xce   :  { %v327_v14 = vmax.f32 %v314_v54, 0.0  ;;  %v7134_v54 = vld [vmem:[%s11924_s4 + $0x88] sm:$0xf] }
  0xcf   :  { %v324_v26 = vmax.f32 %v305_v25, 0.0  ;;  %v8795_v25 = vld [vmem:[%s11924_s4 + $0x11c] sm:$0xf0]  ;;  %v7135_v57 = vor.u32 %v8780_v55, %v7134_v54  ;;  %v7240_v55 = vld [vmem:[%s11924_s4 + $0x170] sm:$0xf0] }
  0xd1   :  { %7054 = vmatmul.msk.f32.gmra.mxu1 %vm342_vm2, %v324_v26  ;;  %v7168_v26 = vld [vmem:[%s11924_s4 + $0xe8] sm:$0xf0] }
  0xd2   :  { %v7171_v31 = vor.u32 %v8784_v15, %v7168_v26  ;;  %v7064_v15 = vld [vmem:[%s11924_s4 + $0x20] sm:$0xf0] }
  0xd3   :  { %v316_v20 = vpop.f32.mrf.mxu3 }
  0xd4   :  { %v307_v28 = vpop.f32.mrf.mxu0  ;;  %v317_v35 = vadd.f32 %v10037_v17, %v316_v20  ;;  %913 = vmatpush.bf16.msrb.mxu1 %v7171_v31  ;;  %v7070_v20 = vld [vmem:[%s11924_s4 + $0x8] sm:$0xf]  ;;  %v7304_v31 = vld [vmem:[%s11924_s4 + $0x1f0] sm:$0xf0] }
  0xd5   :  { %v308_v29 = vadd.f32 %v10037_v17, %v307_v28  ;;  %v8796_v28 = vld [vmem:[%s11924_s4 + $0x124] sm:$0xf0] }
  0xd6   :  { %v7199_v32 = vor.u32 %v8796_v28, %v7198_v27  ;;  %v328_v40 = vmax.f32 %v317_v35, 0.0  ;;  %v7302_v27 = vld [vmem:[%s11924_s4 + $0x1d0] sm:$0xf]  ;;  %v8818_v35 = vld [vmem:[%s11924_s4 + $0x1dc] sm:$0xf] }
  0xd7   :  { %v325_v30 = vmax.f32 %v308_v29, 0.0  ;;  %v7195_v29 = vor.u32 %v8791_v19, %v7192_v23  ;;  %v8763_v19 = vld [vmem:[%s11924_s4 + $0x1c] sm:$0xf0]  ;;  %v7071_v23 = vor.u32 %v8764_v21, %v7070_v20  ;;  %v8821_v28 = vld [vmem:[%s11924_s4 + $0x1ec] sm:$0xf0] }
  0xd8   :  { %883 = vmatpush.bf16.msrb.mxu0 %v7199_v32  ;;  %914 = vmatpush.bf16.msrb.mxu1 %v7139_v39  ;;  %v7063_v22 = vor.u32 %v8763_v19, %v7062_v16  ;;  %v8813_v39 = vld [vmem:[%s11924_s4 + $0x1ac] sm:$0xf0]  ;;  %v7214_v21 = vld [vmem:[%s11924_s4 + $0x118] sm:$0xf] }
  0xd9   :  { %7055 = vmatmul.msk.f32.gmra.mxu1 %vm342_vm2, %v325_v30  ;;  %v7191_v30 = vor.u32 %v8795_v25, %v7190_v24  ;;  %854 = vmatpush.bf16.msrb.mxu3 %v7195_v29  ;;  %v8760_v24 = vld [vmem:[%s11924_s4 + $0xc] sm:$0xf]  ;;  %v8817_v29 = vld [vmem:[%s11924_s4 + $0x1d4] sm:$0xf] }
  0xda   :  { %v7072_v25 = vld [vmem:[%s11924_s4 + $0x28] sm:$0xf0]  ;;  %v7307_v32 = vor.u32 %v8817_v29, %v7304_v31  ;;  %v8789_v29 = vld [vmem:[%s11924_s4 + $0xec] sm:$0xf0] }
  0xdb   :  { %825 = vmatpush.bf16.msra.mxu2 %v7191_v30  ;;  %v319_v41 = vpop.f32.mrf.mxu3  ;;  %v7075_v26 = vor.u32 %v8760_v24, %v7072_v25  ;;  %v7303_v30 = vor.u32 %v8821_v28, %v7302_v27  ;;  %v7216_v25 = vld [vmem:[%s11924_s4 + $0x138] sm:$0xf0]  ;;  %v7174_v28 = vld [vmem:[%s11924_s4 + $0xd0] sm:$0xf] }
  0xdc   :  { %v320_v42 = vadd.f32 %v10037_v17, %v319_v41  ;;  %v8788_v17 = vld [vmem:[%s11924_s4 + $0xe4] sm:$0xf0]  ;;  %915 = vmatpush.bf16.msrb.mxu1 %v7107_v61  ;;  %v8802_v61 = vld [vmem:[%s11924_s4 + $0x15c] sm:$0xf]  ;;  %v7175_v31 = vor.u32 %v8789_v29, %v7174_v28 }
  0xdd   :  { %v7167_v48 = vor.u32 %v8788_v17, %v7166_v46  ;;  %v8814_v46 = vld [vmem:[%s11924_s4 + $0x1b4] sm:$0xf0]  ;;  %v7251_v0 = vor.u32 %v8802_v61, %v7248_v62  ;;  %v8769_v61 = vld [vmem:[%s11924_s4 + $0x54] sm:$0xf] }
  0xde   :  { %v329_v43 = vmax.f32 %v320_v42, 0.0  ;;  %v8809_v42 = vld [vmem:[%s11924_s4 + $0x194] sm:$0xf]  ;;  %v7279_v17 = vor.u32 %v8814_v46, %v7278_v45 }
  0xdf   :  { %826 = vmatpush.bf16.msra.mxu2 %v7159_v47  ;;  %884 = vmatpush.bf16.msrb.mxu0 %v7167_v48  ;;  %v8810_v47 = vld [vmem:[%s11924_s4 + $0x19c] sm:$0xf] }
  0xe0   :  { %916 = vmatpush.bf16.msrb.mxu1 %v7075_v26  ;;  %v7280_v48 = vld [vmem:[%s11924_s4 + $0x1b8] sm:$0xf0] }
  0xe1   :  { %7056 = vmatmul.msk.f32.gmra.mxu1 %vm342_vm2, %v326_v38  ;;  %v7163_v38 = vor.u32 %v8783_v33, %v7160_v34  ;;  %v7310_v33 = vld [vmem:[%s11924_s4 + $0x1d8] sm:$0xf]  ;;  %v7283_v49 = vor.u32 %v8810_v47, %v7280_v48 }
  0xe2   :  { %v8822_v34 = vld [vmem:[%s11924_s4 + $0x1f4] sm:$0xf0] }
  0xe3   :  { %855 = vmatpush.bf16.msrb.mxu3 %v7163_v38  ;;  %827 = vmatpush.bf16.msra.mxu2 %v7127_v56  ;;  %v7311_v36 = vor.u32 %v8822_v34, %v7310_v33  ;;  %v7270_v38 = vld [vmem:[%s11924_s4 + $0x190] sm:$0xf]  ;;  %v7243_v56 = vor.u32 %v8801_v53, %v7240_v55  ;;  %v7182_v34 = vld [vmem:[%s11924_s4 + $0xd8] sm:$0xf]  ;;  %v8778_v53 = vld [vmem:[%s11924_s4 + $0x9c] sm:$0xf] }
  0xe4   :  { %885 = vmatpush.bf16.msrb.mxu0 %v7135_v57  ;;  %v7271_v41 = vor.u32 %v8813_v39, %v7270_v38  ;;  %v10307_v57 = vld [vmem:[#allocation5 + $0x1] ss:$0 sm:$0xff]  ;;  %v7184_v38 = vld [vmem:[%s11924_s4 + $0xf8] sm:$0xf0]  ;;  %v7142_v39 = vld [vmem:[%s11924_s4 + $0x90] sm:$0xf] }
  0xe5   :  { %v7152_v55 = vld [vmem:[%s11924_s4 + $0xb8] sm:$0xf0] }
  0xe7   :  { %856 = vmatpush.bf16.msrb.mxu3 %v7131_v52  ;;  %828 = vmatpush.bf16.msra.mxu2 %v7095_v5  ;;  %v8805_v52 = vld [vmem:[%s11924_s4 + $0x16c] sm:$0xf0]  ;;  %v7208_v5 = vld [vmem:[%s11924_s4 + $0x130] sm:$0xf0] }
  0xe8   :  { %886 = vmatpush.bf16.msrb.mxu0 %v7103_v9  ;;  %v7239_v54 = vor.u32 %v8805_v52, %v7238_v51  ;;  %v7211_v9 = vor.u32 %v8793_v4, %v7208_v5  ;;  %v7150_v51 = vld [vmem:[%s11924_s4 + $0x98] sm:$0xf] }
  0xe9   :  { %7057 = vmatmul.msk.f32.gmra.mxu1 %vm342_vm2, %v327_v14  ;;  %v8759_v14 = vld [vmem:[%s11924_s4 + $0x4] sm:$0xf]  ;;  %v8782_v52 = vld [vmem:[%s11924_s4 + $0xb4] sm:$0xf0] }
  0xea   :  { %v7067_v18 = vor.u32 %v8759_v14, %v7064_v15 }
  0xeb   :  { %857 = vmatpush.bf16.msrb.mxu3 %v7099_v63  ;;  %829 = vmatpush.bf16.msra.mxu2 %v7063_v22  ;;  %v7206_v63 = vld [vmem:[%s11924_s4 + $0x110] sm:$0xf]  ;;  %v8798_v22 = vld [vmem:[%s11924_s4 + $0x134] sm:$0xf0] }
  0xec   :  { %887 = vmatpush.bf16.msrb.mxu0 %v7071_v23  ;;  %v7207_v8 = vor.u32 %v8797_v3, %v7206_v63  ;;  %v8794_v23 = vld [vmem:[%s11924_s4 + $0x11c] sm:$0xf]  ;;  %v7215_v24 = vor.u32 %v8798_v22, %v7214_v21  ;;  %v7112_v63 = vld [vmem:[%s11924_s4 + $0x70] sm:$0xf0]  ;;  %v8774_v3 = vld [vmem:[%s11924_s4 + $0x74] sm:$0xf0] }
  0xed   :  { %v7219_v26 = vor.u32 %v8794_v23, %v7216_v25  ;;  %v7115_v4 = vor.u32 %v8769_v61, %v7112_v63  ;;  %v7080_v21 = vld [vmem:[%s11924_s4 + $0x30] sm:$0xf0]  ;;  %v7086_v22 = vld [vmem:[%s11924_s4 + $0x18] sm:$0xf] }
  0xee   :  { %v8766_v23 = vld [vmem:[%s11924_s4 + $0x34] sm:$0xf0] }
  0xef   :  { %858 = vmatpush.bf16.msrb.mxu3 %v7067_v18  ;;  %938 = vmatpush.bf16.msrb.mxu2 %v7303_v30  ;;  %v8785_v30 = vld [vmem:[%s11924_s4 + $0xd4] sm:$0xf]  ;;  %v7087_v25 = vor.u32 %v8766_v23, %v7086_v22 }
  0xf0   :  { %996 = vmatpush.bf16.msra.mxu0 %v7311_v36 }
  0xf1   :  { %7058 = vmatmul.msk.f32.gmra.mxu1 %vm342_vm2, %v328_v40  ;;  %v7315_v40 = vor.u32 %v8818_v35, %v7312_v37  ;;  %v8790_v35 = vld [vmem:[%s11924_s4 + $0xf4] sm:$0xf0]  ;;  %v8786_v37 = vld [vmem:[%s11924_s4 + $0xdc] sm:$0xf] }
  0xf2   :  { %v7183_v36 = vor.u32 %v8790_v35, %v7182_v34 }
  0xf3   :  { %967 = vmatpush.bf16.msra.mxu3 %v7307_v32  ;;  %1025 = vmatpush.bf16.msra.mxu1 %v7315_v40  ;;  %v7176_v32 = vld [vmem:[%s11924_s4 + $0xf0] sm:$0xf0]  ;;  %v7187_v40 = vor.u32 %v8786_v37, %v7184_v38 }
  0xf4   :  { %939 = vmatpush.bf16.msrb.mxu2 %v7271_v41  ;;  %997 = vmatpush.bf16.msra.mxu0 %v7279_v17  ;;  %v7179_v33 = vor.u32 %v8785_v30, %v7176_v32  ;;  %v8781_v41 = vld [vmem:[%s11924_s4 + $0xac] sm:$0xf0] }
  0xf7   :  { %1026 = vmatpush.bf16.msra.mxu1 %v7283_v49 }
  0xf8   :  { %940 = vmatpush.bf16.msrb.mxu2 %v7239_v54  ;;  %998 = vmatpush.bf16.msra.mxu0 %v7247_v60  ;;  %v7151_v54 = vor.u32 %v8782_v52, %v7150_v51  ;;  %v8773_v60 = vld [vmem:[%s11924_s4 + $0x6c] sm:$0xf0] }
  0xf9   :  { %7059 = vmatmul.msk.f32.gmra.mxu1 %vm342_vm2, %v329_v43  ;;  %v7272_v43 = vld [vmem:[%s11924_s4 + $0x1b0] sm:$0xf0]  ;;  %v7111_v62 = vor.u32 %v8773_v60, %v7110_v59 }
  0xfa   :  { %v7275_v44 = vor.u32 %v8809_v42, %v7272_v43  ;;  %v8777_v42 = vld [vmem:[%s11924_s4 + $0x94] sm:$0xf] }
  0xfb   :  { %1027 = vmatpush.bf16.msra.mxu1 %v7251_v0  ;;  %v7144_v43 = vld [vmem:[%s11924_s4 + $0xb0] sm:$0xf0]  ;;  %v7118_v0 = vld [vmem:[%s11924_s4 + $0x58] sm:$0xf] }
  0xfc   :  { %968 = vmatpush.bf16.msra.mxu3 %v7275_v44  ;;  %941 = vmatpush.bf16.msrb.mxu2 %v7207_v8  ;;  %v7143_v44 = vor.u32 %v8781_v41, %v7142_v39  ;;  %v7147_v45 = vor.u32 %v8777_v42, %v7144_v43  ;;  %v7119_v5 = vor.u32 %v8774_v3, %v7118_v0  ;;  %v8770_v8 = vld [vmem:[%s11924_s4 + $0x5c] sm:$0xf]  ;;  %v10469_v43 = vld [vmem:[#allocation5 + $0x2] sm:$0xff] }
  0xfd   :  { %999 = vmatpush.bf16.msra.mxu0 %v7215_v24  ;;  %v10482_v52 = vperm.slane %v10469_v43, 0 }
  0xff   :  { %1028 = vmatpush.bf16.msra.mxu1 %v7219_v26  ;;  %v8762_v26 = vld [vmem:[%s11924_s4 + $0x1c] sm:$0xf] }
 0x100   :  { %969 = vmatpush.bf16.msra.mxu3 %v7243_v56  ;;  %942 = vmatpush.bf16.msrb.mxu2 %v7175_v31  ;;  %v7155_v56 = vor.u32 %v8778_v53, %v7152_v55  ;;  %v10485_v53 = vperm.slane %v10469_v43, 1 }
 0x101   :  { %1000 = vmatpush.bf16.msra.mxu0 %v7183_v36 }
 0x103   :  { %1029 = vmatpush.bf16.msra.mxu1 %v7187_v40 }
 0x104   :  { %970 = vmatpush.bf16.msra.mxu3 %v7211_v9  ;;  %943 = vmatpush.bf16.msrb.mxu2 %v7143_v44  ;;  %v7120_v9 = vld [vmem:[%s11924_s4 + $0x78] sm:$0xf0]  ;;  %v10475_v44 = vperm.slane %v10469_v43, 3 }
 0x105   :  { %1001 = vmatpush.bf16.msra.mxu0 %v7151_v54 }
 0x107   :  { %1030 = vmatpush.bf16.msra.mxu1 %v7155_v56 }
 0x108   :  { %971 = vmatpush.bf16.msra.mxu3 %v7179_v33  ;;  %944 = vmatpush.bf16.msrb.mxu2 %v7111_v62 }
 0x109   :  { %1002 = vmatpush.bf16.msra.mxu0 %v7119_v5 }
 0x10c   :  { %972 = vmatpush.bf16.msra.mxu3 %v7147_v45 }
 0x10d   :  { %1003 = vmatpush.bf16.msra.mxu0 %v7087_v25 }
 0x110   :  { %973 = vmatpush.bf16.msra.mxu3 %v7115_v4 }
 0x13e   :  { %v384_v50 = vpop.f32.mrf.mxu1 }
 0x13f   :  { %v385_v14 = vadd.f32 %v10307_v57, %v384_v50 }
 0x141   :  { %v408_v18 = vmax.f32 %v385_v14, 0.0  ;;  %v7078_v14 = vld [vmem:[%s11924_s4 + $0x10] sm:$0xf] }
 0x146   :  { %v387_v15 = vpop.f32.mrf.mxu1 }
 0x147   :  { %v388_v16 = vadd.f32 %v10307_v57, %v387_v15  ;;  %v7123_v15 = vor.u32 %v8770_v8, %v7120_v9 }
 0x149   :  { %v409_v19 = vmax.f32 %v388_v16, 0.0  ;;  %v8765_v16 = vld [vmem:[%s11924_s4 + $0x2c] sm:$0xf0]  ;;  %1031 = vmatpush.bf16.msra.mxu1 %v7123_v15 }
 0x14b   :  { %v10335_v20 = vpack.c.bf16 %v409_v19, %v408_v18  ;;  %v8761_v18 = vld [vmem:[%s11924_s4 + $0x14] sm:$0xf]  ;;  %v7079_v19 = vor.u32 %v8765_v16, %v7078_v14 }
 0x14c   :  { %v7083_v24 = vor.u32 %v8761_v18, %v7080_v21 }
 0x14d   :  { %830 = vmatmul.bf16.vlgmr.msra.gmra.mxu2 %v10335_v20  ;;  %859 = vmatmul.bf16.vlgmr.msrb.gmra.mxu3 %v10335_v20 }
 0x14e   :  { %888 = vmatmul.bf16.vlgmr.msrb.gmra.mxu0 %v10335_v20  ;;  %917 = vmatmul.bf16.vlgmr.msrb.gmra.mxu1 %v10335_v20  ;;  %v390_v27 = vpop.f32.mrf.mxu1 }
 0x14f   :  { %v391_v46 = vadd.f32 %v10307_v57, %v390_v27  ;;  %v7088_v27 = vld [vmem:[%s11924_s4 + $0x38] sm:$0xf0]  ;;  %945 = vmatpush.bf16.msrb.mxu2 %v7079_v19  ;;  %974 = vmatpush.bf16.msra.mxu3 %v7083_v24 }
 0x150   :  { %v7091_v28 = vor.u32 %v8762_v26, %v7088_v27 }
 0x151   :  { %v410_v48 = vmax.f32 %v391_v46, 0.0 }
 0x152   :  { %1032 = vmatpush.bf16.msra.mxu1 %v7091_v28 }
 0x156   :  { %v393_v47 = vpop.f32.mrf.mxu1 }
 0x157   :  { %v394_v17 = vadd.f32 %v10307_v57, %v393_v47 }
 0x159   :  { %v411_v49 = vmax.f32 %v394_v17, 0.0 }
 0x15b   :  { %v10391_v50 = vpack.c.bf16 %v411_v49, %v410_v48 }
 0x15d   :  { %835 = vmatmul.bf16.gmra.mxu2 %v10391_v50  ;;  %864 = vmatmul.bf16.gmra.mxu3 %v10391_v50 }
 0x15e   :  { %893 = vmatmul.bf16.gmra.mxu0 %v10391_v50  ;;  %922 = vmatmul.bf16.gmra.mxu1 %v10391_v50  ;;  %v396_v58 = vpop.f32.mrf.mxu1 }
 0x15f   :  { %v397_v29 = vadd.f32 %v10307_v57, %v396_v58 }
 0x161   :  { %v412_v32 = vmax.f32 %v397_v29, 0.0 }
 0x166   :  { %v399_v30 = vpop.f32.mrf.mxu1 }
 0x167   :  { %v400_v31 = vadd.f32 %v10307_v57, %v399_v30 }
 0x169   :  { %v413_v33 = vmax.f32 %v400_v31, 0.0 }
 0x16b   :  { %v418_v34 = vpack.c.bf16 %v413_v33, %v412_v32 }
 0x16d   :  { %840 = vmatmul.bf16.gmra.mxu2 %v418_v34  ;;  %869 = vmatmul.bf16.gmra.mxu3 %v418_v34 }
 0x16e   :  { %898 = vmatmul.bf16.gmra.mxu0 %v418_v34  ;;  %927 = vmatmul.bf16.gmra.mxu1 %v418_v34  ;;  %v402_v35 = vpop.f32.mrf.mxu1 }
 0x16f   :  { %v403_v36 = vadd.f32 %v10307_v57, %v402_v35 }
 0x171   :  { %v414_v39 = vmax.f32 %v403_v36, 0.0 }
 0x176   :  { %v405_v37 = vpop.f32.mrf.mxu1 }
 0x177   :  { %v406_v38 = vadd.f32 %v10307_v57, %v405_v37 }
 0x179   :  { %v415_v40 = vmax.f32 %v406_v38, 0.0 }
 0x17b   :  { %v419_v41 = vpack.c.bf16 %v415_v40, %v414_v39 }
 0x17d   :  { %845 = vmatmul.bf16.gmra.mxu2 %v419_v41  ;;  %874 = vmatmul.bf16.gmra.mxu3 %v419_v41 }
 0x17e   :  { %903 = vmatmul.bf16.gmra.mxu0 %v419_v41  ;;  %932 = vmatmul.bf16.gmra.mxu1 %v419_v41 }
 0x18d   :  { %946 = vmatmul.bf16.vlgmr.msrb.gmra.mxu2 %v10335_v20  ;;  %975 = vmatmul.bf16.vlgmr.msra.gmra.mxu3 %v10335_v20 }
 0x18e   :  { %1004 = vmatmul.bf16.vlgmr.msra.gmra.mxu0 %v10335_v20  ;;  %1033 = vmatmul.bf16.vlgmr.msra.gmra.mxu1 %v10335_v20  ;;  %v10472_v20 = vperm.slane %v10469_v43, 2 }
 0x19d   :  { %951 = vmatmul.bf16.gmra.mxu2 %v10391_v50  ;;  %980 = vmatmul.bf16.gmra.mxu3 %v10391_v50 }
 0x19e   :  { %1009 = vmatmul.bf16.gmra.mxu0 %v10391_v50  ;;  %1038 = vmatmul.bf16.gmra.mxu1 %v10391_v50 }
 0x1ad   :  { %956 = vmatmul.bf16.gmra.mxu2 %v418_v34  ;;  %985 = vmatmul.bf16.gmra.mxu3 %v418_v34 }
 0x1ae   :  { %1014 = vmatmul.bf16.gmra.mxu0 %v418_v34  ;;  %1043 = vmatmul.bf16.gmra.mxu1 %v418_v34 }
 0x1bd   :  { %961 = vmatmul.bf16.gmra.mxu2 %v419_v41  ;;  %990 = vmatmul.bf16.gmra.mxu3 %v419_v41 }
 0x1be   :  { %1019 = vmatmul.bf16.gmra.mxu0 %v419_v41  ;;  %1048 = vmatmul.bf16.gmra.mxu1 %v419_v41 }
 0x1cb   :  { %v889_v57 = vpop.f32.mrf.mxu0  ;;  %v918_v42 = vpop.f32.mrf.mxu1 }
 0x1cc   :  { %v890_v48 = vadd.f32 %v889_v57, %v10472_v20  ;;  %v919_v49 = vadd.f32 %v918_v42, %v10475_v44 }
 0x1d0   :  { %v831_v45 = vpop.f32.mrf.mxu2  ;;  %v860_v46 = vpop.f32.mrf.mxu3 }
 0x1d1   :  { %v832_v59 = vadd.f32 %v831_v45, %v10482_v52  ;;  %v861_v60 = vadd.f32 %v860_v46, %v10485_v53 }
 0x1d3   :  { %v891_v47 = vpop.f32.mrf.mxu0  ;;  %v920_v17 = vpop.f32.mrf.mxu1 }
 0x1d4   :  { %v892_v50 = vadd.f32 %v891_v47, %v10472_v20  ;;  %v921_v51 = vadd.f32 %v920_v17, %v10475_v44 }
 0x1d6   :  { %v1080_v54 = vmax.f32 %v890_v48, %v892_v50  ;;  %v1093_v55 = vmax.f32 %v919_v49, %v921_v51 }
 0x1d8   :  { %v833_v56 = vpop.f32.mrf.mxu2  ;;  %v862_v58 = vpop.f32.mrf.mxu3 }
 0x1d9   :  { %v834_v61 = vadd.f32 %v833_v56, %v10482_v52  ;;  %v863_v62 = vadd.f32 %v862_v58, %v10485_v53 }
 0x1db   :  { %v1054_v63 = vmax.f32 %v832_v59, %v834_v61  ;;  %v1067_v0 = vmax.f32 %v861_v60, %v863_v62  ;;  %v894_v3 = vpop.f32.mrf.mxu0  ;;  %v923_v4 = vpop.f32.mrf.mxu1 }
 0x1dc   :  { %v895_v5 = vadd.f32 %v894_v3, %v10472_v20  ;;  %v924_v8 = vadd.f32 %v923_v4, %v10475_v44 }
 0x1de   :  { %v1081_v9 = vmax.f32 %v1080_v54, %v895_v5  ;;  %v1094_v14 = vmax.f32 %v1093_v55, %v924_v8 }
 0x1e0   :  { %v836_v15 = vpop.f32.mrf.mxu2  ;;  %v865_v16 = vpop.f32.mrf.mxu3 }
 0x1e1   :  { %v837_v18 = vadd.f32 %v836_v15, %v10482_v52  ;;  %v866_v19 = vadd.f32 %v865_v16, %v10485_v53 }
 0x1e3   :  { %v1055_v21 = vmax.f32 %v1054_v63, %v837_v18  ;;  %v1068_v22 = vmax.f32 %v1067_v0, %v866_v19  ;;  %v896_v23 = vpop.f32.mrf.mxu0  ;;  %v925_v24 = vpop.f32.mrf.mxu1 }
 0x1e4   :  { %v897_v25 = vadd.f32 %v896_v23, %v10472_v20  ;;  %v926_v26 = vadd.f32 %v925_v24, %v10475_v44 }
 0x1e6   :  { %v1082_v27 = vmax.f32 %v1081_v9, %v897_v25  ;;  %v1095_v28 = vmax.f32 %v1094_v14, %v926_v26 }
 0x1e8   :  { %v838_v29 = vpop.f32.mrf.mxu2  ;;  %v867_v30 = vpop.f32.mrf.mxu3 }
 0x1e9   :  { %v839_v31 = vadd.f32 %v838_v29, %v10482_v52  ;;  %v868_v32 = vadd.f32 %v867_v30, %v10485_v53 }
 0x1eb   :  { %v1056_v33 = vmax.f32 %v1055_v21, %v839_v31  ;;  %v1069_v34 = vmax.f32 %v1068_v22, %v868_v32  ;;  %v899_v35 = vpop.f32.mrf.mxu0  ;;  %v928_v36 = vpop.f32.mrf.mxu1 }
 0x1ec   :  { %v900_v37 = vadd.f32 %v899_v35, %v10472_v20  ;;  %v929_v38 = vadd.f32 %v928_v36, %v10475_v44 }
 0x1ee   :  { %v1083_v39 = vmax.f32 %v1082_v27, %v900_v37  ;;  %v1096_v40 = vmax.f32 %v1095_v28, %v929_v38 }
 0x1f0   :  { %v841_v41 = vpop.f32.mrf.mxu2  ;;  %v870_v57 = vpop.f32.mrf.mxu3 }
 0x1f1   :  { %v842_v42 = vadd.f32 %v841_v41, %v10482_v52  ;;  %v871_v45 = vadd.f32 %v870_v57, %v10485_v53 }
 0x1f3   :  { %v1057_v46 = vmax.f32 %v1056_v33, %v842_v42  ;;  %v1070_v47 = vmax.f32 %v1069_v34, %v871_v45  ;;  %v901_v17 = vpop.f32.mrf.mxu0  ;;  %v930_v48 = vpop.f32.mrf.mxu1 }
 0x1f4   :  { %v902_v49 = vadd.f32 %v901_v17, %v10472_v20  ;;  %v931_v50 = vadd.f32 %v930_v48, %v10475_v44 }
 0x1f6   :  { %v1084_v51 = vmax.f32 %v1083_v39, %v902_v49  ;;  %v1097_v54 = vmax.f32 %v1096_v40, %v931_v50 }
 0x1f8   :  { %v843_v55 = vpop.f32.mrf.mxu2  ;;  %v872_v56 = vpop.f32.mrf.mxu3 }
 0x1f9   :  { %v844_v58 = vadd.f32 %v843_v55, %v10482_v52  ;;  %v873_v59 = vadd.f32 %v872_v56, %v10485_v53 }
 0x1fb   :  { %v1058_v60 = vmax.f32 %v1057_v46, %v844_v58  ;;  %v1071_v61 = vmax.f32 %v1070_v47, %v873_v59  ;;  %v904_v62 = vpop.f32.mrf.mxu0  ;;  %v933_v63 = vpop.f32.mrf.mxu1 }
 0x1fc   :  { %v905_v0 = vadd.f32 %v904_v62, %v10472_v20  ;;  %v934_v3 = vadd.f32 %v933_v63, %v10475_v44 }
 0x1fe   :  { %v1085_v4 = vmax.f32 %v1084_v51, %v905_v0  ;;  %v1098_v5 = vmax.f32 %v1097_v54, %v934_v3 }
 0x200   :  { %v846_v8 = vpop.f32.mrf.mxu2  ;;  %v875_v9 = vpop.f32.mrf.mxu3 }
 0x201   :  { %v847_v14 = vadd.f32 %v846_v8, %v10482_v52  ;;  %v876_v15 = vadd.f32 %v875_v9, %v10485_v53 }
 0x203   :  { %v1059_v16 = vmax.f32 %v1058_v60, %v847_v14  ;;  %v1072_v18 = vmax.f32 %v1071_v61, %v876_v15  ;;  %v906_v19 = vpop.f32.mrf.mxu0  ;;  %v935_v21 = vpop.f32.mrf.mxu1 }
 0x204   :  { %v907_v22 = vadd.f32 %v906_v19, %v10472_v20  ;;  %v936_v23 = vadd.f32 %v935_v21, %v10475_v44 }
 0x206   :  { %v1086_v24 = vmax.f32 %v1085_v4, %v907_v22  ;;  %v1099_v25 = vmax.f32 %v1098_v5, %v936_v23 }
 0x208   :  { %v1087_v26 = vrot.slane %v1086_v24, 4  ;;  %v1100_v27 = vrot.slane %v1099_v25, 4  ;;  %v848_v28 = vpop.f32.mrf.mxu2  ;;  %v877_v29 = vpop.f32.mrf.mxu3 }
 0x209   :  { %v849_v30 = vadd.f32 %v848_v28, %v10482_v52  ;;  %v878_v31 = vadd.f32 %v877_v29, %v10485_v53  ;;  %v493_v28 = vperm.slane %v10469_v43, 7 }
 0x20a   :  { %v1088_v32 = vmax.f32 %v1086_v24, %v1087_v26  ;;  %v1101_v33 = vmax.f32 %v1099_v25, %v1100_v27  ;;  %v492_v27 = vperm.slane %v10469_v43, 6 }
 0x20b   :  { %v1060_v34 = vmax.f32 %v1059_v16, %v849_v30  ;;  %v1073_v35 = vmax.f32 %v1072_v18, %v878_v31  ;;  %v1005_v36 = vpop.f32.mrf.mxu0  ;;  %v1034_v37 = vpop.f32.mrf.mxu1 }
 0x20c   :  { %v1089_v38 = vrot.slane %v1088_v32, 2  ;;  %v1102_v20 = vrot.slane %v1101_v33, 2  ;;  %v1006_v31 = vadd.f32 %v1005_v36, %v492_v27 }
 0x20d   :  { %v1061_v39 = vrot.slane %v1060_v34, 4  ;;  %v1074_v44 = vrot.slane %v1073_v35, 4 }
 0x20e   :  { %v1090_v40 = vmax.f32 %v1088_v32, %v1089_v38  ;;  %v1103_v41 = vmax.f32 %v1101_v33, %v1102_v20  ;;  %v1035_v32 = vadd.f32 %v1034_v37, %v493_v28  ;;  %v490_v20 = vperm.slane %v10469_v43, 4 }
 0x20f   :  { %v1062_v57 = vmax.f32 %v1060_v34, %v1061_v39  ;;  %v1075_v42 = vmax.f32 %v1073_v35, %v1074_v44  ;;  %v491_v39 = vperm.slane %v10469_v43, 5 }
 0x210   :  { %v1091_v45 = vrot.slane %v1090_v40, 1  ;;  %v1104_v46 = vrot.slane %v1103_v41, 1  ;;  %v947_v47 = vpop.f32.mrf.mxu2  ;;  %v976_v52 = vpop.f32.mrf.mxu3 }
 0x211   :  { %v1063_v17 = vrot.slane %v1062_v57, 2  ;;  %v1076_v53 = vrot.slane %v1075_v42, 2 }
 0x212   :  { %v10521_v48 = vmax.f32 %v1090_v40, %v1091_v45  ;;  %v10523_v49 = vmax.f32 %v1103_v41, %v1104_v46 }
 0x213   :  { %v1064_v50 = vmax.f32 %v1062_v57, %v1063_v17  ;;  %v1077_v51 = vmax.f32 %v1075_v42, %v1076_v53  ;;  %v1007_v54 = vpop.f32.mrf.mxu0  ;;  %v1036_v55 = vpop.f32.mrf.mxu1 }
 0x214   :  { %v1160_v56 = vmax.f32 %v10521_v48, 0.0  ;;  %v1161_v58 = vmax.f32 %v10523_v49, 0.0  ;;  %v1008_v29 = vadd.f32 %v1007_v54, %v492_v27  ;;  %v1037_v30 = vadd.f32 %v1036_v55, %v493_v28 }
 0x215   :  { %v1065_v59 = vrot.slane %v1064_v50, 1  ;;  %v1078_v60 = vrot.slane %v1077_v51, 1  ;;  %v977_v54 = vadd.f32 %v976_v52, %v491_v39 }
 0x216   :  { %v1132_v44 = vmax.f32 %v1006_v31, %v1008_v29  ;;  %v1145_v40 = vmax.f32 %v1035_v32, %v1037_v30 }
 0x217   :  { %v10527_v61 = vmax.f32 %v1064_v50, %v1065_v59  ;;  %v10529_v62 = vmax.f32 %v1077_v51, %v1078_v60  ;;  %v948_v51 = vadd.f32 %v947_v47, %v490_v20 }
 0x218   :  { %v949_v63 = vpop.f32.mrf.mxu2  ;;  %v978_v0 = vpop.f32.mrf.mxu3 }
 0x219   :  { %v1158_v3 = vmax.f32 %v10527_v61, 0.0  ;;  %v1159_v4 = vmax.f32 %v10529_v62, 0.0  ;;  %v950_v42 = vadd.f32 %v949_v63, %v490_v20  ;;  %v979_v45 = vadd.f32 %v978_v0, %v491_v39 }
 0x21b   :  { %v1010_v5 = vpop.f32.mrf.mxu0  ;;  %v1039_v8 = vpop.f32.mrf.mxu1  ;;  %v1106_v29 = vmax.f32 %v948_v51, %v950_v42  ;;  %v1119_v30 = vmax.f32 %v977_v54, %v979_v45 }
 0x21c   :  { %v1011_v33 = vadd.f32 %v1010_v5, %v492_v27  ;;  %v1040_v34 = vadd.f32 %v1039_v8, %v493_v28 }
 0x21e   :  { %v1133_v53 = vmax.f32 %v1132_v44, %v1011_v33  ;;  %v1146_v50 = vmax.f32 %v1145_v40, %v1040_v34 }
 0x220   :  { %v952_v9 = vpop.f32.mrf.mxu2  ;;  %v981_v14 = vpop.f32.mrf.mxu3 }
 0x221   :  { %v953_v55 = vadd.f32 %v952_v9, %v490_v20  ;;  %v982_v59 = vadd.f32 %v981_v14, %v491_v39 }
 0x223   :  { %v1012_v15 = vpop.f32.mrf.mxu0  ;;  %v1041_v16 = vpop.f32.mrf.mxu1 }
 0x224   :  { %v1013_v41 = vadd.f32 %v1012_v15, %v492_v27  ;;  %v1042_v57 = vadd.f32 %v1041_v16, %v493_v28 }
 0x226   :  { %v1134_v60 = vmax.f32 %v1133_v53, %v1013_v41  ;;  %v1147_v5 = vmax.f32 %v1146_v50, %v1042_v57 }
 0x228   :  { %v954_v18 = vpop.f32.mrf.mxu2  ;;  %v983_v19 = vpop.f32.mrf.mxu3 }
 0x229   :  { %v955_v15 = vadd.f32 %v954_v18, %v490_v20  ;;  %v984_v16 = vadd.f32 %v983_v19, %v491_v39 }
 0x22b   :  { %v1015_v21 = vpop.f32.mrf.mxu0  ;;  %v1044_v22 = vpop.f32.mrf.mxu1 }
 0x22c   :  { %v1016_v36 = vadd.f32 %v1015_v21, %v492_v27  ;;  %v1045_v37 = vadd.f32 %v1044_v22, %v493_v28  ;;  %v1107_v21 = vmax.f32 %v1106_v29, %v953_v55  ;;  %v1120_v22 = vmax.f32 %v1119_v30, %v982_v59 }
 0x22e   :  { %v1135_v63 = vmax.f32 %v1134_v60, %v1016_v36  ;;  %v1148_v0 = vmax.f32 %v1147_v5, %v1045_v37  ;;  %v1108_v44 = vmax.f32 %v1107_v21, %v955_v15  ;;  %v1121_v40 = vmax.f32 %v1120_v22, %v984_v16 }
 0x230   :  { %v957_v23 = vpop.f32.mrf.mxu2  ;;  %v986_v24 = vpop.f32.mrf.mxu3 }
 0x231   :  { %v958_v47 = vadd.f32 %v957_v23, %v490_v20  ;;  %v987_v52 = vadd.f32 %v986_v24, %v491_v39 }
 0x233   :  { %v1017_v25 = vpop.f32.mrf.mxu0  ;;  %v1046_v26 = vpop.f32.mrf.mxu1 }
 0x234   :  { %v1018_v8 = vadd.f32 %v1017_v25, %v492_v27  ;;  %v1047_v43 = vadd.f32 %v1046_v26, %v493_v28 }
 0x236   :  { %v1136_v9 = vmax.f32 %v1135_v63, %v1018_v8  ;;  %v1149_v14 = vmax.f32 %v1148_v0, %v1047_v43 }
 0x238   :  { %v959_v35 = vpop.f32.mrf.mxu2  ;;  %v988_v38 = vpop.f32.mrf.mxu3 }
 0x239   :  { %v960_v25 = vadd.f32 %v959_v35, %v490_v20  ;;  %v989_v26 = vadd.f32 %v988_v38, %v491_v39 }
 0x23b   :  { %v1020_v46 = vpop.f32.mrf.mxu0  ;;  %v1049_v17 = vpop.f32.mrf.mxu1 }
 0x23c   :  { %v1021_v31 = vadd.f32 %v1020_v46, %v492_v27  ;;  %v1050_v32 = vadd.f32 %v1049_v17, %v493_v28  ;;  %v1109_v46 = vmax.f32 %v1108_v44, %v958_v47  ;;  %v1122_v17 = vmax.f32 %v1121_v40, %v987_v52 }
 0x23e   :  { %v1137_v18 = vmax.f32 %v1136_v9, %v1021_v31  ;;  %v1150_v19 = vmax.f32 %v1149_v14, %v1050_v32  ;;  %v1110_v23 = vmax.f32 %v1109_v46, %v960_v25  ;;  %v1123_v24 = vmax.f32 %v1122_v17, %v989_v26 }
 0x240   :  { %v962_v33 = vpop.f32.mrf.mxu2  ;;  %v991_v34 = vpop.f32.mrf.mxu3 }
 0x241   :  { %v963_v53 = vadd.f32 %v962_v33, %v490_v20  ;;  %v992_v50 = vadd.f32 %v991_v34, %v491_v39 }
 0x243   :  { %v1022_v41 = vpop.f32.mrf.mxu0  ;;  %v1051_v57 = vpop.f32.mrf.mxu1  ;;  %v1111_v35 = vmax.f32 %v1110_v23, %v963_v53  ;;  %v1124_v38 = vmax.f32 %v1123_v24, %v992_v50 }
 0x244   :  { %v1023_v42 = vadd.f32 %v1022_v41, %v492_v27  ;;  %v1052_v45 = vadd.f32 %v1051_v57, %v493_v28 }
 0x246   :  { %v1138_v36 = vmax.f32 %v1137_v18, %v1023_v42  ;;  %v1151_v37 = vmax.f32 %v1150_v19, %v1052_v45 }
 0x248   :  { %v1139_v51 = vrot.slane %v1138_v36, 4  ;;  %v1152_v54 = vrot.slane %v1151_v37, 4  ;;  %v964_v55 = vpop.f32.mrf.mxu2  ;;  %v993_v59 = vpop.f32.mrf.mxu3 }
 0x249   :  { %v965_v60 = vadd.f32 %v964_v55, %v490_v20  ;;  %v994_v5 = vadd.f32 %v993_v59, %v491_v39 }
 0x24a   :  { %v1140_v8 = vmax.f32 %v1138_v36, %v1139_v51  ;;  %v1153_v43 = vmax.f32 %v1151_v37, %v1152_v54 }
 0x24b   :  { %v1112_v27 = vmax.f32 %v1111_v35, %v965_v60  ;;  %v1125_v28 = vmax.f32 %v1124_v38, %v994_v5 }
 0x24c   :  { %v1141_v29 = vrot.slane %v1140_v8, 2  ;;  %v1154_v30 = vrot.slane %v1153_v43, 2 }
 0x24d   :  { %v1113_v15 = vrot.slane %v1112_v27, 4  ;;  %v1126_v16 = vrot.slane %v1125_v28, 4 }
 0x24e   :  { %v1142_v63 = vmax.f32 %v1140_v8, %v1141_v29  ;;  %v1155_v0 = vmax.f32 %v1153_v43, %v1154_v30 }
 0x24f   :  { %v1114_v31 = vmax.f32 %v1112_v27, %v1113_v15  ;;  %v1127_v32 = vmax.f32 %v1125_v28, %v1126_v16 }
 0x250   :  { %v1143_v33 = vrot.slane %v1142_v63, 1  ;;  %v1156_v34 = vrot.slane %v1155_v0, 1 }
 0x251   :  { %v1115_v21 = vrot.slane %v1114_v31, 2  ;;  %v1128_v22 = vrot.slane %v1127_v32, 2 }
 0x252   :  { %v10537_v47 = vmax.f32 %v1142_v63, %v1143_v33  ;;  %v10539_v20 = vmax.f32 %v1155_v0, %v1156_v34 }
 0x253   :  { %v1116_v39 = vmax.f32 %v1114_v31, %v1115_v21  ;;  %v1129_v52 = vmax.f32 %v1127_v32, %v1128_v22 }
 0x254   :  { %v1164_v9 = vmax.f32 %v10537_v47, 0.0  ;;  %v1165_v14 = vmax.f32 %v10539_v20, 0.0 }
 0x255   :  { %v1117_v44 = vrot.slane %v1116_v39, 1  ;;  %v1130_v40 = vrot.slane %v1129_v52, 1 }
 0x257   :  { %v10543_v25 = vmax.f32 %v1116_v39, %v1117_v44  ;;  %v10545_v26 = vmax.f32 %v1129_v52, %v1130_v40 }
 0x259   :  { %v1162_v41 = vmax.f32 %v10543_v25, 0.0  ;;  %v1163_v57 = vmax.f32 %v10545_v26, 0.0 }
 0x25a   :  { %9782 = dma.done.wait [#allocation4], 32768 }
 0x25b   :  { %9783 = vsyncadd [#allocation4], 4294934528  ;;  %v7430_v18 = vld [vmem:[#allocation2 + $0xe0] sm:$0xf]  ;;  %v8853_v19 = vld [vmem:[#allocation2 + $0xec] sm:$0xf0] }
 0x25c   :  { %v7558_v42 = vld [vmem:[#allocation2 + $0x1e0] sm:$0xf]  ;;  %v7431_v45 = vor.u32 %v8853_v19, %v7430_v18  ;;  %v8885_v46 = vld [vmem:[#allocation2 + $0x1ec] sm:$0xf0]  ;;  %v7656_v47 = vld [vmem:[#allocation2 + $0x2b0] sm:$0xf0] }
 0x25d   :  { %v7414_v17 = vld [vmem:[#allocation2 + $0xc0] sm:$0xf]  ;;  %v8849_v53 = vld [vmem:[#allocation2 + $0xcc] sm:$0xf0]  ;;  %v7559_v50 = vor.u32 %v8885_v46, %v7558_v42 }
 0x25e   :  { %v7542_v36 = vld [vmem:[#allocation2 + $0x1c0] sm:$0xf]  ;;  %v8881_v37 = vld [vmem:[#allocation2 + $0x1cc] sm:$0xf0]  ;;  %2724 = vmatpush.bf16.msra.mxu2 %v7431_v45  ;;  %v7415_v23 = vor.u32 %v8849_v53, %v7414_v17 }
 0x25f   :  { %2737 = vmatpush.bf16.msrb.mxu3 %v7559_v50  ;;  %v7543_v24 = vor.u32 %v8881_v37, %v7542_v36  ;;  %v7398_v51 = vld [vmem:[#allocation2 + $0xa0] sm:$0xf]  ;;  %v8845_v54 = vld [vmem:[#allocation2 + $0xac] sm:$0xf0] }
 0x260   :  { %v7526_v55 = vld [vmem:[#allocation2 + $0x1a0] sm:$0xf]  ;;  %v8877_v59 = vld [vmem:[#allocation2 + $0x1ac] sm:$0xf0]  ;;  %v7399_v35 = vor.u32 %v8845_v54, %v7398_v51 }
 0x261   :  { %v7527_v38 = vor.u32 %v8877_v59, %v7526_v55  ;;  %v7382_v60 = vld [vmem:[#allocation2 + $0x80] sm:$0xf]  ;;  %v8841_v5 = vld [vmem:[#allocation2 + $0x8c] sm:$0xf0] }
 0x262   :  { %2725 = vmatpush.bf16.msra.mxu2 %v7415_v23  ;;  %v7510_v8 = vld [vmem:[#allocation2 + $0x180] sm:$0xf]  ;;  %v8873_v43 = vld [vmem:[#allocation2 + $0x18c] sm:$0xf0]  ;;  %v7383_v27 = vor.u32 %v8841_v5, %v7382_v60 }
 0x263   :  { %2738 = vmatpush.bf16.msrb.mxu3 %v7543_v24  ;;  %v7511_v28 = vor.u32 %v8873_v43, %v7510_v8  ;;  %v7366_v29 = vld [vmem:[#allocation2 + $0x60] sm:$0xf]  ;;  %v8837_v30 = vld [vmem:[#allocation2 + $0x6c] sm:$0xf0] }
 0x264   :  { %v7494_v15 = vld [vmem:[#allocation2 + $0x160] sm:$0xf]  ;;  %v8869_v16 = vld [vmem:[#allocation2 + $0x16c] sm:$0xf0]  ;;  %v7367_v0 = vor.u32 %v8837_v30, %v7366_v29 }
 0x265   :  { %v7942_v63 = vld [vmem:[#allocation2 + $0x4e0] sm:$0xf]  ;;  %v8833_v32 = vld [vmem:[#allocation2 + $0x4c] sm:$0xf0]  ;;  %v7495_v34 = vor.u32 %v8869_v16, %v7494_v15 }
 0x266   :  { %2726 = vmatpush.bf16.msra.mxu2 %v7399_v35  ;;  %v7350_v31 = vld [vmem:[#allocation2 + $0x40] sm:$0xf]  ;;  %v8981_v33 = vld [vmem:[#allocation2 + $0x4ec] sm:$0xf0] }
 0x267   :  { %2739 = vmatpush.bf16.msrb.mxu3 %v7527_v38  ;;  %v7478_v21 = vld [vmem:[#allocation2 + $0x140] sm:$0xf]  ;;  %v8865_v22 = vld [vmem:[#allocation2 + $0x14c] sm:$0xf0]  ;;  %v7943_v39 = vor.u32 %v8981_v33, %v7942_v63  ;;  %v7351_v45 = vor.u32 %v8833_v32, %v7350_v31 }
 0x268   :  { %v8070_v52 = vld [vmem:[#allocation2 + $0x5e0] sm:$0xf]  ;;  %v9013_v44 = vld [vmem:[#allocation2 + $0x5ec] sm:$0xf0]  ;;  %v7479_v50 = vor.u32 %v8865_v22, %v7478_v21 }
 0x269   :  { %v7926_v40 = vld [vmem:[#allocation2 + $0x4c0] sm:$0xf]  ;;  %v8977_v18 = vld [vmem:[#allocation2 + $0x4cc] sm:$0xf0]  ;;  %2776 = vmatpush.bf16.msrb.mxu0 %v7943_v39  ;;  %v8071_v19 = vor.u32 %v9013_v44, %v8070_v52 }
 0x26a   :  { %2727 = vmatpush.bf16.msra.mxu2 %v7383_v27  ;;  %v7927_v42 = vor.u32 %v8977_v18, %v7926_v40  ;;  %v7334_v46 = vld [vmem:[#allocation2 + $0x20] sm:$0xf]  ;;  %v9009_v53 = vld [vmem:[#allocation2 + $0x5cc] sm:$0xf0] }
 0x26b   :  { %2740 = vmatpush.bf16.msrb.mxu3 %v7511_v28  ;;  %v8054_v17 = vld [vmem:[#allocation2 + $0x5c0] sm:$0xf]  ;;  %v8829_v36 = vld [vmem:[#allocation2 + $0x2c] sm:$0xf0]  ;;  %2789 = vmatpush.bf16.msrb.mxu1 %v8071_v19 }
 0x26c   :  { %v8055_v37 = vor.u32 %v9009_v53, %v8054_v17  ;;  %v7910_v23 = vld [vmem:[#allocation2 + $0x4a0] sm:$0xf]  ;;  %v8973_v24 = vld [vmem:[#allocation2 + $0x4ac] sm:$0xf0]  ;;  %v7335_v38 = vor.u32 %v8829_v36, %v7334_v46  ;;  %v10552_v46 = vpack.c.bf16 %v1158_v3, %v1158_v3  ;;  %v10557_v36 = vpack.c.bf16 %v1159_v4, %v1159_v4 }
 0x26d   :  { %v7462_v51 = vld [vmem:[#allocation2 + $0x120] sm:$0xf]  ;;  %v8861_v54 = vld [vmem:[#allocation2 + $0x12c] sm:$0xf0]  ;;  %2777 = vmatpush.bf16.msrb.mxu0 %v7927_v42  ;;  %v7911_v55 = vor.u32 %v8973_v24, %v7910_v23 }
 0x26e   :  { %2728 = vmatpush.bf16.msra.mxu2 %v7367_v0  ;;  %v8038_v59 = vld [vmem:[#allocation2 + $0x5a0] sm:$0xf]  ;;  %v9005_v35 = vld [vmem:[#allocation2 + $0x5ac] sm:$0xf0]  ;;  %v7463_v43 = vor.u32 %v8861_v54, %v7462_v51 }
 0x26f   :  { %2741 = vmatpush.bf16.msrb.mxu3 %v7495_v34  ;;  %v7318_v60 = vld [vmem:[#allocation2] sm:$0xf]  ;;  %v8969_v8 = vld [vmem:[#allocation2 + $0x48c] sm:$0xf0]  ;;  %2790 = vmatpush.bf16.msrb.mxu1 %v8055_v37  ;;  %v8039_v30 = vor.u32 %v9005_v35, %v8038_v59 }
 0x270   :  { %v7894_v5 = vld [vmem:[#allocation2 + $0x480] sm:$0xf]  ;;  %v8825_v27 = vld [vmem:[#allocation2 + $0xc] sm:$0xf0] }
 0x271   :  { %v7446_v28 = vld [vmem:[#allocation2 + $0x100] sm:$0xf]  ;;  %v8857_v29 = vld [vmem:[#allocation2 + $0x10c] sm:$0xf0]  ;;  %2778 = vmatpush.bf16.msrb.mxu0 %v7911_v55  ;;  %v7895_v31 = vor.u32 %v8969_v8, %v7894_v5  ;;  %v7319_v34 = vor.u32 %v8825_v27, %v7318_v60 }
 0x272   :  { %2729 = vmatpush.bf16.msra.mxu2 %v7351_v45  ;;  %v7686_v15 = vld [vmem:[#allocation2 + $0x2e0] sm:$0xf]  ;;  %v8917_v16 = vld [vmem:[#allocation2 + $0x2ec] sm:$0xf0]  ;;  %v7447_v39 = vor.u32 %v8857_v29, %v7446_v28 }
 0x273   :  { %2742 = vmatpush.bf16.msrb.mxu3 %v7479_v50  ;;  %v7814_v63 = vld [vmem:[#allocation2 + $0x3e0] sm:$0xf]  ;;  %v8949_v0 = vld [vmem:[#allocation2 + $0x3ec] sm:$0xf0]  ;;  %v7687_v52 = vor.u32 %v8917_v16, %v7686_v15  ;;  %2791 = vmatpush.bf16.msrb.mxu1 %v8039_v30 }
 0x274   :  { %v8022_v32 = vld [vmem:[#allocation2 + $0x580] sm:$0xf]  ;;  %v9001_v33 = vld [vmem:[#allocation2 + $0x58c] sm:$0xf0]  ;;  %v7815_v44 = vor.u32 %v8949_v0, %v7814_v63 }
 0x275   :  { %v7878_v21 = vld [vmem:[#allocation2 + $0x460] sm:$0xf]  ;;  %v8965_v22 = vld [vmem:[#allocation2 + $0x46c] sm:$0xf0]  ;;  %v8023_v42 = vor.u32 %v9001_v33, %v8022_v32  ;;  %2779 = vmatpush.bf16.msrb.mxu0 %v7895_v31 }
 0x276   :  { %2730 = vmatpush.bf16.msra.mxu2 %v7335_v38  ;;  %v7670_v40 = vld [vmem:[#allocation2 + $0x2c0] sm:$0xf]  ;;  %v8913_v18 = vld [vmem:[#allocation2 + $0x2cc] sm:$0xf0]  ;;  %v7879_v17 = vor.u32 %v8965_v22, %v7878_v21 }
 0x277   :  { %2743 = vmatpush.bf16.msrb.mxu3 %v7463_v43  ;;  %v7798_v19 = vld [vmem:[#allocation2 + $0x3c0] sm:$0xf]  ;;  %v8945_v45 = vld [vmem:[#allocation2 + $0x3cc] sm:$0xf0]  ;;  %v7671_v24 = vor.u32 %v8913_v18, %v7670_v40  ;;  %2792 = vmatpush.bf16.msrb.mxu1 %v8023_v42 }
 0x278   :  { %v8006_v53 = vld [vmem:[#allocation2 + $0x560] sm:$0xf]  ;;  %v8997_v50 = vld [vmem:[#allocation2 + $0x56c] sm:$0xf0]  ;;  %v7799_v61 = vor.u32 %v8945_v45, %v7798_v19 }
 0x279   :  { %v7862_v37 = vld [vmem:[#allocation2 + $0x440] sm:$0xf]  ;;  %v8961_v23 = vld [vmem:[#allocation2 + $0x44c] sm:$0xf0]  ;;  %v8007_v55 = vor.u32 %v8997_v50, %v8006_v53  ;;  %2780 = vmatpush.bf16.msrb.mxu0 %v7879_v17 }
 0x27a   :  { %2731 = vmatpush.bf16.msra.mxu2 %v7319_v34  ;;  %v7654_v51 = vld [vmem:[#allocation2 + $0x2a0] sm:$0xf]  ;;  %v8909_v3 = vld [vmem:[#allocation2 + $0x2ac] sm:$0xf0]  ;;  %v7863_v62 = vor.u32 %v8961_v23, %v7862_v37  ;;  %v10564_v23 = vpack.c.bf16 %v1162_v41, %v1162_v41  ;;  %v8883_v41 = vld [vmem:[#allocation2 + $0x1e4] sm:$0xf] }
 0x27b   :  { %2744 = vmatpush.bf16.msrb.mxu3 %v7447_v39  ;;  %v7782_v54 = vld [vmem:[#allocation2 + $0x3a0] sm:$0xf]  ;;  %v8941_v59 = vld [vmem:[#allocation2 + $0x3ac] sm:$0xf0]  ;;  %v7655_v5 = vor.u32 %v8909_v3, %v7654_v51  ;;  %2793 = vmatpush.bf16.msrb.mxu1 %v8007_v55  ;;  %v8851_v51 = vld [vmem:[#allocation2 + $0xe4] sm:$0xf] }
 0x27c   :  { %v7990_v35 = vld [vmem:[#allocation2 + $0x540] sm:$0xf]  ;;  %v8993_v4 = vld [vmem:[#allocation2 + $0x54c] sm:$0xf0]  ;;  %v7783_v8 = vor.u32 %v8941_v59, %v7782_v54  ;;  %v7432_v3 = vld [vmem:[#allocation2 + $0xf0] sm:$0xf0] }
 0x27d   :  { %2732 = vmatmul.bf16.vlgmr.msra.gmra.mxu2 %v10552_v46  ;;  %v7846_v38 = vld [vmem:[#allocation2 + $0x420] sm:$0xf]  ;;  %v8957_v60 = vld [vmem:[#allocation2 + $0x42c] sm:$0xf0]  ;;  %v7991_v29 = vor.u32 %v8993_v4, %v7990_v35  ;;  %2781 = vmatpush.bf16.msrb.mxu0 %v7863_v62  ;;  %v7435_v35 = vor.u32 %v8851_v51, %v7432_v3  ;;  %v7560_v4 = vld [vmem:[#allocation2 + $0x1f0] sm:$0xf0] }
 0x27e   :  { %2750 = vmatpush.bf16.msrb.mxu2 %v7687_v52  ;;  %2745 = vmatmul.bf16.vlgmr.msrb.gmra.mxu3 %v10557_v36  ;;  %v7638_v43 = vld [vmem:[#allocation2 + $0x280] sm:$0xf]  ;;  %v8905_v27 = vld [vmem:[#allocation2 + $0x28c] sm:$0xf0]  ;;  %v7847_v15 = vor.u32 %v8957_v60, %v7846_v38  ;;  %v7563_v26 = vor.u32 %v8883_v41, %v7560_v4  ;;  %v7384_v51 = vld [vmem:[#allocation2 + $0x90] sm:$0xf0] }
 0x27f   :  { %2763 = vmatpush.bf16.msra.mxu3 %v7815_v44  ;;  %v7766_v28 = vld [vmem:[#allocation2 + $0x380] sm:$0xf]  ;;  %v8937_v30 = vld [vmem:[#allocation2 + $0x38c] sm:$0xf0]  ;;  %v7639_v32 = vor.u32 %v8905_v27, %v7638_v43  ;;  %2794 = vmatpush.bf16.msrb.mxu1 %v7991_v29  ;;  %v7368_v41 = vld [vmem:[#allocation2 + $0x70] sm:$0xf0] }
 0x280   :  { %v7974_v16 = vld [vmem:[#allocation2 + $0x520] sm:$0xf]  ;;  %v8989_v63 = vld [vmem:[#allocation2 + $0x52c] sm:$0xf0]  ;;  %v7767_v33 = vor.u32 %v8937_v30, %v7766_v28 }
 0x281   :  { %v7830_v0 = vld [vmem:[#allocation2 + $0x400] sm:$0xf]  ;;  %v8953_v31 = vld [vmem:[#allocation2 + $0x40c] sm:$0xf0]  ;;  %v7975_v39 = vor.u32 %v8989_v63, %v7974_v16  ;;  %2782 = vmatpush.bf16.msrb.mxu0 %v7847_v15  ;;  %v8879_v16 = vld [vmem:[#allocation2 + $0x1c4] sm:$0xf] }
 0x282   :  { %2751 = vmatpush.bf16.msrb.mxu2 %v7671_v24  ;;  %v7622_v34 = vld [vmem:[#allocation2 + $0x260] sm:$0xf]  ;;  %v8901_v21 = vld [vmem:[#allocation2 + $0x26c] sm:$0xf0]  ;;  %v7831_v44 = vor.u32 %v8953_v31, %v7830_v0  ;;  %v7544_v63 = vld [vmem:[#allocation2 + $0x1d0] sm:$0xf0] }
 0x283   :  { %2764 = vmatpush.bf16.msra.mxu3 %v7799_v61  ;;  %v7750_v22 = vld [vmem:[#allocation2 + $0x360] sm:$0xf]  ;;  %v8933_v52 = vld [vmem:[#allocation2 + $0x36c] sm:$0xf0]  ;;  %v7623_v19 = vor.u32 %v8901_v21, %v7622_v34  ;;  %2795 = vmatpush.bf16.msrb.mxu1 %v7975_v39  ;;  %v10569_v61 = vpack.c.bf16 %v1163_v57, %v1163_v57  ;;  %v8843_v34 = vld [vmem:[#allocation2 + $0xa4] sm:$0xf] }
 0x284   :  { %v7958_v40 = vld [vmem:[#allocation2 + $0x500] sm:$0xf]  ;;  %v8985_v18 = vld [vmem:[#allocation2 + $0x50c] sm:$0xf0]  ;;  %v7751_v42 = vor.u32 %v8933_v52, %v7750_v22  ;;  %v7400_v21 = vld [vmem:[#allocation2 + $0xb0] sm:$0xf0] }
 0x285   :  { %v7606_v45 = vld [vmem:[#allocation2 + $0x240] sm:$0xf]  ;;  %v8897_v17 = vld [vmem:[#allocation2 + $0x24c] sm:$0xf0]  ;;  %v7959_v53 = vor.u32 %v8985_v18, %v7958_v40  ;;  %2783 = vmatpush.bf16.msrb.mxu0 %v7831_v44  ;;  %v7403_v44 = vor.u32 %v8843_v34, %v7400_v21  ;;  %v7480_v34 = vld [vmem:[#allocation2 + $0x150] sm:$0xf0] }
 0x286   :  { %2752 = vmatpush.bf16.msrb.mxu2 %v7655_v5  ;;  %v7734_v50 = vld [vmem:[#allocation2 + $0x340] sm:$0xf]  ;;  %v8929_v37 = vld [vmem:[#allocation2 + $0x34c] sm:$0xf0]  ;;  %v7607_v24 = vor.u32 %v8897_v17, %v7606_v45  ;;  %v8847_v5 = vld [vmem:[#allocation2 + $0xc4] sm:$0xf]  ;;  %v10576_v45 = vpack.c.bf16 %v1160_v56, %v1160_v56 }
 0x287   :  { %2765 = vmatpush.bf16.msra.mxu3 %v7783_v8  ;;  %v7735_v54 = vor.u32 %v8929_v37, %v7734_v50  ;;  %v7590_v55 = vld [vmem:[#allocation2 + $0x220] sm:$0xf]  ;;  %v8893_v59 = vld [vmem:[#allocation2 + $0x22c] sm:$0xf0]  ;;  %2796 = vmatpush.bf16.msrb.mxu1 %v7959_v53  ;;  %v7416_v8 = vld [vmem:[#allocation2 + $0xd0] sm:$0xf0]  ;;  %v10581_v37 = vpack.c.bf16 %v1161_v58, %v1161_v58 }
 0x288   :  { %v7718_v62 = vld [vmem:[#allocation2 + $0x320] sm:$0xf]  ;;  %v8925_v25 = vld [vmem:[#allocation2 + $0x32c] sm:$0xf0]  ;;  %2784 = vmatmul.bf16.vlgmr.msrb.gmra.mxu0 %v10564_v23  ;;  %v7591_v57 = vor.u32 %v8893_v59, %v7590_v55  ;;  %v7419_v30 = vor.u32 %v8847_v5, %v7416_v8  ;;  %v8867_v8 = vld [vmem:[#allocation2 + $0x164] sm:$0xf] }
 0x289   :  { %v7574_v38 = vld [vmem:[#allocation2 + $0x200] sm:$0xf]  ;;  %2828 = vmatpush.bf16.msra.mxu0 %v7435_v35  ;;  %v8889_v60 = vld [vmem:[#allocation2 + $0x20c] sm:$0xf0]  ;;  %v7719_v43 = vor.u32 %v8925_v25, %v7718_v62  ;;  %v8871_v62 = vld [vmem:[#allocation2 + $0x184] sm:$0xf] }
 0x28a   :  { %2753 = vmatpush.bf16.msrb.mxu2 %v7639_v32  ;;  %2797 = vmatmul.bf16.vlgmr.msrb.gmra.mxu1 %v10569_v61  ;;  %v7702_v27 = vld [vmem:[#allocation2 + $0x300] sm:$0xf]  ;;  %v8921_v28 = vld [vmem:[#allocation2 + $0x30c] sm:$0xf0]  ;;  %v7547_v32 = vor.u32 %v8879_v16, %v7544_v63  ;;  %v7512_v35 = vld [vmem:[#allocation2 + $0x190] sm:$0xf0] }
 0x28b   :  { %2766 = vmatpush.bf16.msra.mxu3 %v7767_v33  ;;  %v8198_v29 = vld [vmem:[#allocation2 + $0x6e0] sm:$0xf]  ;;  %2841 = vmatpush.bf16.msra.mxu1 %v7563_v26  ;;  %v9045_v15 = vld [vmem:[#allocation2 + $0x6ec] sm:$0xf0]  ;;  %v7575_v33 = vor.u32 %v8889_v60, %v7574_v38  ;;  %v7703_v22 = vor.u32 %v8921_v28, %v7702_v27  ;;  %v7515_v58 = vor.u32 %v8871_v62, %v7512_v35  ;;  %v8835_v25 = vld [vmem:[#allocation2 + $0x64] sm:$0xf] }
 0x28c   :  { %v8326_v0 = vld [vmem:[#allocation2 + $0x7e0] sm:$0xf]  ;;  %v9077_v31 = vld [vmem:[#allocation2 + $0x7ec] sm:$0xf0]  ;;  %v8199_v39 = vor.u32 %v9045_v15, %v8198_v29  ;;  %v7371_v4 = vor.u32 %v8835_v25, %v7368_v41  ;;  %v8831_v29 = vld [vmem:[#allocation2 + $0x44] sm:$0xf] }
 0x28d   :  { %2829 = vmatpush.bf16.msra.mxu0 %v7419_v30  ;;  %v8182_v52 = vld [vmem:[#allocation2 + $0x6c0] sm:$0xf]  ;;  %v8327_v40 = vor.u32 %v9077_v31, %v8326_v0  ;;  %v9041_v18 = vld [vmem:[#allocation2 + $0x6cc] sm:$0xf0]  ;;  %v7352_v30 = vld [vmem:[#allocation2 + $0x50] sm:$0xf0] }
 0x28e   :  { %2754 = vmatpush.bf16.msrb.mxu2 %v7623_v19  ;;  %v8875_v19 = vld [vmem:[#allocation2 + $0x1a4] sm:$0xf]  ;;  %v8310_v17 = vld [vmem:[#allocation2 + $0x7c0] sm:$0xf]  ;;  %v9073_v53 = vld [vmem:[#allocation2 + $0x7cc] sm:$0xf0]  ;;  %v8183_v3 = vor.u32 %v9041_v18, %v8182_v52  ;;  %v7355_v15 = vor.u32 %v8831_v29, %v7352_v30 }
 0x28f   :  { %2767 = vmatpush.bf16.msra.mxu3 %v7751_v42  ;;  %2842 = vmatpush.bf16.msra.mxu1 %v7547_v32  ;;  %v7528_v42 = vld [vmem:[#allocation2 + $0x1b0] sm:$0xf0]  ;;  %v9037_v48 = vld [vmem:[#allocation2 + $0x6ac] sm:$0xf0]  ;;  %v8311_v56 = vor.u32 %v9073_v53, %v8310_v17  ;;  %v8294_v59 = vld [vmem:[#allocation2 + $0x7a0] sm:$0xf] }
 0x290   :  { %v7531_v50 = vor.u32 %v8875_v19, %v7528_v42  ;;  %v9069_v49 = vld [vmem:[#allocation2 + $0x7ac] sm:$0xf0]  ;;  %v8150_v26 = vld [vmem:[#allocation2 + $0x680] sm:$0xf]  ;;  %v7336_v52 = vld [vmem:[#allocation2 + $0x30] sm:$0xf0] }
 0x291   :  { %2830 = vmatpush.bf16.msra.mxu0 %v7403_v44  ;;  %v8295_v60 = vor.u32 %v9069_v49, %v8294_v59  ;;  %v8278_v5 = vld [vmem:[#allocation2 + $0x780] sm:$0xf]  ;;  %v9065_v27 = vld [vmem:[#allocation2 + $0x78c] sm:$0xf0]  ;;  %v8859_v53 = vld [vmem:[#allocation2 + $0x124] sm:$0xf] }
 0x292   :  { %2755 = vmatpush.bf16.msrb.mxu2 %v7607_v24  ;;  %v8839_v24 = vld [vmem:[#allocation2 + $0x84] sm:$0xf]  ;;  %v8134_v63 = vld [vmem:[#allocation2 + $0x660] sm:$0xf]  ;;  %v9029_v0 = vld [vmem:[#allocation2 + $0x66c] sm:$0xf0]  ;;  %v8279_v31 = vor.u32 %v9065_v27, %v8278_v5 }
 0x293   :  { %2768 = vmatpush.bf16.msra.mxu3 %v7735_v54  ;;  %v8166_v54 = vld [vmem:[#allocation2 + $0x6a0] sm:$0xf]  ;;  %v7387_v55 = vor.u32 %v8839_v24, %v7384_v51  ;;  %2843 = vmatpush.bf16.msra.mxu1 %v7531_v50  ;;  %v9061_v21 = vld [vmem:[#allocation2 + $0x76c] sm:$0xf0]  ;;  %v7464_v50 = vld [vmem:[#allocation2 + $0x130] sm:$0xf0] }
 0x294   :  { %v8167_v38 = vor.u32 %v9037_v48, %v8166_v54  ;;  %v8262_v32 = vld [vmem:[#allocation2 + $0x760] sm:$0xf]  ;;  %v9025_v19 = vld [vmem:[#allocation2 + $0x64c] sm:$0xf0]  ;;  %v7467_v51 = vor.u32 %v8859_v53, %v7464_v50  ;;  %v7320_v54 = vld [vmem:[#allocation2 + $0x10] sm:$0xf0] }
 0x295   :  { %2831 = vmatpush.bf16.msra.mxu0 %v7387_v55  ;;  %v8118_v18 = vld [vmem:[#allocation2 + $0x640] sm:$0xf]  ;;  %v8263_v42 = vor.u32 %v9061_v21, %v8262_v32  ;;  %v9057_v24 = vld [vmem:[#allocation2 + $0x74c] sm:$0xf0]  ;;  %v8979_v62 = vld [vmem:[#allocation2 + $0x4e4] sm:$0xf] }
 0x296   :  { %2756 = vmatpush.bf16.msrb.mxu2 %v7591_v57  ;;  %v9033_v57 = vld [vmem:[#allocation2 + $0x68c] sm:$0xf0]  ;;  %v8246_v17 = vld [vmem:[#allocation2 + $0x740] sm:$0xf]  ;;  %v7944_v35 = vld [vmem:[#allocation2 + $0x4f0] sm:$0xf0] }
 0x297   :  { %2769 = vmatpush.bf16.msra.mxu3 %v7719_v43  ;;  %2844 = vmatpush.bf16.msra.mxu1 %v7515_v58  ;;  %v7496_v43 = vld [vmem:[#allocation2 + $0x170] sm:$0xf0]  ;;  %v8151_v16 = vor.u32 %v9033_v57, %v8150_v26  ;;  %v8102_v48 = vld [vmem:[#allocation2 + $0x620] sm:$0xf]  ;;  %v9021_v59 = vld [vmem:[#allocation2 + $0x62c] sm:$0xf0]  ;;  %v8247_v49 = vor.u32 %v9057_v24, %v8246_v17  ;;  %v7947_v25 = vor.u32 %v8979_v62, %v7944_v35 }
 0x298   :  { %v7499_v28 = vor.u32 %v8867_v8, %v7496_v43  ;;  %v8230_v58 = vld [vmem:[#allocation2 + $0x720] sm:$0xf]  ;;  %v8855_v41 = vld [vmem:[#allocation2 + $0x104] sm:$0xf]  ;;  %v8103_v43 = vor.u32 %v9021_v59, %v8102_v48  ;;  %v9017_v27 = vld [vmem:[#allocation2 + $0x60c] sm:$0xf0]  ;;  %v10595_v59 = vpack.c.bf16 %v1165_v14, %v1165_v14 }
 0x299   :  { %2832 = vmatpush.bf16.msra.mxu0 %v7371_v4  ;;  %v7448_v4 = vld [vmem:[#allocation2 + $0x110] sm:$0xf0]  ;;  %v9011_v57 = vld [vmem:[#allocation2 + $0x5e4] sm:$0xf]  ;;  %v8086_v5 = vld [vmem:[#allocation2 + $0x600] sm:$0xf] }
 0x29a   :  { %2757 = vmatpush.bf16.msrb.mxu2 %v7575_v33  ;;  %v8863_v33 = vld [vmem:[#allocation2 + $0x144] sm:$0xf]  ;;  %v7451_v26 = vor.u32 %v8855_v41, %v7448_v4  ;;  %v7928_v29 = vld [vmem:[#allocation2 + $0x4d0] sm:$0xf0] }
 0x29b   :  { %2770 = vmatpush.bf16.msra.mxu3 %v7703_v22  ;;  %2845 = vmatpush.bf16.msra.mxu1 %v7499_v28  ;;  %v7483_v22 = vor.u32 %v8863_v33, %v7480_v34  ;;  %v8975_v28 = vld [vmem:[#allocation2 + $0x4c4] sm:$0xf]  ;;  %v8056_v33 = vld [vmem:[#allocation2 + $0x5d0] sm:$0xf0] }
 0x29c   :  { %v9007_v32 = vld [vmem:[#allocation2 + $0x5c4] sm:$0xf]  ;;  %v7816_v21 = vld [vmem:[#allocation2 + $0x3f0] sm:$0xf0] }
 0x29d   :  { %2758 = vmatmul.bf16.vlgmr.msrb.gmra.mxu2 %v10576_v45  ;;  %2833 = vmatpush.bf16.msra.mxu0 %v7355_v15  ;;  %v8214_v15 = vld [vmem:[#allocation2 + $0x700] sm:$0xf]  ;;  %v8947_v34 = vld [vmem:[#allocation2 + $0x3e4] sm:$0xf]  ;;  %v8024_v41 = vld [vmem:[#allocation2 + $0x590] sm:$0xf0] }
 0x29e   :  { %2802 = vmatpush.bf16.msra.mxu2 %v8199_v39  ;;  %2771 = vmatmul.bf16.vlgmr.msra.gmra.mxu3 %v10581_v37  ;;  %v8827_v39 = vld [vmem:[#allocation2 + $0x24] sm:$0xf]  ;;  %v7819_v53 = vor.u32 %v8947_v34, %v7816_v21  ;;  %v7784_v4 = vld [vmem:[#allocation2 + $0x3b0] sm:$0xf0] }
 0x29f   :  { %2815 = vmatpush.bf16.msrb.mxu3 %v8327_v40  ;;  %v7339_v44 = vor.u32 %v8827_v39, %v7336_v52  ;;  %v8135_v40 = vor.u32 %v9029_v0, %v8134_v63  ;;  %2846 = vmatpush.bf16.msra.mxu1 %v7483_v22  ;;  %v8915_v63 = vld [vmem:[#allocation2 + $0x2e4] sm:$0xf]  ;;  %v7931_v0 = vor.u32 %v8975_v28, %v7928_v29  ;;  %v7880_v14 = vld [vmem:[#allocation2 + $0x470] sm:$0xf0] }
 0x2a0   :  { %v8059_v22 = vor.u32 %v9007_v32, %v8056_v33  ;;  %v8087_v39 = vor.u32 %v9017_v27, %v8086_v5  ;;  %v8971_v52 = vld [vmem:[#allocation2 + $0x4a4] sm:$0xf]  ;;  %v7640_v5 = vld [vmem:[#allocation2 + $0x290] sm:$0xf0] }
 0x2a1   :  { %2834 = vmatpush.bf16.msra.mxu0 %v7339_v44  ;;  %v7912_v44 = vld [vmem:[#allocation2 + $0x4b0] sm:$0xf0]  ;;  %v8943_v50 = vld [vmem:[#allocation2 + $0x3c4] sm:$0xf] }
 0x2a2   :  { %2803 = vmatpush.bf16.msra.mxu2 %v8183_v3  ;;  %v8823_v3 = vld [vmem:[#allocation2 + $0x4] sm:$0xf]  ;;  %v7915_v17 = vor.u32 %v8971_v52, %v7912_v44  ;;  %v8008_v28 = vld [vmem:[#allocation2 + $0x570] sm:$0xf0] }
 0x2a3   :  { %2816 = vmatpush.bf16.msrb.mxu3 %v8311_v56  ;;  %v7323_v55 = vor.u32 %v8823_v3, %v7320_v54  ;;  %v8119_v56 = vor.u32 %v9025_v19, %v8118_v18  ;;  %2847 = vmatpush.bf16.msra.mxu1 %v7467_v51  ;;  %v8911_v19 = vld [vmem:[#allocation2 + $0x2c4] sm:$0xf]  ;;  %v8040_v51 = vld [vmem:[#allocation2 + $0x5b0] sm:$0xf0]  ;;  %v10590_v3 = vpack.c.bf16 %v1164_v9, %v1164_v9 }
 0x2a4   :  { %v9003_v24 = vld [vmem:[#allocation2 + $0x5a4] sm:$0xf]  ;;  %v7800_v54 = vld [vmem:[#allocation2 + $0x3d0] sm:$0xf0] }
 0x2a5   :  { %2835 = vmatpush.bf16.msra.mxu0 %v7323_v55  ;;  %v8043_v48 = vor.u32 %v9003_v24, %v8040_v51  ;;  %v8967_v55 = vld [vmem:[#allocation2 + $0x484] sm:$0xf]  ;;  %v7803_v9 = vor.u32 %v8943_v50, %v7800_v54  ;;  %v7768_v29 = vld [vmem:[#allocation2 + $0x390] sm:$0xf0] }
 0x2a6   :  { %2804 = vmatpush.bf16.msra.mxu2 %v8167_v38  ;;  %v9053_v38 = vld [vmem:[#allocation2 + $0x72c] sm:$0xf0]  ;;  %v8995_v27 = vld [vmem:[#allocation2 + $0x564] sm:$0xf]  ;;  %v7624_v32 = vld [vmem:[#allocation2 + $0x270] sm:$0xf0] }
 0x2a7   :  { %2817 = vmatpush.bf16.msrb.mxu3 %v8295_v60  ;;  %v8072_v60 = vld [vmem:[#allocation2 + $0x5f0] sm:$0xf0]  ;;  %v8231_v30 = vor.u32 %v9053_v38, %v8230_v58  ;;  %2848 = vmatpush.bf16.msra.mxu1 %v7451_v26  ;;  %v8939_v58 = vld [vmem:[#allocation2 + $0x3a4] sm:$0xf] }
 0x2a8   :  { %v8075_v8 = vor.u32 %v9011_v57, %v8072_v60  ;;  %2836 = vmatmul.bf16.vlgmr.msra.gmra.mxu0 %v10552_v46  ;;  %v8963_v38 = vld [vmem:[#allocation2 + $0x464] sm:$0xf]  ;;  %v7976_v51 = vld [vmem:[#allocation2 + $0x530] sm:$0xf0] }
 0x2a9   :  { %2880 = vmatpush.bf16.msrb.mxu0 %v7947_v25  ;;  %v8999_v25 = vld [vmem:[#allocation2 + $0x584] sm:$0xf]  ;;  %v7883_v26 = vor.u32 %v8963_v38, %v7880_v14  ;;  %v7736_v54 = vld [vmem:[#allocation2 + $0x350] sm:$0xf0] }
 0x2aa   :  { %2805 = vmatpush.bf16.msra.mxu2 %v8151_v16  ;;  %v9049_v16 = vld [vmem:[#allocation2 + $0x70c] sm:$0xf0]  ;;  %2849 = vmatmul.bf16.vlgmr.msra.gmra.mxu1 %v10557_v36  ;;  %v8027_v20 = vor.u32 %v8999_v25, %v8024_v41  ;;  %v8903_v60 = vld [vmem:[#allocation2 + $0x284] sm:$0xf]  ;;  %v7960_v38 = vld [vmem:[#allocation2 + $0x510] sm:$0xf0] }
 0x2ab   :  { %2818 = vmatpush.bf16.msrb.mxu3 %v8279_v31  ;;  %v7688_v31 = vld [vmem:[#allocation2 + $0x2f0] sm:$0xf0]  ;;  %2893 = vmatpush.bf16.msrb.mxu1 %v8075_v8  ;;  %v7787_v8 = vor.u32 %v8939_v58, %v7784_v4  ;;  %v8931_v34 = vld [vmem:[#allocation2 + $0x364] sm:$0xf]  ;;  %v8854_v58 = vld [vmem:[#allocation2 + $0xf4] sm:$0xf0] }
 0x2ac   :  { %v7691_v18 = vor.u32 %v8915_v63, %v7688_v31  ;;  %v8899_v31 = vld [vmem:[#allocation2 + $0x264] sm:$0xf]  ;;  %v7720_v14 = vld [vmem:[#allocation2 + $0x330] sm:$0xf0] }
 0x2ad   :  { %2881 = vmatpush.bf16.msrb.mxu0 %v7931_v0  ;;  %v7643_v0 = vor.u32 %v8903_v60, %v7640_v5  ;;  %v8991_v21 = vld [vmem:[#allocation2 + $0x544] sm:$0xf]  ;;  %v8886_v60 = vld [vmem:[#allocation2 + $0x1f4] sm:$0xf0] }
 0x2ae   :  { %2806 = vmatpush.bf16.msra.mxu2 %v8135_v40  ;;  %v8215_v40 = vor.u32 %v9049_v16, %v8214_v15  ;;  %v8959_v15 = vld [vmem:[#allocation2 + $0x444] sm:$0xf]  ;;  %v7864_v16 = vld [vmem:[#allocation2 + $0x450] sm:$0xf0] }
 0x2af   :  { %2819 = vmatpush.bf16.msrb.mxu3 %v8263_v42  ;;  %v7672_v42 = vld [vmem:[#allocation2 + $0x2d0] sm:$0xf0]  ;;  %2894 = vmatpush.bf16.msrb.mxu1 %v8059_v22  ;;  %v7867_v63 = vor.u32 %v8959_v15, %v7864_v16  ;;  %v8955_v44 = vld [vmem:[#allocation2 + $0x424] sm:$0xf] }
 0x2b0   :  { %v7675_v35 = vor.u32 %v8911_v19, %v7672_v42  ;;  %v7992_v22 = vld [vmem:[#allocation2 + $0x550] sm:$0xf0]  ;;  %v7627_v19 = vor.u32 %v8899_v31, %v7624_v32  ;;  %v8895_v42 = vld [vmem:[#allocation2 + $0x244] sm:$0xf]  ;;  %v7550_v32 = vld [vmem:[#allocation2 + $0x1c8] sm:$0xf] }
 0x2b1   :  { %2882 = vmatpush.bf16.msrb.mxu0 %v7915_v17  ;;  %v7995_v52 = vor.u32 %v8991_v21, %v7992_v22  ;;  %v7608_v17 = vld [vmem:[#allocation2 + $0x250] sm:$0xf0]  ;;  %v8927_v50 = vld [vmem:[#allocation2 + $0x344] sm:$0xf] }
 0x2b2   :  { %2807 = vmatpush.bf16.msra.mxu2 %v8119_v56  ;;  %v7896_v56 = vld [vmem:[#allocation2 + $0x490] sm:$0xf0]  ;;  %v8987_v24 = vld [vmem:[#allocation2 + $0x524] sm:$0xf]  ;;  %v7739_v25 = vor.u32 %v8927_v50, %v7736_v54 }
 0x2b3   :  { %2820 = vmatpush.bf16.msrb.mxu3 %v8247_v49  ;;  %v7899_v62 = vor.u32 %v8967_v55, %v7896_v56  ;;  %v8907_v49 = vld [vmem:[#allocation2 + $0x2a4] sm:$0xf]  ;;  %2895 = vmatpush.bf16.msrb.mxu1 %v8043_v48  ;;  %v7979_v48 = vor.u32 %v8987_v24, %v7976_v51  ;;  %v7832_v56 = vld [vmem:[#allocation2 + $0x410] sm:$0xf0]  ;;  %v7534_v24 = vld [vmem:[#allocation2 + $0x1a8] sm:$0xf] }
 0x2b4   :  { %v7659_v57 = vor.u32 %v8907_v49, %v7656_v47  ;;  %v8951_v55 = vld [vmem:[#allocation2 + $0x404] sm:$0xf]  ;;  %v7611_v49 = vor.u32 %v8895_v42, %v7608_v17  ;;  %v7592_v47 = vld [vmem:[#allocation2 + $0x230] sm:$0xf0]  ;;  %v8878_v51 = vld [vmem:[#allocation2 + $0x1b4] sm:$0xf0] }
 0x2b5   :  { %2883 = vmatpush.bf16.msrb.mxu0 %v7899_v62  ;;  %v8891_v62 = vld [vmem:[#allocation2 + $0x224] sm:$0xf]  ;;  %v7704_v16 = vld [vmem:[#allocation2 + $0x310] sm:$0xf0] }
 0x2b6   :  { %2808 = vmatpush.bf16.msra.mxu2 %v8103_v43  ;;  %v8935_v43 = vld [vmem:[#allocation2 + $0x384] sm:$0xf]  ;;  %v8200_v31 = vld [vmem:[#allocation2 + $0x6f0] sm:$0xf0] }
 0x2b7   :  { %2821 = vmatpush.bf16.msrb.mxu3 %v8231_v30  ;;  %2896 = vmatpush.bf16.msrb.mxu1 %v8027_v20  ;;  %v8011_v30 = vor.u32 %v8995_v27, %v8008_v28  ;;  %v7771_v33 = vor.u32 %v8935_v43, %v7768_v29  ;;  %v8923_v41 = vld [vmem:[#allocation2 + $0x324] sm:$0xf]  ;;  %v7595_v43 = vor.u32 %v8891_v62, %v7592_v47  ;;  %v7576_v27 = vld [vmem:[#allocation2 + $0x210] sm:$0xf0]  ;;  %v7422_v28 = vld [vmem:[#allocation2 + $0xc8] sm:$0xf] }
 0x2b8   :  { %v8983_v20 = vld [vmem:[#allocation2 + $0x504] sm:$0xf]  ;;  %v8850_v29 = vld [vmem:[#allocation2 + $0xd4] sm:$0xf0]  ;;  %v8328_v21 = vld [vmem:[#allocation2 + $0x7f0] sm:$0xf0] }
 0x2b9   :  { %2884 = vmatpush.bf16.msrb.mxu0 %v7883_v26  ;;  %v7963_v26 = vor.u32 %v8983_v20, %v7960_v38  ;;  %v8887_v5 = vld [vmem:[#allocation2 + $0x204] sm:$0xf]  ;;  %v8184_v42 = vld [vmem:[#allocation2 + $0x6d0] sm:$0xf0]  ;;  %v7374_v38 = vld [vmem:[#allocation2 + $0x68] sm:$0xf] }
 0x2ba   :  { %2809 = vmatpush.bf16.msra.mxu2 %v8087_v39  ;;  %v7752_v39 = vld [vmem:[#allocation2 + $0x370] sm:$0xf0]  ;;  %v8919_v15 = vld [vmem:[#allocation2 + $0x304] sm:$0xf] }
 0x2bb   :  { %2822 = vmatpush.bf16.msrb.mxu3 %v8215_v40  ;;  %2897 = vmatpush.bf16.msrb.mxu1 %v8011_v30  ;;  %v7848_v40 = vld [vmem:[#allocation2 + $0x430] sm:$0xf0]  ;;  %v7723_v30 = vor.u32 %v8923_v41, %v7720_v14  ;;  %v9071_v50 = vld [vmem:[#allocation2 + $0x7c4] sm:$0xf]  ;;  %v8874_v41 = vld [vmem:[#allocation2 + $0x194] sm:$0xf0] }
 0x2bc   :  { %v8312_v54 = vld [vmem:[#allocation2 + $0x7d0] sm:$0xf0]  ;;  %v8838_v14 = vld [vmem:[#allocation2 + $0x74] sm:$0xf0] }
 0x2bd   :  { %2810 = vmatmul.bf16.vlgmr.msra.gmra.mxu2 %v10590_v3  ;;  %2885 = vmatpush.bf16.msrb.mxu0 %v7867_v63  ;;  %v9043_v63 = vld [vmem:[#allocation2 + $0x6e4] sm:$0xf]  ;;  %v8168_v47 = vld [vmem:[#allocation2 + $0x6b0] sm:$0xf0] }
 0x2be   :  { %2854 = vmatpush.bf16.msrb.mxu2 %v7691_v18  ;;  %2823 = vmatmul.bf16.vlgmr.msrb.gmra.mxu3 %v10595_v59  ;;  %v7851_v18 = vor.u32 %v8955_v44, %v7848_v40  ;;  %v8846_v44 = vld [vmem:[#allocation2 + $0xb4] sm:$0xf0]  ;;  %v7707_v40 = vor.u32 %v8919_v15, %v7704_v16  ;;  %v7358_v15 = vld [vmem:[#allocation2 + $0x48] sm:$0xf] }
 0x2bf   :  { %2867 = vmatpush.bf16.msra.mxu3 %v7819_v53  ;;  %v7755_v53 = vor.u32 %v8931_v34, %v7752_v39  ;;  %2898 = vmatpush.bf16.msrb.mxu1 %v7995_v52  ;;  %v9075_v34 = vld [vmem:[#allocation2 + $0x7e4] sm:$0xf]  ;;  %v7579_v39 = vor.u32 %v8887_v5, %v7576_v27  ;;  %v7406_v52 = vld [vmem:[#allocation2 + $0xa8] sm:$0xf]  ;;  %v8152_v5 = vld [vmem:[#allocation2 + $0x690] sm:$0xf0] }
 0x2c0   :  { %v7407_v17 = vor.u32 %v8846_v44, %v7406_v52  ;;  %v7502_v27 = vld [vmem:[#allocation2 + $0x168] sm:$0xf]  ;;  %v8834_v16 = vld [vmem:[#allocation2 + $0x54] sm:$0xf0] }
 0x2c1   :  { %2886 = vmatpush.bf16.msrb.mxu0 %v7851_v18  ;;  %v8203_v18 = vor.u32 %v9043_v63, %v8200_v31  ;;  %v7359_v63 = vor.u32 %v8834_v16, %v7358_v15  ;;  %v9027_v31 = vld [vmem:[#allocation2 + $0x664] sm:$0xf]  ;;  %v7342_v44 = vld [vmem:[#allocation2 + $0x28] sm:$0xf]  ;;  %v8216_v16 = vld [vmem:[#allocation2 + $0x710] sm:$0xf0] }
 0x2c2   :  { %2855 = vmatpush.bf16.msrb.mxu2 %v7675_v35  ;;  %v7835_v35 = vor.u32 %v8951_v55, %v7832_v56  ;;  %v7390_v55 = vld [vmem:[#allocation2 + $0x88] sm:$0xf]  ;;  %v8842_v56 = vld [vmem:[#allocation2 + $0x94] sm:$0xf0]  ;;  %v9047_v15 = vld [vmem:[#allocation2 + $0x704] sm:$0xf] }
 0x2c3   :  { %2868 = vmatpush.bf16.msra.mxu3 %v7803_v9  ;;  %v7438_v9 = vld [vmem:[#allocation2 + $0xe8] sm:$0xf]  ;;  %2899 = vmatpush.bf16.msrb.mxu1 %v7979_v48  ;;  %v7535_v48 = vor.u32 %v8878_v51, %v7534_v24  ;;  %v7391_v62 = vor.u32 %v8842_v56, %v7390_v55  ;;  %v8862_v51 = vld [vmem:[#allocation2 + $0x134] sm:$0xf0] }
 0x2c4   :  { %v7439_v4 = vor.u32 %v8854_v58, %v7438_v9  ;;  %v8315_v9 = vor.u32 %v9071_v50, %v8312_v54  ;;  %v9067_v58 = vld [vmem:[#allocation2 + $0x7a4] sm:$0xf]  ;;  %v7470_v24 = vld [vmem:[#allocation2 + $0x128] sm:$0xf]  ;;  %v8248_v54 = vld [vmem:[#allocation2 + $0x750] sm:$0xf0] }
 0x2c5   :  { %2887 = vmatpush.bf16.msrb.mxu0 %v7835_v35  ;;  %v9055_v50 = vld [vmem:[#allocation2 + $0x744] sm:$0xf]  ;;  %v7326_v55 = vld [vmem:[#allocation2 + $0x8] sm:$0xf]  ;;  %v8826_v56 = vld [vmem:[#allocation2 + $0x14] sm:$0xf0] }
 0x2c6   :  { %2856 = vmatpush.bf16.msrb.mxu2 %v7659_v57  ;;  %v7566_v57 = vld [vmem:[#allocation2 + $0x1e8] sm:$0xf] }
 0x2c7   :  { %2869 = vmatpush.bf16.msra.mxu3 %v7787_v8  ;;  %v7567_v8 = vor.u32 %v8886_v60, %v7566_v57  ;;  %2900 = vmatpush.bf16.msrb.mxu1 %v7963_v26  ;;  %v7375_v26 = vor.u32 %v8838_v14, %v7374_v38  ;;  %v9031_v60 = vld [vmem:[#allocation2 + $0x684] sm:$0xf]  ;;  %v8858_v38 = vld [vmem:[#allocation2 + $0x114] sm:$0xf0]  ;;  %v8232_v14 = vld [vmem:[#allocation2 + $0x730] sm:$0xf0] }
 0x2c8   :  { %2888 = vmatmul.bf16.vlgmr.msrb.gmra.mxu0 %v10564_v23 }
 0x2c9   :  { %2932 = vmatpush.bf16.msra.mxu0 %v7439_v4  ;;  %v8296_v4 = vld [vmem:[#allocation2 + $0x7b0] sm:$0xf0] }
 0x2ca   :  { %2857 = vmatpush.bf16.msrb.mxu2 %v7643_v0  ;;  %v7423_v0 = vor.u32 %v8850_v29, %v7422_v28  ;;  %2901 = vmatmul.bf16.vlgmr.msrb.gmra.mxu1 %v10569_v61  ;;  %v8870_v28 = vld [vmem:[#allocation2 + $0x174] sm:$0xf0]  ;;  %v8280_v29 = vld [vmem:[#allocation2 + $0x790] sm:$0xf0] }
 0x2cb   :  { %2870 = vmatpush.bf16.msra.mxu3 %v7771_v33  ;;  %2945 = vmatpush.bf16.msra.mxu1 %v7567_v8  ;;  %v8882_v33 = vld [vmem:[#allocation2 + $0x1d4] sm:$0xf0]  ;;  %v8299_v8 = vor.u32 %v9067_v58, %v8296_v4 }
 0x2cc   :  { %v7551_v22 = vor.u32 %v8882_v33, %v7550_v32  ;;  %v8136_v32 = vld [vmem:[#allocation2 + $0x670] sm:$0xf0]  ;;  %v8982_v58 = vld [vmem:[#allocation2 + $0x4f4] sm:$0xf0] }
 0x2cd   :  { %2933 = vmatpush.bf16.msra.mxu0 %v7423_v0  ;;  %v8155_v0 = vor.u32 %v9031_v60, %v8152_v5  ;;  %v9014_v60 = vld [vmem:[#allocation2 + $0x5f4] sm:$0xf0]  ;;  %v9015_v5 = vld [vmem:[#allocation2 + $0x604] sm:$0xf] }
 0x2ce   :  { %2858 = vmatpush.bf16.msrb.mxu2 %v7627_v19  ;;  %v9039_v19 = vld [vmem:[#allocation2 + $0x6c4] sm:$0xf] }
 0x2cf   :  { %2871 = vmatpush.bf16.msra.mxu3 %v7755_v53  ;;  %v8331_v53 = vor.u32 %v9075_v34, %v8328_v21  ;;  %2946 = vmatpush.bf16.msra.mxu1 %v7551_v22  ;;  %v8187_v35 = vor.u32 %v9039_v19, %v8184_v42  ;;  %v9059_v34 = vld [vmem:[#allocation2 + $0x764] sm:$0xf]  ;;  %v7486_v21 = vld [vmem:[#allocation2 + $0x148] sm:$0xf]  ;;  %v8866_v22 = vld [vmem:[#allocation2 + $0x154] sm:$0xf0]  ;;  %v8139_v19 = vor.u32 %v9027_v31, %v8136_v32 }
 0x2d0   :  { %v7487_v52 = vor.u32 %v8866_v22, %v7486_v21  ;;  %v9023_v42 = vld [vmem:[#allocation2 + $0x644] sm:$0xf]  ;;  %v8918_v31 = vld [vmem:[#allocation2 + $0x2f4] sm:$0xf0]  ;;  %v8062_v32 = vld [vmem:[#allocation2 + $0x5c8] sm:$0xf] }
 0x2d1   :  { %2934 = vmatpush.bf16.msra.mxu0 %v7407_v17  ;;  %v8120_v17 = vld [vmem:[#allocation2 + $0x650] sm:$0xf0]  ;;  %v8950_v21 = vld [vmem:[#allocation2 + $0x3f4] sm:$0xf0] }
 0x2d2   :  { %2859 = vmatpush.bf16.msrb.mxu2 %v7611_v49  ;;  %v9035_v49 = vld [vmem:[#allocation2 + $0x6a4] sm:$0xf] }
 0x2d3   :  { %2872 = vmatpush.bf16.msra.mxu3 %v7739_v25  ;;  %2947 = vmatpush.bf16.msra.mxu1 %v7535_v48  ;;  %v7518_v25 = vld [vmem:[#allocation2 + $0x188] sm:$0xf]  ;;  %v8171_v57 = vor.u32 %v9035_v49, %v8168_v47  ;;  %v7471_v48 = vor.u32 %v8862_v51, %v7470_v24  ;;  %v8123_v49 = vor.u32 %v9023_v42, %v8120_v17  ;;  %v8104_v47 = vld [vmem:[#allocation2 + $0x630] sm:$0xf0]  ;;  %v8914_v42 = vld [vmem:[#allocation2 + $0x2d4] sm:$0xf0] }
 0x2d4   :  { %v7519_v20 = vor.u32 %v8874_v41, %v7518_v25  ;;  %v8251_v25 = vor.u32 %v9055_v50, %v8248_v54  ;;  %v9051_v41 = vld [vmem:[#allocation2 + $0x724] sm:$0xf]  ;;  %v7806_v50 = vld [vmem:[#allocation2 + $0x3c8] sm:$0xf]  ;;  %v9006_v51 = vld [vmem:[#allocation2 + $0x5b4] sm:$0xf0] }
 0x2d5   :  { %2935 = vmatpush.bf16.msra.mxu0 %v7391_v62  ;;  %v9019_v62 = vld [vmem:[#allocation2 + $0x624] sm:$0xf]  ;;  %v8046_v24 = vld [vmem:[#allocation2 + $0x5a8] sm:$0xf]  ;;  %v8946_v54 = vld [vmem:[#allocation2 + $0x3d4] sm:$0xf0] }
 0x2d6   :  { %2860 = vmatpush.bf16.msrb.mxu2 %v7595_v43  ;;  %v9063_v43 = vld [vmem:[#allocation2 + $0x784] sm:$0xf] }
 0x2d7   :  { %2873 = vmatpush.bf16.msra.mxu3 %v7723_v30  ;;  %2948 = vmatpush.bf16.msra.mxu1 %v7519_v20  ;;  %v7503_v30 = vor.u32 %v8870_v28, %v7502_v27  ;;  %v8283_v33 = vor.u32 %v9063_v43, %v8280_v29  ;;  %v7454_v20 = vld [vmem:[#allocation2 + $0x108] sm:$0xf]  ;;  %v8107_v43 = vor.u32 %v9019_v62, %v8104_v47  ;;  %v8088_v27 = vld [vmem:[#allocation2 + $0x610] sm:$0xf0]  ;;  %v8978_v29 = vld [vmem:[#allocation2 + $0x4d4] sm:$0xf0] }
 0x2d8   :  { %v7934_v28 = vld [vmem:[#allocation2 + $0x4c8] sm:$0xf]  ;;  %v8910_v47 = vld [vmem:[#allocation2 + $0x2b4] sm:$0xf0] }
 0x2d9   :  { %2936 = vmatpush.bf16.msra.mxu0 %v7375_v26  ;;  %v7455_v26 = vor.u32 %v8858_v38, %v7454_v20  ;;  %v7886_v38 = vld [vmem:[#allocation2 + $0x468] sm:$0xf] }
 0x2da   :  { %2861 = vmatpush.bf16.msrb.mxu2 %v7579_v39  ;;  %v8264_v39 = vld [vmem:[#allocation2 + $0x770] sm:$0xf0] }
 0x2db   :  { %2874 = vmatpush.bf16.msra.mxu3 %v7707_v40  ;;  %2949 = vmatpush.bf16.msra.mxu1 %v7503_v30  ;;  %v8830_v40 = vld [vmem:[#allocation2 + $0x34] sm:$0xf0]  ;;  %v8235_v30 = vor.u32 %v9051_v41, %v8232_v14 }
 0x2dc   :  { %v9002_v41 = vld [vmem:[#allocation2 + $0x594] sm:$0xf0] }
 0x2dd   :  { %2862 = vmatmul.bf16.vlgmr.msrb.gmra.mxu2 %v10576_v45  ;;  %2937 = vmatpush.bf16.msra.mxu0 %v7359_v63  ;;  %v7694_v63 = vld [vmem:[#allocation2 + $0x2e8] sm:$0xf]  ;;  %v8966_v14 = vld [vmem:[#allocation2 + $0x474] sm:$0xf0] }
 0x2de   :  { %2906 = vmatpush.bf16.msra.mxu2 %v8203_v18  ;;  %2875 = vmatmul.bf16.vlgmr.msra.gmra.mxu3 %v10581_v37  ;;  %v7343_v18 = vor.u32 %v8830_v40, %v7342_v44  ;;  %v8974_v44 = vld [vmem:[#allocation2 + $0x4b4] sm:$0xf0]  ;;  %v8219_v40 = vor.u32 %v9047_v15, %v8216_v16  ;;  %v7870_v15 = vld [vmem:[#allocation2 + $0x448] sm:$0xf] }
 0x2df   :  { %2919 = vmatpush.bf16.msrb.mxu3 %v8331_v53  ;;  %v8267_v53 = vor.u32 %v9059_v34, %v8264_v39  ;;  %2950 = vmatpush.bf16.msra.mxu1 %v7487_v52  ;;  %v7822_v34 = vld [vmem:[#allocation2 + $0x3e8] sm:$0xf]  ;;  %v8091_v39 = vor.u32 %v9015_v5, %v8088_v27  ;;  %v8906_v5 = vld [vmem:[#allocation2 + $0x294] sm:$0xf0] }
 0x2e0   :  { %v7918_v52 = vld [vmem:[#allocation2 + $0x4a8] sm:$0xf]  ;;  %v8962_v16 = vld [vmem:[#allocation2 + $0x454] sm:$0xf0] }
 0x2e1   :  { %2938 = vmatpush.bf16.msra.mxu0 %v7343_v18  ;;  %v7695_v18 = vor.u32 %v8918_v31, %v7694_v63  ;;  %v7919_v17 = vor.u32 %v8974_v44, %v7918_v52  ;;  %v8014_v27 = vld [vmem:[#allocation2 + $0x568] sm:$0xf]  ;;  %v7871_v63 = vor.u32 %v8962_v16, %v7870_v15  ;;  %v8890_v16 = vld [vmem:[#allocation2 + $0x214] sm:$0xf0] }
 0x2e2   :  { %2907 = vmatpush.bf16.msra.mxu2 %v8187_v35  ;;  %v7327_v35 = vor.u32 %v8826_v56, %v7326_v55  ;;  %v7902_v55 = vld [vmem:[#allocation2 + $0x488] sm:$0xf]  ;;  %v8970_v56 = vld [vmem:[#allocation2 + $0x494] sm:$0xf0] }
 0x2e3   :  { %2920 = vmatpush.bf16.msrb.mxu3 %v8315_v9  ;;  %v7950_v9 = vld [vmem:[#allocation2 + $0x4e8] sm:$0xf]  ;;  %2951 = vmatpush.bf16.msra.mxu1 %v7471_v48  ;;  %v8047_v48 = vor.u32 %v9006_v51, %v8046_v24  ;;  %v7903_v62 = vor.u32 %v8970_v56, %v7902_v55  ;;  %v8990_v51 = vld [vmem:[#allocation2 + $0x534] sm:$0xf0] }
 0x2e4   :  { %v7951_v4 = vor.u32 %v8982_v58, %v7950_v9  ;;  %v7807_v9 = vor.u32 %v8946_v54, %v7806_v50  ;;  %v7790_v58 = vld [vmem:[#allocation2 + $0x3a8] sm:$0xf]  ;;  %v8898_v50 = vld [vmem:[#allocation2 + $0x254] sm:$0xf0] }
 0x2e5   :  { %2939 = vmatpush.bf16.msra.mxu0 %v7327_v35  ;;  %v7630_v31 = vld [vmem:[#allocation2 + $0x268] sm:$0xf] }
 0x2e6   :  { %2908 = vmatpush.bf16.msra.mxu2 %v8171_v57  ;;  %v8078_v57 = vld [vmem:[#allocation2 + $0x5e8] sm:$0xf] }
 0x2e7   :  { %2921 = vmatpush.bf16.msrb.mxu3 %v8299_v8  ;;  %v8079_v8 = vor.u32 %v9014_v60, %v8078_v57  ;;  %2952 = vmatpush.bf16.msra.mxu1 %v7455_v26  ;;  %v7887_v26 = vor.u32 %v8966_v14, %v7886_v38  ;;  %v7646_v60 = vld [vmem:[#allocation2 + $0x288] sm:$0xf]  ;;  %v8852_v38 = vld [vmem:[#allocation2 + $0xec] sm:$0xf]  ;;  %v7440_v14 = vld [vmem:[#allocation2 + $0xf8] sm:$0xf0] }
 0x2e8   :  { %2940 = vmatmul.bf16.vlgmr.msra.gmra.mxu0 %v10552_v46  ;;  %v7854_v44 = vld [vmem:[#allocation2 + $0x428] sm:$0xf] }
 0x2e9   :  { %2984 = vmatpush.bf16.msrb.mxu0 %v7951_v4  ;;  %v8942_v4 = vld [vmem:[#allocation2 + $0x3b4] sm:$0xf0]  ;;  %v7982_v24 = vld [vmem:[#allocation2 + $0x528] sm:$0xf] }
 0x2ea   :  { %2909 = vmatpush.bf16.msra.mxu2 %v8155_v0  ;;  %v7935_v0 = vor.u32 %v8978_v29, %v7934_v28  ;;  %2953 = vmatmul.bf16.vlgmr.msra.gmra.mxu1 %v10557_v36  ;;  %v8998_v28 = vld [vmem:[#allocation2 + $0x574] sm:$0xf0]  ;;  %v7742_v54 = vld [vmem:[#allocation2 + $0x348] sm:$0xf]  ;;  %v7983_v56 = vor.u32 %v8990_v51, %v7982_v24 }
 0x2eb   :  { %2922 = vmatpush.bf16.msrb.mxu3 %v8283_v33  ;;  %2997 = vmatpush.bf16.msrb.mxu1 %v8079_v8  ;;  %v9010_v33 = vld [vmem:[#allocation2 + $0x5d4] sm:$0xf0]  ;;  %v7791_v8 = vor.u32 %v8942_v4, %v7790_v58  ;;  %v7726_v58 = vld [vmem:[#allocation2 + $0x328] sm:$0xf] }
 0x2ec   :  { %v8063_v22 = vor.u32 %v9010_v33, %v8062_v32  ;;  %v8938_v29 = vld [vmem:[#allocation2 + $0x394] sm:$0xf0] }
 0x2ed   :  { %2985 = vmatpush.bf16.msrb.mxu0 %v7935_v0  ;;  %v7647_v0 = vor.u32 %v8906_v5, %v7646_v60  ;;  %v8902_v32 = vld [vmem:[#allocation2 + $0x274] sm:$0xf0]  ;;  %v7443_v5 = vor.u32 %v8852_v38, %v7440_v14 }
 0x2ee   :  { %2910 = vmatpush.bf16.msra.mxu2 %v8139_v19  ;;  %v7678_v19 = vld [vmem:[#allocation2 + $0x2c8] sm:$0xf] }
 0x2ef   :  { %2923 = vmatpush.bf16.msrb.mxu3 %v8267_v53  ;;  %v7823_v53 = vor.u32 %v8950_v21, %v7822_v34  ;;  %2998 = vmatpush.bf16.msrb.mxu1 %v8063_v22  ;;  %v7679_v35 = vor.u32 %v8914_v42, %v7678_v19  ;;  %v7758_v34 = vld [vmem:[#allocation2 + $0x368] sm:$0xf]  ;;  %v8994_v22 = vld [vmem:[#allocation2 + $0x554] sm:$0xf0]  ;;  %v7631_v42 = vor.u32 %v8902_v32, %v7630_v31  ;;  %v7424_v31 = vld [vmem:[#allocation2 + $0xd8] sm:$0xf0] }
 0x2f0   :  { %v7998_v21 = vld [vmem:[#allocation2 + $0x548] sm:$0xf] }
 0x2f1   :  { %2986 = vmatpush.bf16.msrb.mxu0 %v7919_v17  ;;  %v7999_v52 = vor.u32 %v8994_v22, %v7998_v21  ;;  %v7614_v17 = vld [vmem:[#allocation2 + $0x248] sm:$0xf] }
 0x2f2   :  { %2911 = vmatpush.bf16.msra.mxu2 %v8123_v49  ;;  %v7662_v49 = vld [vmem:[#allocation2 + $0x2a8] sm:$0xf] }
 0x2f3   :  { %2924 = vmatpush.bf16.msrb.mxu3 %v8251_v25  ;;  %2999 = vmatpush.bf16.msrb.mxu1 %v8047_v48  ;;  %v8030_v25 = vld [vmem:[#allocation2 + $0x588] sm:$0xf]  ;;  %v7663_v57 = vor.u32 %v8910_v47, %v7662_v49  ;;  %v8930_v48 = vld [vmem:[#allocation2 + $0x354] sm:$0xf0]  ;;  %v7615_v47 = vor.u32 %v8898_v50, %v7614_v17  ;;  %v7408_v50 = vld [vmem:[#allocation2 + $0xb8] sm:$0xf0] }
 0x2f4   :  { %v8031_v20 = vor.u32 %v9002_v41, %v8030_v25  ;;  %v8954_v49 = vld [vmem:[#allocation2 + $0x414] sm:$0xf0]  ;;  %v7743_v4 = vor.u32 %v8930_v48, %v7742_v54  ;;  %v8206_v21 = vld [vmem:[#allocation2 + $0x6e8] sm:$0xf] }
 0x2f5   :  { %2987 = vmatpush.bf16.msrb.mxu0 %v7903_v62  ;;  %v7598_v62 = vld [vmem:[#allocation2 + $0x228] sm:$0xf]  ;;  %v8926_v25 = vld [vmem:[#allocation2 + $0x334] sm:$0xf0] }
 0x2f6   :  { %2912 = vmatpush.bf16.msra.mxu2 %v8107_v43  ;;  %v7774_v43 = vld [vmem:[#allocation2 + $0x388] sm:$0xf]  ;;  %v7727_v32 = vor.u32 %v8926_v25, %v7726_v58  ;;  %v9042_v48 = vld [vmem:[#allocation2 + $0x6d4] sm:$0xf0] }
 0x2f7   :  { %2925 = vmatpush.bf16.msrb.mxu3 %v8235_v30  ;;  %3000 = vmatpush.bf16.msrb.mxu1 %v8031_v20  ;;  %v8015_v30 = vor.u32 %v8998_v28, %v8014_v27  ;;  %v7775_v33 = vor.u32 %v8938_v29, %v7774_v43  ;;  %v8884_v43 = vld [vmem:[#allocation2 + $0x1ec] sm:$0xf]  ;;  %v7568_v27 = vld [vmem:[#allocation2 + $0x1f8] sm:$0xf0]  ;;  %v7582_v28 = vld [vmem:[#allocation2 + $0x208] sm:$0xf] }
 0x2f8   :  { %v7583_v17 = vor.u32 %v8890_v16, %v7582_v28  ;;  %v8190_v54 = vld [vmem:[#allocation2 + $0x6c8] sm:$0xf]  ;;  %v9074_v58 = vld [vmem:[#allocation2 + $0x7d4] sm:$0xf0] }
 0x2f9   :  { %2988 = vmatpush.bf16.msrb.mxu0 %v7887_v26  ;;  %v7966_v26 = vld [vmem:[#allocation2 + $0x508] sm:$0xf]  ;;  %v8191_v14 = vor.u32 %v9042_v48, %v8190_v54  ;;  %v9070_v28 = vld [vmem:[#allocation2 + $0x7b4] sm:$0xf0]  ;;  %v8864_v48 = vld [vmem:[#allocation2 + $0x14c] sm:$0xf] }
 0x2fa   :  { %2913 = vmatpush.bf16.msra.mxu2 %v8091_v39  ;;  %v8934_v39 = vld [vmem:[#allocation2 + $0x374] sm:$0xf0]  ;;  %v8270_v54 = vld [vmem:[#allocation2 + $0x768] sm:$0xf] }
 0x2fb   :  { %2926 = vmatpush.bf16.msrb.mxu3 %v8219_v40  ;;  %3001 = vmatpush.bf16.msrb.mxu1 %v8015_v30  ;;  %v8958_v40 = vld [vmem:[#allocation2 + $0x434] sm:$0xf0]  ;;  %v7571_v30 = vor.u32 %v8884_v43, %v7568_v27  ;;  %v8872_v43 = vld [vmem:[#allocation2 + $0x18c] sm:$0xf]  ;;  %v7520_v27 = vld [vmem:[#allocation2 + $0x198] sm:$0xf0] }
 0x2fc   :  { %v7855_v19 = vor.u32 %v8958_v40, %v7854_v44  ;;  %v7552_v44 = vld [vmem:[#allocation2 + $0x1d8] sm:$0xf0]  ;;  %v8334_v40 = vld [vmem:[#allocation2 + $0x7e8] sm:$0xf] }
 0x2fd   :  { %2914 = vmatmul.bf16.vlgmr.msra.gmra.mxu2 %v10590_v3  ;;  %2989 = vmatpush.bf16.msrb.mxu0 %v7871_v63 }
 0x2fe   :  { %2958 = vmatpush.bf16.msrb.mxu2 %v7695_v18  ;;  %2927 = vmatmul.bf16.vlgmr.msrb.gmra.mxu3 %v10595_v59  ;;  %v10607_v18 = vld [vmem:[#allocation5 + $0xa] sm:$0xf] }
 0x2ff   :  { %2971 = vmatpush.bf16.msra.mxu3 %v7823_v53  ;;  %v7759_v53 = vor.u32 %v8934_v39, %v7758_v34  ;;  %3002 = vmatpush.bf16.msrb.mxu1 %v7999_v52  ;;  %v2716_v55 = vperm.slane %v10607_v18, 0  ;;  %v8922_v34 = vld [vmem:[#allocation2 + $0x314] sm:$0xf0]  ;;  %v8880_v52 = vld [vmem:[#allocation2 + $0x1cc] sm:$0xf] }
 0x300   :  { %v2733_v20 = vpop.f32.mrf.mxu2  ;;  %v9046_v39 = vld [vmem:[#allocation2 + $0x6f4] sm:$0xf0] }
 0x301   :  { %2990 = vmatpush.bf16.msrb.mxu0 %v7855_v19  ;;  %v2746_v60 = vpop.f32.mrf.mxu3  ;;  %v9078_v19 = vld [vmem:[#allocation2 + $0x7f4] sm:$0xf0]  ;;  %v8207_v51 = vor.u32 %v9046_v39, %v8206_v21  ;;  %v8868_v21 = vld [vmem:[#allocation2 + $0x16c] sm:$0xf] }
 0x302   :  { %2959 = vmatpush.bf16.msrb.mxu2 %v7679_v35  ;;  %v7838_v35 = vld [vmem:[#allocation2 + $0x408] sm:$0xf]  ;;  %v9066_v39 = vld [vmem:[#allocation2 + $0x794] sm:$0xf0] }
 0x303   :  { %2972 = vmatpush.bf16.msra.mxu3 %v7807_v9  ;;  %v8894_v9 = vld [vmem:[#allocation2 + $0x234] sm:$0xf0]  ;;  %v7839_v41 = vor.u32 %v8954_v49, %v7838_v35  ;;  %3003 = vmatpush.bf16.msrb.mxu1 %v7983_v56  ;;  %v8318_v35 = vld [vmem:[#allocation2 + $0x7c8] sm:$0xf] }
 0x304   :  { %v7599_v15 = vor.u32 %v8894_v9, %v7598_v62  ;;  %v8335_v62 = vor.u32 %v9078_v19, %v8334_v40  ;;  %v7536_v9 = vld [vmem:[#allocation2 + $0x1b8] sm:$0xf0] }
 0x305   :  { %2991 = vmatpush.bf16.msrb.mxu0 %v7839_v41  ;;  %v10614_v25 = vpop.f32.mrf.mxu0  ;;  %v7360_v40 = vld [vmem:[#allocation2 + $0x58] sm:$0xf0] }
 0x306   :  { %2960 = vmatpush.bf16.msrb.mxu2 %v7663_v57  ;;  %v2734_v57 = vadd.f32 %v2733_v20, %v2716_v55  ;;  %v7392_v20 = vld [vmem:[#allocation2 + $0x98] sm:$0xf0] }
 0x307   :  { %2973 = vmatpush.bf16.msra.mxu3 %v7791_v8  ;;  %v8986_v8 = vld [vmem:[#allocation2 + $0x514] sm:$0xf0] }
 0x308   :  { %v7967_v29 = vor.u32 %v8986_v8, %v7966_v26  ;;  %v10610_v63 = vadd.f32 %v2746_v60, %v2734_v57  ;;  %2992 = vmatmul.bf16.vlgmr.msrb.gmra.mxu0 %v10564_v23  ;;  %v2735_v55 = vpop.f32.mrf.mxu2  ;;  %v8174_v26 = vld [vmem:[#allocation2 + $0x6a8] sm:$0xf]  ;;  %v9038_v57 = vld [vmem:[#allocation2 + $0x6b4] sm:$0xf0]  ;;  %v10616_v60 = vpop.f32.mrf.mxu1 }
 0x309   :  { %3036 = vmatpush.bf16.msra.mxu0 %v7443_v5  ;;  %v2748_v49 = vpop.f32.mrf.mxu3  ;;  %v8319_v5 = vor.u32 %v9074_v58, %v8318_v35  ;;  %v8302_v8 = vld [vmem:[#allocation2 + $0x7a8] sm:$0xf]  ;;  %v7488_v55 = vld [vmem:[#allocation2 + $0x158] sm:$0xf0]  ;;  %v8828_v35 = vld [vmem:[#allocation2 + $0x2c] sm:$0xf] }
 0x30a   :  { %2961 = vmatpush.bf16.msrb.mxu2 %v7647_v0  ;;  %v8848_v0 = vld [vmem:[#allocation2 + $0xcc] sm:$0xf]  ;;  %3004 = vmatpush.bf16.msrb.mxu1 %v7967_v29  ;;  %v7523_v29 = vor.u32 %v8872_v43, %v7520_v27  ;;  %v7344_v49 = vld [vmem:[#allocation2 + $0x38] sm:$0xf0]  ;;  %v8126_v58 = vld [vmem:[#allocation2 + $0x648] sm:$0xf] }
 0x30b   :  { %2974 = vmatpush.bf16.msra.mxu3 %v7775_v33  ;;  %v7710_v33 = vld [vmem:[#allocation2 + $0x308] sm:$0xf]  ;;  %v7427_v22 = vor.u32 %v8848_v0, %v7424_v31  ;;  %v8175_v0 = vor.u32 %v9038_v57, %v8174_v26  ;;  %v9058_v26 = vld [vmem:[#allocation2 + $0x754] sm:$0xf0]  ;;  %v7328_v43 = vld [vmem:[#allocation2 + $0x18] sm:$0xf0] }
 0x30c   :  { %v7711_v24 = vor.u32 %v8922_v34, %v7710_v33  ;;  %v8158_v31 = vld [vmem:[#allocation2 + $0x688] sm:$0xf]  ;;  %v8303_v33 = vor.u32 %v9070_v28, %v8302_v8  ;;  %v8824_v8 = vld [vmem:[#allocation2 + $0xc] sm:$0xf]  ;;  %v9022_v28 = vld [vmem:[#allocation2 + $0x634] sm:$0xf0] }
 0x30d   :  { %3037 = vmatpush.bf16.msra.mxu0 %v7427_v22  ;;  %3005 = vmatmul.bf16.vlgmr.msrb.gmra.mxu1 %v10569_v61  ;;  %v8286_v34 = vld [vmem:[#allocation2 + $0x788] sm:$0xf]  ;;  %v7504_v22 = vld [vmem:[#allocation2 + $0x178] sm:$0xf0]  ;;  %v2787_v19 = vpop.f32.mrf.mxu0 }
 0x30e   :  { %2962 = vmatpush.bf16.msrb.mxu2 %v7631_v42  ;;  %3049 = vmatpush.bf16.msra.mxu1 %v7571_v30  ;;  %v7555_v42 = vor.u32 %v8880_v52, %v7552_v44  ;;  %v8836_v30 = vld [vmem:[#allocation2 + $0x6c] sm:$0xf]  ;;  %v7507_v52 = vor.u32 %v8868_v21, %v7504_v22 }
 0x30f   :  { %2975 = vmatpush.bf16.msra.mxu3 %v7759_v53  ;;  %v8844_v53 = vld [vmem:[#allocation2 + $0xac] sm:$0xf] }
 0x310   :  { %v7411_v56 = vor.u32 %v8844_v53, %v7408_v50  ;;  %v8832_v44 = vld [vmem:[#allocation2 + $0x4c] sm:$0xf]  ;;  %v8142_v53 = vld [vmem:[#allocation2 + $0x668] sm:$0xf]  ;;  %v9030_v50 = vld [vmem:[#allocation2 + $0x674] sm:$0xf0] }
 0x312   :  { %2963 = vmatpush.bf16.msrb.mxu2 %v7615_v47  ;;  %3050 = vmatpush.bf16.msra.mxu1 %v7555_v42  ;;  %v8876_v47 = vld [vmem:[#allocation2 + $0x1ac] sm:$0xf]  ;;  %v7363_v42 = vor.u32 %v8832_v44, %v7360_v40  ;;  %v8080_v44 = vld [vmem:[#allocation2 + $0x5f8] sm:$0xf0]  ;;  %v8094_v40 = vld [vmem:[#allocation2 + $0x608] sm:$0xf] }
 0x313   :  { %2976 = vmatpush.bf16.msra.mxu3 %v7743_v4  ;;  %v7539_v41 = vor.u32 %v8876_v47, %v7536_v9  ;;  %v8840_v4 = vld [vmem:[#allocation2 + $0x8c] sm:$0xf]  ;;  %3038 = vmatpush.bf16.msra.mxu0 %v7411_v56  ;;  %v9062_v56 = vld [vmem:[#allocation2 + $0x774] sm:$0xf0]  ;;  %v7347_v47 = vor.u32 %v8828_v35, %v7344_v49  ;;  %v8143_v9 = vor.u32 %v9030_v50, %v8142_v53  ;;  %v7696_v35 = vld [vmem:[#allocation2 + $0x2f8] sm:$0xf0] }
 0x314   :  { %v7395_v38 = vor.u32 %v8840_v4, %v7392_v20  ;;  %v9026_v4 = vld [vmem:[#allocation2 + $0x654] sm:$0xf0]  ;;  %v8860_v20 = vld [vmem:[#allocation2 + $0x12c] sm:$0xf] }
 0x315   :  { %v8127_v27 = vor.u32 %v9026_v4, %v8126_v58  ;;  %v9018_v50 = vld [vmem:[#allocation2 + $0x614] sm:$0xf0]  ;;  %v9008_v49 = vld [vmem:[#allocation2 + $0x5cc] sm:$0xf]  ;;  %v7824_v58 = vld [vmem:[#allocation2 + $0x3f8] sm:$0xf0] }
 0x316   :  { %2964 = vmatpush.bf16.msrb.mxu2 %v7599_v15  ;;  %3051 = vmatpush.bf16.msra.mxu1 %v7539_v41  ;;  %v7376_v15 = vld [vmem:[#allocation2 + $0x78] sm:$0xf0]  ;;  %v8271_v41 = vor.u32 %v9062_v56, %v8270_v54 }
 0x317   :  { %2977 = vmatpush.bf16.msra.mxu3 %v7727_v32  ;;  %3039 = vmatpush.bf16.msra.mxu0 %v7395_v38  ;;  %v7379_v16 = vor.u32 %v8836_v30, %v7376_v15  ;;  %v9034_v32 = vld [vmem:[#allocation2 + $0x694] sm:$0xf0]  ;;  %v7472_v38 = vld [vmem:[#allocation2 + $0x138] sm:$0xf0]  ;;  %v7331_v15 = vor.u32 %v8824_v8, %v7328_v43 }
 0x318   :  { %v7475_v57 = vor.u32 %v8860_v20, %v7472_v38  ;;  %v9054_v30 = vld [vmem:[#allocation2 + $0x734] sm:$0xf0]  ;;  %v8095_v20 = vor.u32 %v9018_v50, %v8094_v40  ;;  %v8972_v38 = vld [vmem:[#allocation2 + $0x4ac] sm:$0xf]  ;;  %v7648_v50 = vld [vmem:[#allocation2 + $0x298] sm:$0xf0] }
 0x319   :  { %v8964_v40 = vld [vmem:[#allocation2 + $0x46c] sm:$0xf] }
 0x31a   :  { %2965 = vmatpush.bf16.msrb.mxu2 %v7583_v17  ;;  %3052 = vmatpush.bf16.msra.mxu1 %v7523_v29  ;;  %v8159_v17 = vor.u32 %v9034_v32, %v8158_v31  ;;  %v8238_v29 = vld [vmem:[#allocation2 + $0x728] sm:$0xf]  ;;  %v8980_v31 = vld [vmem:[#allocation2 + $0x4ec] sm:$0xf]  ;;  %v7952_v32 = vld [vmem:[#allocation2 + $0x4f8] sm:$0xf0] }
 0x31b   :  { %2978 = vmatpush.bf16.msra.mxu3 %v7711_v24  ;;  %3040 = vmatpush.bf16.msra.mxu0 %v7379_v16  ;;  %v2800_v24 = vpop.f32.mrf.mxu1  ;;  %v7955_v22 = vor.u32 %v8980_v31, %v7952_v32  ;;  %v8239_v54 = vor.u32 %v9054_v30, %v8238_v29  ;;  %v8048_v29 = vld [vmem:[#allocation2 + $0x5b8] sm:$0xf0] }
 0x31c   :  { %v8976_v24 = vld [vmem:[#allocation2 + $0x4cc] sm:$0xf]  ;;  %v7808_v30 = vld [vmem:[#allocation2 + $0x3d8] sm:$0xf0] }
 0x31d   :  { %2966 = vmatmul.bf16.vlgmr.msrb.gmra.mxu2 %v10576_v45 }
 0x31e   :  { %3010 = vmatpush.bf16.msra.mxu2 %v8207_v51  ;;  %2979 = vmatmul.bf16.vlgmr.msra.gmra.mxu3 %v10581_v37  ;;  %v8287_v51 = vor.u32 %v9066_v39, %v8286_v34  ;;  %v7456_v39 = vld [vmem:[#allocation2 + $0x118] sm:$0xf0] }
 0x31f   :  { %3023 = vmatpush.bf16.msrb.mxu3 %v8335_v62  ;;  %3053 = vmatpush.bf16.msra.mxu1 %v7507_v52  ;;  %v7491_v62 = vor.u32 %v8864_v48, %v7488_v55  ;;  %v9012_v52 = vld [vmem:[#allocation2 + $0x5ec] sm:$0xf]  ;;  %v8222_v48 = vld [vmem:[#allocation2 + $0x708] sm:$0xf] }
 0x320   :  { %3041 = vmatpush.bf16.msra.mxu0 %v7363_v42  ;;  %v2759_v16 = vpop.f32.mrf.mxu2  ;;  %v8083_v42 = vor.u32 %v9012_v52, %v8080_v44  ;;  %v8916_v55 = vld [vmem:[#allocation2 + $0x2ec] sm:$0xf]  ;;  %v7792_v52 = vld [vmem:[#allocation2 + $0x3b8] sm:$0xf0] }
 0x321   :  { %v2760_v34 = vadd.f32 %v2759_v16, %v10610_v63  ;;  %v2772_v21 = vpop.f32.mrf.mxu3  ;;  %v9050_v63 = vld [vmem:[#allocation2 + $0x714] sm:$0xf0]  ;;  %v8968_v16 = vld [vmem:[#allocation2 + $0x48c] sm:$0xf] }
 0x322   :  { %3011 = vmatpush.bf16.msra.mxu2 %v8191_v14  ;;  %v8254_v14 = vld [vmem:[#allocation2 + $0x748] sm:$0xf] }
 0x323   :  { %3024 = vmatpush.bf16.msrb.mxu3 %v8319_v5  ;;  %3054 = vmatpush.bf16.msra.mxu1 %v7491_v62  ;;  %v8110_v5 = vld [vmem:[#allocation2 + $0x628] sm:$0xf] }
 0x324   :  { %3042 = vmatpush.bf16.msra.mxu0 %v7347_v47  ;;  %v8111_v53 = vor.u32 %v9022_v28, %v8110_v5  ;;  %v8064_v47 = vld [vmem:[#allocation2 + $0x5d8] sm:$0xf0] }
 0x325   :  { %v7680_v5 = vld [vmem:[#allocation2 + $0x2d8] sm:$0xf0] }
 0x326   :  { %3012 = vmatpush.bf16.msra.mxu2 %v8175_v0  ;;  %v8255_v0 = vor.u32 %v9058_v26, %v8254_v14  ;;  %v7920_v14 = vld [vmem:[#allocation2 + $0x4b8] sm:$0xf0]  ;;  %v8223_v26 = vor.u32 %v9050_v63, %v8222_v48 }
 0x327   :  { %3025 = vmatpush.bf16.msrb.mxu3 %v8303_v33  ;;  %3055 = vmatpush.bf16.msra.mxu1 %v7475_v57  ;;  %v8856_v33 = vld [vmem:[#allocation2 + $0x10c] sm:$0xf]  ;;  %v7923_v43 = vor.u32 %v8972_v38, %v7920_v14  ;;  %v8016_v48 = vld [vmem:[#allocation2 + $0x578] sm:$0xf0] }
 0x328   :  { %3043 = vmatpush.bf16.msra.mxu0 %v7331_v15  ;;  %v7459_v19 = vor.u32 %v8856_v33, %v7456_v39  ;;  %v8912_v57 = vld [vmem:[#allocation2 + $0x2cc] sm:$0xf]  ;;  %v2761_v8 = vpop.f32.mrf.mxu2  ;;  %v8032_v39 = vld [vmem:[#allocation2 + $0x598] sm:$0xf0] }
 0x329   :  { %v2774_v28 = vpop.f32.mrf.mxu3  ;;  %v7683_v32 = vor.u32 %v8912_v57, %v7680_v5  ;;  %v8908_v33 = vld [vmem:[#allocation2 + $0x2ac] sm:$0xf]  ;;  %v7776_v63 = vld [vmem:[#allocation2 + $0x398] sm:$0xf0] }
 0x32a   :  { %3013 = vmatpush.bf16.msra.mxu2 %v8159_v17  ;;  %v2773_v17 = vadd.f32 %v2772_v21, %v2760_v34  ;;  %v7664_v34 = vld [vmem:[#allocation2 + $0x2b8] sm:$0xf0]  ;;  %v8940_v21 = vld [vmem:[#allocation2 + $0x3ac] sm:$0xf] }
 0x32b   :  { %3026 = vmatpush.bf16.msrb.mxu3 %v8287_v51  ;;  %v7936_v51 = vld [vmem:[#allocation2 + $0x4d8] sm:$0xf0]  ;;  %3056 = vmatpush.bf16.msra.mxu1 %v7459_v19  ;;  %v8928_v28 = vld [vmem:[#allocation2 + $0x34c] sm:$0xf] }
 0x32c   :  { %3088 = vmatpush.bf16.msrb.mxu0 %v7955_v22  ;;  %v7939_v56 = vor.u32 %v8976_v24, %v7936_v51  ;;  %v2786_v62 = vadd.f32 %v10614_v25, %v2773_v17  ;;  %v7699_v25 = vor.u32 %v8916_v55, %v7696_v35  ;;  %v9000_v22 = vld [vmem:[#allocation2 + $0x58c] sm:$0xf]  ;;  %v7888_v19 = vld [vmem:[#allocation2 + $0x478] sm:$0xf0]  ;;  %v7667_v17 = vor.u32 %v8908_v33, %v7664_v34 }
 0x32d   :  { %3044 = vmatmul.bf16.vlgmr.msra.gmra.mxu0 %v10552_v46  ;;  %v8035_v44 = vor.u32 %v9000_v22, %v8032_v39  ;;  %v7795_v24 = vor.u32 %v8940_v21, %v7792_v52  ;;  %v8936_v51 = vld [vmem:[#allocation2 + $0x38c] sm:$0xf]  ;;  %v8000_v38 = vld [vmem:[#allocation2 + $0x558] sm:$0xf0] }
 0x32e   :  { %3014 = vmatpush.bf16.msra.mxu2 %v8143_v9  ;;  %v8948_v9 = vld [vmem:[#allocation2 + $0x3ec] sm:$0xf]  ;;  %v10624_v4 = vadd.f32 %v10616_v60, %v2786_v62  ;;  %3057 = vmatmul.bf16.vlgmr.msra.gmra.mxu1 %v10557_v36  ;;  %v7872_v62 = vld [vmem:[#allocation2 + $0x458] sm:$0xf0] }
 0x32f   :  { %3027 = vmatpush.bf16.msrb.mxu3 %v8271_v41  ;;  %3101 = vmatpush.bf16.msrb.mxu1 %v8083_v42  ;;  %v8067_v41 = vor.u32 %v9008_v49, %v8064_v47  ;;  %v7827_v46 = vor.u32 %v8948_v9, %v7824_v58  ;;  %v9004_v60 = vld [vmem:[#allocation2 + $0x5ac] sm:$0xf]  ;;  %v7891_v42 = vor.u32 %v8964_v40, %v7888_v19  ;;  %v7632_v9 = vld [vmem:[#allocation2 + $0x278] sm:$0xf0] }
 0x330   :  { %3089 = vmatpush.bf16.msrb.mxu0 %v7939_v56  ;;  %v8051_v15 = vor.u32 %v9004_v60, %v8048_v29  ;;  %v8960_v56 = vld [vmem:[#allocation2 + $0x44c] sm:$0xf]  ;;  %v7779_v58 = vor.u32 %v8936_v51, %v7776_v63  ;;  %v7760_v14 = vld [vmem:[#allocation2 + $0x378] sm:$0xf0] }
 0x331   :  { %v7875_v35 = vor.u32 %v8960_v56, %v7872_v62  ;;  %v8900_v47 = vld [vmem:[#allocation2 + $0x26c] sm:$0xf]  ;;  %v7856_v57 = vld [vmem:[#allocation2 + $0x438] sm:$0xf0] }
 0x332   :  { %3015 = vmatpush.bf16.msra.mxu2 %v8127_v27  ;;  %v8944_v27 = vld [vmem:[#allocation2 + $0x3cc] sm:$0xf]  ;;  %v7635_v8 = vor.u32 %v8900_v47, %v7632_v9  ;;  %v7984_v29 = vld [vmem:[#allocation2 + $0x538] sm:$0xf0] }
 0x333   :  { %3028 = vmatpush.bf16.msrb.mxu3 %v8255_v0  ;;  %3102 = vmatpush.bf16.msrb.mxu1 %v8067_v41  ;;  %v7904_v0 = vld [vmem:[#allocation2 + $0x498] sm:$0xf0]  ;;  %v7811_v36 = vor.u32 %v8944_v27, %v7808_v30  ;;  %v8932_v41 = vld [vmem:[#allocation2 + $0x36c] sm:$0xf] }
 0x334   :  { %3090 = vmatpush.bf16.msrb.mxu0 %v7923_v43  ;;  %v7907_v31 = vor.u32 %v8968_v16, %v7904_v0  ;;  %v8896_v43 = vld [vmem:[#allocation2 + $0x24c] sm:$0xf]  ;;  %v7763_v27 = vor.u32 %v8932_v41, %v7760_v14  ;;  %v7744_v30 = vld [vmem:[#allocation2 + $0x358] sm:$0xf0]  ;;  %v2717_v14 = vperm.slane %v10607_v18, 1 }
 0x335   :  { %v8988_v60 = vld [vmem:[#allocation2 + $0x52c] sm:$0xf]  ;;  %v7840_v0 = vld [vmem:[#allocation2 + $0x418] sm:$0xf0] }
 0x336   :  { %3016 = vmatpush.bf16.msra.mxu2 %v8111_v53  ;;  %v8904_v53 = vld [vmem:[#allocation2 + $0x28c] sm:$0xf]  ;;  %v7600_v21 = vld [vmem:[#allocation2 + $0x238] sm:$0xf0] }
 0x337   :  { %3029 = vmatpush.bf16.msrb.mxu3 %v8239_v54  ;;  %3103 = vmatpush.bf16.msrb.mxu1 %v8051_v15  ;;  %v8996_v54 = vld [vmem:[#allocation2 + $0x56c] sm:$0xf]  ;;  %v7651_v49 = vor.u32 %v8904_v53, %v7648_v50  ;;  %v7987_v15 = vor.u32 %v8988_v60, %v7984_v29  ;;  %v7968_v39 = vld [vmem:[#allocation2 + $0x518] sm:$0xf0] }
 0x338   :  { %3091 = vmatpush.bf16.msrb.mxu0 %v7907_v31  ;;  %v8019_v55 = vor.u32 %v8996_v54, %v8016_v48  ;;  %v8952_v16 = vld [vmem:[#allocation2 + $0x40c] sm:$0xf]  ;;  %v7728_v19 = vld [vmem:[#allocation2 + $0x338] sm:$0xf0] }
 0x339   :  { %v7843_v31 = vor.u32 %v8952_v16, %v7840_v0  ;;  %v8892_v33 = vld [vmem:[#allocation2 + $0x22c] sm:$0xf]  ;;  %v7584_v51 = vld [vmem:[#allocation2 + $0x218] sm:$0xf0] }
 0x33a   :  { %3017 = vmatpush.bf16.msra.mxu2 %v8095_v20  ;;  %v8992_v20 = vld [vmem:[#allocation2 + $0x54c] sm:$0xf]  ;;  %v7603_v53 = vor.u32 %v8892_v33, %v7600_v21  ;;  %v7712_v48 = vld [vmem:[#allocation2 + $0x318] sm:$0xf0] }
 0x33b   :  { %3030 = vmatpush.bf16.msrb.mxu3 %v8223_v26  ;;  %3104 = vmatpush.bf16.msrb.mxu1 %v8035_v44  ;;  %v8003_v26 = vor.u32 %v8992_v20, %v8000_v38  ;;  %v8984_v22 = vld [vmem:[#allocation2 + $0x50c] sm:$0xf]  ;;  %v8336_v62 = vld [vmem:[#allocation2 + $0x7f8] sm:$0xf0] }
 0x33c   :  { %3092 = vmatpush.bf16.msrb.mxu0 %v7891_v42  ;;  %v8924_v40 = vld [vmem:[#allocation2 + $0x32c] sm:$0xf]  ;;  %v7971_v42 = vor.u32 %v8984_v22, %v7968_v39  ;;  %v8192_v20 = vld [vmem:[#allocation2 + $0x6d8] sm:$0xf0] }
 0x33d   :  { %3018 = vmatmul.bf16.vlgmr.msra.gmra.mxu2 %v10590_v3  ;;  %v8888_v50 = vld [vmem:[#allocation2 + $0x20c] sm:$0xf]  ;;  %v8304_v60 = vld [vmem:[#allocation2 + $0x7b8] sm:$0xf0] }
 0x33e   :  { %3062 = vmatpush.bf16.msrb.mxu2 %v7699_v25  ;;  %3031 = vmatmul.bf16.vlgmr.msrb.gmra.mxu3 %v10595_v59  ;;  %v8956_v25 = vld [vmem:[#allocation2 + $0x42c] sm:$0xf]  ;;  %v8160_v16 = vld [vmem:[#allocation2 + $0x698] sm:$0xf0] }
 0x33f   :  { %3075 = vmatpush.bf16.msra.mxu3 %v7827_v46  ;;  %3105 = vmatpush.bf16.msrb.mxu1 %v8019_v55  ;;  %v7859_v5 = vor.u32 %v8956_v25, %v7856_v57  ;;  %v7616_v46 = vld [vmem:[#allocation2 + $0x258] sm:$0xf0]  ;;  %v8920_v54 = vld [vmem:[#allocation2 + $0x30c] sm:$0xf] }
 0x340   :  { %3093 = vmatpush.bf16.msrb.mxu0 %v7875_v35  ;;  %v2811_v34 = vpop.f32.mrf.mxu2  ;;  %v9044_v55 = vld [vmem:[#allocation2 + $0x6ec] sm:$0xf]  ;;  %v7587_v35 = vor.u32 %v8888_v50, %v7584_v51  ;;  %v8320_v57 = vld [vmem:[#allocation2 + $0x7d8] sm:$0xf0] }
 0x341   :  { %v2812_v52 = vadd.f32 %v2811_v34, %v10624_v4  ;;  %v2824_v44 = vpop.f32.mrf.mxu3  ;;  %v8208_v4 = vld [vmem:[#allocation2 + $0x6f8] sm:$0xf0]  ;;  %v9076_v56 = vld [vmem:[#allocation2 + $0x7ec] sm:$0xf] }
 0x342   :  { %3063 = vmatpush.bf16.msrb.mxu2 %v7683_v32  ;;  %v7619_v32 = vor.u32 %v8896_v43, %v7616_v46  ;;  %v8211_v47 = vor.u32 %v9044_v55, %v8208_v4  ;;  %v9040_v41 = vld [vmem:[#allocation2 + $0x6cc] sm:$0xf]  ;;  %v8176_v46 = vld [vmem:[#allocation2 + $0x6b8] sm:$0xf0] }
 0x343   :  { %3076 = vmatpush.bf16.msra.mxu3 %v7811_v36  ;;  %3106 = vmatpush.bf16.msrb.mxu1 %v8003_v26  ;;  %v7747_v36 = vor.u32 %v8928_v28, %v7744_v30  ;;  %v2837_v26 = vpop.f32.mrf.mxu0  ;;  %v9072_v25 = vld [vmem:[#allocation2 + $0x7cc] sm:$0xf]  ;;  %v8272_v39 = vld [vmem:[#allocation2 + $0x778] sm:$0xf0] }
 0x344   :  { %3094 = vmatpush.bf16.msrb.mxu0 %v7859_v5  ;;  %v8195_v5 = vor.u32 %v9040_v41, %v8192_v20  ;;  %v9036_v43 = vld [vmem:[#allocation2 + $0x6ac] sm:$0xf]  ;;  %v8096_v41 = vld [vmem:[#allocation2 + $0x618] sm:$0xf0] }
 0x345   :  { %v9068_v28 = vld [vmem:[#allocation2 + $0x7ac] sm:$0xf]  ;;  %v8179_v29 = vor.u32 %v9036_v43, %v8176_v46  ;;  %v2718_v43 = vperm.slane %v10607_v18, 2 }
 0x346   :  { %3064 = vmatpush.bf16.msrb.mxu2 %v7667_v17  ;;  %v10630_v17 = vadd.f32 %v2824_v44, %v2812_v52  ;;  %v8307_v30 = vor.u32 %v9068_v28, %v8304_v60  ;;  %v9028_v21 = vld [vmem:[#allocation2 + $0x66c] sm:$0xf] }
 0x347   :  { %3077 = vmatpush.bf16.msra.mxu3 %v7795_v24  ;;  %3107 = vmatpush.bf16.msrb.mxu1 %v7987_v15  ;;  %v7731_v24 = vor.u32 %v8924_v40, %v7728_v19  ;;  %v9032_v15 = vld [vmem:[#allocation2 + $0x68c] sm:$0xf]  ;;  %v8128_v40 = vld [vmem:[#allocation2 + $0x658] sm:$0xf0] }
 0x348   :  { %3095 = vmatpush.bf16.msrb.mxu0 %v7843_v31  ;;  %v3140_v63 = vmax.f32 %v10630_v17, 0.0  ;;  %v2813_v9 = vpop.f32.mrf.mxu2  ;;  %v9064_v31 = vld [vmem:[#allocation2 + $0x78c] sm:$0xf]  ;;  %v8163_v33 = vor.u32 %v9032_v15, %v8160_v16 }
 0x349   :  { %v2826_v38 = vpop.f32.mrf.mxu3  ;;  %v9060_v22 = vld [vmem:[#allocation2 + $0x76c] sm:$0xf] }
 0x34a   :  { %3065 = vmatpush.bf16.msrb.mxu2 %v7651_v49  ;;  %v7715_v49 = vor.u32 %v8920_v54, %v7712_v48  ;;  %v8275_v52 = vor.u32 %v9060_v22, %v8272_v39  ;;  %v9024_v44 = vld [vmem:[#allocation2 + $0x64c] sm:$0xf]  ;;  %v8112_v48 = vld [vmem:[#allocation2 + $0x638] sm:$0xf0] }
 0x34b   :  { %3078 = vmatpush.bf16.msra.mxu3 %v7779_v58  ;;  %3108 = vmatpush.bf16.msrb.mxu1 %v7971_v42  ;;  %v8339_v58 = vor.u32 %v9076_v56, %v8336_v62  ;;  %v2839_v0 = vpop.f32.mrf.mxu0  ;;  %v9056_v42 = vld [vmem:[#allocation2 + $0x74c] sm:$0xf]  ;;  %v8131_v50 = vor.u32 %v9024_v44, %v8128_v40  ;;  %v8240_v56 = vld [vmem:[#allocation2 + $0x738] sm:$0xf0] }
 0x34c   :  { %3096 = vmatmul.bf16.vlgmr.msrb.gmra.mxu0 %v10564_v23  ;;  %v2838_v23 = vadd.f32 %v2837_v26, %v2717_v14  ;;  %v9020_v54 = vld [vmem:[#allocation2 + $0x62c] sm:$0xf]  ;;  %v8224_v14 = vld [vmem:[#allocation2 + $0x718] sm:$0xf0] }
 0x34d   :  { %v9052_v4 = vld [vmem:[#allocation2 + $0x72c] sm:$0xf] }
 0x34e   :  { %3066 = vmatpush.bf16.msrb.mxu2 %v7635_v8  ;;  %3109 = vmatmul.bf16.vlgmr.msrb.gmra.mxu1 %v10569_v61  ;;  %v2850_v8 = vpop.f32.mrf.mxu1  ;;  %v8323_v61 = vor.u32 %v9072_v25, %v8320_v57  ;;  %v8243_v9 = vor.u32 %v9052_v4, %v8240_v56  ;;  %v9048_v38 = vld [vmem:[#allocation2 + $0x70c] sm:$0xf] }
 0x34f   :  { %3079 = vmatpush.bf16.msra.mxu3 %v7763_v27  ;;  %v2851_v27 = vadd.f32 %v2850_v8, %v2838_v23 }
 0x352   :  { %3067 = vmatpush.bf16.msrb.mxu2 %v7619_v32  ;;  %v8288_v32 = vld [vmem:[#allocation2 + $0x798] sm:$0xf0] }
 0x353   :  { %3080 = vmatpush.bf16.msra.mxu3 %v7747_v36  ;;  %v8291_v36 = vor.u32 %v9064_v31, %v8288_v32  ;;  %v2889_v19 = vpop.f32.mrf.mxu0 }
 0x356   :  { %3068 = vmatpush.bf16.msrb.mxu2 %v7603_v53  ;;  %v2852_v34 = vpop.f32.mrf.mxu1  ;;  %v8256_v53 = vld [vmem:[#allocation2 + $0x758] sm:$0xf0] }
 0x357   :  { %3081 = vmatpush.bf16.msra.mxu3 %v7731_v24  ;;  %v8259_v51 = vor.u32 %v9056_v42, %v8256_v53  ;;  %v2719_v42 = vperm.slane %v10607_v18, 3 }
 0x35a   :  { %3069 = vmatpush.bf16.msrb.mxu2 %v7587_v35 }
 0x35b   :  { %3082 = vmatpush.bf16.msra.mxu3 %v7715_v49  ;;  %v8115_v49 = vor.u32 %v9020_v54, %v8112_v48  ;;  %v2891_v20 = vpop.f32.mrf.mxu0 }
 0x35d   :  { %3070 = vmatmul.bf16.vlgmr.msrb.gmra.mxu2 %v10576_v45  ;;  %v8144_v45 = vld [vmem:[#allocation2 + $0x678] sm:$0xf0] }
 0x35e   :  { %3114 = vmatpush.bf16.msra.mxu2 %v8211_v47  ;;  %3083 = vmatmul.bf16.vlgmr.msra.gmra.mxu3 %v10581_v37  ;;  %v8147_v37 = vor.u32 %v9028_v21, %v8144_v45  ;;  %v2902_v24 = vpop.f32.mrf.mxu1 }
 0x35f   :  { %3127 = vmatpush.bf16.msrb.mxu3 %v8339_v58  ;;  %v9016_v58 = vld [vmem:[#allocation2 + $0x60c] sm:$0xf] }
 0x360   :  { %v2863_v55 = vpop.f32.mrf.mxu2  ;;  %v8099_v25 = vor.u32 %v9016_v58, %v8096_v41 }
 0x361   :  { %v2864_v62 = vadd.f32 %v2863_v55, %v2851_v27  ;;  %v2876_v35 = vpop.f32.mrf.mxu3 }
 0x362   :  { %3115 = vmatpush.bf16.msra.mxu2 %v8195_v5  ;;  %v8227_v5 = vor.u32 %v9048_v38, %v8224_v14 }
 0x363   :  { %3128 = vmatpush.bf16.msrb.mxu3 %v8323_v61  ;;  %v2877_v47 = vadd.f32 %v2876_v35, %v2864_v62 }
 0x365   :  { %v2890_v26 = vadd.f32 %v2889_v19, %v2877_v47  ;;  %v2941_v46 = vpop.f32.mrf.mxu0 }
 0x366   :  { %3116 = vmatpush.bf16.msra.mxu2 %v8179_v29  ;;  %v2904_v23 = vpop.f32.mrf.mxu1  ;;  %v2942_v27 = vadd.f32 %v2941_v46, %v2718_v43 }
 0x367   :  { %3129 = vmatpush.bf16.msrb.mxu3 %v8307_v30  ;;  %v2903_v57 = vadd.f32 %v2902_v24, %v2890_v26 }
 0x368   :  { %v2865_v8 = vpop.f32.mrf.mxu2 }
 0x369   :  { %v2878_v61 = vpop.f32.mrf.mxu3 }
 0x36a   :  { %3117 = vmatpush.bf16.msra.mxu2 %v8163_v33 }
 0x36b   :  { %3130 = vmatpush.bf16.msrb.mxu3 %v8291_v36 }
 0x36d   :  { %v2943_v29 = vpop.f32.mrf.mxu0 }
 0x36e   :  { %3118 = vmatpush.bf16.msra.mxu2 %v8147_v37  ;;  %v2954_v28 = vpop.f32.mrf.mxu1 }
 0x36f   :  { %3131 = vmatpush.bf16.msrb.mxu3 %v8275_v52  ;;  %v2955_v60 = vadd.f32 %v2954_v28, %v2942_v27 }
 0x372   :  { %3119 = vmatpush.bf16.msra.mxu2 %v8131_v50 }
 0x373   :  { %3132 = vmatpush.bf16.msrb.mxu3 %v8259_v51 }
 0x376   :  { %3120 = vmatpush.bf16.msra.mxu2 %v8115_v49  ;;  %v2956_v30 = vpop.f32.mrf.mxu1 }
 0x377   :  { %3133 = vmatpush.bf16.msrb.mxu3 %v8243_v9 }
 0x37a   :  { %3121 = vmatpush.bf16.msra.mxu2 %v8099_v25 }
 0x37b   :  { %3134 = vmatpush.bf16.msrb.mxu3 %v8227_v5 }
 0x37d   :  { %3122 = vmatmul.bf16.vlgmr.msra.gmra.mxu2 %v10590_v3 }
 0x37e   :  { %3135 = vmatmul.bf16.vlgmr.msrb.gmra.mxu3 %v10595_v59 }
 0x380   :  { %v2915_v15 = vpop.f32.mrf.mxu2 }
 0x381   :  { %v2916_v16 = vadd.f32 %v2915_v15, %v2903_v57  ;;  %v2928_v0 = vpop.f32.mrf.mxu3 }
 0x383   :  { %v10641_v31 = vadd.f32 %v2928_v0, %v2916_v16 }
 0x385   :  { %v3141_v32 = vmax.f32 %v10641_v31, 0.0  ;;  %v2993_v36 = vpop.f32.mrf.mxu0 }
 0x388   :  { %v2917_v33 = vpop.f32.mrf.mxu2 }
 0x389   :  { %v2930_v34 = vpop.f32.mrf.mxu3 }
 0x38a   :  { %v3006_v21 = vpop.f32.mrf.mxu1 }
 0x38d   :  { %v2995_v3 = vpop.f32.mrf.mxu0 }
 0x392   :  { %v3008_v45 = vpop.f32.mrf.mxu1 }
 0x3a0   :  { %v2967_v22 = vpop.f32.mrf.mxu2 }
 0x3a1   :  { %v2968_v59 = vadd.f32 %v2967_v22, %v2955_v60  ;;  %v2980_v39 = vpop.f32.mrf.mxu3 }
 0x3a3   :  { %v2981_v37 = vadd.f32 %v2980_v39, %v2968_v59 }
 0x3a5   :  { %v2994_v52 = vadd.f32 %v2993_v36, %v2981_v37 }
 0x3a7   :  { %v3007_v44 = vadd.f32 %v3006_v21, %v2994_v52 }
 0x3a8   :  { %v2969_v40 = vpop.f32.mrf.mxu2 }
 0x3a9   :  { %v2982_v19 = vpop.f32.mrf.mxu3 }
 0x3aa   :  { %v3045_v53 = vpop.f32.mrf.mxu0 }
 0x3ab   :  { %v3046_v50 = vadd.f32 %v3045_v53, %v2719_v42  ;;  %v3058_v24 = vpop.f32.mrf.mxu1 }
 0x3ad   :  { %v3059_v51 = vadd.f32 %v3058_v24, %v3046_v50 }
 0x3b2   :  { %v3047_v54 = vpop.f32.mrf.mxu0 }
 0x3b3   :  { %v3060_v48 = vpop.f32.mrf.mxu1 }
 0x3c0   :  { %v3019_v55 = vpop.f32.mrf.mxu2 }
 0x3c1   :  { %v3020_v4 = vadd.f32 %v3019_v55, %v3007_v44  ;;  %v3032_v56 = vpop.f32.mrf.mxu3 }
 0x3c3   :  { %v10645_v62 = vadd.f32 %v3032_v56, %v3020_v4 }
 0x3c5   :  { %v3142_v35 = vmax.f32 %v10645_v62, 0.0 }
 0x3c8   :  { %v3021_v49 = vpop.f32.mrf.mxu2 }
 0x3c9   :  { %v3034_v47 = vpop.f32.mrf.mxu3  ;;  %v3097_v9 = vpop.f32.mrf.mxu0 }
 0x3cb   :  { %v3110_v58 = vpop.f32.mrf.mxu1 }
 0x3d1   :  { %v3099_v41 = vpop.f32.mrf.mxu0 }
 0x3d3   :  { %v3112_v20 = vpop.f32.mrf.mxu1 }
 0x3e0   :  { %v3071_v18 = vpop.f32.mrf.mxu2 }
 0x3e1   :  { %v3084_v38 = vpop.f32.mrf.mxu3  ;;  %v3072_v25 = vadd.f32 %v3071_v18, %v3059_v51 }
 0x3e3   :  { %v3085_v57 = vadd.f32 %v3084_v38, %v3072_v25 }
 0x3e5   :  { %v3098_v23 = vadd.f32 %v3097_v9, %v3085_v57 }
 0x3e7   :  { %v3111_v5 = vadd.f32 %v3110_v58, %v3098_v23 }
 0x3e8   :  { %v3073_v14 = vpop.f32.mrf.mxu2 }
 0x3e9   :  { %v3086_v26 = vpop.f32.mrf.mxu3 }
 0x400   :  { %v3123_v8 = vpop.f32.mrf.mxu2 }
 0x401   :  { %v3124_v61 = vadd.f32 %v3123_v8, %v3111_v5  ;;  %v3136_v43 = vpop.f32.mrf.mxu3 }
 0x403   :  { %v10648_v46 = vadd.f32 %v3136_v43, %v3124_v61 }
 0x405   :  { %v3143_v27 = vmax.f32 %v10648_v46, 0.0 }
 0x408   :  { %v3125_v28 = vpop.f32.mrf.mxu2 }
 0x409   :  { %v3138_v60 = vpop.f32.mrf.mxu3 }
 0x40a   :  { %9784 = dma.done.wait [#allocation4 + $0x1], 8192 }
 0x40b   :  { %9785 = vsyncadd [#allocation4 + $0x1], 4294959104  ;;  %v8398_v29 = vld [vmem:[#allocation3 + $0x70] sm:$0xf]  ;;  %v9094_v30 = vld [vmem:[#allocation3 + $0x74] sm:$0xf0] }
 0x40c   :  { %v8462_v15 = vld [vmem:[#allocation3 + $0xf0] sm:$0xf]  ;;  %v8399_v16 = vor.u32 %v9094_v30, %v8398_v29  ;;  %v9110_v0 = vld [vmem:[#allocation3 + $0xf4] sm:$0xf0]  ;;  %v8390_v22 = vld [vmem:[#allocation3 + $0x60] sm:$0xf] }
 0x40d   :  { %v8526_v33 = vld [vmem:[#allocation3 + $0x170] sm:$0xf]  ;;  %v9126_v34 = vld [vmem:[#allocation3 + $0x174] sm:$0xf0]  ;;  %v8463_v36 = vor.u32 %v9110_v0, %v8462_v15  ;;  %v9092_v39 = vld [vmem:[#allocation3 + $0x64] sm:$0xf0] }
 0x40e   :  { %v8527_v21 = vor.u32 %v9126_v34, %v8526_v33  ;;  %v8590_v3 = vld [vmem:[#allocation3 + $0x1f0] sm:$0xf]  ;;  %v9142_v45 = vld [vmem:[#allocation3 + $0x1f4] sm:$0xf0]  ;;  %3542 = vmatpush.bf16.msra.mxu0 %v8399_v16  ;;  %v8454_v37 = vld [vmem:[#allocation3 + $0xe0] sm:$0xf]  ;;  %v8391_v44 = vor.u32 %v9092_v39, %v8390_v22 }
 0x40f   :  { %v8591_v59 = vor.u32 %v9142_v45, %v8590_v3  ;;  %v9108_v52 = vld [vmem:[#allocation3 + $0xe4] sm:$0xf0]  ;;  %3555 = vmatpush.bf16.msra.mxu1 %v8463_v36  ;;  %v8518_v19 = vld [vmem:[#allocation3 + $0x160] sm:$0xf]  ;;  %v8382_v51 = vld [vmem:[#allocation3 + $0x50] sm:$0xf] }
 0x410   :  { %3568 = vmatpush.bf16.msrb.mxu2 %v8527_v21  ;;  %v8455_v40 = vor.u32 %v9108_v52, %v8454_v37  ;;  %v9124_v42 = vld [vmem:[#allocation3 + $0x164] sm:$0xf0]  ;;  %v8582_v53 = vld [vmem:[#allocation3 + $0x1e0] sm:$0xf]  ;;  %v9090_v54 = vld [vmem:[#allocation3 + $0x54] sm:$0xf0] }
 0x411   :  { %3581 = vmatpush.bf16.msra.mxu3 %v8591_v59  ;;  %v8519_v50 = vor.u32 %v9124_v42, %v8518_v19  ;;  %v9140_v24 = vld [vmem:[#allocation3 + $0x1e4] sm:$0xf0]  ;;  %v8446_v55 = vld [vmem:[#allocation3 + $0xd0] sm:$0xf]  ;;  %v9106_v4 = vld [vmem:[#allocation3 + $0xd4] sm:$0xf0]  ;;  %v8383_v49 = vor.u32 %v9090_v54, %v8382_v51 }
 0x412   :  { %v8583_v48 = vor.u32 %v9140_v24, %v8582_v53  ;;  %v8510_v56 = vld [vmem:[#allocation3 + $0x150] sm:$0xf]  ;;  %3543 = vmatpush.bf16.msra.mxu0 %v8391_v44  ;;  %v9122_v47 = vld [vmem:[#allocation3 + $0x154] sm:$0xf0]  ;;  %v8447_v41 = vor.u32 %v9106_v4, %v8446_v55  ;;  %v8374_v18 = vld [vmem:[#allocation3 + $0x40] sm:$0xf] }
 0x413   :  { %v8574_v9 = vld [vmem:[#allocation3 + $0x1d0] sm:$0xf]  ;;  %v9138_v58 = vld [vmem:[#allocation3 + $0x1d4] sm:$0xf0]  ;;  %3556 = vmatpush.bf16.msra.mxu1 %v8455_v40  ;;  %v8511_v20 = vor.u32 %v9122_v47, %v8510_v56  ;;  %v9088_v38 = vld [vmem:[#allocation3 + $0x44] sm:$0xf0] }
 0x414   :  { %3569 = vmatpush.bf16.msrb.mxu2 %v8519_v50  ;;  %v8438_v14 = vld [vmem:[#allocation3 + $0xc0] sm:$0xf]  ;;  %v8575_v26 = vor.u32 %v9138_v58, %v8574_v9  ;;  %v9104_v25 = vld [vmem:[#allocation3 + $0xc4] sm:$0xf0]  ;;  %v8375_v61 = vor.u32 %v9088_v38, %v8374_v18  ;;  %v8366_v60 = vld [vmem:[#allocation3 + $0x30] sm:$0xf] }
 0x415   :  { %3582 = vmatpush.bf16.msra.mxu3 %v8583_v48  ;;  %v8502_v57 = vld [vmem:[#allocation3 + $0x140] sm:$0xf]  ;;  %v9120_v23 = vld [vmem:[#allocation3 + $0x144] sm:$0xf0]  ;;  %v8439_v43 = vor.u32 %v9104_v25, %v8438_v14  ;;  %v9086_v29 = vld [vmem:[#allocation3 + $0x34] sm:$0xf0] }
 0x416   :  { %v8566_v5 = vld [vmem:[#allocation3 + $0x1c0] sm:$0xf]  ;;  %v9136_v8 = vld [vmem:[#allocation3 + $0x1c4] sm:$0xf0]  ;;  %3544 = vmatpush.bf16.msra.mxu0 %v8383_v49  ;;  %v8503_v28 = vor.u32 %v9120_v23, %v8502_v57  ;;  %v8430_v30 = vld [vmem:[#allocation3 + $0xb0] sm:$0xf]  ;;  %v8367_v21 = vor.u32 %v9086_v29, %v8366_v60 }
 0x417   :  { %3557 = vmatpush.bf16.msra.mxu1 %v8447_v41  ;;  %v8567_v15 = vor.u32 %v9136_v8, %v8566_v5  ;;  %v9102_v16 = vld [vmem:[#allocation3 + $0xb4] sm:$0xf0]  ;;  %v8494_v0 = vld [vmem:[#allocation3 + $0x130] sm:$0xf]  ;;  %v8358_v22 = vld [vmem:[#allocation3 + $0x20] sm:$0xf] }
 0x418   :  { %3570 = vmatpush.bf16.msrb.mxu2 %v8511_v20  ;;  %v9118_v33 = vld [vmem:[#allocation3 + $0x134] sm:$0xf0]  ;;  %v8558_v34 = vld [vmem:[#allocation3 + $0x1b0] sm:$0xf]  ;;  %v8431_v3 = vor.u32 %v9102_v16, %v8430_v30  ;;  %v9084_v59 = vld [vmem:[#allocation3 + $0x24] sm:$0xf0] }
 0x419   :  { %3583 = vmatpush.bf16.msra.mxu3 %v8575_v26  ;;  %v9134_v36 = vld [vmem:[#allocation3 + $0x1b4] sm:$0xf0]  ;;  %v8495_v45 = vor.u32 %v9118_v33, %v8494_v0  ;;  %v8422_v39 = vld [vmem:[#allocation3 + $0xa0] sm:$0xf]  ;;  %v9100_v52 = vld [vmem:[#allocation3 + $0xa4] sm:$0xf0]  ;;  %v8359_v53 = vor.u32 %v9084_v59, %v8358_v22 }
 0x41a   :  { %3545 = vmatpush.bf16.msra.mxu0 %v8375_v61  ;;  %v8559_v37 = vor.u32 %v9134_v36, %v8558_v34  ;;  %v8486_v44 = vld [vmem:[#allocation3 + $0x120] sm:$0xf]  ;;  %v9116_v40 = vld [vmem:[#allocation3 + $0x124] sm:$0xf0]  ;;  %v8423_v50 = vor.u32 %v9100_v52, %v8422_v39  ;;  %v8350_v51 = vld [vmem:[#allocation3 + $0x10] sm:$0xf] }
 0x41b   :  { %3558 = vmatpush.bf16.msra.mxu1 %v8439_v43  ;;  %v8550_v19 = vld [vmem:[#allocation3 + $0x1a0] sm:$0xf]  ;;  %v9132_v42 = vld [vmem:[#allocation3 + $0x1a4] sm:$0xf0]  ;;  %v8487_v24 = vor.u32 %v9116_v40, %v8486_v44  ;;  %v9082_v54 = vld [vmem:[#allocation3 + $0x14] sm:$0xf0] }
 0x41c   :  { %3571 = vmatpush.bf16.msrb.mxu2 %v8503_v28  ;;  %v8414_v48 = vld [vmem:[#allocation3 + $0x90] sm:$0xf]  ;;  %v8551_v55 = vor.u32 %v9132_v42, %v8550_v19  ;;  %v9098_v4 = vld [vmem:[#allocation3 + $0x94] sm:$0xf0]  ;;  %v8351_v58 = vor.u32 %v9082_v54, %v8350_v51  ;;  %v8342_v41 = vld [vmem:[#allocation3] sm:$0xf]  ;;  %v10654_v19 = vpack.c.bf16 %v3142_v35, %v3142_v35  ;;  %v10669_v35 = vpack.c.bf16 %v3141_v32, %v3141_v32 }
 0x41d   :  { %3584 = vmatpush.bf16.msra.mxu3 %v8567_v15  ;;  %v8478_v56 = vld [vmem:[#allocation3 + $0x110] sm:$0xf]  ;;  %v9114_v49 = vld [vmem:[#allocation3 + $0x114] sm:$0xf0]  ;;  %v9080_v20 = vld [vmem:[#allocation3 + $0x4] sm:$0xf0]  ;;  %v8415_v18 = vor.u32 %v9098_v4, %v8414_v48 }
 0x41e   :  { %3546 = vmatpush.bf16.msra.mxu0 %v8367_v21  ;;  %v8542_v47 = vld [vmem:[#allocation3 + $0x190] sm:$0xf]  ;;  %v9130_v9 = vld [vmem:[#allocation3 + $0x194] sm:$0xf0]  ;;  %v8479_v38 = vor.u32 %v9114_v49, %v8478_v56  ;;  %v8406_v14 = vld [vmem:[#allocation3 + $0x80] sm:$0xf]  ;;  %v8343_v60 = vor.u32 %v9080_v20, %v8342_v41 }
 0x41f   :  { %3559 = vmatpush.bf16.msra.mxu1 %v8431_v3  ;;  %v9096_v26 = vld [vmem:[#allocation3 + $0x84] sm:$0xf0]  ;;  %v8470_v25 = vld [vmem:[#allocation3 + $0x100] sm:$0xf]  ;;  %v8543_v57 = vor.u32 %v9130_v9, %v8542_v47  ;;  %v9093_v61 = vld [vmem:[#allocation3 + $0x74] sm:$0xf] }
 0x420   :  { %3572 = vmatpush.bf16.msrb.mxu2 %v8495_v45  ;;  %v9112_v23 = vld [vmem:[#allocation3 + $0x104] sm:$0xf0]  ;;  %v8534_v5 = vld [vmem:[#allocation3 + $0x180] sm:$0xf]  ;;  %v8400_v43 = vld [vmem:[#allocation3 + $0x78] sm:$0xf0]  ;;  %v8407_v16 = vor.u32 %v9096_v26, %v8406_v14 }
 0x421   :  { %3585 = vmatpush.bf16.msra.mxu3 %v8559_v37  ;;  %v9128_v8 = vld [vmem:[#allocation3 + $0x184] sm:$0xf0]  ;;  %v9109_v28 = vld [vmem:[#allocation3 + $0xf4] sm:$0xf]  ;;  %v8464_v29 = vld [vmem:[#allocation3 + $0xf8] sm:$0xf0]  ;;  %v8471_v0 = vor.u32 %v9112_v23, %v8470_v25  ;;  %v8403_v21 = vor.u32 %v9093_v61, %v8400_v43 }
 0x422   :  { %3547 = vmatpush.bf16.msra.mxu0 %v8359_v53  ;;  %v9125_v30 = vld [vmem:[#allocation3 + $0x174] sm:$0xf]  ;;  %v8528_v15 = vld [vmem:[#allocation3 + $0x178] sm:$0xf0]  ;;  %v8535_v36 = vor.u32 %v9128_v8, %v8534_v5  ;;  %v8467_v3 = vor.u32 %v9109_v28, %v8464_v29  ;;  %v9091_v22 = vld [vmem:[#allocation3 + $0x64] sm:$0xf] }
 0x423   :  { %3560 = vmatpush.bf16.msra.mxu1 %v8423_v50  ;;  %v9141_v33 = vld [vmem:[#allocation3 + $0x1f4] sm:$0xf]  ;;  %v8592_v34 = vld [vmem:[#allocation3 + $0x1f8] sm:$0xf0]  ;;  %v8531_v45 = vor.u32 %v9125_v30, %v8528_v15  ;;  %v8392_v59 = vld [vmem:[#allocation3 + $0x68] sm:$0xf0]  ;;  %v10659_v50 = vpack.c.bf16 %v3140_v63, %v3140_v63 }
 0x424   :  { %3573 = vmatpush.bf16.msrb.mxu2 %v8487_v24  ;;  %v9107_v39 = vld [vmem:[#allocation3 + $0xe4] sm:$0xf]  ;;  %v8595_v37 = vor.u32 %v9141_v33, %v8592_v34  ;;  %v8456_v52 = vld [vmem:[#allocation3 + $0xe8] sm:$0xf0]  ;;  %v10664_v24 = vpack.c.bf16 %v3143_v27, %v3143_v27  ;;  %v8395_v62 = vor.u32 %v9091_v22, %v8392_v59  ;;  %v9089_v54 = vld [vmem:[#allocation3 + $0x54] sm:$0xf] }
 0x425   :  { %3586 = vmatpush.bf16.msra.mxu3 %v8551_v55  ;;  %v9123_v44 = vld [vmem:[#allocation3 + $0x164] sm:$0xf]  ;;  %v8520_v40 = vld [vmem:[#allocation3 + $0x168] sm:$0xf0]  ;;  %v8459_v51 = vor.u32 %v9107_v39, %v8456_v52  ;;  %v8384_v63 = vld [vmem:[#allocation3 + $0x58] sm:$0xf0] }
 0x426   :  { %3548 = vmatpush.bf16.msra.mxu0 %v8351_v58  ;;  %v9139_v42 = vld [vmem:[#allocation3 + $0x1e4] sm:$0xf]  ;;  %v8584_v53 = vld [vmem:[#allocation3 + $0x1e8] sm:$0xf0]  ;;  %v8523_v17 = vor.u32 %v9123_v44, %v8520_v40  ;;  %v9105_v48 = vld [vmem:[#allocation3 + $0xd4] sm:$0xf]  ;;  %v8387_v31 = vor.u32 %v9089_v54, %v8384_v63 }
 0x427   :  { %3561 = vmatpush.bf16.msra.mxu1 %v8415_v18  ;;  %v8587_v46 = vor.u32 %v9139_v42, %v8584_v53  ;;  %v8448_v27 = vld [vmem:[#allocation3 + $0xd8] sm:$0xf0]  ;;  %v9121_v55 = vld [vmem:[#allocation3 + $0x154] sm:$0xf]  ;;  %v9087_v9 = vld [vmem:[#allocation3 + $0x44] sm:$0xf] }
 0x428   :  { %3574 = vmatpush.bf16.msrb.mxu2 %v8479_v38  ;;  %v8512_v4 = vld [vmem:[#allocation3 + $0x158] sm:$0xf0]  ;;  %v9137_v56 = vld [vmem:[#allocation3 + $0x1d4] sm:$0xf]  ;;  %v8451_v32 = vor.u32 %v9105_v48, %v8448_v27  ;;  %v8376_v58 = vld [vmem:[#allocation3 + $0x48] sm:$0xf0] }
 0x429   :  { %3587 = vmatpush.bf16.msra.mxu3 %v8543_v57  ;;  %v8576_v49 = vld [vmem:[#allocation3 + $0x1d8] sm:$0xf0]  ;;  %v8515_v47 = vor.u32 %v9121_v55, %v8512_v4  ;;  %v9103_v41 = vld [vmem:[#allocation3 + $0xc4] sm:$0xf]  ;;  %v8440_v18 = vld [vmem:[#allocation3 + $0xc8] sm:$0xf0]  ;;  %v8379_v57 = vor.u32 %v9087_v9, %v8376_v58 }
 0x42a   :  { %3549 = vmatpush.bf16.msra.mxu0 %v8343_v60  ;;  %v8579_v20 = vor.u32 %v9137_v56, %v8576_v49  ;;  %v9119_v38 = vld [vmem:[#allocation3 + $0x144] sm:$0xf]  ;;  %v8504_v14 = vld [vmem:[#allocation3 + $0x148] sm:$0xf0]  ;;  %v9085_v23 = vld [vmem:[#allocation3 + $0x34] sm:$0xf]  ;;  %v8443_v5 = vor.u32 %v9103_v41, %v8440_v18 }
 0x42b   :  { %3562 = vmatpush.bf16.msra.mxu1 %v8407_v16  ;;  %v9135_v26 = vld [vmem:[#allocation3 + $0x1c4] sm:$0xf]  ;;  %v8568_v25 = vld [vmem:[#allocation3 + $0x1c8] sm:$0xf0]  ;;  %v8507_v8 = vor.u32 %v9119_v38, %v8504_v14  ;;  %v8368_v61 = vld [vmem:[#allocation3 + $0x38] sm:$0xf0] }
 0x42c   :  { %3575 = vmatpush.bf16.msrb.mxu2 %v8471_v0  ;;  %v9101_v43 = vld [vmem:[#allocation3 + $0xb4] sm:$0xf]  ;;  %v8432_v28 = vld [vmem:[#allocation3 + $0xb8] sm:$0xf0]  ;;  %v8571_v60 = vor.u32 %v9135_v26, %v8568_v25  ;;  %v9083_v0 = vld [vmem:[#allocation3 + $0x24] sm:$0xf]  ;;  %v8371_v34 = vor.u32 %v9085_v23, %v8368_v61 }
 0x42d   :  { %3588 = vmatpush.bf16.msra.mxu3 %v8535_v36  ;;  %3550 = vmatmul.bf16.vlgmr.msra.gmra.mxu0 %v10659_v50  ;;  %v9117_v29 = vld [vmem:[#allocation3 + $0x134] sm:$0xf]  ;;  %v8496_v30 = vld [vmem:[#allocation3 + $0x138] sm:$0xf0]  ;;  %v8360_v33 = vld [vmem:[#allocation3 + $0x28] sm:$0xf0]  ;;  %v8435_v22 = vor.u32 %v9101_v43, %v8432_v28 }
 0x42e   :  { %3594 = vmatpush.bf16.msrb.mxu0 %v8403_v21  ;;  %3563 = vmatmul.bf16.vlgmr.msra.gmra.mxu1 %v10669_v35  ;;  %v9133_v15 = vld [vmem:[#allocation3 + $0x1b4] sm:$0xf]  ;;  %v8560_v16 = vld [vmem:[#allocation3 + $0x1b8] sm:$0xf0]  ;;  %v9099_v36 = vld [vmem:[#allocation3 + $0xa4] sm:$0xf]  ;;  %v8499_v59 = vor.u32 %v9117_v29, %v8496_v30  ;;  %v8363_v42 = vor.u32 %v9083_v0, %v8360_v33 }
 0x42f   :  { %3607 = vmatpush.bf16.msrb.mxu1 %v8467_v3  ;;  %3576 = vmatmul.bf16.vlgmr.msrb.gmra.mxu2 %v10654_v19  ;;  %v8424_v21 = vld [vmem:[#allocation3 + $0xa8] sm:$0xf0]  ;;  %v9115_v3 = vld [vmem:[#allocation3 + $0x124] sm:$0xf]  ;;  %v8563_v52 = vor.u32 %v9133_v15, %v8560_v16  ;;  %v9081_v44 = vld [vmem:[#allocation3 + $0x14] sm:$0xf] }
 0x430   :  { %3620 = vmatpush.bf16.msra.mxu2 %v8531_v45  ;;  %3589 = vmatmul.bf16.vlgmr.msra.gmra.mxu3 %v10664_v24  ;;  %v8488_v45 = vld [vmem:[#allocation3 + $0x128] sm:$0xf0]  ;;  %v9131_v39 = vld [vmem:[#allocation3 + $0x1a4] sm:$0xf]  ;;  %v8352_v40 = vld [vmem:[#allocation3 + $0x18] sm:$0xf0]  ;;  %v8427_v54 = vor.u32 %v9099_v36, %v8424_v21 }
 0x431   :  { %3633 = vmatpush.bf16.msrb.mxu3 %v8595_v37  ;;  %v8552_v37 = vld [vmem:[#allocation3 + $0x1a8] sm:$0xf0]  ;;  %v9097_v53 = vld [vmem:[#allocation3 + $0x94] sm:$0xf]  ;;  %v8491_v63 = vor.u32 %v9115_v3, %v8488_v45  ;;  %v8355_v55 = vor.u32 %v9081_v44, %v8352_v40  ;;  %v9079_v49 = vld [vmem:[#allocation3 + $0x4] sm:$0xf] }
 0x432   :  { %3595 = vmatpush.bf16.msrb.mxu0 %v8395_v62  ;;  %v8416_v62 = vld [vmem:[#allocation3 + $0x98] sm:$0xf0]  ;;  %v9129_v48 = vld [vmem:[#allocation3 + $0x194] sm:$0xf]  ;;  %v8555_v27 = vor.u32 %v9131_v39, %v8552_v37  ;;  %v8408_v9 = vld [vmem:[#allocation3 + $0x88] sm:$0xf0] }
 0x433   :  { %3608 = vmatpush.bf16.msrb.mxu1 %v8459_v51  ;;  %v9113_v51 = vld [vmem:[#allocation3 + $0x114] sm:$0xf]  ;;  %v8419_v4 = vor.u32 %v9097_v53, %v8416_v62  ;;  %v9111_v58 = vld [vmem:[#allocation3 + $0x104] sm:$0xf]  ;;  %v8472_v41 = vld [vmem:[#allocation3 + $0x108] sm:$0xf0] }
 0x434   :  { %3621 = vmatpush.bf16.msra.mxu2 %v8523_v17  ;;  %v8480_v17 = vld [vmem:[#allocation3 + $0x118] sm:$0xf0]  ;;  %v8536_v18 = vld [vmem:[#allocation3 + $0x188] sm:$0xf0]  ;;  %v8475_v26 = vor.u32 %v9111_v58, %v8472_v41  ;;  %v9803_v3 = vmov 2   ;;  %v9804_v58 = vmov 0  }
 0x435   :  { %3634 = vmatpush.bf16.msrb.mxu3 %v8587_v46  ;;  %v8544_v46 = vld [vmem:[#allocation3 + $0x198] sm:$0xf0]  ;;  %v8483_v56 = vor.u32 %v9113_v51, %v8480_v17  ;;  %v3659_v61 = vld [vmem:[#allocation9 + $0x58] sm:$0xff]  ;;  %v3652_v16 = vld [vmem:[#allocation9 + $0x20] sm:$0xff]  ;;  %s9805_s6 = smov 122   ;;  %s9806_s14 = smov 125  }
 0x436   :  { %3596 = vmatpush.bf16.msrb.mxu0 %v8387_v31  ;;  %v8344_v31 = vld [vmem:[#allocation3 + $0x8] sm:$0xf0]  ;;  %v3662_v23 = vld [vmem:[#allocation9 + $0x70] sm:$0xff]  ;;  %v3657_v28 = vld [vmem:[#allocation9 + $0x48] sm:$0xff]  ;;  %vm4346_vm10 = vcmask 261120   ;;  %s9809_s16 = smov 88  }
 0x437   :  { %3609 = vmatpush.bf16.msrb.mxu1 %v8451_v32  ;;  %v9095_v32 = vld [vmem:[#allocation3 + $0x84] sm:$0xf]  ;;  %v8347_v38 = vor.u32 %v9079_v49, %v8344_v31  ;;  %v3653_v30 = vld [vmem:[#allocation9 + $0x28] sm:$0xff]  ;;  %v3676_v0 = vld [vmem:[#allocation9 + $0xe0] sm:$0xff]  ;;  %s9810_s17 = smov 120   ;;  %s9811_s21 = smov 80  }
 0x438   :  { %3622 = vmatpush.bf16.msra.mxu2 %v8515_v47  ;;  %v8547_v47 = vor.u32 %v9129_v48, %v8544_v46  ;;  %v8411_v14 = vor.u32 %v9095_v32, %v8408_v9  ;;  %v3658_v43 = vld [vmem:[#allocation9 + $0x50] sm:$0xff]  ;;  %v3679_v29 = vld [vmem:[#allocation9 + $0xf8] sm:$0xff]  ;;  %v3677_v15 = vld [vmem:[#allocation9 + $0xe8] sm:$0xff]  ;;  %s9812_s20 = smov 72   ;;  %s9813_s4 = smov 112   ;;  %vm4549_vm14 = vcmask 64512  }
 0x439   :  { %3635 = vmatpush.bf16.msrb.mxu3 %v8579_v20  ;;  %v9127_v20 = vld [vmem:[#allocation3 + $0x184] sm:$0xf]  ;;  %v3649_v45 = vld [vmem:[#allocation9 + $0x8] sm:$0xff]  ;;  %v3672_v39 = vld [vmem:[#allocation9 + $0xc0] sm:$0xff]  ;;  %s9814_s12 = smov 104   ;;  %s9815_s25 = smov 64  }
 0x43a   :  { %3597 = vmatpush.bf16.msrb.mxu0 %v8379_v57  ;;  %v8539_v25 = vor.u32 %v9127_v20, %v8536_v18  ;;  %v3663_v57 = vld [vmem:[#allocation9 + $0x78] sm:$0xff]  ;;  %v3650_v36 = vld [vmem:[#allocation9 + $0x10] sm:$0xff]  ;;  %v3668_v53 = vld [vmem:[#allocation9 + $0xa0] sm:$0xff]  ;;  %s9816_s7 = smov 56   ;;  %s9817_s22 = smov 48   ;;  %vm5234_vm15 = vcmask 130048  }
 0x43b   :  { %3610 = vmatpush.bf16.msrb.mxu1 %v8443_v5  ;;  %v3661_v5 = vld [vmem:[#allocation9 + $0x68] sm:$0xff]  ;;  %v3651_v33 = vld [vmem:[#allocation9 + $0x18] sm:$0xff]  ;;  %v3674_v21 = vld [vmem:[#allocation9 + $0xd0] sm:$0xff]  ;;  %s9818_s23 = smov 40   ;;  %s9819_s26 = smov 24  }
 0x43c   :  { %3623 = vmatpush.bf16.msra.mxu2 %v8507_v8  ;;  %v3660_v8 = vld [vmem:[#allocation9 + $0x60] sm:$0xff]  ;;  %v3671_v37 = vld [vmem:[#allocation9 + $0xb8] sm:$0xff]  ;;  %v3670_v40 = vld [vmem:[#allocation9 + $0xb0] sm:$0xff] }
 0x43d   :  { %3636 = vmatpush.bf16.msrb.mxu3 %v8571_v60  ;;  %v3656_v60 = vld [vmem:[#allocation9 + $0x40] sm:$0xff]  ;;  %v3666_v46 = vld [vmem:[#allocation9 + $0x90] sm:$0xff] }
 0x43e   :  { %3598 = vmatpush.bf16.msrb.mxu0 %v8371_v34  ;;  %v3675_v34 = vld [vmem:[#allocation9 + $0xd8] sm:$0xff]  ;;  %v3664_v31 = vld [vmem:[#allocation9 + $0x80] sm:$0xff] }
 0x43f   :  { %3611 = vmatpush.bf16.msrb.mxu1 %v8435_v22  ;;  %v3673_v22 = vld [vmem:[#allocation9 + $0xc8] sm:$0xff] }
 0x440   :  { %3624 = vmatpush.bf16.msra.mxu2 %v8499_v59  ;;  %v3648_v59 = vld [vmem:[#allocation9] sm:$0xff] }
 0x441   :  { %3637 = vmatpush.bf16.msrb.mxu3 %v8563_v52  ;;  %v3216_v52 = vld [vmem:[#allocation5 + $0xe] sm:$0x3] }
 0x442   :  { %3599 = vmatpush.bf16.msrb.mxu0 %v8363_v42  ;;  %v3538_v44 = vperm.slane %v3216_v52, 0  ;;  %v3669_v42 = vld [vmem:[#allocation9 + $0xa8] sm:$0xff]  ;;  %v3539_v20 = vperm.slane %v3216_v52, 1 }
 0x443   :  { %3612 = vmatpush.bf16.msrb.mxu1 %v8427_v54 }
 0x444   :  { %3625 = vmatpush.bf16.msra.mxu2 %v8491_v63  ;;  %v3667_v63 = vld [vmem:[#allocation9 + $0x98] sm:$0xff] }
 0x445   :  { %3638 = vmatpush.bf16.msrb.mxu3 %v8555_v27 }
 0x446   :  { %3600 = vmatpush.bf16.msrb.mxu0 %v8355_v55 }
 0x447   :  { %3613 = vmatpush.bf16.msrb.mxu1 %v8419_v4  ;;  %v3665_v4 = vld [vmem:[#allocation9 + $0x88] sm:$0xff] }
 0x448   :  { %3626 = vmatpush.bf16.msra.mxu2 %v8483_v56 }
 0x449   :  { %3639 = vmatpush.bf16.msrb.mxu3 %v8547_v47 }
 0x44a   :  { %3601 = vmatpush.bf16.msrb.mxu0 %v8347_v38 }
 0x44b   :  { %3614 = vmatpush.bf16.msrb.mxu1 %v8411_v14 }
 0x44c   :  { %3627 = vmatpush.bf16.msra.mxu2 %v8475_v26 }
 0x44d   :  { %3640 = vmatpush.bf16.msrb.mxu3 %v8539_v25  ;;  %3602 = vmatmul.bf16.vlgmr.msrb.gmra.mxu0 %v10659_v50  ;;  %v3655_v50 = vld [vmem:[#allocation9 + $0x38] sm:$0xff] }
 0x44e   :  { %3681 = vmatpush.msra.mxu0 %v3663_v57  ;;  %3615 = vmatmul.bf16.vlgmr.msrb.gmra.mxu1 %v10669_v35  ;;  %v3678_v35 = vld [vmem:[#allocation9 + $0xf0] sm:$0xff] }
 0x44f   :  { %3628 = vmatmul.bf16.vlgmr.msra.gmra.mxu2 %v10654_v19  ;;  %3701 = vmatpush.msra.mxu1 %v3679_v29  ;;  %v9802_v19 = vmov 1  }
 0x450   :  { %3641 = vmatmul.bf16.vlgmr.msrb.gmra.mxu3 %v10664_v24  ;;  %3682 = vmatpush.msra.mxu0 %v3662_v23  ;;  %v3654_v24 = vld [vmem:[#allocation9 + $0x30] sm:$0xff] }
 0x451   :  { %9192 = vset.pattern.permute.xlu1 %v9802_v19  ;;  %9190 = vset.pattern.permute.xlu0 %v9802_v19 }
 0x452   :  { %3683 = vmatpush.msra.mxu0 %v3661_v5  ;;  %3767 = vperm.xlu1 %9192, %v9998_v6  }
 0x453   :  { %3763 = vperm.xlu0 %9190, %v9982_v1   ;;  %9194 = vset.pattern.permute.xlu2 %v9802_v19 }
 0x454   :  { %3684 = vmatpush.msra.mxu0 %v3660_v8  ;;  %3702 = vmatpush.msra.mxu1 %v3678_v35 }
 0x455   :  { %3771 = vperm.xlu2 %9194, %v10012_v10  }
 0x456   :  { %3685 = vmatpush.msra.mxu0 %v3659_v61  ;;  %3703 = vmatpush.msra.mxu1 %v3677_v15 }
 0x458   :  { %3686 = vmatpush.msra.mxu0 %v3658_v43  ;;  %3704 = vmatpush.msra.mxu1 %v3676_v0 }
 0x45a   :  { %3687 = vmatpush.msra.mxu0 %v3657_v28  ;;  %3705 = vmatpush.msra.mxu1 %v3675_v34 }
 0x45b   :  { %9193 = vset.pattern.permute.xlu1 %v9803_v3  ;;  %9191 = vset.pattern.permute.xlu0 %v9803_v3 }
 0x45c   :  { %3688 = vmatpush.msra.mxu0 %v3656_v60  ;;  %3706 = vmatpush.msra.mxu1 %v3674_v21 }
 0x45d   :  { %3847 = vperm.xlu1 %9193, %v9998_v6   ;;  %3843 = vperm.xlu0 %9191, %v9982_v1  }
 0x45e   :  { %3689 = vmatpush.msra.mxu0 %v3655_v50  ;;  %3707 = vmatpush.msra.mxu1 %v3673_v22 }
 0x45f   :  { %9195 = vset.pattern.permute.xlu2 %v9803_v3 }
 0x460   :  { %3690 = vmatpush.msra.mxu0 %v3654_v24  ;;  %3708 = vmatpush.msra.mxu1 %v3672_v39 }
 0x461   :  { %3851 = vperm.xlu2 %9195, %v10012_v10  }
 0x462   :  { %3691 = vmatpush.msra.mxu0 %v3653_v30  ;;  %3709 = vmatpush.msra.mxu1 %v3671_v37 }
 0x464   :  { %3692 = vmatpush.msra.mxu0 %v3652_v16  ;;  %3710 = vmatpush.msra.mxu1 %v3670_v40 }
 0x465   :  { %9196 = vset.pattern.permute.xlu1 %v9802_v19  ;;  %9197 = vset.pattern.permute.xlu0 %v9802_v19 }
 0x466   :  { %3693 = vmatpush.msra.mxu0 %v3651_v33  ;;  %3775 = vperm.xlu1 %9196, %v10026_v12  }
 0x467   :  { %3779 = vperm.xlu0 %9197, %v9989_v2   ;;  %3711 = vmatpush.msra.mxu1 %v3669_v42 }
 0x468   :  { %3694 = vmatpush.msra.mxu0 %v3650_v36 }
 0x469   :  { %3855 = vperm.xlu2 %9195, %v10026_v12   ;;  %3712 = vmatpush.msra.mxu1 %v3668_v53 }
 0x46a   :  { %3695 = vmatpush.msra.mxu0 %v3649_v45 }
 0x46b   :  { %3713 = vmatpush.msra.mxu1 %v3667_v63 }
 0x46c   :  { %3696 = vmatpush.msra.mxu0 %v3648_v59 }
 0x46d   :  { %3714 = vmatpush.msra.mxu1 %v3666_v46 }
 0x46e   :  { %9198 = vset.pattern.permute.xlu1 %v9803_v3 }
 0x46f   :  { %9201 = vset.pattern.permute.xlu0 %v9803_v3  ;;  %3859 = vperm.xlu1 %9198, %v9989_v2  }
 0x470   :  { %3863 = vperm.xlu0 %9201, %v10003_v7   ;;  %3715 = vmatpush.msra.mxu1 %v3665_v4 }
 0x471   :  { %9199 = vset.pattern.permute.xlu2 %v9804_v58 }
 0x472   :  { %3716 = vmatpush.msra.mxu1 %v3664_v31  ;;  %3722 = vperm.xlu2 %9199, %v9982_v1  }
 0x477   :  { %9200 = vset.pattern.permute.xlu1 %v9802_v19 }
 0x478   :  { %3867 = vperm.xlu0 %9201, %v10017_v11   ;;  %3783 = vperm.xlu1 %9200, %v10003_v7  }
 0x47a   :  { %3726 = vperm.xlu2 %9199, %v9998_v6  }
 0x480   :  { %9202 = vset.pattern.permute.xlu0 %v9802_v19  ;;  %3787 = vperm.xlu1 %9200, %v10017_v11  }
 0x481   :  { %3791 = vperm.xlu0 %9202, %v10031_v13  }
 0x482   :  { %3730 = vperm.xlu2 %9199, %v10012_v10   ;;  %v3680_v10 = vld [vmem:[#allocation5 + $0x10] sm:$0x1] }
 0x489   :  { %9285 = vset.pattern.permute.xlu0 %v9803_v3 }
 0x48a   :  { %9203 = vset.pattern.permute.xlu2 %v9803_v3 }
 0x4aa   :  { %v3551_v62 = vpop.f32.mrf.mxu0 }
 0x4ab   :  { %v3552_v51 = vadd.f32 %v3551_v62, %v3538_v44  ;;  %v3564_v17 = vpop.f32.mrf.mxu1 }
 0x4ad   :  { %v3565_v54 = vadd.f32 %v3564_v17, %v3552_v51 }
 0x4af   :  { %v3772_v39 = vpop.permute.xlu2 %3771 }
 0x4b2   :  { %v3577_v48 = vpop.f32.mrf.mxu2  ;;  %v3553_v49 = vpop.f32.mrf.mxu0 }
 0x4b3   :  { %v3578_v27 = vadd.f32 %v3577_v48, %v3565_v54  ;;  %v3590_v55 = vpop.f32.mrf.mxu3  ;;  %v3566_v32 = vpop.f32.mrf.mxu1 }
 0x4b5   :  { %v3591_v56 = vadd.f32 %v3590_v55, %v3578_v27 }
 0x4b7   :  { %v3646_v47 = vmax.f32 %v3591_v56, 0.0  ;;  %v3922_v56 = vld [vmem:[%s11928_s8] sm:$0x7] }
 0x4b8   :  { %8596 = vmatpush.msk.msrb.mxu0 %vm277_vm0, %v3922_v56  ;;  %vm5239_vm0 = vcmask 195584  }
 0x4b9   :  { %3697 = vmatmul.f32.vlgmr.msra.gmra.mxu0 %v3646_v47 }
 0x4ba   :  { %v3579_v9 = vpop.f32.mrf.mxu2 }
 0x4bb   :  { %v3592_v41 = vpop.f32.mrf.mxu3  ;;  %v3852_v42 = vpop.permute.xlu2 %3851 }
 0x4c3   :  { %v3856_v54 = vpop.permute.xlu2 %3855 }
 0x4c4   :  { %v3768_v28 = vpop.permute.xlu1 %3767 }
 0x4c5   :  { %v3764_v60 = vpop.permute.xlu0 %3763 }
 0x4ca   :  { %v3603_v18 = vpop.f32.mrf.mxu0 }
 0x4cb   :  { %v3604_v38 = vadd.f32 %v3603_v18, %v3539_v20  ;;  %v3616_v14 = vpop.f32.mrf.mxu1 }
 0x4cc   :  { %v3723_v55 = vpop.permute.xlu2 %3722 }
 0x4cd   :  { %v3617_v26 = vadd.f32 %v3616_v14, %v3604_v38 }
 0x4cf   :  { %v3848_v50 = vpop.permute.xlu1 %3847  ;;  %v3844_v29 = vpop.permute.xlu0 %3843 }
 0x4d2   :  { %v3629_v1 = vpop.f32.mrf.mxu2  ;;  %v3605_v23 = vpop.f32.mrf.mxu0 }
 0x4d3   :  { %v3630_v25 = vadd.f32 %v3629_v1, %v3617_v26  ;;  %v3642_v57 = vpop.f32.mrf.mxu3  ;;  %v3618_v6 = vpop.f32.mrf.mxu1 }
 0x4d5   :  { %v3643_v5 = vadd.f32 %v3642_v57, %v3630_v25 }
 0x4d7   :  { %v3647_v8 = vmax.f32 %v3643_v5, 0.0 }
 0x4d8   :  { %v3776_v24 = vpop.permute.xlu1 %3775 }
 0x4d9   :  { %3717 = vmatmul.f32.vlgmr.msra.gmra.mxu1 %v3647_v8  ;;  %v3780_v0 = vpop.permute.xlu0 %3779 }
 0x4da   :  { %v3631_v61 = vpop.f32.mrf.mxu2 }
 0x4db   :  { %v3644_v43 = vpop.f32.mrf.mxu3 }
 0x4e1   :  { %v3860_v21 = vpop.permute.xlu1 %3859 }
 0x4e2   :  { %v3864_v59 = vpop.permute.xlu0 %3863 }
 0x4ea   :  { %v3784_v37 = vpop.permute.xlu1 %3783  ;;  %v3868_v40 = vpop.permute.xlu0 %3867 }
 0x4f2   :  { %v3788_v53 = vpop.permute.xlu1 %3787 }
 0x4f3   :  { %v3792_v17 = vpop.permute.xlu0 %3791 }
 0x536   :  { %v3698_v19 = vpop.f32.mrf.mxu0 }
 0x537   :  { %v3699_v35 = vadd.f32 %v3698_v19, %v3680_v10 }
 0x556   :  { %v3718_v30 = vpop.f32.mrf.mxu1 }
 0x557   :  { %v3719_v15 = vadd.f32 %v3718_v30, %v3699_v35 }
 0x559   :  { %v10712_v16 = vperm.slane %v3719_v15, 0 }
 0x55b   :  { %v3874_v33 = vmul.f32 %v3844_v29, %v10712_v16  ;;  %v3797_v34 = vmul.f32 %v3776_v24, %v10712_v16  ;;  %v3794_v36 = vmul.f32 %v3764_v60, %v10712_v16  ;;  %v3875_v3 = vmul.f32 %v3848_v50, %v10712_v16 }
 0x55c   :  { %v3798_v45 = vmul.f32 %v3780_v0, %v10712_v16  ;;  %v3795_v22 = vmul.f32 %v3768_v28, %v10712_v16  ;;  %v3796_v52 = vmul.f32 %v3772_v39, %v10712_v16  ;;  %v3799_v44 = vmul.f32 %v3784_v37, %v10712_v16 }
 0x55d   :  { %3890 = vrot.lane.b32.xlu1 %v3874_v33, %s9805_s6  ;;  %3816 = vrot.lane.b32.xlu0 %v3797_v34, %s9806_s14  ;;  %v3876_v62 = vmul.f32 %v3852_v42, %v10712_v16  ;;  %v3800_v51 = vmul.f32 %v3788_v53, %v10712_v16  ;;  %v3877_v63 = vmul.f32 %v3856_v54, %v10712_v16  ;;  %v9286_v54 = vld [vmem:[#allocation5 + $0x11] ss:$0 sm:$0xff] }
 0x55e   :  { %3810 = vrot.lane.b32.xlu2 %v3794_v36, %s9806_s14  ;;  %v3801_v48 = vmul.f32 %v3792_v17, %v10712_v16  ;;  %v3878_v46 = vmul.f32 %v3860_v21, %v10712_v16  ;;  %v3880_v27 = vmul.f32 %v3868_v40, %v10712_v16  ;;  %v3754_v32 = vmul.f32 %v10712_v16, %v3723_v55 }
 0x565   :  { %3892 = vrot.lane.b32.xlu1 %v3875_v3, %s9805_s6  ;;  %3818 = vrot.lane.b32.xlu0 %v3798_v45, %s9806_s14 }
 0x566   :  { %3812 = vrot.lane.b32.xlu2 %v3795_v22, %s9806_s14 }
 0x56d   :  { %3814 = vrot.lane.b32.xlu1 %v3796_v52, %s9806_s14  ;;  %3820 = vrot.lane.b32.xlu0 %v3799_v44, %s9806_s14 }
 0x56e   :  { %3871 = vperm.xlu2 %9203, %v10031_v13  }
 0x575   :  { %3894 = vrot.lane.b32.xlu1 %v3876_v62, %s9805_s6  ;;  %3822 = vrot.lane.b32.xlu0 %v3800_v51, %s9806_s14 }
 0x576   :  { %9204 = vset.pattern.permute.xlu2 %v9804_v58 }
 0x577   :  { %3734 = vperm.xlu2 %9204, %v10026_v12   ;;  %v3879_v12 = vmul.f32 %v3864_v59, %v10712_v16 }
 0x57d   :  { %3896 = vrot.lane.b32.xlu1 %v3877_v63, %s9805_s6  ;;  %3824 = vrot.lane.b32.xlu0 %v3801_v48, %s9806_s14 }
 0x57f   :  { %3738 = vperm.xlu2 %9204, %v9989_v2   ;;  %v3727_v2 = vpop.permute.xlu2 %3726 }
 0x580   :  { %v3755_v58 = vmul.f32 %v10712_v16, %v3727_v2 }
 0x585   :  { %3898 = vrot.lane.b32.xlu1 %v3878_v46, %s9805_s6 }
 0x587   :  { %3742 = vperm.xlu2 %9204, %v10003_v7   ;;  %v3731_v4 = vpop.permute.xlu2 %3730 }
 0x588   :  { %v3756_v26 = vmul.f32 %v10712_v16, %v3731_v4 }
 0x58d   :  { %3900 = vrot.lane.b32.xlu1 %v3879_v12, %s9805_s6 }
 0x58f   :  { %3746 = vperm.xlu2 %9204, %v10017_v11  }
 0x595   :  { %3902 = vrot.lane.b32.xlu1 %v3880_v27, %s9805_s6 }
 0x597   :  { %3750 = vperm.xlu2 %9204, %v10031_v13  }
 0x5b8   :  { %v3811_v7 = vpop.permute.xlu2 %3810 }
 0x5b9   :  { %v3834_v47 = vadd.f32 %v3811_v7, %v3754_v32 }
 0x5c0   :  { %v3813_v49 = vpop.permute.xlu2 %3812 }
 0x5c1   :  { %v3835_v41 = vadd.f32 %v3813_v49, %v3755_v58 }
 0x5c8   :  { %v3872_v31 = vpop.permute.xlu2 %3871 }
 0x5c9   :  { %v3881_v11 = vmul.f32 %v3872_v31, %v10712_v16 }
 0x5cb   :  { %3904 = vrot.lane.b32.xlu1 %v3881_v11, %s9805_s6 }
 0x5cf   :  { %v3891_v13 = vpop.permute.xlu1 %3890  ;;  %v3817_v25 = vpop.permute.xlu0 %3816 }
 0x5d0   :  { %v3914_v9 = vadd.f32 %v3891_v13, %v3834_v47 }
 0x5d1   :  { %v3735_v14 = vpop.permute.xlu2 %3734 }
 0x5d2   :  { %8597 = vmatmul.msk.f32.vlgmr.msrb.gmra.mxu0 %vm252_vm1, %v3914_v9  ;;  %v3757_v6 = vmul.f32 %v10712_v16, %v3735_v14 }
 0x5d4   :  { %v3837_v8 = vadd.f32 %v3817_v25, %v3757_v6 }
 0x5d7   :  { %v3893_v20 = vpop.permute.xlu1 %3892  ;;  %v3819_v28 = vpop.permute.xlu0 %3818 }
 0x5d8   :  { %v3915_v18 = vadd.f32 %v3893_v20, %v3835_v41 }
 0x5d9   :  { %v3739_v5 = vpop.permute.xlu2 %3738 }
 0x5da   :  { %8598 = vmatmul.msk.f32.gmra.mxu0 %vm252_vm1, %v3915_v18  ;;  %v3758_v60 = vmul.f32 %v10712_v16, %v3739_v5 }
 0x5dc   :  { %v3838_v29 = vadd.f32 %v3819_v28, %v3758_v60 }
 0x5df   :  { %v3815_v38 = vpop.permute.xlu1 %3814  ;;  %v3821_v35 = vpop.permute.xlu0 %3820 }
 0x5e0   :  { %v3836_v1 = vadd.f32 %v3815_v38, %v3756_v26 }
 0x5e1   :  { %v3743_v50 = vpop.permute.xlu2 %3742 }
 0x5e2   :  { %v3759_v24 = vmul.f32 %v10712_v16, %v3743_v50 }
 0x5e4   :  { %v3839_v30 = vadd.f32 %v3821_v35, %v3759_v24 }
 0x5e7   :  { %v3895_v57 = vpop.permute.xlu1 %3894  ;;  %v3823_v36 = vpop.permute.xlu0 %3822 }
 0x5e8   :  { %v3916_v23 = vadd.f32 %v3895_v57, %v3836_v1 }
 0x5e9   :  { %v3747_v15 = vpop.permute.xlu2 %3746 }
 0x5ea   :  { %8599 = vmatmul.msk.f32.gmra.mxu0 %vm252_vm1, %v3916_v23  ;;  %v3760_v34 = vmul.f32 %v10712_v16, %v3747_v15 }
 0x5ec   :  { %v3840_v21 = vadd.f32 %v3823_v36, %v3760_v34 }
 0x5ef   :  { %v3897_v61 = vpop.permute.xlu1 %3896  ;;  %v3825_v39 = vpop.permute.xlu0 %3824 }
 0x5f0   :  { %v3917_v43 = vadd.f32 %v3897_v61, %v3837_v8 }
 0x5f1   :  { %v3751_v22 = vpop.permute.xlu2 %3750 }
 0x5f2   :  { %8600 = vmatmul.msk.f32.gmra.mxu0 %vm252_vm1, %v3917_v43  ;;  %v3761_v59 = vmul.f32 %v10712_v16, %v3751_v22  ;;  %v9807_v16 = vmov 64.0  }
 0x5f3   :  { %9312 = vrcp.f32 %v9807_v16  ;;  %v4120_v16 = vld [vmem:[#allocation10 + $0x38] sm:$0xff] }
 0x5f4   :  { %v3841_v37 = vadd.f32 %v3825_v39, %v3761_v59  ;;  %4157 = vmatpush.msrb.mxu2 %v4120_v16 }
 0x5f7   :  { %v3899_v10 = vpop.permute.xlu1 %3898 }
 0x5f8   :  { %v3918_v19 = vadd.f32 %v3899_v10, %v3838_v29 }
 0x5f9   :  { %v9313_v13 = vpop.eup %9312 }
 0x5fa   :  { %8601 = vmatmul.msk.f32.gmra.mxu0 %vm252_vm1, %v3918_v19  ;;  %v4017_v18 = vmul.f32 64.0, %v9313_v13  ;;  %vm4021_vm3 = vweird.f32 %v9313_v13 }
 0x5fc   :  { %v4018_v57 = vsub.f32 1.0, %v4017_v18 }
 0x5fe   :  { %v4019_v5 = vmul.f32 %v9313_v13, %v4018_v57 }
 0x5ff   :  { %v3901_v0 = vpop.permute.xlu1 %3900 }
 0x600   :  { %v3919_v33 = vadd.f32 %v3901_v0, %v3839_v30  ;;  %v4020_v43 = vadd.f32 %v9313_v13, %v4019_v5 }
 0x602   :  { %8602 = vmatmul.msk.f32.gmra.mxu0 %vm252_vm1, %v3919_v33  ;;  %v10781_v50 = vsel %vm4021_vm3, %v9313_v13, %v4020_v43  ;;  %v4114_v13 = vld [vmem:[#allocation10 + $0x8] sm:$0xff] }
 0x607   :  { %v3903_v3 = vpop.permute.xlu1 %3902 }
 0x608   :  { %v3920_v45 = vadd.f32 %v3903_v3, %v3840_v21 }
 0x60a   :  { %8603 = vmatmul.msk.f32.gmra.mxu0 %vm252_vm1, %v3920_v45 }
 0x63d   :  { %v3905_v52 = vpop.permute.xlu1 %3904 }
 0x63e   :  { %v3921_v44 = vadd.f32 %v3905_v52, %v3841_v37 }
 0x640   :  { %8604 = vmatmul.msk.f32.gmra.mxu0 %vm252_vm1, %v3921_v44 }
 0x64f   :  { %v3971_v40 = vpop.f32.mrf.mxu0 }
 0x650   :  { %v3972_v48 = vadd.f32 %v9286_v54, %v3971_v40 }
 0x652   :  { %v3995_v55 = vsel %vm342_vm2, %v3972_v48, 0.0 }
 0x657   :  { %v3974_v42 = vpop.f32.mrf.mxu0 }
 0x658   :  { %v3975_v63 = vadd.f32 %v9286_v54, %v3974_v42 }
 0x65a   :  { %v3996_v12 = vsel %vm342_vm2, %v3975_v63, 0.0 }
 0x65b   :  { %v3997_v56 = vadd.f32 %v3996_v12, %v3995_v55 }
 0x667   :  { %v3977_v53 = vpop.f32.mrf.mxu0 }
 0x668   :  { %v3978_v46 = vadd.f32 %v9286_v54, %v3977_v53 }
 0x66a   :  { %v3998_v2 = vsel %vm342_vm2, %v3978_v46, 0.0 }
 0x66b   :  { %v3999_v11 = vadd.f32 %v3998_v2, %v3997_v56  ;;  %v4119_v2 = vld [vmem:[#allocation10 + $0x30] sm:$0xff]  ;;  %v4118_v56 = vld [vmem:[#allocation10 + $0x28] sm:$0xff] }
 0x66c   :  { %4158 = vmatpush.msrb.mxu2 %v4119_v2  ;;  %v9289_v2 = vld [vmem:[#allocation5 + $0x14] ss:$0 sm:$0xff] }
 0x66e   :  { %4159 = vmatpush.msrb.mxu2 %v4118_v56 }
 0x66f   :  { %v3980_v62 = vpop.f32.mrf.mxu0 }
 0x670   :  { %v3981_v27 = vadd.f32 %v9286_v54, %v3980_v62 }
 0x672   :  { %v4000_v49 = vsel %vm342_vm2, %v3981_v27, 0.0 }
 0x673   :  { %v4001_v9 = vadd.f32 %v4000_v49, %v3999_v11  ;;  %v4117_v49 = vld [vmem:[#allocation10 + $0x20] sm:$0xff] }
 0x674   :  { %4160 = vmatpush.msrb.mxu2 %v4117_v49 }
 0x677   :  { %v3983_v51 = vpop.f32.mrf.mxu0 }
 0x678   :  { %v3984_v4 = vadd.f32 %v9286_v54, %v3983_v51 }
 0x67a   :  { %v4002_v32 = vsel %vm342_vm2, %v3984_v4, 0.0 }
 0x67b   :  { %v4003_v41 = vadd.f32 %v4002_v32, %v4001_v9  ;;  %v4115_v32 = vld [vmem:[#allocation10 + $0x10] sm:$0xff] }
 0x67f   :  { %v3986_v17 = vpop.f32.mrf.mxu0 }
 0x680   :  { %v3987_v31 = vadd.f32 %v9286_v54, %v3986_v17 }
 0x682   :  { %v4004_v58 = vsel %vm342_vm2, %v3987_v31, 0.0 }
 0x683   :  { %v4005_v38 = vadd.f32 %v4004_v58, %v4003_v41  ;;  %v4113_v58 = vld [vmem:[#allocation10] sm:$0xff] }
 0x687   :  { %v3989_v7 = vpop.f32.mrf.mxu0 }
 0x688   :  { %v3990_v47 = vadd.f32 %v9286_v54, %v3989_v7 }
 0x68a   :  { %v4006_v20 = vsel %vm342_vm2, %v3990_v47, 0.0 }
 0x68b   :  { %v4007_v1 = vadd.f32 %v4006_v20, %v4005_v38 }
 0x6bd   :  { %v3992_v14 = vpop.f32.mrf.mxu0 }
 0x6be   :  { %v3993_v26 = vadd.f32 %v9286_v54, %v3992_v14 }
 0x6c0   :  { %v4008_v25 = vsel %vm342_vm2, %v3993_v26, 0.0 }
 0x6c1   :  { %v4009_v23 = vadd.f32 %v4008_v25, %v4007_v1 }
 0x6c3   :  { %v4010_v6 = vrot.slane %v4009_v23, 4 }
 0x6c5   :  { %v4011_v8 = vadd.f32 %v4010_v6, %v4009_v23  ;;  %v9287_v23 = vld [vmem:[#allocation5 + $0x12] ss:$0 sm:$0xff] }
 0x6c7   :  { %v4012_v61 = vrot.slane %v4011_v8, 2 }
 0x6c9   :  { %v4013_v28 = vadd.f32 %v4012_v61, %v4011_v8  ;;  %v9288_v8 = vld [vmem:[#allocation5 + $0x13] ss:$0 sm:$0xff] }
 0x6cb   :  { %v4014_v60 = vrot.slane %v4013_v28, 1 }
 0x6cd   :  { %v4015_v29 = vadd.f32 %v4014_v60, %v4013_v28 }
 0x6cf   :  { %v4023_v10 = vmul.f32 %v10781_v50, %v4015_v29 }
 0x6d1   :  { %v10784_v19 = vsub.f32 %v3972_v48, %v4023_v10  ;;  %v10786_v24 = vsub.f32 %v3975_v63, %v4023_v10  ;;  %v10788_v35 = vsub.f32 %v3978_v46, %v4023_v10  ;;  %v10790_v30 = vsub.f32 %v3981_v27, %v4023_v10 }
 0x6d2   :  { %v10792_v15 = vsub.f32 %v3984_v4, %v4023_v10  ;;  %v10800_v36 = vsub.f32 %v3987_v31, %v4023_v10  ;;  %v10806_v59 = vsub.f32 %v3990_v47, %v4023_v10  ;;  %v10811_v44 = vsub.f32 %v3993_v26, %v4023_v10  ;;  %v4116_v31 = vld [vmem:[#allocation10 + $0x18] sm:$0xff] }
 0x6d3   :  { %v4032_v0 = vmul.f32 %v10784_v19, %v10784_v19  ;;  %v4033_v33 = vmul.f32 %v10786_v24, %v10786_v24  ;;  %v4034_v34 = vmul.f32 %v10788_v35, %v10788_v35  ;;  %v4035_v21 = vmul.f32 %v10790_v30, %v10790_v30  ;;  %4161 = vmatpush.msrb.mxu2 %v4116_v31 }
 0x6d4   :  { %v4036_v39 = vmul.f32 %v10792_v15, %v10792_v15  ;;  %v4037_v40 = vmul.f32 %v10800_v36, %v10800_v36  ;;  %v4038_v62 = vmul.f32 %v10806_v59, %v10806_v59  ;;  %v4039_v54 = vmul.f32 %v10811_v44, %v10811_v44 }
 0x6d5   :  { %v4040_v3 = vsel %vm342_vm2, %v4032_v0, 0.0  ;;  %v4041_v45 = vsel %vm342_vm2, %v4033_v33, 0.0  ;;  %v4043_v37 = vsel %vm342_vm2, %v4034_v34, 0.0  ;;  %v4045_v42 = vsel %vm342_vm2, %v4035_v21, 0.0  ;;  %4162 = vmatpush.msrb.mxu2 %v4115_v32 }
 0x6d6   :  { %v4042_v22 = vadd.f32 %v4041_v45, %v4040_v3  ;;  %v4047_v51 = vsel %vm342_vm2, %v4036_v39, 0.0  ;;  %v4049_v63 = vsel %vm342_vm2, %v4037_v40, 0.0  ;;  %v4051_v46 = vsel %vm342_vm2, %v4038_v62, 0.0 }
 0x6d7   :  { %v4053_v27 = vsel %vm342_vm2, %v4039_v54, 0.0  ;;  %4163 = vmatpush.msrb.mxu2 %v4114_v13 }
 0x6d8   :  { %v4044_v52 = vadd.f32 %v4043_v37, %v4042_v22 }
 0x6d9   :  { %4164 = vmatpush.msrb.mxu2 %v4113_v58 }
 0x6da   :  { %v4046_v53 = vadd.f32 %v4045_v42, %v4044_v52 }
 0x6dc   :  { %v4048_v17 = vadd.f32 %v4047_v51, %v4046_v53 }
 0x6de   :  { %v4050_v48 = vadd.f32 %v4049_v63, %v4048_v17 }
 0x6e0   :  { %v4052_v12 = vadd.f32 %v4051_v46, %v4050_v48 }
 0x6e2   :  { %v4054_v55 = vadd.f32 %v4053_v27, %v4052_v12 }
 0x6e4   :  { %v4055_v4 = vrot.slane %v4054_v55, 4 }
 0x6e6   :  { %v4056_v7 = vadd.f32 %v4055_v4, %v4054_v55 }
 0x6e8   :  { %v4057_v11 = vrot.slane %v4056_v7, 2 }
 0x6ea   :  { %v4058_v47 = vadd.f32 %v4057_v11, %v4056_v7 }
 0x6ec   :  { %v4059_v9 = vrot.slane %v4058_v47, 1 }
 0x6ee   :  { %v4060_v41 = vadd.f32 %v4059_v9, %v4058_v47 }
 0x6f0   :  { %v4061_v20 = vmul.f32 %v4060_v41, %v10781_v50 }
 0x6f2   :  { %v4062_v18 = vadd.f32 1e-05, %v4061_v20 }
 0x6f4   :  { %9314 = vrsqrt.f32 %v4062_v18  ;;  %vm4069_vm5 = vweird.f32 %v4062_v18 }
 0x6fa   :  { %v9315_v38 = vpop.eup %9314 }
 0x6fb   :  { %v4064_v14 = vmul.f32 %v9315_v38, %v4062_v18  ;;  %vm4070_vm4 = vweird.f32 %v9315_v38 }
 0x6fc   :  { %vm4071_vm6 = vmor %vm4069_vm5, %vm4070_vm4 }
 0x6fd   :  { %v4065_v26 = vmul.f32 %v9315_v38, %v4064_v14 }
 0x6ff   :  { %v4066_v1 = vmul.f32 0.5, %v4065_v26 }
 0x701   :  { %v4067_v25 = vsub.f32 1.5, %v4066_v1 }
 0x703   :  { %v4068_v57 = vmul.f32 %v9315_v38, %v4067_v25 }
 0x705   :  { %v4072_v6 = vsel %vm4071_vm6, %v9315_v38, %v4068_v57 }
 0x706   :  { %v4073_v5 = vmul.f32 %v4072_v6, %v10784_v19  ;;  %v4074_v43 = vmul.f32 %v4072_v6, %v10786_v24  ;;  %v4075_v0 = vmul.f32 %v4072_v6, %v10788_v35  ;;  %v4076_v3 = vmul.f32 %v4072_v6, %v10790_v30 }
 0x707   :  { %v4077_v22 = vmul.f32 %v4072_v6, %v10792_v15  ;;  %v4078_v35 = vmul.f32 %v4072_v6, %v10800_v36  ;;  %v4079_v30 = vmul.f32 %v4072_v6, %v10806_v59  ;;  %v4080_v15 = vmul.f32 %v4072_v6, %v10811_v44 }
 0x708   :  { %v4085_v61 = vmul.f32 %v9287_v23, %v4073_v5  ;;  %v4086_v29 = vmul.f32 %v9287_v23, %v4074_v43  ;;  %v4087_v34 = vmul.f32 %v9287_v23, %v4075_v0  ;;  %v4088_v45 = vmul.f32 %v9287_v23, %v4076_v3 }
 0x709   :  { %v4089_v37 = vmul.f32 %v9287_v23, %v4077_v22  ;;  %v4090_v42 = vmul.f32 %v9287_v23, %v4078_v35  ;;  %v4091_v51 = vmul.f32 %v9287_v23, %v4079_v30  ;;  %v4092_v63 = vmul.f32 %v9287_v23, %v4080_v15 }
 0x70a   :  { %v4097_v28 = vadd.f32 %v9288_v8, %v4085_v61  ;;  %v4098_v10 = vadd.f32 %v9288_v8, %v4086_v29  ;;  %v4099_v21 = vadd.f32 %v9288_v8, %v4087_v34  ;;  %v4100_v24 = vadd.f32 %v9288_v8, %v4088_v45 }
 0x70b   :  { %v4101_v52 = vadd.f32 %v9288_v8, %v4089_v37  ;;  %v4102_v53 = vadd.f32 %v9288_v8, %v4090_v42  ;;  %v4103_v17 = vadd.f32 %v9288_v8, %v4091_v51  ;;  %v4104_v48 = vadd.f32 %v9288_v8, %v4092_v63  ;;  %v4300_v8 = vld [vmem:[%s11930_s10 + $0x78] sm:$0xff] }
 0x70c   :  { %v4105_v60 = vmax.f32 %v4097_v28, 0.0  ;;  %v4106_v33 = vmax.f32 %v4098_v10, 0.0  ;;  %v4107_v19 = vmax.f32 %v4099_v21, 0.0  ;;  %v4108_v39 = vmax.f32 %v4100_v24, 0.0  ;;  %4305 = vmatpush.msra.mxu3 %v4300_v8 }
 0x70d   :  { %v4109_v40 = vmax.f32 %v4101_v52, 0.0  ;;  %v4110_v62 = vmax.f32 %v4102_v53, 0.0  ;;  %v4111_v54 = vmax.f32 %v4103_v17, 0.0  ;;  %v4112_v36 = vmax.f32 %v4104_v48, 0.0  ;;  %v4293_v17 = vld [vmem:[%s11930_s10 + $0x40] sm:$0xff]  ;;  %v4292_v48 = vld [vmem:[%s11930_s10 + $0x38] sm:$0xff] }
 0x70e   :  { %8605 = vmatmul.msk.f32.vlgmr.msrb.gmra.mxu2 %vm342_vm2, %v4105_v60  ;;  %v4299_v60 = vld [vmem:[%s11930_s10 + $0x70] sm:$0xff] }
 0x70f   :  { %4306 = vmatpush.msra.mxu3 %v4299_v60 }
 0x716   :  { %8606 = vmatmul.msk.f32.gmra.mxu2 %vm342_vm2, %v4106_v33  ;;  %v4298_v33 = vld [vmem:[%s11930_s10 + $0x68] sm:$0xff] }
 0x717   :  { %4307 = vmatpush.msra.mxu3 %v4298_v33 }
 0x71e   :  { %8607 = vmatmul.msk.f32.gmra.mxu2 %vm342_vm2, %v4107_v19  ;;  %v4297_v19 = vld [vmem:[%s11930_s10 + $0x60] sm:$0xff] }
 0x71f   :  { %4308 = vmatpush.msra.mxu3 %v4297_v19 }
 0x726   :  { %8608 = vmatmul.msk.f32.gmra.mxu2 %vm342_vm2, %v4108_v39  ;;  %v4296_v39 = vld [vmem:[%s11930_s10 + $0x58] sm:$0xff] }
 0x727   :  { %4309 = vmatpush.msra.mxu3 %v4296_v39 }
 0x72e   :  { %8609 = vmatmul.msk.f32.gmra.mxu2 %vm342_vm2, %v4109_v40  ;;  %v4295_v40 = vld [vmem:[%s11930_s10 + $0x50] sm:$0xff] }
 0x72f   :  { %4310 = vmatpush.msra.mxu3 %v4295_v40 }
 0x736   :  { %8610 = vmatmul.msk.f32.gmra.mxu2 %vm342_vm2, %v4110_v62  ;;  %v4294_v62 = vld [vmem:[%s11930_s10 + $0x48] sm:$0xff] }
 0x737   :  { %4311 = vmatpush.msra.mxu3 %v4294_v62 }
 0x739   :  { %4312 = vmatpush.msra.mxu3 %v4293_v17 }
 0x73b   :  { %4313 = vmatpush.msra.mxu3 %v4292_v48 }
 0x73e   :  { %8611 = vmatmul.msk.f32.gmra.mxu2 %vm342_vm2, %v4111_v54 }
 0x746   :  { %8612 = vmatmul.msk.f32.gmra.mxu2 %vm342_vm2, %v4112_v36 }
 0x791   :  { %v4166_v46 = vpop.f32.mrf.mxu2 }
 0x792   :  { %v4167_v56 = vadd.f32 %v9289_v2, %v4166_v46  ;;  %v4291_v46 = vld [vmem:[%s11930_s10 + $0x30] sm:$0xff] }
 0x793   :  { %4314 = vmatpush.msra.mxu3 %v4291_v46  ;;  %v9292_v46 = vld [vmem:[#allocation5 + $0x17] ss:$0 sm:$0xff] }
 0x799   :  { %v4169_v12 = vpop.f32.mrf.mxu2 }
 0x79a   :  { %v4170_v4 = vadd.f32 %v9289_v2, %v4169_v12 }
 0x79c   :  { %v4190_v44 = vadd.f32 %v4170_v4, %v4167_v56 }
 0x7a1   :  { %v4172_v27 = vpop.f32.mrf.mxu2 }
 0x7a2   :  { %v4173_v7 = vadd.f32 %v9289_v2, %v4172_v27  ;;  %v4290_v27 = vld [vmem:[%s11930_s10 + $0x28] sm:$0xff] }
 0x7a3   :  { %4315 = vmatpush.msra.mxu3 %v4290_v27 }
 0x7a4   :  { %v4191_v11 = vadd.f32 %v4190_v44, %v4173_v7 }
 0x7a9   :  { %v4175_v16 = vpop.f32.mrf.mxu2 }
 0x7aa   :  { %v4176_v49 = vadd.f32 %v9289_v2, %v4175_v16 }
 0x7ac   :  { %v4192_v47 = vadd.f32 %v4191_v11, %v4176_v49 }
 0x7b1   :  { %v4178_v59 = vpop.f32.mrf.mxu2 }
 0x7b2   :  { %v4179_v32 = vadd.f32 %v9289_v2, %v4178_v59  ;;  %v4289_v59 = vld [vmem:[%s11930_s10 + $0x20] sm:$0xff] }
 0x7b3   :  { %4316 = vmatpush.msra.mxu3 %v4289_v59 }
 0x7b4   :  { %v4193_v9 = vadd.f32 %v4192_v47, %v4179_v32 }
 0x7b9   :  { %v4181_v55 = vpop.f32.mrf.mxu2 }
 0x7ba   :  { %v4182_v13 = vadd.f32 %v9289_v2, %v4181_v55  ;;  %v4288_v55 = vld [vmem:[%s11930_s10 + $0x18] sm:$0xff] }
 0x7bb   :  { %4317 = vmatpush.msra.mxu3 %v4288_v55 }
 0x7bc   :  { %v4194_v41 = vadd.f32 %v4193_v9, %v4182_v13 }
 0x7c1   :  { %v4184_v31 = vpop.f32.mrf.mxu2 }
 0x7c2   :  { %v4185_v58 = vadd.f32 %v9289_v2, %v4184_v31 }
 0x7c4   :  { %v4195_v18 = vadd.f32 %v4194_v41, %v4185_v58 }
 0x7c9   :  { %v4187_v20 = vpop.f32.mrf.mxu2 }
 0x7ca   :  { %v4188_v38 = vadd.f32 %v9289_v2, %v4187_v20 }
 0x7cc   :  { %v4196_v14 = vadd.f32 %v4195_v18, %v4188_v38  ;;  %v9290_v18 = vld [vmem:[#allocation5 + $0x15] ss:$0 sm:$0xff] }
 0x7ce   :  { %v4197_v26 = vrot.slane %v4196_v14, 4 }
 0x7d0   :  { %v4198_v1 = vadd.f32 %v4197_v26, %v4196_v14  ;;  %v9291_v26 = vld [vmem:[#allocation5 + $0x16] ss:$0 sm:$0xff] }
 0x7d2   :  { %v4199_v25 = vrot.slane %v4198_v1, 2 }
 0x7d4   :  { %v4200_v57 = vadd.f32 %v4199_v25, %v4198_v1 }
 0x7d6   :  { %v4201_v23 = vrot.slane %v4200_v57, 1 }
 0x7d8   :  { %v4202_v6 = vadd.f32 %v4201_v23, %v4200_v57 }
 0x7da   :  { %v4203_v5 = vmul.f32 %v4202_v6, %v10781_v50 }
 0x7dc   :  { %v10845_v61 = vsub.f32 %v4167_v56, %v4203_v5  ;;  %v10847_v43 = vsub.f32 %v4170_v4, %v4203_v5  ;;  %v10849_v28 = vsub.f32 %v4173_v7, %v4203_v5  ;;  %v10854_v29 = vsub.f32 %v4176_v49, %v4203_v5  ;;  %v4287_v4 = vld [vmem:[%s11930_s10 + $0x10] sm:$0xff]  ;;  %v4286_v7 = vld [vmem:[%s11930_s10 + $0x8] sm:$0xff]  ;;  %v4285_v49 = vld [vmem:[%s11930_s10] sm:$0xff]  ;;  %s9808_s10 = smov 96  }
 0x7dd   :  { %v10863_v34 = vsub.f32 %v4179_v32, %v4203_v5  ;;  %v10870_v45 = vsub.f32 %v4182_v13, %v4203_v5  ;;  %v10877_v37 = vsub.f32 %v4185_v58, %v4203_v5  ;;  %v10884_v42 = vsub.f32 %v4188_v38, %v4203_v5  ;;  %4318 = vmatpush.msra.mxu3 %v4287_v4 }
 0x7de   :  { %v4212_v10 = vmul.f32 %v10845_v61, %v10845_v61  ;;  %v4213_v0 = vmul.f32 %v10847_v43, %v10847_v43  ;;  %v4214_v21 = vmul.f32 %v10849_v28, %v10849_v28  ;;  %v4215_v24 = vmul.f32 %v10854_v29, %v10854_v29 }
 0x7df   :  { %v4216_v52 = vmul.f32 %v10863_v34, %v10863_v34  ;;  %v4217_v53 = vmul.f32 %v10870_v45, %v10870_v45  ;;  %v4218_v51 = vmul.f32 %v10877_v37, %v10877_v37  ;;  %v4219_v54 = vmul.f32 %v10884_v42, %v10884_v42  ;;  %4319 = vmatpush.msra.mxu3 %v4286_v7 }
 0x7e0   :  { %v4220_v3 = vadd.f32 %v4213_v0, %v4212_v10 }
 0x7e1   :  { %4320 = vmatpush.msra.mxu3 %v4285_v49 }
 0x7e2   :  { %v4221_v22 = vadd.f32 %v4220_v3, %v4214_v21 }
 0x7e4   :  { %v4222_v35 = vadd.f32 %v4221_v22, %v4215_v24 }
 0x7e6   :  { %v4223_v30 = vadd.f32 %v4222_v35, %v4216_v52 }
 0x7e8   :  { %v4224_v15 = vadd.f32 %v4223_v30, %v4217_v53 }
 0x7ea   :  { %v4225_v63 = vadd.f32 %v4224_v15, %v4218_v51 }
 0x7ec   :  { %v4226_v36 = vadd.f32 %v4225_v63, %v4219_v54 }
 0x7ee   :  { %v4227_v12 = vrot.slane %v4226_v36, 4 }
 0x7f0   :  { %v4228_v16 = vadd.f32 %v4227_v12, %v4226_v36 }
 0x7f2   :  { %v4229_v2 = vrot.slane %v4228_v16, 2 }
 0x7f4   :  { %v4230_v56 = vadd.f32 %v4229_v2, %v4228_v16 }
 0x7f6   :  { %v4231_v44 = vrot.slane %v4230_v56, 1 }
 0x7f8   :  { %v4232_v31 = vadd.f32 %v4231_v44, %v4230_v56 }
 0x7fa   :  { %v4233_v11 = vmul.f32 %v4232_v31, %v10781_v50 }
 0x7fc   :  { %v4234_v32 = vadd.f32 1e-05, %v4233_v11 }
 0x7fe   :  { %9316 = vrsqrt.f32 %v4234_v32  ;;  %vm4241_vm8 = vweird.f32 %v4234_v32 }
 0x804   :  { %v9317_v47 = vpop.eup %9316 }
 0x805   :  { %v4236_v13 = vmul.f32 %v9317_v47, %v4234_v32  ;;  %vm4242_vm7 = vweird.f32 %v9317_v47 }
 0x806   :  { %vm4243_vm9 = vmor %vm4241_vm8, %vm4242_vm7 }
 0x807   :  { %v4237_v9 = vmul.f32 %v9317_v47, %v4236_v13 }
 0x809   :  { %v4238_v58 = vmul.f32 0.5, %v4237_v9 }
 0x80b   :  { %v4239_v41 = vsub.f32 1.5, %v4238_v58 }
 0x80d   :  { %v4240_v20 = vmul.f32 %v9317_v47, %v4239_v41 }
 0x80f   :  { %v4244_v38 = vsel %vm4243_vm9, %v9317_v47, %v4240_v20 }
 0x810   :  { %v4245_v14 = vmul.f32 %v4244_v38, %v10845_v61  ;;  %v4246_v25 = vmul.f32 %v4244_v38, %v10847_v43  ;;  %v4247_v8 = vmul.f32 %v4244_v38, %v10849_v28  ;;  %v4248_v33 = vmul.f32 %v4244_v38, %v10854_v29 }
 0x811   :  { %v4249_v19 = vmul.f32 %v4244_v38, %v10863_v34  ;;  %v4250_v39 = vmul.f32 %v4244_v38, %v10870_v45  ;;  %v4251_v40 = vmul.f32 %v4244_v38, %v10877_v37  ;;  %v4252_v30 = vmul.f32 %v4244_v38, %v10884_v42 }
 0x812   :  { %v4257_v1 = vmul.f32 %v9290_v18, %v4245_v14  ;;  %v4258_v6 = vmul.f32 %v9290_v18, %v4246_v25  ;;  %v4259_v10 = vmul.f32 %v9290_v18, %v4247_v8  ;;  %v4260_v3 = vmul.f32 %v9290_v18, %v4248_v33 }
 0x813   :  { %v4261_v24 = vmul.f32 %v9290_v18, %v4249_v19  ;;  %v4262_v28 = vmul.f32 %v9290_v18, %v4250_v39  ;;  %v4263_v29 = vmul.f32 %v9290_v18, %v4251_v40  ;;  %v4264_v34 = vmul.f32 %v9290_v18, %v4252_v30 }
 0x814   :  { %v4269_v57 = vadd.f32 %v9291_v26, %v4257_v1  ;;  %v4270_v5 = vadd.f32 %v9291_v26, %v4258_v6  ;;  %v4271_v0 = vadd.f32 %v9291_v26, %v4259_v10  ;;  %v4272_v61 = vadd.f32 %v9291_v26, %v4260_v3 }
 0x815   :  { %v4273_v22 = vadd.f32 %v9291_v26, %v4261_v24  ;;  %v4274_v35 = vadd.f32 %v9291_v26, %v4262_v28  ;;  %v4275_v62 = vadd.f32 %v9291_v26, %v4263_v29  ;;  %v4276_v15 = vadd.f32 %v9291_v26, %v4264_v34 }
 0x816   :  { %v4277_v23 = vmax.f32 %v4269_v57, 0.0  ;;  %v4278_v60 = vmax.f32 %v4270_v5, 0.0  ;;  %v4279_v21 = vmax.f32 %v4271_v0, 0.0  ;;  %v4280_v43 = vmax.f32 %v4272_v61, 0.0 }
 0x817   :  { %v4281_v52 = vmax.f32 %v4273_v22, 0.0  ;;  %v4282_v53 = vmax.f32 %v4274_v35, 0.0  ;;  %v4283_v51 = vmax.f32 %v4275_v62, 0.0  ;;  %v4284_v17 = vmax.f32 %v4276_v15, 0.0 }
 0x818   :  { %4321 = vmatmul.f32.vlgmr.msra.gmra.mxu3 %v4277_v23 }
 0x820   :  { %4324 = vmatmul.f32.gmra.mxu3 %v4278_v60 }
 0x828   :  { %4327 = vmatmul.f32.gmra.mxu3 %v4279_v21 }
 0x830   :  { %4330 = vmatmul.f32.gmra.mxu3 %v4280_v43 }
 0x838   :  { %4333 = vmatmul.f32.gmra.mxu3 %v4281_v52 }
 0x840   :  { %4336 = vmatmul.f32.gmra.mxu3 %v4282_v53 }
 0x848   :  { %4339 = vmatmul.f32.gmra.mxu3 %v4283_v51 }
 0x850   :  { %4342 = vmatmul.f32.gmra.mxu3 %v4284_v17 }
 0x89b   :  { %v4322_v54 = vpop.f32.mrf.mxu3 }
 0x89c   :  { %v4323_v27 = vadd.f32 %v9292_v46, %v4322_v54 }
 0x89e   :  { %v4347_v55 = vsel %vm4346_vm10, %v4323_v27, 0.0 }
 0x8a3   :  { %v4325_v45 = vpop.f32.mrf.mxu3 }
 0x8a4   :  { %v4326_v37 = vadd.f32 %v9292_v46, %v4325_v45 }
 0x8a6   :  { %v4348_v42 = vsel %vm4346_vm10, %v4326_v37, 0.0 }
 0x8a7   :  { %v4349_v56 = vadd.f32 %v4348_v42, %v4347_v55 }
 0x8ab   :  { %v4328_v63 = vpop.f32.mrf.mxu3 }
 0x8ac   :  { %v4329_v16 = vadd.f32 %v9292_v46, %v4328_v63 }
 0x8ae   :  { %v4350_v2 = vsel %vm4346_vm10, %v4329_v16, 0.0 }
 0x8af   :  { %v4351_v31 = vadd.f32 %v4350_v2, %v4349_v56 }
 0x8b3   :  { %v4331_v48 = vpop.f32.mrf.mxu3 }
 0x8b4   :  { %v4332_v59 = vadd.f32 %v9292_v46, %v4331_v48 }
 0x8b6   :  { %v4352_v44 = vsel %vm4346_vm10, %v4332_v59, 0.0 }
 0x8b7   :  { %v4353_v47 = vadd.f32 %v4352_v44, %v4351_v31  ;;  %v4491_v44 = vld [vmem:[#allocation13 + $0x18] sm:$0xff] }
 0x8b8   :  { %4520 = vmatpush.msra.mxu0 %v4491_v44  ;;  %9144 = vmatpush.msrb.mxu1 %v4491_v44  ;;  %v4480_v44 = vld [vmem:[#allocation12] sm:$0xff] }
 0x8bb   :  { %v4334_v36 = vpop.f32.mrf.mxu3 }
 0x8bc   :  { %v4335_v4 = vadd.f32 %v9292_v46, %v4334_v36 }
 0x8be   :  { %v4354_v11 = vsel %vm4346_vm10, %v4335_v4, 0.0 }
 0x8bf   :  { %v4355_v9 = vadd.f32 %v4354_v11, %v4353_v47  ;;  %v4489_v11 = vld [vmem:[#allocation13 + $0x8] sm:$0xff]  ;;  %v4488_v47 = vld [vmem:[#allocation13] sm:$0xff] }
 0x8c3   :  { %v4337_v12 = vpop.f32.mrf.mxu3 }
 0x8c4   :  { %v4338_v49 = vadd.f32 %v9292_v46, %v4337_v12 }
 0x8c6   :  { %v4356_v13 = vsel %vm4346_vm10, %v4338_v49, 0.0 }
 0x8c7   :  { %v4357_v41 = vadd.f32 %v4356_v13, %v4355_v9 }
 0x8cb   :  { %v4340_v7 = vpop.f32.mrf.mxu3 }
 0x8cc   :  { %v4341_v32 = vadd.f32 %v9292_v46, %v4340_v7 }
 0x8ce   :  { %v4358_v58 = vsel %vm4346_vm10, %v4341_v32, 0.0 }
 0x8cf   :  { %v4359_v38 = vadd.f32 %v4358_v58, %v4357_v41 }
 0x8d3   :  { %v4343_v20 = vpop.f32.mrf.mxu3 }
 0x8d4   :  { %v4344_v18 = vadd.f32 %v9292_v46, %v4343_v20 }
 0x8d6   :  { %v4360_v14 = vsel %vm4346_vm10, %v4344_v18, 0.0 }
 0x8d7   :  { %v4361_v26 = vadd.f32 %v4360_v14, %v4359_v38  ;;  %v9294_v14 = vld [vmem:[#allocation5 + $0x19] ss:$0 sm:$0xff] }
 0x8d9   :  { %v4362_v1 = vrot.slane %v4361_v26, 4 }
 0x8db   :  { %v4363_v25 = vadd.f32 %v4362_v1, %v4361_v26 }
 0x8dd   :  { %v4364_v57 = vrot.slane %v4363_v25, 2 }
 0x8df   :  { %v4365_v23 = vadd.f32 %v4364_v57, %v4363_v25 }
 0x8e1   :  { %v4366_v6 = vrot.slane %v4365_v23, 1 }
 0x8e3   :  { %v4367_v5 = vadd.f32 %v4366_v6, %v4365_v23 }
 0x8e5   :  { %v4368_v8 = vmul.f32 %v4367_v5, %v10781_v50 }
 0x8e7   :  { %v10940_v60 = vsub.f32 %v4323_v27, %v4368_v8  ;;  %v10942_v10 = vsub.f32 %v4326_v37, %v4368_v8  ;;  %v10944_v0 = vsub.f32 %v4329_v16, %v4368_v8  ;;  %v10946_v33 = vsub.f32 %v4332_v59, %v4368_v8 }
 0x8e8   :  { %v10948_v21 = vsub.f32 %v4335_v4, %v4368_v8  ;;  %v4374_v43 = vsub.f32 %v4338_v49, %v4368_v8  ;;  %v4375_v28 = vsub.f32 %v4341_v32, %v4368_v8  ;;  %v4376_v29 = vsub.f32 %v4344_v18, %v4368_v8  ;;  %v4490_v49 = vld [vmem:[#allocation13 + $0x10] sm:$0xff] }
 0x8e9   :  { %v4377_v3 = vmul.f32 %v10940_v60, %v10940_v60  ;;  %v4378_v61 = vmul.f32 %v10942_v10, %v10942_v10  ;;  %v4379_v19 = vmul.f32 %v10944_v0, %v10944_v0  ;;  %v4380_v24 = vmul.f32 %v10946_v33, %v10946_v33  ;;  %4521 = vmatpush.msra.mxu0 %v4490_v49 }
 0x8ea   :  { %v4381_v35 = vmul.f32 %v10948_v21, %v10948_v21  ;;  %v4382_v30 = vmul.f32 %v4374_v43, %v4374_v43  ;;  %v4383_v34 = vmul.f32 %v4375_v28, %v4375_v28  ;;  %v4384_v54 = vmul.f32 %v4376_v29, %v4376_v29  ;;  %9145 = vmatpush.msrb.mxu1 %v4490_v49  ;;  %v4482_v49 = vld [vmem:[#allocation12 + $0x10] sm:$0xff] }
 0x8eb   :  { %v4385_v22 = vsel %vm4346_vm10, %v4377_v3, 0.0  ;;  %v4386_v39 = vsel %vm4346_vm10, %v4378_v61, 0.0  ;;  %v4388_v40 = vsel %vm4346_vm10, %v4379_v19, 0.0  ;;  %v4390_v62 = vsel %vm4346_vm10, %v4380_v24, 0.0  ;;  %4522 = vmatpush.msra.mxu0 %v4489_v11 }
 0x8ec   :  { %v4387_v52 = vadd.f32 %v4386_v39, %v4385_v22  ;;  %v4392_v15 = vsel %vm4346_vm10, %v4381_v35, 0.0  ;;  %v4394_v45 = vsel %vm4346_vm10, %v4382_v30, 0.0  ;;  %v4396_v48 = vsel %vm4346_vm10, %v4383_v34, 0.0  ;;  %9146 = vmatpush.msrb.mxu1 %v4489_v11 }
 0x8ed   :  { %v4398_v46 = vsel %vm4346_vm10, %v4384_v54, 0.0  ;;  %4523 = vmatpush.msra.mxu0 %v4488_v47 }
 0x8ee   :  { %v4389_v53 = vadd.f32 %v4388_v40, %v4387_v52  ;;  %9147 = vmatpush.msrb.mxu1 %v4488_v47  ;;  %v4481_v47 = vld [vmem:[#allocation12 + $0x8] sm:$0xff] }
 0x8f0   :  { %v4391_v51 = vadd.f32 %v4390_v62, %v4389_v53 }
 0x8f2   :  { %v4393_v17 = vadd.f32 %v4392_v15, %v4391_v51 }
 0x8f4   :  { %v4395_v63 = vadd.f32 %v4394_v45, %v4393_v17 }
 0x8f6   :  { %v4397_v36 = vadd.f32 %v4396_v48, %v4395_v63 }
 0x8f8   :  { %v4399_v12 = vadd.f32 %v4398_v46, %v4397_v36 }
 0x8fa   :  { %v4400_v37 = vrot.slane %v4399_v12, 4 }
 0x8fc   :  { %v4401_v27 = vadd.f32 %v4400_v37, %v4399_v12 }
 0x8fe   :  { %v4402_v16 = vrot.slane %v4401_v27, 2 }
 0x900   :  { %v4403_v42 = vadd.f32 %v4402_v16, %v4401_v27 }
 0x902   :  { %v4404_v59 = vrot.slane %v4403_v42, 1 }
 0x904   :  { %v4405_v55 = vadd.f32 %v4404_v59, %v4403_v42 }
 0x906   :  { %v4406_v2 = vmul.f32 %v4405_v55, %v10781_v50  ;;  %v9293_v50 = vld [vmem:[#allocation5 + $0x18] ss:$0 sm:$0xff] }
 0x908   :  { %v4407_v4 = vadd.f32 1e-05, %v4406_v2 }
 0x90a   :  { %9318 = vrsqrt.f32 %v4407_v4  ;;  %vm4414_vm12 = vweird.f32 %v4407_v4 }
 0x910   :  { %v9319_v56 = vpop.eup %9318 }
 0x911   :  { %v4409_v7 = vmul.f32 %v9319_v56, %v4407_v4  ;;  %vm4415_vm11 = vweird.f32 %v9319_v56 }
 0x912   :  { %vm4416_vm13 = vmor %vm4414_vm12, %vm4415_vm11 }
 0x913   :  { %v4410_v31 = vmul.f32 %v9319_v56, %v4409_v7 }
 0x915   :  { %v4411_v32 = vmul.f32 0.5, %v4410_v31 }
 0x917   :  { %v4412_v13 = vsub.f32 1.5, %v4411_v32 }
 0x919   :  { %v4413_v9 = vmul.f32 %v9319_v56, %v4412_v13  ;;  %v4483_v13 = vld [vmem:[#allocation12 + $0x18] sm:$0xff] }
 0x91b   :  { %v4417_v58 = vsel %vm4416_vm13, %v9319_v56, %v4413_v9 }
 0x91c   :  { %v4418_v41 = vmul.f32 %v4417_v58, %v10940_v60  ;;  %v4419_v20 = vmul.f32 %v4417_v58, %v10942_v10  ;;  %v4420_v18 = vmul.f32 %v4417_v58, %v10944_v0  ;;  %v4421_v38 = vmul.f32 %v4417_v58, %v10946_v33 }
 0x91d   :  { %v4422_v26 = vmul.f32 %v4417_v58, %v10948_v21  ;;  %v4423_v1 = vmul.f32 %v4417_v58, %v4374_v43  ;;  %v4424_v25 = vmul.f32 %v4417_v58, %v4375_v28  ;;  %v4425_v57 = vmul.f32 %v4417_v58, %v4376_v29  ;;  %v9295_v58 = vld [vmem:[#allocation5 + $0x1a] ss:$0 sm:$0xff] }
 0x91e   :  { %v4430_v23 = vmul.f32 %v9293_v50, %v4418_v41  ;;  %v4431_v6 = vmul.f32 %v9293_v50, %v4419_v20  ;;  %v4432_v5 = vmul.f32 %v9293_v50, %v4420_v18  ;;  %v4433_v8 = vmul.f32 %v9293_v50, %v4421_v38 }
 0x91f   :  { %v4434_v3 = vmul.f32 %v9293_v50, %v4422_v26  ;;  %v4435_v61 = vmul.f32 %v9293_v50, %v4423_v1  ;;  %v4436_v19 = vmul.f32 %v9293_v50, %v4424_v25  ;;  %v4437_v60 = vmul.f32 %v9293_v50, %v4425_v57 }
 0x920   :  { %v4442_v24 = vadd.f32 %v9294_v14, %v4430_v23  ;;  %v4443_v10 = vadd.f32 %v9294_v14, %v4431_v6  ;;  %v4444_v22 = vadd.f32 %v9294_v14, %v4432_v5  ;;  %v4445_v0 = vadd.f32 %v9294_v14, %v4433_v8 }
 0x921   :  { %v4446_v39 = vadd.f32 %v9294_v14, %v4434_v3  ;;  %v4447_v33 = vadd.f32 %v9294_v14, %v4435_v61  ;;  %v4448_v52 = vadd.f32 %v9294_v14, %v4436_v19  ;;  %v4449_v35 = vadd.f32 %v9294_v14, %v4437_v60 }
 0x922   :  { %v4450_v21 = vmax.f32 %v4442_v24, 0.0  ;;  %v4451_v43 = vmax.f32 %v4443_v10, 0.0  ;;  %v4452_v28 = vmax.f32 %v4444_v22, 0.0  ;;  %v4453_v40 = vmax.f32 %v4445_v0, 0.0 }
 0x923   :  { %v4454_v53 = vmax.f32 %v4446_v39, 0.0  ;;  %v4455_v29 = vmax.f32 %v4447_v33, 0.0  ;;  %v4456_v30 = vmax.f32 %v4448_v52, 0.0  ;;  %v4457_v62 = vmax.f32 %v4449_v35, 0.0 }
 0x924   :  { %v4458_v51 = vsel %vm4346_vm10, %v4450_v21, -inf  ;;  %v4459_v34 = vsel %vm4346_vm10, %v4451_v43, -inf  ;;  %v4460_v15 = vsel %vm4346_vm10, %v4452_v28, -inf  ;;  %v4461_v17 = vsel %vm4346_vm10, %v4453_v40, -inf }
 0x925   :  { %v4462_v54 = vsel %vm4346_vm10, %v4454_v53, -inf  ;;  %v4464_v45 = vsel %vm4346_vm10, %v4455_v29, -inf  ;;  %v4466_v63 = vsel %vm4346_vm10, %v4456_v30, -inf  ;;  %v4468_v48 = vsel %vm4346_vm10, %v4457_v62, -inf }
 0x926   :  { %v4463_v36 = vmax.f32 %v4458_v51, %v4462_v54  ;;  %v4465_v46 = vmax.f32 %v4459_v34, %v4464_v45  ;;  %v4467_v12 = vmax.f32 %v4460_v15, %v4466_v63  ;;  %v4469_v37 = vmax.f32 %v4461_v17, %v4468_v48 }
 0x928   :  { %v4470_v27 = vmax.f32 %v4463_v36, %v4465_v46  ;;  %v4471_v16 = vmax.f32 %v4467_v12, %v4469_v37 }
 0x92a   :  { %v4472_v42 = vmax.f32 %v4470_v27, %v4471_v16 }
 0x92c   :  { %v4473_v59 = vrot.slane %v4472_v42, 4 }
 0x92e   :  { %v4474_v55 = vmax.f32 %v4472_v42, %v4473_v59 }
 0x930   :  { %v4475_v2 = vrot.slane %v4474_v55, 2 }
 0x932   :  { %v4476_v4 = vmax.f32 %v4474_v55, %v4475_v2 }
 0x934   :  { %v4477_v56 = vrot.slane %v4476_v4, 1 }
 0x936   :  { %v4478_v7 = vmax.f32 %v4476_v4, %v4477_v56 }
 0x938   :  { %v4479_v31 = vmul.f32 5.656854, %v4478_v7 }
 0x93a   :  { %v10982_v11 = vadd.f32 %v4480_v44, %v4479_v31  ;;  %v10984_v32 = vadd.f32 %v4482_v49, %v4479_v31  ;;  %v10990_v9 = vadd.f32 %v4481_v47, %v4479_v31  ;;  %v10992_v50 = vadd.f32 %v4483_v13, %v4479_v31 }
 0x93c   :  { %8613 = vmatmul.msk.f32.vlgmr.msra.gmra.mxu0 %vm4346_vm10, %v10982_v11  ;;  %8615 = vmatmul.msk.f32.vlgmr.msrb.gmra.mxu1 %vm4346_vm10, %v10984_v32 }
 0x944   :  { %8614 = vmatmul.msk.f32.gmra.mxu0 %vm4346_vm10, %v10990_v9  ;;  %8616 = vmatmul.msk.f32.gmra.mxu1 %vm4346_vm10, %v10992_v50 }
 0x9b9   :  { %v4525_v41 = vpop.f32.mrf.mxu0  ;;  %v4531_v20 = vpop.f32.mrf.mxu1 }
 0x9ba   :  { %v10998_v18 = vadd.f32 %v9295_v58, %v4531_v20  ;;  %v4526_v25 = vadd.f32 %v9295_v58, %v4525_v41 }
 0x9bc   :  { %4545 = vrot.lane.b32.xlu0 %v10998_v18, %s9808_s10 }
 0x9c1   :  { %v4528_v38 = vpop.f32.mrf.mxu0  ;;  %v4534_v14 = vpop.f32.mrf.mxu1 }
 0x9c2   :  { %v11002_v26 = vadd.f32 %v9295_v58, %v4528_v38  ;;  %v11004_v1 = vadd.f32 %v9295_v58, %v4534_v14 }
 0x9c4   :  { %4547 = vrot.lane.b32.xlu2 %v11004_v1, %s9808_s10  ;;  %4710 = vrot.lane.b32.xlu0 %v11004_v1, %s9809_s16  ;;  %v11049_v57 = vpack.i.bf16 %v10998_v18, %v11004_v1  ;;  %v11058_v23 = vpack.i.bf16 %v4526_v25, %v11002_v26 }
 0x9c5   :  { %4543 = vrot.lane.b32.xlu1 %v11002_v26, %s9808_s10 }
 0x9cc   :  { %4704 = vrot.lane.b32.xlu0 %v4526_v25, %s9809_s16  ;;  %4541 = vrot.lane.b32.xlu2 %v4526_v25, %s9808_s10 }
 0x9cd   :  { %4708 = vrot.lane.b32.xlu1 %v10998_v18, %s9809_s16 }
 0x9d4   :  { %4700 = vrot.lane.b32.xlu0 %v10998_v18, %s9810_s17  ;;  %4706 = vrot.lane.b32.xlu2 %v11002_v26, %s9809_s16 }
 0x9d5   :  { %4696 = vrot.lane.b32.xlu1 %v4526_v25, %s9810_s17 }
 0x9dc   :  { %4870 = vrot.lane.b32.xlu0 %v10998_v18, %s9811_s21  ;;  %4866 = vrot.lane.b32.xlu2 %v4526_v25, %s9811_s21 }
 0x9dd   :  { %5032 = vrot.lane.b32.xlu1 %v10998_v18, %s9812_s20 }
 0x9e4   :  { %4868 = vrot.lane.b32.xlu0 %v11002_v26, %s9811_s21  ;;  %4698 = vrot.lane.b32.xlu2 %v11002_v26, %s9810_s17 }
 0x9e5   :  { %4872 = vrot.lane.b32.xlu1 %v11004_v1, %s9811_s21 }
 0x9ec   :  { %5028 = vrot.lane.b32.xlu0 %v4526_v25, %s9812_s20  ;;  %5034 = vrot.lane.b32.xlu2 %v11004_v1, %s9812_s20 }
 0x9ed   :  { %5030 = vrot.lane.b32.xlu1 %v11002_v26, %s9812_s20 }
 0x9f4   :  { %4860 = vrot.lane.b32.xlu0 %v11002_v26, %s9813_s4  ;;  %4702 = vrot.lane.b32.xlu2 %v11004_v1, %s9810_s17 }
 0x9f5   :  { %4858 = vrot.lane.b32.xlu1 %v4526_v25, %s9813_s4 }
 0x9fc   :  { %5024 = vrot.lane.b32.xlu0 %v10998_v18, %s9814_s12  ;;  %5020 = vrot.lane.b32.xlu2 %v4526_v25, %s9814_s12 }
 0x9fd   :  { %5022 = vrot.lane.b32.xlu1 %v11002_v26, %s9814_s12 }
 0xa04   :  { %9206 = vrot.lane.b32.xlu0 %v11049_v57, %s9815_s25  ;;  %4862 = vrot.lane.b32.xlu2 %v10998_v18, %s9813_s4 }
 0xa05   :  { %4864 = vrot.lane.b32.xlu1 %v11004_v1, %s9813_s4 }
 0xa0c   :  { %9216 = vrot.lane.b32.xlu0 %v11058_v23, %s9815_s25  ;;  %5026 = vrot.lane.b32.xlu2 %v11004_v1, %s9814_s12 }
 0xa0d   :  { %9211 = vrot.lane.b32.xlu1 %v11049_v57, %s9816_s7 }
 0xa1e   :  { %v4548_v6 = vpop.permute.xlu2 %4547 }
 0xa1f   :  { %8617 = vmatpush.xpose.msk.msra.mxu1 %vm4549_vm14, %v4548_v6 }
 0xa26   :  { %v4542_v5 = vpop.permute.xlu2 %4541 }
 0xa2e   :  { %v4546_v8 = vpop.permute.xlu0 %4545  ;;  %v4707_v3 = vpop.permute.xlu2 %4706 }
 0xa2f   :  { %8618 = vmatpush.xpose.msk.msra.mxu1 %vm4549_vm14, %v4546_v8 }
 0xa36   :  { %v4711_v61 = vpop.permute.xlu0 %4710  ;;  %v4867_v19 = vpop.permute.xlu2 %4866 }
 0xa37   :  { %v4544_v60 = vpop.permute.xlu1 %4543  ;;  %9148 = vmatpush.xpose.msk.msra.mxu2 %vm4549_vm14, %v4711_v61 }
 0xa38   :  { %8619 = vmatpush.xpose.msk.msra.mxu1 %vm4549_vm14, %v4544_v60 }
 0xa3c   :  { %8620 = vmatpush.xpose.msk.msra.mxu1 %vm4549_vm14, %v4542_v5 }
 0xa3e   :  { %v4705_v24 = vpop.permute.xlu0 %4704  ;;  %v4699_v10 = vpop.permute.xlu2 %4698 }
 0xa3f   :  { %v4709_v22 = vpop.permute.xlu1 %4708  ;;  %8621 = vmatmul.msk.f32.vlgmr.msra.gmra.mxu1 %vm4549_vm14, %v4526_v25 }
 0xa40   :  { %8629 = vmatpush.xpose.msk.msrb.mxu1 %vm4549_vm14, %v4711_v61  ;;  %9149 = vmatpush.xpose.msk.msra.mxu2 %vm4549_vm14, %v4709_v22 }
 0xa44   :  { %8630 = vmatpush.xpose.msk.msrb.mxu1 %vm4549_vm14, %v4709_v22  ;;  %9150 = vmatpush.xpose.msk.msra.mxu2 %vm4549_vm14, %v4707_v3 }
 0xa46   :  { %v4701_v0 = vpop.permute.xlu0 %4700  ;;  %v5035_v39 = vpop.permute.xlu2 %5034 }
 0xa47   :  { %v4697_v33 = vpop.permute.xlu1 %4696  ;;  %8622 = vmatmul.msk.f32.gmra.mxu1 %vm4549_vm14, %v11002_v26 }
 0xa48   :  { %8631 = vmatpush.xpose.msk.msrb.mxu1 %vm4549_vm14, %v4707_v3  ;;  %9151 = vmatpush.xpose.msk.msra.mxu2 %vm4549_vm14, %v4705_v24 }
 0xa4b   :  { %8635 = vmatmul.msk.f32.vlgmr.msra.gmra.mxu2 %vm4549_vm14, %v4701_v0 }
 0xa4c   :  { %8632 = vmatpush.xpose.msk.msrb.mxu1 %vm4549_vm14, %v4705_v24  ;;  %8653 = vmatpush.xpose.msk.msrb.mxu2 %vm4549_vm14, %v5035_v39 }
 0xa4e   :  { %v4871_v52 = vpop.permute.xlu0 %4870  ;;  %v4703_v21 = vpop.permute.xlu2 %4702 }
 0xa4f   :  { %v5033_v35 = vpop.permute.xlu1 %5032  ;;  %8623 = vmatmul.msk.f32.gmra.mxu1 %vm4549_vm14, %v10998_v18 }
 0xa50   :  { %8654 = vmatpush.xpose.msk.msrb.mxu2 %vm4549_vm14, %v5033_v35 }
 0xa53   :  { %8636 = vmatmul.msk.f32.gmra.mxu2 %vm4549_vm14, %v4703_v21 }
 0xa56   :  { %v4869_v43 = vpop.permute.xlu0 %4868  ;;  %v5021_v29 = vpop.permute.xlu2 %5020 }
 0xa57   :  { %v4873_v28 = vpop.permute.xlu1 %4872  ;;  %8624 = vmatmul.msk.f32.gmra.mxu1 %vm4549_vm14, %v11004_v1 }
 0xa58   :  { %8641 = vmatpush.xpose.msk.msrb.mxu3 %vm4549_vm14, %v4873_v28 }
 0xa5c   :  { %8642 = vmatpush.xpose.msk.msrb.mxu3 %vm4549_vm14, %v4871_v52 }
 0xa5e   :  { %v5029_v40 = vpop.permute.xlu0 %5028  ;;  %v4863_v15 = vpop.permute.xlu2 %4862 }
 0xa5f   :  { %v5031_v53 = vpop.permute.xlu1 %5030  ;;  %8633 = vmatmul.msk.f32.vlgmr.msrb.gmra.mxu1 %vm4549_vm14, %v4697_v33 }
 0xa60   :  { %8643 = vmatpush.xpose.msk.msrb.mxu3 %vm4549_vm14, %v4869_v43  ;;  %8655 = vmatpush.xpose.msk.msrb.mxu2 %vm4549_vm14, %v5031_v53 }
 0xa64   :  { %8644 = vmatpush.xpose.msk.msrb.mxu3 %vm4549_vm14, %v4867_v19  ;;  %8656 = vmatpush.xpose.msk.msrb.mxu2 %vm4549_vm14, %v5029_v40 }
 0xa66   :  { %v4861_v30 = vpop.permute.xlu0 %4860  ;;  %v5027_v36 = vpop.permute.xlu2 %5026 }
 0xa67   :  { %v4859_v62 = vpop.permute.xlu1 %4858  ;;  %8634 = vmatmul.msk.f32.gmra.mxu1 %vm4549_vm14, %v4699_v10  ;;  %8657 = vmatmul.msk.f32.vlgmr.msrb.gmra.mxu2 %vm4549_vm14, %v5021_v29 }
 0xa68   :  { %8645 = vmatmul.msk.f32.vlgmr.msrb.gmra.mxu3 %vm4549_vm14, %v4859_v62 }
 0xa6e   :  { %v5025_v51 = vpop.permute.xlu0 %5024 }
 0xa6f   :  { %v5023_v34 = vpop.permute.xlu1 %5022 }
 0xa70   :  { %8646 = vmatmul.msk.f32.gmra.mxu3 %vm4549_vm14, %v4861_v30  ;;  %8658 = vmatmul.msk.f32.gmra.mxu2 %vm4549_vm14, %v5023_v34 }
 0xa76   :  { %v9207_v17 = vpop.permute.xlu0 %9206 }
 0xa77   :  { %v4865_v54 = vpop.permute.xlu1 %4864  ;;  %v9208_v45 = vunpack.i.l.bf16 %v9207_v17  ;;  %v9209_v63 = vunpack.i.h.bf16 %v9207_v17 }
 0xa78   :  { %8647 = vmatmul.msk.f32.gmra.mxu3 %vm4549_vm14, %v4863_v15  ;;  %8659 = vmatmul.msk.f32.gmra.mxu2 %vm4549_vm14, %v5025_v51 }
 0xa79   :  { %4679 = vmatpush.msrb.mxu0 %v9208_v45 }
 0xa7b   :  { %4680 = vmatpush.msrb.mxu0 %v9209_v63 }
 0xa7e   :  { %v9217_v48 = vpop.permute.xlu0 %9216 }
 0xa7f   :  { %v9212_v46 = vpop.permute.xlu1 %9211  ;;  %v9218_v12 = vunpack.i.l.bf16 %v9217_v48  ;;  %v9219_v27 = vunpack.i.h.bf16 %v9217_v48 }
 0xa80   :  { %v9213_v37 = vunpack.i.l.bf16 %v9212_v46  ;;  %8648 = vmatmul.msk.f32.gmra.mxu3 %vm4549_vm14, %v4865_v54  ;;  %8660 = vmatmul.msk.f32.gmra.mxu2 %vm4549_vm14, %v5027_v36  ;;  %v9214_v16 = vunpack.i.h.bf16 %v9212_v46 }
 0xa81   :  { %4681 = vmatpush.msrb.mxu0 %v9218_v12 }
 0xa82   :  { %4841 = vmatpush.msra.mxu1 %v9213_v37 }
 0xa83   :  { %4682 = vmatpush.msrb.mxu0 %v9219_v27 }
 0xa84   :  { %4842 = vmatpush.msra.mxu1 %v9214_v16 }
 0xabc   :  { %v4583_v42 = vpop.f32.mrf.mxu1 }
 0xabd   :  { %v11105_v59 = vmul.f32 0.35355338, %v4583_v42 }
 0xabf   :  { %v4599_v55 = vsel %vm4346_vm10, %v11105_v59, -inf }
 0xac0   :  { %4600 = vmax.xlane.f32.xlu0 %v4599_v55 }
 0xac4   :  { %v4586_v2 = vpop.f32.mrf.mxu1 }
 0xac5   :  { %v11109_v4 = vmul.f32 0.35355338, %v4586_v2 }
 0xac7   :  { %v4602_v56 = vsel %vm4346_vm10, %v11109_v4, -inf }
 0xac8   :  { %4603 = vmax.xlane.f32.xlu2 %v4602_v56 }
 0xacc   :  { %v4589_v58 = vpop.f32.mrf.mxu1 }
 0xacd   :  { %v11137_v60 = vmul.f32 0.35355338, %v4589_v58 }
 0xace   :  { %v4751_v7 = vpop.f32.mrf.mxu2 }
 0xacf   :  { %v11113_v44 = vmul.f32 0.35355338, %v4751_v7  ;;  %v4605_v0 = vsel %vm4346_vm10, %v11137_v60, -inf }
 0xad1   :  { %v4767_v49 = vsel %vm4346_vm10, %v11113_v44, -inf }
 0xad2   :  { %4768 = vmax.xlane.f32.xlu1 %v4767_v49 }
 0xad4   :  { %v4592_v14 = vpop.f32.mrf.mxu1 }
 0xad5   :  { %v11151_v21 = vmul.f32 0.35355338, %v4592_v14 }
 0xad6   :  { %v4754_v31 = vpop.f32.mrf.mxu2 }
 0xad7   :  { %v11117_v47 = vmul.f32 0.35355338, %v4754_v31  ;;  %v4608_v28 = vsel %vm4346_vm10, %v11151_v21, -inf }
 0xad9   :  { %v4770_v13 = vsel %vm4346_vm10, %v11117_v47, -inf }
 0xada   :  { %4771 = vmax.xlane.f32.xlu0 %v4770_v13 }
 0xadc   :  { %v4745_v19 = vpop.f32.mrf.mxu1 }
 0xadd   :  { %v11139_v24 = vmul.f32 0.35355338, %v4745_v19 }
 0xadf   :  { %v4761_v39 = vsel %vm4346_vm10, %v11139_v24, -inf }
 0xae4   :  { %v4748_v30 = vpop.f32.mrf.mxu1 }
 0xae5   :  { %v11161_v62 = vmul.f32 0.35355338, %v4748_v30 }
 0xae7   :  { %v4764_v51 = vsel %vm4346_vm10, %v11161_v62, -inf }
 0xaea   :  { %v5069_v41 = vpop.f32.mrf.mxu2 }
 0xaeb   :  { %v11121_v20 = vmul.f32 0.35355338, %v5069_v41  ;;  %v4907_v18 = vpop.f32.mrf.mxu3 }
 0xaec   :  { %v11123_v38 = vmul.f32 0.35355338, %v4907_v18 }
 0xaed   :  { %v5085_v26 = vsel %vm4346_vm10, %v11121_v20, -inf }
 0xaee   :  { %5086 = vmax.xlane.f32.xlu2 %v5085_v26  ;;  %v4923_v1 = vsel %vm4346_vm10, %v11123_v38, -inf }
 0xaef   :  { %4924 = vmax.xlane.f32.xlu1 %v4923_v1 }
 0xaf3   :  { %v4910_v25 = vpop.f32.mrf.mxu3  ;;  %v5072_v6 = vpop.f32.mrf.mxu2 }
 0xaf4   :  { %v11129_v5 = vmul.f32 0.35355338, %v4910_v25  ;;  %v11131_v8 = vmul.f32 0.35355338, %v5072_v6 }
 0xaf6   :  { %v4926_v3 = vsel %vm4346_vm10, %v11129_v5, -inf  ;;  %v5088_v61 = vsel %vm4346_vm10, %v11131_v8, -inf }
 0xaf7   :  { %4927 = vmax.xlane.f32.xlu0 %v4926_v3  ;;  %5089 = vmax.xlane.f32.xlu1 %v5088_v61 }
 0xafb   :  { %v4913_v10 = vpop.f32.mrf.mxu3  ;;  %v5075_v52 = vpop.f32.mrf.mxu2 }
 0xafc   :  { %v11141_v22 = vmul.f32 0.35355338, %v4913_v10  ;;  %v11149_v35 = vmul.f32 0.35355338, %v5075_v52 }
 0xafe   :  { %v4929_v33 = vsel %vm4346_vm10, %v11141_v22, -inf  ;;  %v5091_v43 = vsel %vm4346_vm10, %v11149_v35, -inf }
 0xaff   :  { %4606 = vmax.xlane.f32.xlu0 %v4605_v0  ;;  %4762 = vmax.xlane.f32.xlu1 %v4761_v39 }
 0xb00   :  { %4930 = vmax.xlane.f32.xlu2 %v4929_v33 }
 0xb03   :  { %v4916_v40 = vpop.f32.mrf.mxu3  ;;  %v5078_v34 = vpop.f32.mrf.mxu2 }
 0xb04   :  { %v11157_v53 = vmul.f32 0.35355338, %v4916_v40  ;;  %v11167_v15 = vmul.f32 0.35355338, %v5078_v34 }
 0xb06   :  { %v4932_v29 = vsel %vm4346_vm10, %v11157_v53, -inf  ;;  %v5094_v17 = vsel %vm4346_vm10, %v11167_v15, -inf }
 0xb07   :  { %5092 = vmax.xlane.f32.xlu0 %v5091_v43 }
 0xb08   :  { %4609 = vmax.xlane.f32.xlu2 %v4608_v28 }
 0xb10   :  { %4933 = vmax.xlane.f32.xlu2 %v4932_v29 }
 0xb18   :  { %4765 = vmax.xlane.f32.xlu2 %v4764_v51  ;;  %9221 = vrot.lane.b32.xlu1 %v11058_v23, %s9816_s7 }
 0xb20   :  { %5095 = vmax.xlane.f32.xlu2 %v5094_v17 }
 0xb33   :  { %v4601_v54 = vpop.xlane.xlu0 %4600 }
 0xb34   :  { %v4611_v45 = vsub.f32 %v11105_v59, %v4601_v54 }
 0xb36   :  { %v4615_v63 = vmul.f32 1.442695, %v4611_v45 }
 0xb38   :  { %9320 = vpow2.f32 %v4615_v63 }
 0xb3b   :  { %v4604_v42 = vpop.xlane.xlu2 %4603 }
 0xb3c   :  { %v4612_v56 = vsub.f32 %v11109_v4, %v4604_v42 }
 0xb3e   :  { %v11172_v48 = vpop.eup %9320  ;;  %v4617_v49 = vmul.f32 1.442695, %v4612_v56 }
 0xb3f   :  { %v4623_v36 = vsel %vm4346_vm10, %v11172_v48, 0.0 }
 0xb42   :  { %4624 = vadd.xlane.f32.xlu1 %v4623_v36 }
 0xb45   :  { %v4769_v46 = vpop.xlane.xlu1 %4768 }
 0xb46   :  { %v4775_v12 = vsub.f32 %v11113_v44, %v4769_v46 }
 0xb48   :  { %v4781_v37 = vmul.f32 1.442695, %v4775_v12 }
 0xb4a   :  { %9322 = vpow2.f32 %v4781_v37 }
 0xb4d   :  { %v4772_v59 = vpop.xlane.xlu0 %4771 }
 0xb4e   :  { %v4776_v58 = vsub.f32 %v11117_v47, %v4772_v59 }
 0xb50   :  { %v11177_v27 = vpop.eup %9322  ;;  %v4783_v4 = vmul.f32 1.442695, %v4776_v58 }
 0xb51   :  { %v4791_v16 = vsel %vm4346_vm10, %v11177_v27, 0.0 }
 0xb52   :  { %4792 = vadd.xlane.f32.xlu1 %v4791_v16 }
 0xb61   :  { %v5087_v44 = vpop.xlane.xlu2 %5086 }
 0xb62   :  { %v4925_v55 = vpop.xlane.xlu1 %4924  ;;  %v5097_v61 = vsub.f32 %v11121_v20, %v5087_v44 }
 0xb63   :  { %v4935_v2 = vsub.f32 %v11123_v38, %v4925_v55 }
 0xb64   :  { %v5101_v10 = vmul.f32 1.442695, %v5097_v61 }
 0xb65   :  { %v4939_v7 = vmul.f32 1.442695, %v4935_v2 }
 0xb67   :  { %9324 = vpow2.f32 %v4939_v7 }
 0xb68   :  { %9326 = vpow2.f32 %v4617_v49 }
 0xb69   :  { %9328 = vpow2.f32 %v4783_v4 }
 0xb6a   :  { %v11183_v31 = vpop.xlane.xlu0 %4927  ;;  %v5090_v25 = vpop.xlane.xlu1 %5089 }
 0xb6b   :  { %9236 = vrot.lane.b32.xlu1 %v11058_v23, %s9817_s22  ;;  %v4936_v44 = vsub.f32 %v11129_v5, %v11183_v31 }
 0xb6d   :  { %v11187_v13 = vpop.eup %9324  ;;  %v4941_v58 = vmul.f32 1.442695, %v4936_v44 }
 0xb6e   :  { %v4947_v41 = vsel %vm4346_vm10, %v11187_v13, 0.0  ;;  %v11192_v38 = vpop.eup %9326 }
 0xb6f   :  { %4948 = vadd.xlane.f32.xlu2 %v4947_v41  ;;  %v4626_v1 = vsel %vm4346_vm10, %v11192_v38, 0.0  ;;  %v11199_v47 = vpop.eup %9328 }
 0xb70   :  { %v4794_v19 = vsel %vm4346_vm10, %v11199_v47, 0.0 }
 0xb72   :  { %v4607_v18 = vpop.xlane.xlu0 %4606  ;;  %v4763_v0 = vpop.xlane.xlu1 %4762 }
 0xb73   :  { %v11194_v14 = vpop.xlane.xlu2 %4930  ;;  %v4613_v26 = vsub.f32 %v11137_v60, %v4607_v18  ;;  %v5098_v60 = vsub.f32 %v11131_v8, %v5090_v25  ;;  %v4773_v8 = vsub.f32 %v11139_v24, %v4763_v0 }
 0xb75   :  { %v4619_v6 = vmul.f32 1.442695, %v4613_v26  ;;  %v5103_v20 = vmul.f32 1.442695, %v5098_v60  ;;  %v4777_v63 = vmul.f32 1.442695, %v4773_v8 }
 0xb77   :  { %4627 = vadd.xlane.f32.xlu2 %v4626_v1  ;;  %9330 = vpow2.f32 %v4619_v6 }
 0xb78   :  { %9332 = vpow2.f32 %v5101_v10 }
 0xb79   :  { %9334 = vpow2.f32 %v5103_v20 }
 0xb7a   :  { %v5093_v41 = vpop.xlane.xlu0 %5092 }
 0xb7b   :  { %v4610_v3 = vpop.xlane.xlu2 %4609  ;;  %v5099_v4 = vsub.f32 %v11149_v35, %v5093_v41 }
 0xb7c   :  { %v4614_v52 = vsub.f32 %v11151_v21, %v4610_v3 }
 0xb7d   :  { %v11204_v39 = vpop.eup %9330  ;;  %v5105_v18 = vmul.f32 1.442695, %v5099_v4 }
 0xb7e   :  { %v4629_v43 = vsel %vm4346_vm10, %v11204_v39, 0.0  ;;  %v4621_v28 = vmul.f32 1.442695, %v4614_v52  ;;  %v11212_v29 = vpop.eup %9332 }
 0xb7f   :  { %4795 = vadd.xlane.f32.xlu2 %v4794_v19  ;;  %v5109_v54 = vsel %vm4346_vm10, %v11212_v29, 0.0  ;;  %v11218_v45 = vpop.eup %9334 }
 0xb80   :  { %9336 = vpow2.f32 %v4621_v28  ;;  %v5112_v24 = vsel %vm4346_vm10, %v11218_v45, 0.0 }
 0xb83   :  { %v11207_v33 = vpop.xlane.xlu2 %4933 }
 0xb86   :  { %v11220_v36 = vpop.eup %9336 }
 0xb87   :  { %4630 = vadd.xlane.f32.xlu2 %v4629_v43  ;;  %v4632_v16 = vsel %vm4346_vm10, %v11220_v36, 0.0 }
 0xb8a   :  { %v9222_v40 = vpop.permute.xlu1 %9221 }
 0xb8b   :  { %v9223_v30 = vunpack.i.l.bf16 %v9222_v40  ;;  %v4766_v51 = vpop.xlane.xlu2 %4765  ;;  %v9224_v17 = vunpack.i.h.bf16 %v9222_v40 }
 0xb8c   :  { %v4774_v34 = vsub.f32 %v11161_v62, %v4766_v51 }
 0xb8d   :  { %4843 = vmatpush.msra.mxu1 %v9223_v30 }
 0xb8e   :  { %v4779_v21 = vmul.f32 1.442695, %v4774_v34 }
 0xb8f   :  { %4844 = vmatpush.msra.mxu1 %v9224_v17  ;;  %5110 = vadd.xlane.f32.xlu2 %v5109_v54 }
 0xb90   :  { %9338 = vpow2.f32 %v4779_v21 }
 0xb91   :  { %9340 = vpow2.f32 %v4777_v63 }
 0xb93   :  { %v5096_v46 = vpop.xlane.xlu2 %5095 }
 0xb94   :  { %v5100_v62 = vsub.f32 %v11167_v15, %v5096_v46 }
 0xb95   :  { %5113 = vadd.xlane.f32.xlu1 %v5112_v24 }
 0xb96   :  { %v11225_v12 = vpop.eup %9338  ;;  %v5107_v37 = vmul.f32 1.442695, %v5100_v62 }
 0xb97   :  { %4633 = vadd.xlane.f32.xlu2 %v4632_v16  ;;  %v4788_v42 = vsel %vm4346_vm10, %v11225_v12, 0.0  ;;  %v11231_v59 = vpop.eup %9340 }
 0xb98   :  { %9342 = vpow2.f32 %v5107_v37  ;;  %4789 = vadd.xlane.f32.xlu0 %v4788_v42  ;;  %v4785_v55 = vsel %vm4346_vm10, %v11231_v59, 0.0 }
 0xb9e   :  { %v11233_v15 = vpop.eup %9342 }
 0xb9f   :  { %4786 = vadd.xlane.f32.xlu2 %v4785_v55  ;;  %v5118_v2 = vsel %vm4346_vm10, %v11233_v15, 0.0 }
 0xba0   :  { %5119 = vadd.xlane.f32.xlu1 %v5118_v2 }
 0xbac   :  { %9226 = vrot.lane.b32.xlu0 %v11049_v57, %s9817_s22 }
 0xbb5   :  { %v4625_v56 = vpop.xlane.xlu1 %4624 }
 0xbb6   :  { %9344 = vrcp.f32 %v4625_v56 }
 0xbb7   :  { %9231 = vrot.lane.b32.xlu2 %v11049_v57, %s9818_s23  ;;  %9346 = vpow2.f32 %v4941_v58  ;;  %v4938_v57 = vsub.f32 %v11157_v53, %v11207_v33 }
 0xbb8   :  { %9348 = vpow2.f32 %v5105_v18 }
 0xbb9   :  { %v4945_v5 = vmul.f32 1.442695, %v4938_v57 }
 0xbbb   :  { %9350 = vpow2.f32 %v4945_v5 }
 0xbbc   :  { %v9345_v7 = vpop.eup %9344 }
 0xbbd   :  { %v4639_v49 = vmul.f32 %v9345_v7, %v11172_v48  ;;  %v11250_v26 = vpop.eup %9346 }
 0xbbe   :  { %v4950_v48 = vsel %vm4346_vm10, %v11250_v26, 0.0  ;;  %v11258_v31 = vpop.eup %9348 }
 0xbbf   :  { %8625 = vmatmul.msk.f32.vlgmr.msrb.gmra.mxu0 %vm4346_vm10, %v4639_v49  ;;  %9241 = vrot.lane.b32.xlu2 %v11058_v23, %s9818_s23  ;;  %v4937_v23 = vsub.f32 %v11141_v22, %v11194_v14  ;;  %v5115_v35 = vsel %vm4346_vm10, %v11258_v31, 0.0 }
 0xbc1   :  { %v4943_v1 = vmul.f32 1.442695, %v4937_v23  ;;  %v11262_v25 = vpop.eup %9350 }
 0xbc2   :  { %v4956_v3 = vsel %vm4346_vm10, %v11262_v25, 0.0 }
 0xbc3   :  { %9352 = vpow2.f32 %v4943_v1 }
 0xbc5   :  { %v4793_v30 = vpop.xlane.xlu1 %4792 }
 0xbc9   :  { %v11264_v6 = vpop.eup %9352 }
 0xbca   :  { %v4953_v22 = vsel %vm4346_vm10, %v11264_v6, 0.0 }
 0xbd6   :  { %4951 = vadd.xlane.f32.xlu0 %v4950_v48 }
 0xbde   :  { %5116 = vadd.xlane.f32.xlu0 %v5115_v35 }
 0xbe2   :  { %v4949_v53 = vpop.xlane.xlu2 %4948 }
 0xbe6   :  { %4957 = vadd.xlane.f32.xlu0 %v4956_v3 }
 0xbe8   :  { %4954 = vadd.xlane.f32.xlu2 %v4953_v22 }
 0xbea   :  { %v4628_v14 = vpop.xlane.xlu2 %4627 }
 0xbeb   :  { %9354 = vrcp.f32 %v4628_v14 }
 0xbf1   :  { %v9355_v61 = vpop.eup %9354 }
 0xbf2   :  { %v4796_v19 = vpop.xlane.xlu2 %4795  ;;  %v4640_v10 = vmul.f32 %v9355_v61, %v11192_v38 }
 0xbf4   :  { %8626 = vmatmul.msk.f32.gmra.mxu0 %vm4346_vm10, %v4640_v10 }
 0xbfa   :  { %v4631_v0 = vpop.xlane.xlu2 %4630 }
 0xbfb   :  { %9356 = vrcp.f32 %v4631_v0 }
 0xc01   :  { %v9357_v60 = vpop.eup %9356 }
 0xc02   :  { %v5111_v33 = vpop.xlane.xlu2 %5110  ;;  %v4641_v52 = vmul.f32 %v9357_v60, %v11204_v39 }
 0xc04   :  { %8627 = vmatmul.msk.f32.gmra.mxu0 %vm4346_vm10, %v4641_v52 }
 0xc0a   :  { %v4634_v43 = vpop.xlane.xlu2 %4633 }
 0xc0b   :  { %9358 = vrcp.f32 %v4634_v43  ;;  %v4790_v38 = vpop.xlane.xlu0 %4789 }
 0xc11   :  { %v9359_v20 = vpop.eup %9358 }
 0xc12   :  { %v4787_v28 = vpop.xlane.xlu2 %4786  ;;  %v4642_v40 = vmul.f32 %v9359_v20, %v11220_v36  ;;  %v9237_v36 = vpop.permute.xlu1 %9236 }
 0xc13   :  { %9360 = vrcp.f32 %v4787_v28  ;;  %v9238_v16 = vunpack.i.l.bf16 %v9237_v36 }
 0xc14   :  { %8628 = vmatmul.msk.f32.gmra.mxu0 %vm4346_vm10, %v4642_v40  ;;  %9362 = vrcp.f32 %v4790_v38  ;;  %v5247_v38 = vld [vmem:[#allocation15 + $0x18] sm:$0xff] }
 0xc15   :  { %9364 = vrcp.f32 %v4949_v53  ;;  %5276 = vmatpush.msra.mxu3 %v5247_v38 }
 0xc16   :  { %9366 = vrcp.f32 %v4793_v30  ;;  %v5246_v30 = vld [vmem:[#allocation15 + $0x10] sm:$0xff] }
 0xc17   :  { %9368 = vrcp.f32 %v4796_v19  ;;  %5277 = vmatpush.msra.mxu3 %v5246_v30 }
 0xc18   :  { %9370 = vrcp.f32 %v5111_v33 }
 0xc19   :  { %v9361_v51 = vpop.eup %9360 }
 0xc1a   :  { %v4801_v34 = vmul.f32 %v9361_v51, %v11231_v59  ;;  %v9232_v8 = vpop.permute.xlu2 %9231  ;;  %v9363_v54 = vpop.eup %9362  ;;  %v9239_v59 = vunpack.i.h.bf16 %v9237_v36  ;;  %v5245_v51 = vld [vmem:[#allocation15 + $0x8] sm:$0xff] }
 0xc1b   :  { %v9233_v17 = vunpack.i.l.bf16 %v9232_v8  ;;  %v9234_v39 = vunpack.i.h.bf16 %v9232_v8  ;;  %v4802_v24 = vmul.f32 %v9363_v54, %v11225_v12  ;;  %v9365_v37 = vpop.eup %9364  ;;  %v5114_v44 = vpop.xlane.xlu1 %5113  ;;  %5278 = vmatpush.msra.mxu3 %v5245_v51 }
 0xc1c   :  { %8637 = vmatmul.msk.f32.vlgmr.msra.gmra.mxu1 %vm4346_vm10, %v4801_v34  ;;  %v4963_v2 = vmul.f32 %v9365_v37, %v11187_v13  ;;  %v9367_v56 = vpop.eup %9366  ;;  %9372 = vrcp.f32 %v5114_v44  ;;  %v5244_v34 = vld [vmem:[#allocation15] sm:$0xff] }
 0xc1d   :  { %5165 = vmatpush.msrb.mxu1 %v9233_v17  ;;  %v4803_v12 = vmul.f32 %v9367_v56, %v11177_v27  ;;  %v9369_v7 = vpop.eup %9368  ;;  %5279 = vmatpush.msra.mxu3 %v5244_v34 }
 0xc1e   :  { %v9227_v21 = vpop.permute.xlu0 %9226  ;;  %v4804_v49 = vmul.f32 %v9369_v7, %v11199_v47  ;;  %v9371_v58 = vpop.eup %9370 }
 0xc1f   :  { %v9228_v63 = vunpack.i.l.bf16 %v9227_v21  ;;  %5166 = vmatpush.msrb.mxu1 %v9234_v39  ;;  %v9229_v46 = vunpack.i.h.bf16 %v9227_v21  ;;  %v5125_v13 = vmul.f32 %v9371_v58, %v11212_v29 }
 0xc21   :  { %5003 = vmatpush.msra.mxu0 %v9228_v63 }
 0xc22   :  { %v9242_v62 = vpop.permute.xlu2 %9241  ;;  %v9373_v41 = vpop.eup %9372 }
 0xc23   :  { %5004 = vmatpush.msra.mxu0 %v9229_v46  ;;  %v9243_v42 = vunpack.i.l.bf16 %v9242_v62  ;;  %v9244_v55 = vunpack.i.h.bf16 %v9242_v62  ;;  %v5126_v4 = vmul.f32 %v9373_v41, %v11218_v45  ;;  %v5120_v48 = vpop.xlane.xlu1 %5119 }
 0xc24   :  { %8638 = vmatmul.msk.f32.gmra.mxu1 %vm4346_vm10, %v4802_v24 }
 0xc25   :  { %5005 = vmatpush.msra.mxu0 %v9238_v16  ;;  %5167 = vmatpush.msrb.mxu1 %v9243_v42 }
 0xc27   :  { %5006 = vmatpush.msra.mxu0 %v9239_v59  ;;  %5168 = vmatpush.msrb.mxu1 %v9244_v55 }
 0xc28   :  { %8649 = vmatmul.msk.f32.vlgmr.msra.gmra.mxu0 %vm4346_vm10, %v4963_v2 }
 0xc2c   :  { %8639 = vmatmul.msk.f32.gmra.mxu1 %vm4346_vm10, %v4803_v12 }
 0xc34   :  { %8640 = vmatmul.msk.f32.gmra.mxu1 %vm4346_vm10, %v4804_v49 }
 0xc3c   :  { %8661 = vmatmul.msk.f32.vlgmr.msrb.gmra.mxu1 %vm4346_vm10, %v5125_v13 }
 0xc44   :  { %8662 = vmatmul.msk.f32.gmra.mxu1 %vm4346_vm10, %v5126_v4  ;;  %v9296_v4 = vld [vmem:[#allocation5 + $0x1b] ss:$0 sm:$0xff] }
 0xc49   :  { %v4952_v27 = vpop.xlane.xlu0 %4951 }
 0xc4a   :  { %9374 = vrcp.f32 %v4952_v27 }
 0xc50   :  { %v9375_v18 = vpop.eup %9374 }
 0xc51   :  { %v5117_v57 = vpop.xlane.xlu0 %5116  ;;  %v4964_v47 = vmul.f32 %v9375_v18, %v11250_v26 }
 0xc52   :  { %9376 = vrcp.f32 %v5117_v57 }
 0xc53   :  { %8650 = vmatmul.msk.f32.gmra.mxu0 %vm4346_vm10, %v4964_v47  ;;  %9378 = vrcp.f32 %v5120_v48 }
 0xc58   :  { %v9377_v23 = vpop.eup %9376 }
 0xc59   :  { %v5127_v29 = vmul.f32 %v9377_v23, %v11258_v31  ;;  %v9379_v45 = vpop.eup %9378  ;;  %v4958_v1 = vpop.xlane.xlu0 %4957 }
 0xc5a   :  { %v5128_v35 = vmul.f32 %v9379_v45, %v11233_v15  ;;  %v4684_v31 = vpop.f32.mrf.mxu0 }
 0xc5b   :  { %8663 = vmatmul.msk.f32.gmra.mxu1 %vm4346_vm10, %v5127_v29  ;;  %v4955_v5 = vpop.xlane.xlu2 %4954 }
 0xc5c   :  { %9380 = vrcp.f32 %v4955_v5 }
 0xc5d   :  { %9382 = vrcp.f32 %v4958_v1 }
 0xc62   :  { %v9381_v53 = vpop.eup %9380 }
 0xc63   :  { %8664 = vmatmul.msk.f32.gmra.mxu1 %vm4346_vm10, %v5128_v35  ;;  %v4965_v26 = vmul.f32 %v9381_v53, %v11264_v6  ;;  %v9383_v3 = vpop.eup %9382 }
 0xc64   :  { %v4966_v22 = vmul.f32 %v9383_v3, %v11262_v25 }
 0xc65   :  { %8651 = vmatmul.msk.f32.gmra.mxu0 %vm4346_vm10, %v4965_v26 }
 0xc6d   :  { %8652 = vmatmul.msk.f32.gmra.mxu0 %vm4346_vm10, %v4966_v22 }
 0xc71   :  { %v4687_v14 = vpop.f32.mrf.mxu0 }
 0xc81   :  { %v4690_v61 = vpop.f32.mrf.mxu0 }
 0xc91   :  { %v4693_v15 = vpop.f32.mrf.mxu0 }
 0xc99   :  { %v4846_v19 = vpop.f32.mrf.mxu1 }
 0xc9a   :  { %5186 = vrot.lane.b32.xlu2 %v4846_v19, %s9788_s3 }
 0xca1   :  { %v4849_v10 = vpop.f32.mrf.mxu1 }
 0xca5   :  { %v5008_v0 = vpop.f32.mrf.mxu0 }
 0xca6   :  { %5202 = vrot.lane.b32.xlu0 %v5008_v0, %s9798_s1 }
 0xca9   :  { %v4852_v60 = vpop.f32.mrf.mxu1 }
 0xcae   :  { %5188 = vrot.lane.b32.xlu0 %v4849_v10, %s9788_s3 }
 0xcb1   :  { %v4855_v6 = vpop.f32.mrf.mxu1 }
 0xcb6   :  { %5190 = vrot.lane.b32.xlu0 %v4852_v60, %s9788_s3 }
 0xcb9   :  { %v5170_v25 = vpop.f32.mrf.mxu1 }
 0xcba   :  { %5218 = vrot.lane.b32.xlu1 %v5170_v25, %s9819_s26 }
 0xcbe   :  { %5192 = vrot.lane.b32.xlu0 %v4855_v6, %s9788_s3 }
 0xcc1   :  { %v5173_v33 = vpop.f32.mrf.mxu1 }
 0xcc2   :  { %5220 = vrot.lane.b32.xlu1 %v5173_v33, %s9819_s26 }
 0xcd0   :  { %v5011_v52 = vpop.f32.mrf.mxu0 }
 0xcd1   :  { %5204 = vrot.lane.b32.xlu2 %v5011_v52, %s9798_s1 }
 0xcd8   :  { %v5176_v43 = vpop.f32.mrf.mxu1 }
 0xcd9   :  { %5222 = vrot.lane.b32.xlu1 %v5176_v43, %s9819_s26 }
 0xce0   :  { %v5179_v20 = vpop.f32.mrf.mxu1 }
 0xce1   :  { %5224 = vrot.lane.b32.xlu1 %v5179_v20, %s9819_s26 }
 0xce2   :  { %v5014_v28 = vpop.f32.mrf.mxu0 }
 0xce3   :  { %5206 = vrot.lane.b32.xlu2 %v5014_v28, %s9798_s1 }
 0xcea   :  { %v5017_v40 = vpop.f32.mrf.mxu0 }
 0xceb   :  { %5208 = vrot.lane.b32.xlu2 %v5017_v40, %s9798_s1 }
 0xcf4   :  { %v5187_v17 = vpop.permute.xlu2 %5186 }
 0xcf5   :  { %v5230_v39 = vsel %vm4549_vm14, %v4684_v31, %v5187_v17  ;;  %v9820_v31 = vmov 32.0  }
 0xcf6   :  { %9384 = vrcp.f32 %v9820_v31  ;;  %v5466_v31 = vld [vmem:[%s11935_s15 + $0x28] sm:$0xff] }
 0xd18   :  { %v5203_v8 = vpop.permute.xlu0 %5202 }
 0xd19   :  { %v5235_v21 = vsel %vm5234_vm15, %v5230_v39, %v5203_v8 }
 0xd20   :  { %v5189_v36 = vpop.permute.xlu0 %5188 }
 0xd21   :  { %v5231_v62 = vsel %vm4549_vm14, %v4687_v14, %v5189_v36  ;;  %v5409_v36 = vld [vmem:[#allocation16 + $0x8] sm:$0xff] }
 0xd28   :  { %v5191_v42 = vpop.permute.xlu0 %5190 }
 0xd29   :  { %v5232_v55 = vsel %vm4549_vm14, %v4690_v61, %v5191_v42 }
 0xd2b   :  { %v5205_v46 = vpop.permute.xlu2 %5204 }
 0xd2c   :  { %v5219_v54 = vpop.permute.xlu1 %5218  ;;  %v5236_v24 = vsel %vm5234_vm15, %v5231_v62, %v5205_v46  ;;  %v5408_v46 = vld [vmem:[#allocation16] sm:$0xff] }
 0xd2d   :  { %v5240_v63 = vsel %vm5239_vm0, %v5235_v21, %v5219_v54  ;;  %v5411_v54 = vld [vmem:[#allocation16 + $0x18] sm:$0xff] }
 0xd2e   :  { %8665 = vmatmul.msk.f32.vlgmr.msra.gmra.mxu3 %vm4346_vm10, %v5240_v63  ;;  %5440 = vmatpush.msrb.mxu0 %v5411_v54  ;;  %v5410_v63 = vld [vmem:[#allocation16 + $0x10] sm:$0xff] }
 0xd30   :  { %v5193_v7 = vpop.permute.xlu0 %5192  ;;  %5441 = vmatpush.msrb.mxu0 %v5410_v63 }
 0xd31   :  { %v5233_v44 = vsel %vm4549_vm14, %v4693_v15, %v5193_v7 }
 0xd32   :  { %5442 = vmatpush.msrb.mxu0 %v5409_v36  ;;  %v5462_v36 = vld [vmem:[%s11935_s15 + $0x8] sm:$0xff] }
 0xd34   :  { %v5221_v37 = vpop.permute.xlu1 %5220  ;;  %5443 = vmatpush.msrb.mxu0 %v5408_v46  ;;  %v5461_v46 = vld [vmem:[%s11935_s15] sm:$0xff] }
 0xd35   :  { %v5241_v16 = vsel %vm5239_vm0, %v5236_v24, %v5221_v37 }
 0xd36   :  { %8666 = vmatmul.msk.f32.gmra.mxu3 %vm4346_vm10, %v5241_v16 }
 0xd3d   :  { %v5207_v59 = vpop.permute.xlu2 %5206 }
 0xd3e   :  { %v5237_v2 = vsel %vm5234_vm15, %v5232_v55, %v5207_v59 }
 0xd45   :  { %v5209_v49 = vpop.permute.xlu2 %5208 }
 0xd46   :  { %v5238_v58 = vsel %vm5234_vm15, %v5233_v44, %v5209_v49 }
 0xd4b   :  { %v5223_v56 = vpop.permute.xlu1 %5222 }
 0xd4c   :  { %v5242_v12 = vsel %vm5239_vm0, %v5237_v2, %v5223_v56 }
 0xd4d   :  { %8667 = vmatmul.msk.f32.gmra.mxu3 %vm4346_vm10, %v5242_v12 }
 0xd53   :  { %v5225_v13 = vpop.permute.xlu1 %5224 }
 0xd54   :  { %v5243_v41 = vsel %vm5239_vm0, %v5238_v58, %v5225_v13  ;;  %v11356_v13 = vld [vmem:[#allocation5 + $0x1c] ss:$0 sm:$0xff] }
 0xd55   :  { %8668 = vmatmul.msk.f32.gmra.mxu3 %vm4346_vm10, %v5243_v41 }
 0xdb1   :  { %v5281_v27 = vpop.f32.mrf.mxu3 }
 0xdb2   :  { %v5282_v18 = vadd.f32 %v9296_v4, %v5281_v27 }
 0xdb4   :  { %v5293_v57 = vadd.f32 %v5282_v18, %v10982_v11  ;;  %v9298_v18 = vld [vmem:[#allocation5 + $0x1d] ss:$0 sm:$0xff] }
 0xdb6   :  { %v5299_v47 = vsel %vm4346_vm10, %v5293_v57, 0.0 }
 0xdb7   :  { %5300 = vadd.xlane.f32.xlu0 %v5299_v47 }
 0xdb9   :  { %v5284_v48 = vpop.f32.mrf.mxu3 }
 0xdba   :  { %v5285_v23 = vadd.f32 %v9296_v4, %v5284_v48 }
 0xdbc   :  { %v5294_v29 = vadd.f32 %v5285_v23, %v10990_v9  ;;  %v9385_v9 = vpop.eup %9384 }
 0xdbd   :  { %v5312_v14 = vmul.f32 32.0, %v9385_v9  ;;  %vm5316_vm1 = vweird.f32 %v9385_v9 }
 0xdbe   :  { %v5302_v5 = vsel %vm4346_vm10, %v5294_v29, 0.0 }
 0xdbf   :  { %5303 = vadd.xlane.f32.xlu2 %v5302_v5  ;;  %v5313_v61 = vsub.f32 1.0, %v5312_v14 }
 0xdc1   :  { %v5314_v19 = vmul.f32 %v9385_v9, %v5313_v61  ;;  %v5465_v61 = vld [vmem:[%s11935_s15 + $0x20] sm:$0xff] }
 0xdc3   :  { %v5315_v15 = vadd.f32 %v9385_v9, %v5314_v19 }
 0xdc5   :  { %v11336_v10 = vsel %vm5316_vm1, %v9385_v9, %v5315_v15 }
 0xdd0   :  { %v5287_v45 = vpop.f32.mrf.mxu3 }
 0xdd1   :  { %v5288_v1 = vadd.f32 %v9296_v4, %v5287_v45 }
 0xdd3   :  { %v5295_v35 = vadd.f32 %v5288_v1, %v10984_v32 }
 0xdd5   :  { %v5305_v53 = vsel %vm4346_vm10, %v5295_v35, 0.0 }
 0xdd6   :  { %5306 = vadd.xlane.f32.xlu1 %v5305_v53 }
 0xdd8   :  { %v5290_v26 = vpop.f32.mrf.mxu3 }
 0xdd9   :  { %v5291_v3 = vadd.f32 %v9296_v4, %v5290_v26 }
 0xddb   :  { %v5296_v11 = vadd.f32 %v5291_v3, %v10992_v50 }
 0xddd   :  { %v5308_v22 = vsel %vm4346_vm10, %v5296_v11, 0.0 }
 0xdde   :  { %5309 = vadd.xlane.f32.xlu2 %v5308_v22  ;;  %v5467_v22 = vld [vmem:[%s11935_s15 + $0x30] sm:$0xff] }
 0xe2a   :  { %v5301_v32 = vpop.xlane.xlu0 %5300 }
 0xe2b   :  { %v5318_v0 = vmul.f32 %v11336_v10, %v5301_v32  ;;  %v5464_v32 = vld [vmem:[%s11935_s15 + $0x18] sm:$0xff] }
 0xe2d   :  { %v5322_v60 = vsub.f32 %v5293_v57, %v5318_v0 }
 0xe2f   :  { %v5326_v6 = vmul.f32 %v5322_v60, %v5322_v60 }
 0xe31   :  { %v5330_v50 = vsel %vm4346_vm10, %v5326_v6, 0.0 }
 0xe32   :  { %5331 = vadd.xlane.f32.xlu0 %v5330_v50  ;;  %v5304_v25 = vpop.xlane.xlu2 %5303 }
 0xe33   :  { %v5319_v33 = vmul.f32 %v11336_v10, %v5304_v25 }
 0xe35   :  { %v5323_v52 = vsub.f32 %v5294_v29, %v5319_v33 }
 0xe37   :  { %v5327_v43 = vmul.f32 %v5323_v52, %v5323_v52 }
 0xe39   :  { %v5333_v20 = vsel %vm4346_vm10, %v5327_v43, 0.0 }
 0xe3a   :  { %5334 = vadd.xlane.f32.xlu1 %v5333_v20 }
 0xe49   :  { %v5307_v28 = vpop.xlane.xlu1 %5306 }
 0xe4a   :  { %v5320_v40 = vmul.f32 %v11336_v10, %v5307_v28 }
 0xe4c   :  { %v11343_v38 = vsub.f32 %v5295_v35, %v5320_v40 }
 0xe4e   :  { %v5328_v30 = vmul.f32 %v11343_v38, %v11343_v38 }
 0xe50   :  { %v5336_v51 = vsel %vm4346_vm10, %v5328_v30, 0.0 }
 0xe51   :  { %v5310_v34 = vpop.xlane.xlu2 %5309  ;;  %5337 = vadd.xlane.f32.xlu2 %v5336_v51 }
 0xe52   :  { %v5321_v8 = vmul.f32 %v11336_v10, %v5310_v34 }
 0xe54   :  { %v11349_v17 = vsub.f32 %v5296_v11, %v5321_v8  ;;  %v5468_v11 = vld [vmem:[%s11935_s15 + $0x38] sm:$0xff] }
 0xe55   :  { %5493 = vmatpush.msra.mxu2 %v5468_v11 }
 0xe56   :  { %v5329_v39 = vmul.f32 %v11349_v17, %v11349_v17 }
 0xe57   :  { %5494 = vmatpush.msra.mxu2 %v5467_v22 }
 0xe58   :  { %v5339_v21 = vsel %vm4346_vm10, %v5329_v39, 0.0 }
 0xe59   :  { %5340 = vadd.xlane.f32.xlu0 %v5339_v21  ;;  %5495 = vmatpush.msra.mxu2 %v5466_v31 }
 0xe5b   :  { %5496 = vmatpush.msra.mxu2 %v5465_v61 }
 0xe5d   :  { %5497 = vmatpush.msra.mxu2 %v5464_v32 }
 0xea5   :  { %v5332_v62 = vpop.xlane.xlu0 %5331 }
 0xea6   :  { %v5342_v24 = vmul.f32 %v5332_v62, %v11336_v10 }
 0xea8   :  { %v5346_v37 = vadd.f32 1e-05, %v5342_v24 }
 0xeaa   :  { %9386 = vrsqrt.f32 %v5346_v37  ;;  %vm5356_vm4 = vweird.f32 %v5346_v37 }
 0xead   :  { %v5335_v16 = vpop.xlane.xlu1 %5334 }
 0xeae   :  { %v5343_v42 = vmul.f32 %v5335_v16, %v11336_v10 }
 0xeb0   :  { %v9387_v59 = vpop.eup %9386  ;;  %v5347_v55 = vadd.f32 1e-05, %v5343_v42 }
 0xeb1   :  { %v5351_v2 = vmul.f32 %v9387_v59, %v5346_v37  ;;  %vm5357_vm3 = vweird.f32 %v9387_v59 }
 0xeb2   :  { %9388 = vrsqrt.f32 %v5347_v55  ;;  %vm5358_vm5 = vmor %vm5356_vm4, %vm5357_vm3  ;;  %vm5366_vm7 = vweird.f32 %v5347_v55 }
 0xeb3   :  { %v5352_v56 = vmul.f32 %v9387_v59, %v5351_v2 }
 0xeb5   :  { %v5353_v12 = vmul.f32 0.5, %v5352_v56 }
 0xeb7   :  { %v5354_v7 = vsub.f32 1.5, %v5353_v12 }
 0xeb8   :  { %v9389_v49 = vpop.eup %9388 }
 0xeb9   :  { %v5355_v44 = vmul.f32 %v9387_v59, %v5354_v7  ;;  %v5361_v58 = vmul.f32 %v9389_v49, %v5347_v55  ;;  %vm5367_vm6 = vweird.f32 %v9389_v49 }
 0xeba   :  { %vm5368_vm8 = vmor %vm5366_vm7, %vm5367_vm6 }
 0xebb   :  { %v5359_v41 = vsel %vm5358_vm5, %v9387_v59, %v5355_v44  ;;  %v5362_v4 = vmul.f32 %v9389_v49, %v5361_v58  ;;  %v9300_v44 = vld [vmem:[#allocation5 + $0x1f] ss:$0 sm:$0xff] }
 0xebc   :  { %v5390_v27 = vmul.f32 %v5359_v41, %v5322_v60 }
 0xebd   :  { %v5363_v57 = vmul.f32 0.5, %v5362_v4 }
 0xebe   :  { %v5397_v47 = vmul.f32 %v11356_v13, %v5390_v27 }
 0xebf   :  { %v5364_v48 = vsub.f32 1.5, %v5363_v57 }
 0xec0   :  { %v11359_v23 = vadd.f32 %v9298_v18, %v5397_v47 }
 0xec1   :  { %v5365_v29 = vmul.f32 %v9389_v49, %v5364_v48 }
 0xec2   :  { %8669 = vmatmul.msk.f32.vlgmr.msrb.gmra.mxu0 %vm4346_vm10, %v11359_v23 }
 0xec3   :  { %v5369_v5 = vsel %vm5368_vm8, %v9389_v49, %v5365_v29 }
 0xec4   :  { %v5391_v45 = vmul.f32 %v5369_v5, %v5323_v52  ;;  %v5338_v1 = vpop.xlane.xlu2 %5337 }
 0xec5   :  { %v5344_v35 = vmul.f32 %v5338_v1, %v11336_v10 }
 0xec6   :  { %v5398_v53 = vmul.f32 %v11356_v13, %v5391_v45 }
 0xec7   :  { %v5348_v26 = vadd.f32 1e-05, %v5344_v35 }
 0xec8   :  { %v11365_v3 = vadd.f32 %v9298_v18, %v5398_v53 }
 0xec9   :  { %9390 = vrsqrt.f32 %v5348_v26  ;;  %vm5376_vm11 = vweird.f32 %v5348_v26 }
 0xeca   :  { %8670 = vmatmul.msk.f32.gmra.mxu0 %vm4346_vm10, %v11365_v3 }
 0xecc   :  { %v5341_v9 = vpop.xlane.xlu0 %5340 }
 0xecd   :  { %v5345_v14 = vmul.f32 %v5341_v9, %v11336_v10 }
 0xecf   :  { %v9391_v19 = vpop.eup %9390  ;;  %v5349_v15 = vadd.f32 1e-05, %v5345_v14 }
 0xed0   :  { %v5371_v0 = vmul.f32 %v9391_v19, %v5348_v26  ;;  %vm5377_vm9 = vweird.f32 %v9391_v19 }
 0xed1   :  { %9392 = vrsqrt.f32 %v5349_v15  ;;  %vm5378_vm12 = vmor %vm5376_vm11, %vm5377_vm9  ;;  %vm5386_vm1 = vweird.f32 %v5349_v15 }
 0xed2   :  { %v5372_v60 = vmul.f32 %v9391_v19, %v5371_v0 }
 0xed4   :  { %v5373_v6 = vmul.f32 0.5, %v5372_v60 }
 0xed6   :  { %v5374_v50 = vsub.f32 1.5, %v5373_v6 }
 0xed7   :  { %v9393_v25 = vpop.eup %9392 }
 0xed8   :  { %v5375_v33 = vmul.f32 %v9391_v19, %v5374_v50  ;;  %v5381_v52 = vmul.f32 %v9393_v25, %v5349_v15  ;;  %vm5387_vm13 = vweird.f32 %v9393_v25 }
 0xed9   :  { %vm5388_vm3 = vmor %vm5386_vm1, %vm5387_vm13 }
 0xeda   :  { %v5379_v43 = vsel %vm5378_vm12, %v9391_v19, %v5375_v33  ;;  %v5382_v20 = vmul.f32 %v9393_v25, %v5381_v52 }
 0xedb   :  { %v5392_v28 = vmul.f32 %v5379_v43, %v11343_v38  ;;  %v5463_v38 = vld [vmem:[%s11935_s15 + $0x10] sm:$0xff] }
 0xedc   :  { %v5383_v40 = vmul.f32 0.5, %v5382_v20  ;;  %5498 = vmatpush.msra.mxu2 %v5463_v38 }
 0xedd   :  { %v5399_v30 = vmul.f32 %v11356_v13, %v5392_v28  ;;  %v5626_v28 = vld [vmem:[#allocation13 + $0x38] sm:$0xff] }
 0xede   :  { %v5384_v51 = vsub.f32 1.5, %v5383_v40  ;;  %5499 = vmatpush.msra.mxu2 %v5462_v36  ;;  %5655 = vmatpush.msra.mxu1 %v5626_v28  ;;  %v5625_v40 = vld [vmem:[#allocation13 + $0x30] sm:$0xff] }
 0xedf   :  { %v5406_v34 = vadd.f32 %v9298_v18, %v5399_v30  ;;  %v5624_v30 = vld [vmem:[#allocation13 + $0x28] sm:$0xff] }
 0xee0   :  { %v5385_v8 = vmul.f32 %v9393_v25, %v5384_v51  ;;  %5500 = vmatpush.msra.mxu2 %v5461_v46  ;;  %5656 = vmatpush.msra.mxu1 %v5625_v40  ;;  %v5623_v51 = vld [vmem:[#allocation13 + $0x20] sm:$0xff] }
 0xee1   :  { %8671 = vmatmul.msk.f32.gmra.mxu0 %vm4346_vm10, %v5406_v34 }
 0xee2   :  { %v5389_v39 = vsel %vm5388_vm3, %v9393_v25, %v5385_v8  ;;  %5657 = vmatpush.msra.mxu1 %v5624_v30 }
 0xee3   :  { %v5393_v21 = vmul.f32 %v5389_v39, %v11349_v17  ;;  %v9299_v17 = vld [vmem:[#allocation5 + $0x1e] ss:$0 sm:$0xff] }
 0xee4   :  { %5658 = vmatpush.msra.mxu1 %v5623_v51 }
 0xee5   :  { %v5400_v54 = vmul.f32 %v11356_v13, %v5393_v21 }
 0xee7   :  { %v5407_v63 = vadd.f32 %v9298_v18, %v5400_v54 }
 0xee9   :  { %8672 = vmatmul.msk.f32.gmra.mxu0 %vm4346_vm10, %v5407_v63 }
 0xf3f   :  { %v5445_v62 = vpop.f32.mrf.mxu0 }
 0xf40   :  { %v5446_v24 = vadd.f32 %v9299_v17, %v5445_v62 }
 0xf42   :  { %v5457_v37 = vmax.f32 %v5446_v24, 0.0 }
 0xf44   :  { %8673 = vmatmul.msk.f32.vlgmr.msra.gmra.mxu2 %vm342_vm2, %v5457_v37 }
 0xf47   :  { %v5448_v16 = vpop.f32.mrf.mxu0 }
 0xf48   :  { %v5449_v42 = vadd.f32 %v9299_v17, %v5448_v16 }
 0xf4a   :  { %v5458_v59 = vmax.f32 %v5449_v42, 0.0  ;;  %v9301_v42 = vld [vmem:[#allocation5 + $0x20] ss:$0 sm:$0xff] }
 0xf4c   :  { %8674 = vmatmul.msk.f32.gmra.mxu2 %vm342_vm2, %v5458_v59 }
 0xf5e   :  { %v5451_v55 = vpop.f32.mrf.mxu0 }
 0xf5f   :  { %v5452_v2 = vadd.f32 %v9299_v17, %v5451_v55 }
 0xf61   :  { %v5459_v56 = vmax.f32 %v5452_v2, 0.0 }
 0xf63   :  { %8675 = vmatmul.msk.f32.gmra.mxu2 %vm342_vm2, %v5459_v56  ;;  %v9302_v56 = vld [vmem:[#allocation5 + $0x21] ss:$0 sm:$0xff] }
 0xf66   :  { %v5454_v12 = vpop.f32.mrf.mxu0 }
 0xf67   :  { %v5455_v7 = vadd.f32 %v9299_v17, %v5454_v12 }
 0xf69   :  { %v5460_v49 = vmax.f32 %v5455_v7, 0.0 }
 0xf6b   :  { %8676 = vmatmul.msk.f32.gmra.mxu2 %vm342_vm2, %v5460_v49 }
 0xfc7   :  { %v5502_v58 = vpop.f32.mrf.mxu2 }
 0xfc8   :  { %v5503_v13 = vadd.f32 %v9300_v44, %v5502_v58 }
 0xfca   :  { %v5514_v41 = vadd.f32 %v5503_v13, %v11359_v23 }
 0xfcc   :  { %v5520_v4 = vsel %vm4346_vm10, %v5514_v41, 0.0 }
 0xfcd   :  { %5521 = vadd.xlane.f32.xlu1 %v5520_v4 }
 0xfcf   :  { %v5505_v27 = vpop.f32.mrf.mxu2 }
 0xfd0   :  { %v5506_v18 = vadd.f32 %v9300_v44, %v5505_v27 }
 0xfd2   :  { %v5515_v57 = vadd.f32 %v5506_v18, %v11365_v3 }
 0xfd4   :  { %v5523_v47 = vsel %vm4346_vm10, %v5515_v57, 0.0 }
 0xfd5   :  { %5524 = vadd.xlane.f32.xlu2 %v5523_v47 }
 0xfe6   :  { %v5508_v48 = vpop.f32.mrf.mxu2 }
 0xfe7   :  { %v5509_v29 = vadd.f32 %v9300_v44, %v5508_v48 }
 0xfe9   :  { %v5516_v5 = vadd.f32 %v5509_v29, %v5406_v34 }
 0xfeb   :  { %v5526_v45 = vsel %vm4346_vm10, %v5516_v5, 0.0 }
 0xfec   :  { %5527 = vadd.xlane.f32.xlu0 %v5526_v45 }
 0xfee   :  { %v5511_v1 = vpop.f32.mrf.mxu2 }
 0xfef   :  { %v5512_v35 = vadd.f32 %v9300_v44, %v5511_v1 }
 0xff1   :  { %v5517_v53 = vadd.f32 %v5512_v35, %v5407_v63 }
 0xff3   :  { %v5529_v23 = vsel %vm4346_vm10, %v5517_v53, 0.0 }
 0xff4   :  { %5530 = vadd.xlane.f32.xlu1 %v5529_v23 }
0x1040   :  { %v5522_v26 = vpop.xlane.xlu1 %5521 }
0x1041   :  { %v5532_v11 = vmul.f32 %v5522_v26, %v11336_v10 }
0x1043   :  { %v5536_v22 = vsub.f32 %v5514_v41, %v5532_v11 }
0x1045   :  { %v5540_v3 = vmul.f32 %v5536_v22, %v5536_v22 }
0x1047   :  { %v5544_v31 = vsel %vm4346_vm10, %v5540_v3, 0.0 }
0x1048   :  { %v5525_v9 = vpop.xlane.xlu2 %5524  ;;  %5545 = vadd.xlane.f32.xlu2 %v5544_v31 }
0x1049   :  { %v5533_v14 = vmul.f32 %v5525_v9, %v11336_v10 }
0x104b   :  { %v5537_v61 = vsub.f32 %v5515_v57, %v5533_v14 }
0x104d   :  { %v5541_v19 = vmul.f32 %v5537_v61, %v5537_v61 }
0x104f   :  { %v5547_v15 = vsel %vm4346_vm10, %v5541_v19, 0.0 }
0x1050   :  { %5548 = vadd.xlane.f32.xlu0 %v5547_v15 }
0x105f   :  { %v5528_v32 = vpop.xlane.xlu0 %5527 }
0x1060   :  { %v5534_v0 = vmul.f32 %v5528_v32, %v11336_v10 }
0x1062   :  { %v11415_v60 = vsub.f32 %v5516_v5, %v5534_v0 }
0x1064   :  { %v5542_v6 = vmul.f32 %v11415_v60, %v11415_v60 }
0x1066   :  { %v5550_v50 = vsel %vm4346_vm10, %v5542_v6, 0.0 }
0x1067   :  { %5551 = vadd.xlane.f32.xlu1 %v5550_v50  ;;  %v5531_v25 = vpop.xlane.xlu1 %5530 }
0x1068   :  { %v5535_v33 = vmul.f32 %v5531_v25, %v11336_v10 }
0x106a   :  { %v11421_v52 = vsub.f32 %v5517_v53, %v5535_v33 }
0x106c   :  { %v5543_v43 = vmul.f32 %v11421_v52, %v11421_v52 }
0x106e   :  { %v5553_v20 = vsel %vm4346_vm10, %v5543_v43, 0.0  ;;  %v9303_v43 = vld [vmem:[#allocation5 + $0x22] ss:$0 sm:$0xff] }
0x106f   :  { %5554 = vadd.xlane.f32.xlu2 %v5553_v20 }
0x10bb   :  { %v5546_v34 = vpop.xlane.xlu2 %5545 }
0x10bc   :  { %v5556_v8 = vmul.f32 %v5546_v34, %v11336_v10 }
0x10be   :  { %v5560_v39 = vadd.f32 1e-05, %v5556_v8 }
0x10c0   :  { %9394 = vrsqrt.f32 %v5560_v39  ;;  %vm5570_vm5 = vweird.f32 %v5560_v39 }
0x10c3   :  { %v5549_v21 = vpop.xlane.xlu0 %5548 }
0x10c4   :  { %v5557_v54 = vmul.f32 %v5549_v21, %v11336_v10 }
0x10c6   :  { %v9395_v63 = vpop.eup %9394  ;;  %v5561_v38 = vadd.f32 1e-05, %v5557_v54 }
0x10c7   :  { %v5565_v36 = vmul.f32 %v9395_v63, %v5560_v39  ;;  %vm5571_vm4 = vweird.f32 %v9395_v63 }
0x10c8   :  { %9396 = vrsqrt.f32 %v5561_v38  ;;  %vm5572_vm6 = vmor %vm5570_vm5, %vm5571_vm4  ;;  %vm5580_vm8 = vweird.f32 %v5561_v38 }
0x10c9   :  { %v5566_v46 = vmul.f32 %v9395_v63, %v5565_v36 }
0x10cb   :  { %v5567_v17 = vmul.f32 0.5, %v5566_v46 }
0x10cd   :  { %v5568_v62 = vsub.f32 1.5, %v5567_v17 }
0x10ce   :  { %v9397_v24 = vpop.eup %9396 }
0x10cf   :  { %v5569_v37 = vmul.f32 %v9395_v63, %v5568_v62  ;;  %v5575_v16 = vmul.f32 %v9397_v24, %v5561_v38  ;;  %vm5581_vm7 = vweird.f32 %v9397_v24 }
0x10d0   :  { %vm5582_vm9 = vmor %vm5580_vm8, %vm5581_vm7 }
0x10d1   :  { %v5573_v59 = vsel %vm5572_vm6, %v9395_v63, %v5569_v37  ;;  %v5576_v55 = vmul.f32 %v9397_v24, %v5575_v16 }
0x10d2   :  { %v5604_v2 = vmul.f32 %v5573_v59, %v5536_v22 }
0x10d3   :  { %v5577_v12 = vmul.f32 0.5, %v5576_v55 }
0x10d4   :  { %v5611_v7 = vmul.f32 %v9301_v42, %v5604_v2 }
0x10d5   :  { %v5578_v49 = vsub.f32 1.5, %v5577_v12 }
0x10d6   :  { %v11428_v44 = vadd.f32 %v9302_v56, %v5611_v7 }
0x10d7   :  { %v5579_v58 = vmul.f32 %v9397_v24, %v5578_v49 }
0x10d8   :  { %8677 = vmatmul.msk.f32.vlgmr.msra.gmra.mxu1 %vm4346_vm10, %v11428_v44 }
0x10d9   :  { %v5583_v13 = vsel %vm5582_vm9, %v9397_v24, %v5579_v58 }
0x10da   :  { %v5552_v41 = vpop.xlane.xlu1 %5551  ;;  %v5605_v4 = vmul.f32 %v5583_v13, %v5537_v61 }
0x10db   :  { %v5558_v27 = vmul.f32 %v5552_v41, %v11336_v10 }
0x10dc   :  { %v5612_v18 = vmul.f32 %v9301_v42, %v5605_v4 }
0x10dd   :  { %v5562_v57 = vadd.f32 1e-05, %v5558_v27 }
0x10de   :  { %v11433_v47 = vadd.f32 %v9302_v56, %v5612_v18 }
0x10df   :  { %9398 = vrsqrt.f32 %v5562_v57  ;;  %vm5590_vm12 = vweird.f32 %v5562_v57 }
0x10e0   :  { %8678 = vmatmul.msk.f32.gmra.mxu1 %vm4346_vm10, %v11433_v47 }
0x10e2   :  { %v5555_v48 = vpop.xlane.xlu2 %5554 }
0x10e3   :  { %v5559_v29 = vmul.f32 %v5555_v48, %v11336_v10 }
0x10e5   :  { %v9399_v5 = vpop.eup %9398  ;;  %v5563_v45 = vadd.f32 1e-05, %v5559_v29 }
0x10e6   :  { %v5585_v1 = vmul.f32 %v9399_v5, %v5562_v57  ;;  %vm5591_vm11 = vweird.f32 %v9399_v5 }
0x10e7   :  { %9400 = vrsqrt.f32 %v5563_v45  ;;  %vm5592_vm13 = vmor %vm5590_vm12, %vm5591_vm11  ;;  %vm5600_vm3 = vweird.f32 %v5563_v45 }
0x10e8   :  { %v5586_v35 = vmul.f32 %v9399_v5, %v5585_v1 }
0x10ea   :  { %v5587_v53 = vmul.f32 0.5, %v5586_v35 }
0x10ec   :  { %v5588_v23 = vsub.f32 1.5, %v5587_v53 }
0x10ed   :  { %v9401_v26 = vpop.eup %9400 }
0x10ee   :  { %v5589_v11 = vmul.f32 %v9399_v5, %v5588_v23  ;;  %v5595_v22 = vmul.f32 %v9401_v26, %v5563_v45  ;;  %vm5601_vm1 = vweird.f32 %v9401_v26 }
0x10ef   :  { %vm5602_vm4 = vmor %vm5600_vm3, %vm5601_vm1 }
0x10f0   :  { %v5593_v3 = vsel %vm5592_vm13, %v9399_v5, %v5589_v11  ;;  %v5596_v31 = vmul.f32 %v9401_v26, %v5595_v22 }
0x10f1   :  { %v5606_v9 = vmul.f32 %v5593_v3, %v11415_v60 }
0x10f2   :  { %v5597_v14 = vmul.f32 0.5, %v5596_v31 }
0x10f3   :  { %v5613_v61 = vmul.f32 %v9301_v42, %v5606_v9 }
0x10f4   :  { %v5598_v19 = vsub.f32 1.5, %v5597_v14 }
0x10f5   :  { %v11439_v15 = vadd.f32 %v9302_v56, %v5613_v61 }
0x10f6   :  { %v5599_v32 = vmul.f32 %v9401_v26, %v5598_v19 }
0x10f7   :  { %8679 = vmatmul.msk.f32.gmra.mxu1 %vm4346_vm10, %v11439_v15 }
0x10f8   :  { %v5603_v0 = vsel %vm5602_vm4, %v9401_v26, %v5599_v32 }
0x10f9   :  { %v5607_v6 = vmul.f32 %v5603_v0, %v11421_v52 }
0x10fb   :  { %v5614_v50 = vmul.f32 %v9301_v42, %v5607_v6 }
0x10fd   :  { %v11444_v25 = vadd.f32 %v9302_v56, %v5614_v50 }
0x10ff   :  { %8680 = vmatmul.msk.f32.gmra.mxu1 %vm4346_vm10, %v11444_v25 }
0x1155   :  { %v5660_v60 = vpop.f32.mrf.mxu1 }
0x1156   :  { %v5661_v51 = vadd.f32 %v9303_v43, %v5660_v60 }
0x115d   :  { %v5663_v33 = vpop.f32.mrf.mxu1 }
0x115e   :  { %v5664_v30 = vadd.f32 %v9303_v43, %v5663_v33 }
0x1160   :  { %v11500_v8 = vpack.i.bf16 %v5661_v51, %v5664_v30 }
0x1174   :  { %v5666_v20 = vpop.f32.mrf.mxu1 }
0x1175   :  { %v11448_v28 = vadd.f32 %v9303_v43, %v5666_v20 }
0x1177   :  { %5842 = vrot.lane.b32.xlu0 %v11448_v28, %s9809_s16  ;;  %5680 = vrot.lane.b32.xlu2 %v11448_v28, %s9808_s10 }
0x117c   :  { %v5669_v40 = vpop.f32.mrf.mxu1 }
0x117d   :  { %v11454_v52 = vadd.f32 %v9303_v43, %v5669_v40 }
0x117f   :  { %5844 = vrot.lane.b32.xlu1 %v11454_v52, %s9809_s16  ;;  %5682 = vrot.lane.b32.xlu0 %v11454_v52, %s9808_s10  ;;  %v11492_v34 = vpack.i.bf16 %v11448_v28, %v11454_v52 }
0x1180   :  { %5840 = vrot.lane.b32.xlu2 %v5664_v30, %s9809_s16 }
0x1187   :  { %5676 = vrot.lane.b32.xlu1 %v5661_v51, %s9808_s10  ;;  %5678 = vrot.lane.b32.xlu0 %v5664_v30, %s9808_s10 }
0x1188   :  { %5830 = vrot.lane.b32.xlu2 %v5661_v51, %s9810_s17 }
0x118f   :  { %5832 = vrot.lane.b32.xlu1 %v5664_v30, %s9810_s17  ;;  %5838 = vrot.lane.b32.xlu0 %v5661_v51, %s9809_s16 }
0x1190   :  { %6166 = vrot.lane.b32.xlu2 %v11448_v28, %s9812_s20 }
0x1197   :  { %6000 = vrot.lane.b32.xlu1 %v5661_v51, %s9811_s21  ;;  %5834 = vrot.lane.b32.xlu0 %v11448_v28, %s9810_s17 }
0x1198   :  { %6006 = vrot.lane.b32.xlu2 %v11454_v52, %s9811_s21 }
0x119f   :  { %6168 = vrot.lane.b32.xlu1 %v11454_v52, %s9812_s20  ;;  %6004 = vrot.lane.b32.xlu0 %v11448_v28, %s9811_s21 }
0x11a0   :  { %6164 = vrot.lane.b32.xlu2 %v5664_v30, %s9812_s20 }
0x11a7   :  { %5836 = vrot.lane.b32.xlu1 %v11454_v52, %s9810_s17  ;;  %6002 = vrot.lane.b32.xlu0 %v5664_v30, %s9811_s21 }
0x11a8   :  { %5992 = vrot.lane.b32.xlu2 %v5661_v51, %s9813_s4 }
0x11af   :  { %6154 = vrot.lane.b32.xlu1 %v5661_v51, %s9814_s12  ;;  %6162 = vrot.lane.b32.xlu0 %v5661_v51, %s9812_s20 }
0x11b0   :  { %6156 = vrot.lane.b32.xlu2 %v5664_v30, %s9814_s12 }
0x11b7   :  { %5996 = vrot.lane.b32.xlu1 %v11448_v28, %s9813_s4  ;;  %5994 = vrot.lane.b32.xlu0 %v5664_v30, %s9813_s4 }
0x11b8   :  { %5998 = vrot.lane.b32.xlu2 %v11454_v52, %s9813_s4 }
0x11bf   :  { %6160 = vrot.lane.b32.xlu1 %v11454_v52, %s9814_s12  ;;  %6158 = vrot.lane.b32.xlu0 %v11448_v28, %s9814_s12 }
0x11c0   :  { %9256 = vrot.lane.b32.xlu2 %v11492_v34, %s9815_s25 }
0x11c7   :  { %9251 = vrot.lane.b32.xlu1 %v11500_v8, %s9816_s7  ;;  %9246 = vrot.lane.b32.xlu0 %v11500_v8, %s9815_s25 }
0x11cf   :  { %9261 = vrot.lane.b32.xlu1 %v11492_v34, %s9816_s7 }
0x11d1   :  { %v5681_v39 = vpop.permute.xlu2 %5680 }
0x11da   :  { %v5841_v21 = vpop.permute.xlu2 %5840 }
0x11e2   :  { %v5831_v54 = vpop.permute.xlu2 %5830 }
0x11e9   :  { %v5843_v63 = vpop.permute.xlu0 %5842 }
0x11ea   :  { %v6167_v38 = vpop.permute.xlu2 %6166 }
0x11f1   :  { %v5845_v36 = vpop.permute.xlu1 %5844  ;;  %v5683_v46 = vpop.permute.xlu0 %5682 }
0x11f2   :  { %v6007_v17 = vpop.permute.xlu2 %6006  ;;  %8681 = vmatpush.xpose.msk.msrb.mxu3 %vm4549_vm14, %v5683_v46  ;;  %8693 = vmatpush.xpose.msk.msrb.mxu2 %vm4549_vm14, %v5845_v36 }
0x11f6   :  { %8682 = vmatpush.xpose.msk.msrb.mxu3 %vm4549_vm14, %v5681_v39  ;;  %8694 = vmatpush.xpose.msk.msrb.mxu2 %vm4549_vm14, %v5843_v63 }
0x11f9   :  { %v5677_v62 = vpop.permute.xlu1 %5676  ;;  %v5679_v24 = vpop.permute.xlu0 %5678 }
0x11fa   :  { %v6165_v37 = vpop.permute.xlu2 %6164  ;;  %8683 = vmatpush.xpose.msk.msrb.mxu3 %vm4549_vm14, %v5679_v24  ;;  %8695 = vmatpush.xpose.msk.msrb.mxu2 %vm4549_vm14, %v5841_v21 }
0x11fe   :  { %8684 = vmatpush.xpose.msk.msrb.mxu3 %vm4549_vm14, %v5677_v62 }
0x1201   :  { %v5833_v16 = vpop.permute.xlu1 %5832  ;;  %v5839_v42 = vpop.permute.xlu0 %5838  ;;  %8685 = vmatmul.msk.f32.vlgmr.msrb.gmra.mxu3 %vm4549_vm14, %v5661_v51 }
0x1202   :  { %8705 = vmatpush.xpose.msk.msra.mxu3 %vm4549_vm14, %v6007_v17  ;;  %v5993_v59 = vpop.permute.xlu2 %5992  ;;  %8696 = vmatpush.xpose.msk.msrb.mxu2 %vm4549_vm14, %v5839_v42 }
0x1205   :  { %8697 = vmatmul.msk.f32.vlgmr.msrb.gmra.mxu2 %vm4549_vm14, %v5831_v54 }
0x1209   :  { %v6001_v55 = vpop.permute.xlu1 %6000  ;;  %v5835_v2 = vpop.permute.xlu0 %5834  ;;  %8686 = vmatmul.msk.f32.gmra.mxu3 %vm4549_vm14, %v5664_v30 }
0x120a   :  { %v6157_v56 = vpop.permute.xlu2 %6156 }
0x120d   :  { %8698 = vmatmul.msk.f32.gmra.mxu2 %vm4549_vm14, %v5833_v16 }
0x1211   :  { %v6169_v12 = vpop.permute.xlu1 %6168  ;;  %v6005_v7 = vpop.permute.xlu0 %6004  ;;  %8687 = vmatmul.msk.f32.gmra.mxu3 %vm4549_vm14, %v11448_v28 }
0x1212   :  { %v5999_v49 = vpop.permute.xlu2 %5998  ;;  %8706 = vmatpush.xpose.msk.msra.mxu3 %vm4549_vm14, %v6005_v7  ;;  %8717 = vmatpush.xpose.msk.msra.mxu2 %vm4549_vm14, %v6169_v12 }
0x1215   :  { %8699 = vmatmul.msk.f32.gmra.mxu2 %vm4549_vm14, %v5835_v2 }
0x1216   :  { %8718 = vmatpush.xpose.msk.msra.mxu2 %vm4549_vm14, %v6167_v38 }
0x1219   :  { %v5837_v58 = vpop.permute.xlu1 %5836  ;;  %v6003_v13 = vpop.permute.xlu0 %6002  ;;  %8688 = vmatmul.msk.f32.gmra.mxu3 %vm4549_vm14, %v11454_v52 }
0x121a   :  { %v9257_v41 = vpop.permute.xlu2 %9256  ;;  %8707 = vmatpush.xpose.msk.msra.mxu3 %vm4549_vm14, %v6003_v13  ;;  %8719 = vmatpush.xpose.msk.msra.mxu2 %vm4549_vm14, %v6165_v37 }
0x121b   :  { %v9258_v4 = vunpack.i.l.bf16 %v9257_v41  ;;  %v9259_v27 = vunpack.i.h.bf16 %v9257_v41 }
0x121d   :  { %5813 = vmatpush.msra.mxu0 %v9258_v4  ;;  %8700 = vmatmul.msk.f32.gmra.mxu2 %vm4549_vm14, %v5837_v58 }
0x121e   :  { %8708 = vmatpush.xpose.msk.msra.mxu3 %vm4549_vm14, %v6001_v55 }
0x121f   :  { %5814 = vmatpush.msra.mxu0 %v9259_v27 }
0x1221   :  { %v6155_v18 = vpop.permute.xlu1 %6154  ;;  %v6163_v57 = vpop.permute.xlu0 %6162  ;;  %8709 = vmatmul.msk.f32.vlgmr.msra.gmra.mxu3 %vm4549_vm14, %v5993_v59 }
0x1222   :  { %8720 = vmatpush.xpose.msk.msra.mxu2 %vm4549_vm14, %v6163_v57 }
0x1225   :  { %8721 = vmatmul.msk.f32.vlgmr.msra.gmra.mxu2 %vm4549_vm14, %v6155_v18 }
0x1229   :  { %v5997_v48 = vpop.permute.xlu1 %5996  ;;  %v5995_v29 = vpop.permute.xlu0 %5994 }
0x122a   :  { %8710 = vmatmul.msk.f32.gmra.mxu3 %vm4549_vm14, %v5995_v29 }
0x122d   :  { %8722 = vmatmul.msk.f32.gmra.mxu2 %vm4549_vm14, %v6157_v56 }
0x1231   :  { %v6161_v5 = vpop.permute.xlu1 %6160  ;;  %v6159_v45 = vpop.permute.xlu0 %6158 }
0x1232   :  { %8711 = vmatmul.msk.f32.gmra.mxu3 %vm4549_vm14, %v5997_v48 }
0x1235   :  { %8723 = vmatmul.msk.f32.gmra.mxu2 %vm4549_vm14, %v6159_v45 }
0x1239   :  { %v9252_v1 = vpop.permute.xlu1 %9251  ;;  %v9247_v35 = vpop.permute.xlu0 %9246 }
0x123a   :  { %v9248_v53 = vunpack.i.l.bf16 %v9247_v35  ;;  %8712 = vmatmul.msk.f32.gmra.mxu3 %vm4549_vm14, %v5999_v49  ;;  %v9249_v23 = vunpack.i.h.bf16 %v9247_v35  ;;  %v9253_v3 = vunpack.i.l.bf16 %v9252_v1  ;;  %v9254_v31 = vunpack.i.h.bf16 %v9252_v1 }
0x123c   :  { %5815 = vmatpush.msra.mxu0 %v9248_v53 }
0x123d   :  { %8724 = vmatmul.msk.f32.gmra.mxu2 %vm4549_vm14, %v6161_v5 }
0x123e   :  { %5816 = vmatpush.msra.mxu0 %v9249_v23 }
0x1241   :  { %v9262_v26 = vpop.permute.xlu1 %9261 }
0x1242   :  { %v9263_v11 = vunpack.i.l.bf16 %v9262_v26  ;;  %v9264_v22 = vunpack.i.h.bf16 %v9262_v26 }
0x1244   :  { %5975 = vmatpush.msrb.mxu1 %v9263_v11 }
0x1246   :  { %5976 = vmatpush.msrb.mxu1 %v9264_v22 }
0x1248   :  { %5977 = vmatpush.msrb.mxu1 %v9253_v3 }
0x124a   :  { %5978 = vmatpush.msrb.mxu1 %v9254_v31 }
0x1284   :  { %v5717_v9 = vpop.f32.mrf.mxu3 }
0x1285   :  { %v11542_v14 = vmul.f32 0.35355338, %v5717_v9 }
0x1287   :  { %v5733_v61 = vsel %vm4346_vm10, %v11542_v14, -inf }
0x1288   :  { %5734 = vmax.xlane.f32.xlu0 %v5733_v61  ;;  %v5879_v19 = vpop.f32.mrf.mxu2 }
0x1289   :  { %v11546_v32 = vmul.f32 0.35355338, %v5879_v19 }
0x128b   :  { %v5895_v0 = vsel %vm4346_vm10, %v11546_v32, -inf }
0x128c   :  { %v5720_v6 = vpop.f32.mrf.mxu3  ;;  %5896 = vmax.xlane.f32.xlu2 %v5895_v0 }
0x128d   :  { %v11550_v50 = vmul.f32 0.35355338, %v5720_v6 }
0x128f   :  { %v5736_v60 = vsel %vm4346_vm10, %v11550_v50, -inf }
0x1290   :  { %5737 = vmax.xlane.f32.xlu1 %v5736_v60  ;;  %v5882_v33 = vpop.f32.mrf.mxu2 }
0x1291   :  { %v11554_v43 = vmul.f32 0.35355338, %v5882_v33 }
0x1293   :  { %v5898_v20 = vsel %vm4346_vm10, %v11554_v43, -inf }
0x1294   :  { %v5723_v28 = vpop.f32.mrf.mxu3  ;;  %5899 = vmax.xlane.f32.xlu0 %v5898_v20 }
0x1295   :  { %v11558_v40 = vmul.f32 0.35355338, %v5723_v28 }
0x1297   :  { %v5739_v52 = vsel %vm4346_vm10, %v11558_v40, -inf }
0x1298   :  { %5740 = vmax.xlane.f32.xlu2 %v5739_v52  ;;  %v5885_v30 = vpop.f32.mrf.mxu2 }
0x1299   :  { %v11562_v51 = vmul.f32 0.35355338, %v5885_v30 }
0x129b   :  { %v5901_v39 = vsel %vm4346_vm10, %v11562_v51, -inf }
0x129c   :  { %v5726_v21 = vpop.f32.mrf.mxu3  ;;  %5902 = vmax.xlane.f32.xlu1 %v5901_v39 }
0x129d   :  { %v11566_v54 = vmul.f32 0.35355338, %v5726_v21 }
0x129f   :  { %v5742_v63 = vsel %vm4346_vm10, %v11566_v54, -inf }
0x12a0   :  { %5743 = vmax.xlane.f32.xlu0 %v5742_v63  ;;  %v5888_v38 = vpop.f32.mrf.mxu2 }
0x12a1   :  { %v11570_v36 = vmul.f32 0.35355338, %v5888_v38 }
0x12a3   :  { %v5904_v46 = vsel %vm4346_vm10, %v11570_v36, -inf }
0x12a4   :  { %5905 = vmax.xlane.f32.xlu2 %v5904_v46  ;;  %v6041_v17 = vpop.f32.mrf.mxu3 }
0x12a5   :  { %v11574_v62 = vmul.f32 0.35355338, %v6041_v17 }
0x12a7   :  { %v6057_v24 = vsel %vm4346_vm10, %v11574_v62, -inf }
0x12a8   :  { %v6203_v37 = vpop.f32.mrf.mxu2  ;;  %6058 = vmax.xlane.f32.xlu1 %v6057_v24 }
0x12a9   :  { %v11578_v16 = vmul.f32 0.35355338, %v6203_v37 }
0x12ab   :  { %v6219_v42 = vsel %vm4346_vm10, %v11578_v16, -inf }
0x12ac   :  { %6220 = vmax.xlane.f32.xlu0 %v6219_v42 }
0x12ad   :  { %v6044_v59 = vpop.f32.mrf.mxu3 }
0x12ae   :  { %v11582_v55 = vmul.f32 0.35355338, %v6044_v59 }
0x12b0   :  { %v6206_v2 = vpop.f32.mrf.mxu2  ;;  %v6060_v56 = vsel %vm4346_vm10, %v11582_v55, -inf }
0x12b1   :  { %v11586_v12 = vmul.f32 0.35355338, %v6206_v2  ;;  %6061 = vmax.xlane.f32.xlu2 %v6060_v56 }
0x12b3   :  { %v6222_v7 = vsel %vm4346_vm10, %v11586_v12, -inf }
0x12b4   :  { %6223 = vmax.xlane.f32.xlu1 %v6222_v7 }
0x12b5   :  { %v6047_v49 = vpop.f32.mrf.mxu3 }
0x12b6   :  { %v11590_v58 = vmul.f32 0.35355338, %v6047_v49 }
0x12b8   :  { %v6209_v13 = vpop.f32.mrf.mxu2  ;;  %v6063_v41 = vsel %vm4346_vm10, %v11590_v58, -inf }
0x12b9   :  { %v11594_v4 = vmul.f32 0.35355338, %v6209_v13  ;;  %6064 = vmax.xlane.f32.xlu0 %v6063_v41 }
0x12bb   :  { %v6225_v27 = vsel %vm4346_vm10, %v11594_v4, -inf }
0x12bc   :  { %6226 = vmax.xlane.f32.xlu2 %v6225_v27 }
0x12bd   :  { %v6050_v18 = vpop.f32.mrf.mxu3 }
0x12be   :  { %v11598_v57 = vmul.f32 0.35355338, %v6050_v18 }
0x12c0   :  { %v6066_v48 = vsel %vm4346_vm10, %v11598_v57, -inf  ;;  %v6212_v29 = vpop.f32.mrf.mxu2 }
0x12c1   :  { %6067 = vmax.xlane.f32.xlu0 %v6066_v48  ;;  %v11602_v5 = vmul.f32 0.35355338, %v6212_v29 }
0x12c3   :  { %v6228_v45 = vsel %vm4346_vm10, %v11602_v5, -inf }
0x12c9   :  { %6229 = vmax.xlane.f32.xlu0 %v6228_v45 }
0x12fb   :  { %v5735_v1 = vpop.xlane.xlu0 %5734 }
0x12fc   :  { %v5745_v35 = vsub.f32 %v11542_v14, %v5735_v1 }
0x12fe   :  { %v5749_v53 = vmul.f32 1.442695, %v5745_v35 }
0x12ff   :  { %v5897_v23 = vpop.xlane.xlu2 %5896 }
0x1300   :  { %9402 = vpow2.f32 %v5749_v53  ;;  %v5907_v26 = vsub.f32 %v11546_v32, %v5897_v23 }
0x1302   :  { %v5911_v11 = vmul.f32 1.442695, %v5907_v26 }
0x1303   :  { %v5738_v22 = vpop.xlane.xlu1 %5737 }
0x1304   :  { %9404 = vpow2.f32 %v5911_v11  ;;  %v5746_v3 = vsub.f32 %v11550_v50, %v5738_v22 }
0x1306   :  { %v11609_v31 = vpop.eup %9402  ;;  %v5751_v9 = vmul.f32 1.442695, %v5746_v3 }
0x1307   :  { %v5900_v61 = vpop.xlane.xlu0 %5899  ;;  %v5757_v19 = vsel %vm4346_vm10, %v11609_v31, 0.0 }
0x1308   :  { %9406 = vpow2.f32 %v5751_v9  ;;  %v5908_v14 = vsub.f32 %v11554_v43, %v5900_v61  ;;  %5758 = vadd.xlane.f32.xlu1 %v5757_v19 }
0x130a   :  { %v11614_v0 = vpop.eup %9404  ;;  %v5913_v6 = vmul.f32 1.442695, %v5908_v14 }
0x130b   :  { %v5741_v32 = vpop.xlane.xlu2 %5740  ;;  %v5919_v60 = vsel %vm4346_vm10, %v11614_v0, 0.0 }
0x130c   :  { %9408 = vpow2.f32 %v5913_v6  ;;  %v5747_v50 = vsub.f32 %v11558_v40, %v5741_v32  ;;  %5920 = vadd.xlane.f32.xlu0 %v5919_v60 }
0x130e   :  { %v11619_v33 = vpop.eup %9406  ;;  %v5753_v20 = vmul.f32 1.442695, %v5747_v50 }
0x130f   :  { %v5903_v28 = vpop.xlane.xlu1 %5902  ;;  %v5760_v52 = vsel %vm4346_vm10, %v11619_v33, 0.0 }
0x1310   :  { %9410 = vpow2.f32 %v5753_v20  ;;  %v5909_v43 = vsub.f32 %v11562_v51, %v5903_v28  ;;  %5761 = vadd.xlane.f32.xlu2 %v5760_v52 }
0x1312   :  { %v11624_v30 = vpop.eup %9408  ;;  %v5915_v39 = vmul.f32 1.442695, %v5909_v43 }
0x1313   :  { %v5744_v21 = vpop.xlane.xlu0 %5743  ;;  %v5922_v63 = vsel %vm4346_vm10, %v11624_v30, 0.0 }
0x1314   :  { %9412 = vpow2.f32 %v5915_v39  ;;  %v5748_v40 = vsub.f32 %v11566_v54, %v5744_v21  ;;  %5923 = vadd.xlane.f32.xlu1 %v5922_v63 }
0x1316   :  { %v11629_v38 = vpop.eup %9410  ;;  %v5755_v46 = vmul.f32 1.442695, %v5748_v40 }
0x1317   :  { %v5906_v17 = vpop.xlane.xlu2 %5905  ;;  %v5763_v24 = vsel %vm4346_vm10, %v11629_v38, 0.0 }
0x1318   :  { %v5910_v51 = vsub.f32 %v11570_v36, %v5906_v17  ;;  %5764 = vadd.xlane.f32.xlu0 %v5763_v24  ;;  %9414 = vpow2.f32 %v5755_v46 }
0x131a   :  { %v11634_v37 = vpop.eup %9412  ;;  %v5917_v42 = vmul.f32 1.442695, %v5910_v51 }
0x131b   :  { %v6059_v59 = vpop.xlane.xlu1 %6058  ;;  %v5925_v2 = vsel %vm4346_vm10, %v11634_v37, 0.0 }
0x131c   :  { %9416 = vpow2.f32 %v5917_v42  ;;  %v6069_v54 = vsub.f32 %v11574_v62, %v6059_v59  ;;  %5926 = vadd.xlane.f32.xlu2 %v5925_v2 }
0x131e   :  { %v6073_v56 = vmul.f32 1.442695, %v6069_v54  ;;  %v11639_v7 = vpop.eup %9414 }
0x131f   :  { %v5766_v36 = vsel %vm4346_vm10, %v11639_v7, 0.0  ;;  %v6221_v27 = vpop.xlane.xlu0 %6220 }
0x1320   :  { %9418 = vpow2.f32 %v6073_v56  ;;  %v6231_v18 = vsub.f32 %v11578_v16, %v6221_v27 }
0x1322   :  { %v11641_v49 = vpop.eup %9416  ;;  %v6235_v48 = vmul.f32 1.442695, %v6231_v18 }
0x1323   :  { %v5928_v13 = vsel %vm4346_vm10, %v11641_v49, 0.0 }
0x1324   :  { %5767 = vadd.xlane.f32.xlu2 %v5766_v36  ;;  %5929 = vadd.xlane.f32.xlu1 %v5928_v13  ;;  %9420 = vpow2.f32 %v6235_v48  ;;  %v6062_v1 = vpop.xlane.xlu2 %6061 }
0x1325   :  { %v6070_v35 = vsub.f32 %v11582_v55, %v6062_v1 }
0x1326   :  { %v11647_v41 = vpop.eup %9418 }
0x1327   :  { %v6081_v62 = vsel %vm4346_vm10, %v11647_v41, 0.0  ;;  %v6224_v23 = vpop.xlane.xlu1 %6223  ;;  %v6075_v11 = vmul.f32 1.442695, %v6070_v35 }
0x1328   :  { %v6232_v16 = vsub.f32 %v11586_v12, %v6224_v23 }
0x1329   :  { %9422 = vpow2.f32 %v6075_v11 }
0x132a   :  { %v11658_v45 = vpop.eup %9420  ;;  %v6237_v3 = vmul.f32 1.442695, %v6232_v16 }
0x132b   :  { %v6243_v53 = vsel %vm4346_vm10, %v11658_v45, 0.0 }
0x132c   :  { %6082 = vadd.xlane.f32.xlu2 %v6081_v62  ;;  %9276 = vrot.lane.b32.xlu0 %v11500_v8, %s9817_s22  ;;  %v6065_v29 = vpop.xlane.xlu0 %6064  ;;  %9424 = vpow2.f32 %v6237_v3 }
0x132d   :  { %v6071_v21 = vsub.f32 %v11590_v58, %v6065_v29 }
0x132f   :  { %v6227_v22 = vpop.xlane.xlu2 %6226  ;;  %v11665_v19 = vpop.eup %9422  ;;  %v6077_v17 = vmul.f32 1.442695, %v6071_v21 }
0x1330   :  { %v6084_v6 = vsel %vm4346_vm10, %v11665_v19, 0.0 }
0x1332   :  { %v11671_v12 = vpop.eup %9424 }
0x1334   :  { %v6068_v26 = vpop.xlane.xlu0 %6067 }
0x1335   :  { %v6072_v55 = vsub.f32 %v11598_v57, %v6068_v26  ;;  %v6246_v57 = vsel %vm4346_vm10, %v11671_v12, 0.0 }
0x1337   :  { %v6079_v32 = vmul.f32 1.442695, %v6072_v55 }
0x133c   :  { %v6230_v61 = vpop.xlane.xlu0 %6229 }
0x133d   :  { %9266 = vrot.lane.b32.xlu1 %v11492_v34, %s9817_s22  ;;  %v6234_v14 = vsub.f32 %v11602_v5, %v6230_v61 }
0x133f   :  { %v6241_v60 = vmul.f32 1.442695, %v6234_v14 }
0x1344   :  { %9271 = vrot.lane.b32.xlu2 %v11492_v34, %s9818_s23  ;;  %v6233_v34 = vsub.f32 %v11594_v4, %v6227_v22 }
0x1346   :  { %v6239_v9 = vmul.f32 1.442695, %v6233_v34 }
0x1348   :  { %9426 = vpow2.f32 %v6239_v9 }
0x1349   :  { %9428 = vpow2.f32 %v6079_v32 }
0x134a   :  { %9430 = vpow2.f32 %v6241_v60 }
0x134e   :  { %v11675_v4 = vpop.eup %9426 }
0x134f   :  { %v6249_v5 = vsel %vm4346_vm10, %v11675_v4, 0.0  ;;  %v11681_v50 = vpop.eup %9428 }
0x1350   :  { %v11683_v20 = vpop.eup %9430  ;;  %v6090_v28 = vsel %vm4346_vm10, %v11681_v50, 0.0 }
0x1356   :  { %6244 = vadd.xlane.f32.xlu0 %v6243_v53 }
0x1367   :  { %6085 = vadd.xlane.f32.xlu1 %v6084_v6 }
0x136a   :  { %9281 = vrot.lane.b32.xlu0 %v11500_v8, %s9818_s23  ;;  %v6252_v8 = vsel %vm4346_vm10, %v11683_v20, 0.0 }
0x136d   :  { %6247 = vadd.xlane.f32.xlu2 %v6246_v57 }
0x136f   :  { %6250 = vadd.xlane.f32.xlu1 %v6249_v5 }
0x1375   :  { %6091 = vadd.xlane.f32.xlu2 %v6090_v28 }
0x1377   :  { %6253 = vadd.xlane.f32.xlu1 %v6252_v8 }
0x137b   :  { %v5759_v52 = vpop.xlane.xlu1 %5758 }
0x137c   :  { %9432 = vrcp.f32 %v5759_v52 }
0x137f   :  { %v5921_v43 = vpop.xlane.xlu0 %5920 }
0x1380   :  { %9434 = vrcp.f32 %v5921_v43 }
0x1382   :  { %v9433_v39 = vpop.eup %9432 }
0x1383   :  { %v5773_v63 = vmul.f32 %v9433_v39, %v11609_v31  ;;  %v5762_v40 = vpop.xlane.xlu2 %5761 }
0x1384   :  { %9436 = vrcp.f32 %v5762_v40 }
0x1385   :  { %8689 = vmatmul.msk.f32.vlgmr.msra.gmra.mxu0 %vm4346_vm10, %v5773_v63 }
0x1386   :  { %v9435_v46 = vpop.eup %9434 }
0x1387   :  { %v5935_v24 = vmul.f32 %v9435_v46, %v11614_v0  ;;  %v5924_v51 = vpop.xlane.xlu1 %5923 }
0x1388   :  { %9438 = vrcp.f32 %v5924_v51 }
0x1389   :  { %8701 = vmatmul.msk.f32.vlgmr.msrb.gmra.mxu1 %vm4346_vm10, %v5935_v24  ;;  %9440 = vpow2.f32 %v6077_v17 }
0x138a   :  { %v9437_v42 = vpop.eup %9436 }
0x138b   :  { %v5765_v59 = vpop.xlane.xlu0 %5764  ;;  %v5774_v2 = vmul.f32 %v9437_v42, %v11619_v33 }
0x138c   :  { %9442 = vrcp.f32 %v5765_v59 }
0x138d   :  { %8690 = vmatmul.msk.f32.gmra.mxu0 %vm4346_vm10, %v5774_v2 }
0x138e   :  { %v9439_v58 = vpop.eup %9438 }
0x138f   :  { %v5927_v31 = vpop.xlane.xlu2 %5926  ;;  %v5936_v54 = vmul.f32 %v9439_v58, %v11624_v30  ;;  %v11697_v56 = vpop.eup %9440 }
0x1390   :  { %9444 = vrcp.f32 %v5927_v31  ;;  %v6087_v36 = vsel %vm4346_vm10, %v11697_v56, 0.0 }
0x1391   :  { %8702 = vmatmul.msk.f32.gmra.mxu1 %vm4346_vm10, %v5936_v54 }
0x1392   :  { %v9443_v0 = vpop.eup %9442 }
0x1393   :  { %v5775_v13 = vmul.f32 %v9443_v0, %v11629_v38 }
0x1394   :  { %6088 = vadd.xlane.f32.xlu0 %v6087_v36 }
0x1395   :  { %8691 = vmatmul.msk.f32.gmra.mxu0 %vm4346_vm10, %v5775_v13 }
0x1396   :  { %v9445_v33 = vpop.eup %9444 }
0x1397   :  { %v5930_v62 = vpop.xlane.xlu1 %5929  ;;  %v5768_v27 = vpop.xlane.xlu2 %5767  ;;  %v5937_v18 = vmul.f32 %v9445_v33, %v11634_v37 }
0x1398   :  { %9446 = vrcp.f32 %v5930_v62  ;;  %v6380_v62 = vld [vmem:[#allocation15 + $0x38] sm:$0xff] }
0x1399   :  { %9448 = vrcp.f32 %v5768_v27  ;;  %8703 = vmatmul.msk.f32.gmra.mxu1 %vm4346_vm10, %v5937_v18  ;;  %v6379_v27 = vld [vmem:[#allocation15 + $0x30] sm:$0xff]  ;;  %6409 = vmatpush.msrb.mxu3 %v6380_v62  ;;  %v6378_v18 = vld [vmem:[#allocation15 + $0x28] sm:$0xff] }
0x139b   :  { %6410 = vmatpush.msrb.mxu3 %v6379_v27 }
0x139d   :  { %6411 = vmatpush.msrb.mxu3 %v6378_v18  ;;  %v6538_v18 = vld [vmem:[#allocation16 + $0x38] sm:$0xff] }
0x139e   :  { %v9447_v30 = vpop.eup %9446  ;;  %v9277_v11 = vpop.permute.xlu0 %9276 }
0x139f   :  { %v9449_v48 = vpop.eup %9448  ;;  %v6083_v29 = vpop.xlane.xlu2 %6082  ;;  %v5938_v1 = vmul.f32 %v9447_v30, %v11641_v49  ;;  %v9278_v34 = vunpack.i.l.bf16 %v9277_v11  ;;  %v9279_v49 = vunpack.i.h.bf16 %v9277_v11  ;;  %v6377_v30 = vld [vmem:[#allocation15 + $0x20] sm:$0xff] }
0x13a0   :  { %v5776_v35 = vmul.f32 %v9449_v48, %v11639_v7  ;;  %9450 = vrcp.f32 %v6083_v29  ;;  %6412 = vmatpush.msrb.mxu3 %v6377_v30  ;;  %v6537_v30 = vld [vmem:[#allocation16 + $0x30] sm:$0xff] }
0x13a1   :  { %8704 = vmatmul.msk.f32.gmra.mxu1 %vm4346_vm10, %v5938_v1 }
0x13a2   :  { %8692 = vmatmul.msk.f32.gmra.mxu0 %vm4346_vm10, %v5776_v35 }
0x13a6   :  { %v9451_v16 = vpop.eup %9450 }
0x13a7   :  { %v9272_v38 = vpop.permute.xlu2 %9271  ;;  %v6097_v7 = vmul.f32 %v9451_v16, %v11647_v41 }
0x13a8   :  { %v9273_v53 = vunpack.i.l.bf16 %v9272_v38  ;;  %v9274_v23 = vunpack.i.h.bf16 %v9272_v38 }
0x13aa   :  { %6299 = vmatpush.msra.mxu1 %v9273_v53 }
0x13ac   :  { %6300 = vmatpush.msra.mxu1 %v9274_v23 }
0x13af   :  { %v9267_v37 = vpop.permute.xlu1 %9266 }
0x13b0   :  { %v9268_v26 = vunpack.i.l.bf16 %v9267_v37  ;;  %v9269_v22 = vunpack.i.h.bf16 %v9267_v37 }
0x13b2   :  { %6137 = vmatpush.msrb.mxu0 %v9268_v26 }
0x13b4   :  { %6138 = vmatpush.msrb.mxu0 %v9269_v22 }
0x13b6   :  { %6139 = vmatpush.msrb.mxu0 %v9278_v34 }
0x13b8   :  { %6140 = vmatpush.msrb.mxu0 %v9279_v49 }
0x13b9   :  { %8713 = vmatmul.msk.f32.vlgmr.msrb.gmra.mxu0 %vm4346_vm10, %v6097_v7 }
0x13ba   :  { %6567 = vmatpush.msra.mxu0 %v6538_v18 }
0x13bc   :  { %6568 = vmatpush.msra.mxu0 %v6537_v30 }
0x13c9   :  { %v6245_v3 = vpop.xlane.xlu0 %6244 }
0x13ca   :  { %9452 = vrcp.f32 %v6245_v3 }
0x13d0   :  { %v9453_v55 = vpop.eup %9452 }
0x13d1   :  { %v6259_v32 = vmul.f32 %v9453_v55, %v11658_v45 }
0x13da   :  { %v6086_v9 = vpop.xlane.xlu1 %6085 }
0x13db   :  { %9454 = vrcp.f32 %v6086_v9 }
0x13dc   :  { %v9282_v61 = vpop.permute.xlu0 %9281 }
0x13dd   :  { %v9283_v14 = vunpack.i.l.bf16 %v9282_v61  ;;  %v9284_v6 = vunpack.i.h.bf16 %v9282_v61 }
0x13df   :  { %6301 = vmatpush.msra.mxu1 %v9283_v14 }
0x13e0   :  { %v6248_v60 = vpop.xlane.xlu2 %6247 }
0x13e1   :  { %v9455_v57 = vpop.eup %9454  ;;  %9456 = vrcp.f32 %v6248_v60  ;;  %6302 = vmatpush.msra.mxu1 %v9284_v6 }
0x13e2   :  { %v6251_v5 = vpop.xlane.xlu1 %6250  ;;  %8725 = vmatmul.msk.f32.vlgmr.msra.gmra.mxu1 %vm4346_vm10, %v6259_v32  ;;  %v6098_v41 = vmul.f32 %v9455_v57, %v11665_v19 }
0x13e3   :  { %9458 = vrcp.f32 %v6251_v5  ;;  %v9304_v5 = vld [vmem:[#allocation5 + $0x23] ss:$0 sm:$0xff] }
0x13e4   :  { %8714 = vmatmul.msk.f32.gmra.mxu0 %vm4346_vm10, %v6098_v41 }
0x13e7   :  { %v9457_v28 = vpop.eup %9456 }
0x13e8   :  { %v6260_v8 = vmul.f32 %v9457_v28, %v11671_v12  ;;  %v6092_v12 = vpop.xlane.xlu2 %6091 }
0x13e9   :  { %v9459_v43 = vpop.eup %9458 }
0x13ea   :  { %8726 = vmatmul.msk.f32.gmra.mxu1 %vm4346_vm10, %v6260_v8  ;;  %v6254_v52 = vpop.xlane.xlu1 %6253  ;;  %v6261_v45 = vmul.f32 %v9459_v43, %v11675_v4 }
0x13eb   :  { %9460 = vrcp.f32 %v6254_v52 }
0x13f1   :  { %v9461_v39 = vpop.eup %9460 }
0x13f2   :  { %8727 = vmatmul.msk.f32.gmra.mxu1 %vm4346_vm10, %v6261_v45  ;;  %v6262_v21 = vmul.f32 %v9461_v39, %v11683_v20 }
0x13fa   :  { %8728 = vmatmul.msk.f32.gmra.mxu1 %vm4346_vm10, %v6262_v21 }
0x1402   :  { %v5818_v17 = vpop.f32.mrf.mxu0 }
0x1406   :  { %v5980_v19 = vpop.f32.mrf.mxu1 }
0x1407   :  { %6320 = vrot.lane.b32.xlu0 %v5980_v19, %s9788_s3  ;;  %v6089_v63 = vpop.xlane.xlu0 %6088 }
0x1408   :  { %9462 = vrcp.f32 %v6089_v63 }
0x1409   :  { %9464 = vrcp.f32 %v6092_v12 }
0x140a   :  { %v5821_v51 = vpop.f32.mrf.mxu0 }
0x140e   :  { %v9463_v40 = vpop.eup %9462  ;;  %v5983_v46 = vpop.f32.mrf.mxu1 }
0x140f   :  { %6322 = vrot.lane.b32.xlu0 %v5983_v46, %s9788_s3  ;;  %v6099_v4 = vmul.f32 %v9463_v40, %v11697_v56  ;;  %v9465_v24 = vpop.eup %9464 }
0x1410   :  { %v6100_v20 = vmul.f32 %v9465_v24, %v11681_v50 }
0x1411   :  { %8715 = vmatmul.msk.f32.gmra.mxu0 %vm4346_vm10, %v6099_v4 }
0x1412   :  { %v5824_v42 = vpop.f32.mrf.mxu0 }
0x1416   :  { %v5986_v58 = vpop.f32.mrf.mxu1 }
0x1419   :  { %8716 = vmatmul.msk.f32.gmra.mxu0 %vm4346_vm10, %v6100_v20 }
0x141e   :  { %v5989_v31 = vpop.f32.mrf.mxu1 }
0x141f   :  { %v5827_v59 = vpop.f32.mrf.mxu0 }
0x1436   :  { %v6142_v2 = vpop.f32.mrf.mxu0 }
0x1437   :  { %6336 = vrot.lane.b32.xlu2 %v6142_v2, %s9798_s1 }
0x145f   :  { %v6304_v54 = vpop.f32.mrf.mxu1 }
0x1460   :  { %6352 = vrot.lane.b32.xlu1 %v6304_v54, %s9819_s26 }
0x1461   :  { %v6145_v56 = vpop.f32.mrf.mxu0 }
0x1462   :  { %6338 = vrot.lane.b32.xlu2 %v6145_v56, %s9798_s1 }
0x1467   :  { %v6307_v0 = vpop.f32.mrf.mxu1 }
0x1468   :  { %6324 = vrot.lane.b32.xlu1 %v5986_v58, %s9788_s3  ;;  %6354 = vrot.lane.b32.xlu0 %v6307_v0, %s9819_s26 }
0x146f   :  { %v6310_v50 = vpop.f32.mrf.mxu1 }
0x1470   :  { %6326 = vrot.lane.b32.xlu1 %v5989_v31, %s9788_s3  ;;  %6356 = vrot.lane.b32.xlu0 %v6310_v50, %s9819_s26 }
0x1477   :  { %v6313_v36 = vpop.f32.mrf.mxu1 }
0x1478   :  { %6358 = vrot.lane.b32.xlu0 %v6313_v36, %s9819_s26 }
0x1479   :  { %v6321_v48 = vpop.permute.xlu0 %6320 }
0x147a   :  { %v6364_v1 = vsel %vm4549_vm14, %v5818_v17, %v6321_v48  ;;  %v6536_v48 = vld [vmem:[#allocation16 + $0x28] sm:$0xff] }
0x147b   :  { %6569 = vmatpush.msra.mxu0 %v6536_v48  ;;  %v8738_v48 = vld [vmem:[%s11935_s15 + $0x48] sm:$0xff] }
0x1481   :  { %v6323_v35 = vpop.permute.xlu0 %6322 }
0x1482   :  { %v6365_v26 = vsel %vm4549_vm14, %v5821_v51, %v6323_v35 }
0x148e   :  { %v6148_v13 = vpop.f32.mrf.mxu0 }
0x148f   :  { %6340 = vrot.lane.b32.xlu2 %v6148_v13, %s9798_s1 }
0x1491   :  { %v6337_v29 = vpop.permute.xlu2 %6336 }
0x1492   :  { %v6368_v38 = vsel %vm5234_vm15, %v6364_v1, %v6337_v29  ;;  %v6535_v29 = vld [vmem:[#allocation16 + $0x20] sm:$0xff] }
0x1493   :  { %6570 = vmatpush.msra.mxu0 %v6535_v29  ;;  %v8737_v29 = vld [vmem:[%s11935_s15 + $0x40] sm:$0xff] }
0x1496   :  { %v6151_v33 = vpop.f32.mrf.mxu0 }
0x1497   :  { %6342 = vrot.lane.b32.xlu2 %v6151_v33, %s9798_s1 }
0x14bc   :  { %v6339_v37 = vpop.permute.xlu2 %6338 }
0x14bd   :  { %v6369_v11 = vsel %vm5234_vm15, %v6365_v26, %v6339_v37 }
0x14d2   :  { %v6353_v53 = vpop.permute.xlu1 %6352 }
0x14d3   :  { %v6372_v23 = vsel %vm5239_vm0, %v6368_v38, %v6353_v53 }
0x14d4   :  { %8729 = vmatmul.msk.f32.vlgmr.msrb.gmra.mxu3 %vm4346_vm10, %v6372_v23 }
0x14da   :  { %v6355_v22 = vpop.permute.xlu0 %6354  ;;  %v6325_v34 = vpop.permute.xlu1 %6324 }
0x14db   :  { %v6373_v16 = vsel %vm5239_vm0, %v6369_v11, %v6355_v22  ;;  %v6366_v7 = vsel %vm4549_vm14, %v5824_v42, %v6325_v34 }
0x14dc   :  { %8730 = vmatmul.msk.f32.gmra.mxu3 %vm4346_vm10, %v6373_v16 }
0x14e2   :  { %v6357_v49 = vpop.permute.xlu0 %6356  ;;  %v6327_v55 = vpop.permute.xlu1 %6326 }
0x14e3   :  { %v6367_v14 = vsel %vm4549_vm14, %v5827_v59, %v6327_v55 }
0x14e9   :  { %v6341_v3 = vpop.permute.xlu2 %6340 }
0x14ea   :  { %v6370_v9 = vsel %vm5234_vm15, %v6366_v7, %v6341_v3  ;;  %v6359_v32 = vpop.permute.xlu0 %6358 }
0x14eb   :  { %v6374_v61 = vsel %vm5239_vm0, %v6370_v9, %v6357_v49  ;;  %v11784_v9 = vld [vmem:[#allocation5 + $0x24] ss:$0 sm:$0xff] }
0x14ec   :  { %8731 = vmatmul.msk.f32.gmra.mxu3 %vm4346_vm10, %v6374_v61 }
0x14f1   :  { %v6343_v6 = vpop.permute.xlu2 %6342 }
0x14f2   :  { %v6371_v60 = vsel %vm5234_vm15, %v6367_v14, %v6343_v6  ;;  %v9306_v14 = vld [vmem:[#allocation5 + $0x25] ss:$0 sm:$0xff] }
0x14f3   :  { %v6375_v57 = vsel %vm5239_vm0, %v6371_v60, %v6359_v32 }
0x14f4   :  { %8732 = vmatmul.msk.f32.gmra.mxu3 %vm4346_vm10, %v6375_v57 }
0x1557   :  { %v6414_v41 = vpop.f32.mrf.mxu3 }
0x1558   :  { %v6415_v28 = vadd.f32 %v9304_v5, %v6414_v41 }
0x155a   :  { %v6426_v8 = vadd.f32 %v6415_v28, %v11428_v44 }
0x155c   :  { %v6432_v52 = vsel %vm4346_vm10, %v6426_v8, 0.0 }
0x155d   :  { %6433 = vadd.xlane.f32.xlu1 %v6432_v52 }
0x155f   :  { %v6417_v43 = vpop.f32.mrf.mxu3 }
0x1560   :  { %v6418_v45 = vadd.f32 %v9304_v5, %v6417_v43  ;;  %v8744_v43 = vld [vmem:[%s11935_s15 + $0x78] sm:$0xff] }
0x1561   :  { %6621 = vmatpush.msrb.mxu2 %v8744_v43 }
0x1562   :  { %v6427_v39 = vadd.f32 %v6418_v45, %v11433_v47  ;;  %v8743_v45 = vld [vmem:[%s11935_s15 + $0x70] sm:$0xff] }
0x1563   :  { %6622 = vmatpush.msrb.mxu2 %v8743_v45 }
0x1564   :  { %v6435_v21 = vsel %vm4346_vm10, %v6427_v39, 0.0 }
0x1565   :  { %6436 = vadd.xlane.f32.xlu2 %v6435_v21 }
0x156f   :  { %v6420_v19 = vpop.f32.mrf.mxu3 }
0x1570   :  { %v6421_v63 = vadd.f32 %v9304_v5, %v6420_v19  ;;  %v8742_v19 = vld [vmem:[%s11935_s15 + $0x68] sm:$0xff] }
0x1571   :  { %6623 = vmatpush.msrb.mxu2 %v8742_v19 }
0x1572   :  { %v6428_v12 = vadd.f32 %v6421_v63, %v11439_v15 }
0x1574   :  { %v6438_v40 = vsel %vm4346_vm10, %v6428_v12, 0.0 }
0x1575   :  { %6439 = vadd.xlane.f32.xlu0 %v6438_v40 }
0x1577   :  { %v6423_v46 = vpop.f32.mrf.mxu3 }
0x1578   :  { %v6424_v4 = vadd.f32 %v9304_v5, %v6423_v46  ;;  %v8741_v46 = vld [vmem:[%s11935_s15 + $0x60] sm:$0xff] }
0x1579   :  { %6624 = vmatpush.msrb.mxu2 %v8741_v46 }
0x157a   :  { %v6429_v44 = vadd.f32 %v6424_v4, %v11444_v25 }
0x157c   :  { %v6441_v17 = vsel %vm4346_vm10, %v6429_v44, 0.0 }
0x157d   :  { %6442 = vadd.xlane.f32.xlu1 %v6441_v17 }
0x15d0   :  { %v6434_v24 = vpop.xlane.xlu1 %6433 }
0x15d1   :  { %v6444_v47 = vmul.f32 %v6434_v24, %v11336_v10  ;;  %v8740_v24 = vld [vmem:[%s11935_s15 + $0x58] sm:$0xff] }
0x15d2   :  { %6625 = vmatpush.msrb.mxu2 %v8740_v24 }
0x15d3   :  { %v6448_v20 = vsub.f32 %v6426_v8, %v6444_v47 }
0x15d5   :  { %v6452_v51 = vmul.f32 %v6448_v20, %v6448_v20 }
0x15d7   :  { %v6456_v42 = vsel %vm4346_vm10, %v6452_v51, 0.0 }
0x15d8   :  { %6457 = vadd.xlane.f32.xlu2 %v6456_v42  ;;  %v6437_v59 = vpop.xlane.xlu2 %6436 }
0x15d9   :  { %v6445_v15 = vmul.f32 %v6437_v59, %v11336_v10 }
0x15db   :  { %v11765_v2 = vsub.f32 %v6427_v39, %v6445_v15 }
0x15dd   :  { %v6453_v58 = vmul.f32 %v11765_v2, %v11765_v2 }
0x15df   :  { %v6459_v25 = vsel %vm4346_vm10, %v6453_v58, 0.0 }
0x15e0   :  { %6460 = vadd.xlane.f32.xlu0 %v6459_v25 }
0x15e8   :  { %v6440_v31 = vpop.xlane.xlu0 %6439 }
0x15e9   :  { %v6446_v54 = vmul.f32 %v6440_v31, %v11336_v10 }
0x15eb   :  { %v11771_v56 = vsub.f32 %v6428_v12, %v6446_v54 }
0x15ed   :  { %v6454_v0 = vmul.f32 %v11771_v56, %v11771_v56 }
0x15ef   :  { %v6462_v50 = vsel %vm4346_vm10, %v6454_v0, 0.0 }
0x15f0   :  { %6463 = vadd.xlane.f32.xlu1 %v6462_v50  ;;  %v6443_v36 = vpop.xlane.xlu1 %6442 }
0x15f1   :  { %v6447_v13 = vmul.f32 %v6443_v36, %v11336_v10 }
0x15f3   :  { %v11777_v33 = vsub.f32 %v6429_v44, %v6447_v13 }
0x15f5   :  { %v6455_v62 = vmul.f32 %v11777_v33, %v11777_v33 }
0x15f7   :  { %v6465_v27 = vsel %vm4346_vm10, %v6455_v62, 0.0 }
0x15f8   :  { %6466 = vadd.xlane.f32.xlu2 %v6465_v27 }
0x164b   :  { %v6458_v1 = vpop.xlane.xlu2 %6457 }
0x164c   :  { %v6468_v35 = vmul.f32 %v6458_v1, %v11336_v10 }
0x164e   :  { %v6472_v38 = vadd.f32 1e-05, %v6468_v35 }
0x1650   :  { %9466 = vrsqrt.f32 %v6472_v38  ;;  %vm6482_vm15 = vweird.f32 %v6472_v38 }
0x1653   :  { %v6461_v53 = vpop.xlane.xlu0 %6460 }
0x1654   :  { %v6469_v23 = vmul.f32 %v6461_v53, %v11336_v10 }
0x1656   :  { %v9467_v37 = vpop.eup %9466  ;;  %v6473_v26 = vadd.f32 1e-05, %v6469_v23 }
0x1657   :  { %v6477_v11 = vmul.f32 %v9467_v37, %v6472_v38  ;;  %vm6483_vm14 = vweird.f32 %v9467_v37 }
0x1658   :  { %9468 = vrsqrt.f32 %v6473_v26  ;;  %vm6484_vm0 = vmor %vm6482_vm15, %vm6483_vm14  ;;  %vm6492_vm6 = vweird.f32 %v6473_v26 }
0x1659   :  { %v6478_v22 = vmul.f32 %v9467_v37, %v6477_v11 }
0x165b   :  { %v6479_v16 = vmul.f32 0.5, %v6478_v22 }
0x165d   :  { %v6480_v34 = vsub.f32 1.5, %v6479_v16 }
0x165e   :  { %v9469_v49 = vpop.eup %9468 }
0x165f   :  { %v6481_v7 = vmul.f32 %v9467_v37, %v6480_v34  ;;  %v6487_v3 = vmul.f32 %v9469_v49, %v6473_v26  ;;  %vm6493_vm5 = vweird.f32 %v9469_v49 }
0x1660   :  { %vm6494_vm7 = vmor %vm6492_vm6, %vm6493_vm5 }
0x1661   :  { %v6485_v61 = vsel %vm6484_vm0, %v9467_v37, %v6481_v7  ;;  %v6488_v55 = vmul.f32 %v9469_v49, %v6487_v3  ;;  %v9308_v7 = vld [vmem:[#allocation5 + $0x27] ss:$0 sm:$0xff] }
0x1662   :  { %v6516_v6 = vmul.f32 %v6485_v61, %v6448_v20 }
0x1663   :  { %v6489_v32 = vmul.f32 0.5, %v6488_v55  ;;  %v6464_v60 = vpop.xlane.xlu1 %6463 }
0x1664   :  { %v6523_v57 = vmul.f32 %v11784_v9, %v6516_v6  ;;  %v6470_v5 = vmul.f32 %v6464_v60, %v11336_v10 }
0x1665   :  { %v6490_v41 = vsub.f32 1.5, %v6489_v32 }
0x1666   :  { %v11788_v28 = vadd.f32 %v9306_v14, %v6523_v57  ;;  %v6474_v8 = vadd.f32 1e-05, %v6470_v5 }
0x1667   :  { %v6491_v52 = vmul.f32 %v9469_v49, %v6490_v41 }
0x1668   :  { %9470 = vrsqrt.f32 %v6474_v8  ;;  %8733 = vmatmul.msk.f32.vlgmr.msra.gmra.mxu0 %vm4346_vm10, %v11788_v28  ;;  %vm6502_vm9 = vweird.f32 %v6474_v8 }
0x1669   :  { %v6495_v39 = vsel %vm6494_vm7, %v9469_v49, %v6491_v52 }
0x166a   :  { %v6517_v21 = vmul.f32 %v6495_v39, %v11765_v2 }
0x166b   :  { %v6467_v63 = vpop.xlane.xlu2 %6466 }
0x166c   :  { %v6471_v12 = vmul.f32 %v6467_v63, %v11336_v10  ;;  %v6524_v40 = vmul.f32 %v11784_v9, %v6517_v21 }
0x166e   :  { %v9471_v4 = vpop.eup %9470  ;;  %v6475_v44 = vadd.f32 1e-05, %v6471_v12  ;;  %v11807_v17 = vadd.f32 %v9306_v14, %v6524_v40 }
0x166f   :  { %v6497_v47 = vmul.f32 %v9471_v4, %v6474_v8  ;;  %vm6503_vm8 = vweird.f32 %v9471_v4 }
0x1670   :  { %9472 = vrsqrt.f32 %v6475_v44  ;;  %8734 = vmatmul.msk.f32.gmra.mxu0 %vm4346_vm10, %v11807_v17  ;;  %vm6504_vm11 = vmor %vm6502_vm9, %vm6503_vm8  ;;  %vm6512_vm13 = vweird.f32 %v6475_v44 }
0x1671   :  { %v6498_v20 = vmul.f32 %v9471_v4, %v6497_v47 }
0x1673   :  { %v6499_v51 = vmul.f32 0.5, %v6498_v20 }
0x1675   :  { %v6500_v42 = vsub.f32 1.5, %v6499_v51 }
0x1676   :  { %v9473_v59 = vpop.eup %9472 }
0x1677   :  { %v6501_v15 = vmul.f32 %v9471_v4, %v6500_v42  ;;  %v6507_v2 = vmul.f32 %v9473_v59, %v6475_v44  ;;  %vm6513_vm12 = vweird.f32 %v9473_v59 }
0x1678   :  { %vm6514_vm1 = vmor %vm6512_vm13, %vm6513_vm12 }
0x1679   :  { %v6505_v58 = vsel %vm6504_vm11, %v9471_v4, %v6501_v15  ;;  %v6508_v25 = vmul.f32 %v9473_v59, %v6507_v2 }
0x167a   :  { %v6518_v31 = vmul.f32 %v6505_v58, %v11771_v56  ;;  %v8739_v56 = vld [vmem:[%s11935_s15 + $0x50] sm:$0xff] }
0x167b   :  { %v6509_v54 = vmul.f32 0.5, %v6508_v25  ;;  %6626 = vmatpush.msrb.mxu2 %v8739_v56 }
0x167c   :  { %v6525_v0 = vmul.f32 %v11784_v9, %v6518_v31 }
0x167d   :  { %v6510_v50 = vsub.f32 1.5, %v6509_v54  ;;  %6627 = vmatpush.msrb.mxu2 %v8738_v48 }
0x167e   :  { %v6532_v36 = vadd.f32 %v9306_v14, %v6525_v0 }
0x167f   :  { %v6511_v13 = vmul.f32 %v9473_v59, %v6510_v50  ;;  %6628 = vmatpush.msrb.mxu2 %v8737_v29 }
0x1680   :  { %8735 = vmatmul.msk.f32.gmra.mxu0 %vm4346_vm10, %v6532_v36 }
0x1681   :  { %v6515_v62 = vsel %vm6514_vm1, %v9473_v59, %v6511_v13 }
0x1682   :  { %v6519_v27 = vmul.f32 %v6515_v62, %v11777_v33  ;;  %v9307_v33 = vld [vmem:[#allocation5 + $0x26] ss:$0 sm:$0xff] }
0x1684   :  { %v6526_v18 = vmul.f32 %v11784_v9, %v6519_v27 }
0x1686   :  { %v6533_v30 = vadd.f32 %v9306_v14, %v6526_v18 }
0x1688   :  { %8736 = vmatmul.msk.f32.gmra.mxu0 %vm4346_vm10, %v6533_v30 }
0x16e5   :  { %v6572_v1 = vpop.f32.mrf.mxu0 }
0x16e6   :  { %v6573_v35 = vadd.f32 %v9307_v33, %v6572_v1  ;;  %v9309_v1 = vld [vmem:[#allocation5 + $0x28] ss:$0 sm:$0xff] }
0x16e8   :  { %v6584_v38 = vmax.f32 %v6573_v35, 0.0 }
0x16ea   :  { %8745 = vmatmul.msk.f32.vlgmr.msrb.gmra.mxu2 %vm342_vm2, %v6584_v38 }
0x16ed   :  { %v6575_v53 = vpop.f32.mrf.mxu0 }
0x16ee   :  { %v6576_v23 = vadd.f32 %v9307_v33, %v6575_v53 }
0x16f0   :  { %v6585_v37 = vmax.f32 %v6576_v23, 0.0  ;;  %v9310_v23 = vld [vmem:[#allocation5 + $0x29] ss:$0 sm:$0xff] }
0x16f2   :  { %8746 = vmatmul.msk.f32.gmra.mxu2 %vm342_vm2, %v6585_v37 }
0x16fd   :  { %v6578_v26 = vpop.f32.mrf.mxu0 }
0x16fe   :  { %v6579_v11 = vadd.f32 %v9307_v33, %v6578_v26 }
0x1700   :  { %v6586_v22 = vmax.f32 %v6579_v11, 0.0 }
0x1702   :  { %8747 = vmatmul.msk.f32.gmra.mxu2 %vm342_vm2, %v6586_v22 }
0x1705   :  { %v6581_v16 = vpop.f32.mrf.mxu0 }
0x1706   :  { %v6582_v34 = vadd.f32 %v9307_v33, %v6581_v16 }
0x1708   :  { %v6587_v49 = vmax.f32 %v6582_v34, 0.0 }
0x170a   :  { %8748 = vmatmul.msk.f32.gmra.mxu2 %vm342_vm2, %v6587_v49 }
0x176d   :  { %v6630_v3 = vpop.f32.mrf.mxu2 }
0x176e   :  { %v6631_v9 = vadd.f32 %v9308_v7, %v6630_v3  ;;  %v6757_v3 = vld [vmem:[#allocation18 + $0x38] sm:$0xff] }
0x176f   :  { %6849 = vmatpush.msra.mxu3 %v6757_v3  ;;  %v6877_v3 = vld [vmem:[#allocation19 + $0x18] sm:$0xff] }
0x1770   :  { %v6642_v61 = vadd.f32 %v6631_v9, %v11788_v28  ;;  %v6755_v9 = vld [vmem:[#allocation18 + $0x28] sm:$0xff] }
0x1771   :  { %6850 = vmatpush.msra.mxu3 %v6755_v9  ;;  %v6876_v9 = vld [vmem:[#allocation19 + $0x10] sm:$0xff] }
0x1772   :  { %v6648_v55 = vsel %vm4346_vm10, %v6642_v61, 0.0 }
0x1773   :  { %6649 = vadd.xlane.f32.xlu0 %v6648_v55 }
0x1775   :  { %v6633_v14 = vpop.f32.mrf.mxu2 }
0x1776   :  { %v6634_v6 = vadd.f32 %v9308_v7, %v6633_v14  ;;  %v6753_v14 = vld [vmem:[#allocation18 + $0x18] sm:$0xff] }
0x1777   :  { %6851 = vmatpush.msra.mxu3 %v6753_v14  ;;  %v6892_v14 = vld [vmem:[#allocation19 + $0x90] sm:$0xff] }
0x1778   :  { %v6643_v32 = vadd.f32 %v6634_v6, %v11807_v17 }
0x177a   :  { %v6651_v60 = vsel %vm4346_vm10, %v6643_v32, 0.0 }
0x177b   :  { %6652 = vadd.xlane.f32.xlu1 %v6651_v60 }
0x1785   :  { %v6636_v57 = vpop.f32.mrf.mxu2 }
0x1786   :  { %v6637_v5 = vadd.f32 %v9308_v7, %v6636_v57  ;;  %v6751_v57 = vld [vmem:[#allocation18 + $0x8] sm:$0xff] }
0x1787   :  { %6852 = vmatpush.msra.mxu3 %v6751_v57 }
0x1788   :  { %v6644_v41 = vadd.f32 %v6637_v5, %v6532_v36 }
0x178a   :  { %v6654_v8 = vsel %vm4346_vm10, %v6644_v41, 0.0 }
0x178b   :  { %6655 = vadd.xlane.f32.xlu2 %v6654_v8 }
0x178d   :  { %v6639_v52 = vpop.f32.mrf.mxu2 }
0x178e   :  { %v6640_v43 = vadd.f32 %v9308_v7, %v6639_v52 }
0x1790   :  { %v6645_v45 = vadd.f32 %v6640_v43, %v6533_v30 }
0x1792   :  { %v6657_v28 = vsel %vm4346_vm10, %v6645_v45, 0.0 }
0x1793   :  { %6658 = vadd.xlane.f32.xlu0 %v6657_v28 }
0x17e6   :  { %v6650_v39 = vpop.xlane.xlu0 %6649 }
0x17e7   :  { %v6660_v21 = vmul.f32 %v6650_v39, %v11336_v10 }
0x17e9   :  { %v6664_v19 = vsub.f32 %v6642_v61, %v6660_v21 }
0x17eb   :  { %v6668_v63 = vmul.f32 %v6664_v19, %v6664_v19 }
0x17ed   :  { %v6672_v12 = vsel %vm4346_vm10, %v6668_v63, 0.0 }
0x17ee   :  { %v6653_v40 = vpop.xlane.xlu1 %6652  ;;  %6673 = vadd.xlane.f32.xlu1 %v6672_v12 }
0x17ef   :  { %v6661_v46 = vmul.f32 %v6653_v40, %v11336_v10 }
0x17f1   :  { %v6665_v4 = vsub.f32 %v6643_v32, %v6661_v46 }
0x17f3   :  { %v6669_v44 = vmul.f32 %v6665_v4, %v6665_v4 }
0x17f5   :  { %v6675_v17 = vsel %vm4346_vm10, %v6669_v44, 0.0 }
0x17f6   :  { %6676 = vadd.xlane.f32.xlu2 %v6675_v17 }
0x17fe   :  { %v6656_v24 = vpop.xlane.xlu2 %6655 }
0x17ff   :  { %v6662_v47 = vmul.f32 %v6656_v24, %v11336_v10 }
0x1801   :  { %v11844_v20 = vsub.f32 %v6644_v41, %v6662_v47 }
0x1803   :  { %v6670_v51 = vmul.f32 %v11844_v20, %v11844_v20 }
0x1805   :  { %v6678_v42 = vsel %vm4346_vm10, %v6670_v51, 0.0 }
0x1806   :  { %v6659_v59 = vpop.xlane.xlu0 %6658  ;;  %6679 = vadd.xlane.f32.xlu0 %v6678_v42 }
0x1807   :  { %v6663_v15 = vmul.f32 %v6659_v59, %v11336_v10  ;;  %v6756_v59 = vld [vmem:[#allocation18 + $0x30] sm:$0xff] }
0x1808   :  { %6820 = vmatpush.msrb.mxu1 %v6756_v59 }
0x1809   :  { %v11850_v2 = vsub.f32 %v6645_v45, %v6663_v15  ;;  %v6754_v15 = vld [vmem:[#allocation18 + $0x20] sm:$0xff] }
0x180a   :  { %6821 = vmatpush.msrb.mxu1 %v6754_v15 }
0x180b   :  { %v6671_v58 = vmul.f32 %v11850_v2, %v11850_v2 }
0x180d   :  { %v6681_v25 = vsel %vm4346_vm10, %v6671_v58, 0.0  ;;  %v6750_v58 = vld [vmem:[#allocation18] sm:$0xff] }
0x180e   :  { %6682 = vadd.xlane.f32.xlu1 %v6681_v25  ;;  %v6905_v25 = vld [vmem:[#allocation19 + $0xf8] sm:$0xff] }
0x180f   :  { %6939 = vmatpush.msra.mxu2 %v6905_v25  ;;  %v6995_v25 = vld [vmem:[%s11938_s18 + $0x70] sm:$0xff] }
0x1861   :  { %v6674_v31 = vpop.xlane.xlu1 %6673 }
0x1862   :  { %v6684_v54 = vmul.f32 %v6674_v31, %v11336_v10  ;;  %v6904_v31 = vld [vmem:[#allocation19 + $0xf0] sm:$0xff] }
0x1863   :  { %6940 = vmatpush.msra.mxu2 %v6904_v31  ;;  %v6994_v31 = vld [vmem:[%s11938_s18 + $0x68] sm:$0xff] }
0x1864   :  { %v6688_v0 = vadd.f32 1e-05, %v6684_v54  ;;  %v6889_v54 = vld [vmem:[#allocation19 + $0x78] sm:$0xff] }
0x1865   :  { %6910 = vmatpush.msrb.mxu0 %v6889_v54  ;;  %v6993_v54 = vld [vmem:[%s11938_s18 + $0x60] sm:$0xff] }
0x1866   :  { %9474 = vrsqrt.f32 %v6688_v0  ;;  %vm6698_vm3 = vweird.f32 %v6688_v0 }
0x1869   :  { %v6677_v50 = vpop.xlane.xlu2 %6676 }
0x186a   :  { %v6685_v36 = vmul.f32 %v6677_v50, %v11336_v10  ;;  %v6903_v50 = vld [vmem:[#allocation19 + $0xe8] sm:$0xff] }
0x186b   :  { %6941 = vmatpush.msra.mxu2 %v6903_v50 }
0x186c   :  { %v9475_v13 = vpop.eup %9474  ;;  %v6689_v62 = vadd.f32 1e-05, %v6685_v36  ;;  %v6887_v36 = vld [vmem:[#allocation19 + $0x68] sm:$0xff] }
0x186d   :  { %v6693_v27 = vmul.f32 %v9475_v13, %v6688_v0  ;;  %vm6699_vm2 = vweird.f32 %v9475_v13  ;;  %v6888_v0 = vld [vmem:[#allocation19 + $0x70] sm:$0xff] }
0x186e   :  { %9476 = vrsqrt.f32 %v6689_v62  ;;  %vm6700_vm4 = vmor %vm6698_vm3, %vm6699_vm2  ;;  %vm6708_vm15 = vweird.f32 %v6689_v62  ;;  %6911 = vmatpush.msrb.mxu0 %v6888_v0  ;;  %v6992_v0 = vld [vmem:[%s11938_s18 + $0x58] sm:$0xff] }
0x186f   :  { %v6694_v18 = vmul.f32 %v9475_v13, %v6693_v27  ;;  %v6885_v27 = vld [vmem:[#allocation19 + $0x58] sm:$0xff] }
0x1870   :  { %6912 = vmatpush.msrb.mxu0 %v6887_v36  ;;  %v6991_v36 = vld [vmem:[%s11938_s18 + $0x50] sm:$0xff] }
0x1871   :  { %v6695_v30 = vmul.f32 0.5, %v6694_v18 }
0x1873   :  { %v6696_v56 = vsub.f32 1.5, %v6695_v30  ;;  %v6900_v30 = vld [vmem:[#allocation19 + $0xd0] sm:$0xff] }
0x1874   :  { %v9477_v48 = vpop.eup %9476 }
0x1875   :  { %v6697_v29 = vmul.f32 %v9475_v13, %v6696_v56  ;;  %v6703_v33 = vmul.f32 %v9477_v48, %v6689_v62  ;;  %vm6709_vm14 = vweird.f32 %v9477_v48  ;;  %v6901_v62 = vld [vmem:[#allocation19 + $0xd8] sm:$0xff]  ;;  %v6884_v56 = vld [vmem:[#allocation19 + $0x50] sm:$0xff] }
0x1876   :  { %vm6710_vm0 = vmor %vm6708_vm15, %vm6709_vm14 }
0x1877   :  { %v6701_v35 = vsel %vm6700_vm4, %v9475_v13, %v6697_v29  ;;  %v6704_v38 = vmul.f32 %v9477_v48, %v6703_v33  ;;  %v6886_v13 = vld [vmem:[#allocation19 + $0x60] sm:$0xff]  ;;  %v6883_v29 = vld [vmem:[#allocation19 + $0x48] sm:$0xff] }
0x1878   :  { %v6732_v53 = vmul.f32 %v6701_v35, %v6664_v19  ;;  %6913 = vmatpush.msrb.mxu0 %v6886_v13  ;;  %v6898_v33 = vld [vmem:[#allocation19 + $0xc0] sm:$0xff]  ;;  %v6897_v35 = vld [vmem:[#allocation19 + $0xb8] sm:$0xff] }
0x1879   :  { %v6705_v37 = vmul.f32 0.5, %v6704_v38  ;;  %v6680_v26 = vpop.xlane.xlu0 %6679  ;;  %v6881_v38 = vld [vmem:[#allocation19 + $0x38] sm:$0xff] }
0x187a   :  { %v6686_v11 = vmul.f32 %v6680_v26, %v11336_v10  ;;  %v6739_v22 = vmul.f32 %v9309_v1, %v6732_v53  ;;  %6914 = vmatpush.msrb.mxu0 %v6885_v27  ;;  %v6895_v26 = vld [vmem:[#allocation19 + $0xa8] sm:$0xff]  ;;  %v6989_v13 = vld [vmem:[%s11938_s18 + $0x40] sm:$0xff] }
0x187b   :  { %v6706_v16 = vsub.f32 1.5, %v6705_v37  ;;  %v6880_v37 = vld [vmem:[#allocation19 + $0x30] sm:$0xff] }
0x187c   :  { %v6690_v34 = vadd.f32 1e-05, %v6686_v11  ;;  %v6746_v49 = vadd.f32 %v9310_v23, %v6739_v22  ;;  %6915 = vmatpush.msrb.mxu0 %v6884_v56  ;;  %v6879_v11 = vld [vmem:[#allocation19 + $0x28] sm:$0xff]  ;;  %v6894_v22 = vld [vmem:[#allocation19 + $0xa0] sm:$0xff] }
0x187d   :  { %v6707_v7 = vmul.f32 %v9477_v48, %v6706_v16  ;;  %v6893_v16 = vld [vmem:[#allocation19 + $0x98] sm:$0xff] }
0x187e   :  { %9478 = vrsqrt.f32 %v6690_v34  ;;  %6764 = vxpose.xlu2.b32.start [1/4] (short) (narrow) %v6746_v49, 32  ;;  %vm6718_vm6 = vweird.f32 %v6690_v34  ;;  %6916 = vmatpush.msrb.mxu0 %v6883_v29  ;;  %v6986_v56 = vld [vmem:[%s11938_s18 + $0x28] sm:$0xff]  ;;  %v6984_v29 = vld [vmem:[%s11938_s18 + $0x18] sm:$0xff] }
0x187f   :  { %v6711_v61 = vsel %vm6710_vm0, %v9477_v48, %v6707_v7  ;;  %v6899_v48 = vld [vmem:[#allocation19 + $0xc8] sm:$0xff]  ;;  %v6878_v7 = vld [vmem:[#allocation19 + $0x20] sm:$0xff] }
0x1880   :  { %v6733_v55 = vmul.f32 %v6711_v61, %v6665_v4  ;;  %v6875_v61 = vld [vmem:[#allocation19 + $0x8] sm:$0xff] }
0x1881   :  { %v6683_v6 = vpop.xlane.xlu1 %6682 }
0x1882   :  { %v6687_v32 = vmul.f32 %v6683_v6, %v11336_v10  ;;  %v6740_v60 = vmul.f32 %v9309_v1, %v6733_v55  ;;  %v6874_v55 = vld [vmem:[#allocation19] sm:$0xff]  ;;  %v6891_v6 = vld [vmem:[#allocation19 + $0x88] sm:$0xff] }
0x1884   :  { %v9479_v5 = vpop.eup %9478  ;;  %v6691_v41 = vadd.f32 1e-05, %v6687_v32  ;;  %v6747_v8 = vadd.f32 %v9310_v23, %v6740_v60  ;;  %v6890_v32 = vld [vmem:[#allocation19 + $0x80] sm:$0xff]  ;;  %v6758_v60 = vld [vmem:[#allocation5 + $0x2a] sm:$0x3] }
0x1885   :  { %v6713_v52 = vmul.f32 %v9479_v5, %v6690_v34  ;;  %vm6719_vm5 = vweird.f32 %v9479_v5  ;;  %v6760_v57 = vperm.slane %v6758_v60, 0 }
0x1886   :  { %9480 = vrsqrt.f32 %v6691_v41  ;;  %6765 = vxpose.xlu2.b32.cont [2/4] (short) (narrow) %v6747_v8, 32  ;;  %vm6720_vm7 = vmor %vm6718_vm6, %vm6719_vm5  ;;  %vm6728_vm9 = vweird.f32 %v6691_v41  ;;  %v6761_v8 = vperm.slane %v6758_v60, 1 }
0x1887   :  { %v6714_v43 = vmul.f32 %v9479_v5, %v6713_v52 }
0x1889   :  { %v6715_v45 = vmul.f32 0.5, %v6714_v43 }
0x188b   :  { %v6716_v28 = vsub.f32 1.5, %v6715_v45 }
0x188c   :  { %v9481_v39 = vpop.eup %9480 }
0x188d   :  { %v6717_v21 = vmul.f32 %v9479_v5, %v6716_v28  ;;  %v6723_v19 = vmul.f32 %v9481_v39, %v6691_v41  ;;  %vm6729_vm8 = vweird.f32 %v9481_v39 }
0x188e   :  { %vm6730_vm11 = vmor %vm6728_vm9, %vm6729_vm8 }
0x188f   :  { %v6721_v10 = vsel %vm6720_vm7, %v9479_v5, %v6717_v21  ;;  %v6724_v63 = vmul.f32 %v9481_v39, %v6723_v19 }
0x1890   :  { %v6734_v12 = vmul.f32 %v6721_v10, %v11844_v20  ;;  %v6752_v20 = vld [vmem:[#allocation18 + $0x10] sm:$0xff] }
0x1891   :  { %v6725_v40 = vmul.f32 0.5, %v6724_v63  ;;  %6822 = vmatpush.msrb.mxu1 %v6752_v20 }
0x1892   :  { %v6741_v46 = vmul.f32 %v9309_v1, %v6734_v12 }
0x1893   :  { %v6726_v4 = vsub.f32 1.5, %v6725_v40  ;;  %6823 = vmatpush.msrb.mxu1 %v6750_v58  ;;  %v6996_v58 = vld [vmem:[%s11938_s18 + $0x78] sm:$0xff] }
0x1894   :  { %v6748_v44 = vadd.f32 %v9310_v23, %v6741_v46 }
0x1895   :  { %v6727_v17 = vmul.f32 %v9481_v39, %v6726_v4  ;;  %6998 = vmatpush.msra.mxu1 %v6996_v58 }
0x1896   :  { %6766 = vxpose.xlu2.b32.cont [3/4] (short) (narrow) %v6748_v44, 32 }
0x1897   :  { %v6731_v24 = vsel %vm6730_vm11, %v9481_v39, %v6727_v17  ;;  %6999 = vmatpush.msra.mxu1 %v6995_v25 }
0x1898   :  { %v6735_v47 = vmul.f32 %v6731_v24, %v11850_v2  ;;  %v6902_v2 = vld [vmem:[#allocation19 + $0xe0] sm:$0xff] }
0x1899   :  { %6942 = vmatpush.msra.mxu2 %v6902_v2  ;;  %7000 = vmatpush.msra.mxu1 %v6994_v31  ;;  %v6990_v2 = vld [vmem:[%s11938_s18 + $0x48] sm:$0xff] }
0x189a   :  { %v6742_v51 = vmul.f32 %v9309_v1, %v6735_v47  ;;  %v6882_v1 = vld [vmem:[#allocation19 + $0x40] sm:$0xff] }
0x189b   :  { %6943 = vmatpush.msra.mxu2 %v6901_v62  ;;  %6917 = vmatpush.msrb.mxu0 %v6882_v1  ;;  %v6988_v62 = vld [vmem:[%s11938_s18 + $0x38] sm:$0xff]  ;;  %v6983_v1 = vld [vmem:[%s11938_s18 + $0x10] sm:$0xff] }
0x189c   :  { %v6749_v42 = vadd.f32 %v9310_v23, %v6742_v51  ;;  %v6896_v23 = vld [vmem:[#allocation19 + $0xb0] sm:$0xff]  ;;  %7001 = vmatpush.msra.mxu1 %v6993_v54 }
0x189d   :  { %6944 = vmatpush.msra.mxu2 %v6900_v30  ;;  %6918 = vmatpush.msrb.mxu0 %v6881_v38  ;;  %v6987_v30 = vld [vmem:[%s11938_s18 + $0x30] sm:$0xff]  ;;  %v6982_v38 = vld [vmem:[%s11938_s18 + $0x8] sm:$0xff] }
0x189e   :  { %6767 = vxpose.xlu2.b32.end [4/4] (short) (narrow) %v6749_v42, 32  ;;  %7002 = vmatpush.msra.mxu1 %v6992_v0 }
0x189f   :  { %6945 = vmatpush.msra.mxu2 %v6899_v48  ;;  %6919 = vmatpush.msrb.mxu0 %v6880_v37  ;;  %v6985_v48 = vld [vmem:[%s11938_s18 + $0x20] sm:$0xff]  ;;  %v9311_v37 = vld [vmem:[#allocation5 + $0x2c] ss:$0 sm:$0xff] }
0x18a0   :  { %7003 = vmatpush.msra.mxu1 %v6991_v36 }
0x18a1   :  { %6946 = vmatpush.msra.mxu2 %v6898_v33  ;;  %6920 = vmatpush.msrb.mxu0 %v6879_v11 }
0x18a2   :  { %7004 = vmatpush.msra.mxu1 %v6990_v2 }
0x18a3   :  { %6947 = vmatpush.msra.mxu2 %v6897_v35  ;;  %6921 = vmatpush.msrb.mxu0 %v6878_v7 }
0x18a4   :  { %7005 = vmatpush.msra.mxu1 %v6989_v13 }
0x18a5   :  { %6948 = vmatpush.msra.mxu2 %v6896_v23  ;;  %6922 = vmatpush.msrb.mxu0 %v6877_v3 }
0x18a6   :  { %7006 = vmatpush.msra.mxu1 %v6988_v62 }
0x18a7   :  { %6949 = vmatpush.msra.mxu2 %v6895_v26  ;;  %6923 = vmatpush.msrb.mxu0 %v6876_v9 }
0x18a8   :  { %7007 = vmatpush.msra.mxu1 %v6987_v30 }
0x18a9   :  { %6950 = vmatpush.msra.mxu2 %v6894_v22  ;;  %6924 = vmatpush.msrb.mxu0 %v6875_v61 }
0x18aa   :  { %7008 = vmatpush.msra.mxu1 %v6986_v56 }
0x18ab   :  { %6951 = vmatpush.msra.mxu2 %v6893_v16  ;;  %6925 = vmatpush.msrb.mxu0 %v6874_v55 }
0x18ac   :  { %7009 = vmatpush.msra.mxu1 %v6985_v48 }
0x18ad   :  { %6952 = vmatpush.msra.mxu2 %v6892_v14 }
0x18ae   :  { %7010 = vmatpush.msra.mxu1 %v6984_v29 }
0x18af   :  { %6953 = vmatpush.msra.mxu2 %v6891_v6 }
0x18b0   :  { %7011 = vmatpush.msra.mxu1 %v6983_v1 }
0x18b1   :  { %6954 = vmatpush.msra.mxu2 %v6890_v32 }
0x18b2   :  { %7012 = vmatpush.msra.mxu1 %v6982_v38 }
0x191f   :  { %v6780_v18 = vpop.trf.xlu2 }
0x1920   :  { %8753 = vmatmul.msk.f32.vlgmr.msra.gmra.mxu3 %vm4346_vm10, %v6780_v18  ;;  %8749 = vmatmul.msk.f32.vlgmr.msrb.gmra.mxu1 %vm4346_vm10, %v6780_v18 }
0x1927   :  { %v6781_v53 = vpop.trf.xlu2 }
0x1928   :  { %8754 = vmatmul.msk.f32.gmra.mxu3 %vm4346_vm10, %v6781_v53  ;;  %8750 = vmatmul.msk.f32.gmra.mxu1 %vm4346_vm10, %v6781_v53  ;;  %v6981_v53 = vld [vmem:[%s11938_s18] sm:$0xff] }
0x1929   :  { %7013 = vmatpush.msra.mxu1 %v6981_v53 }
0x192f   :  { %v6782_v34 = vpop.trf.xlu2 }
0x1930   :  { %8755 = vmatmul.msk.f32.gmra.mxu3 %vm4346_vm10, %v6782_v34  ;;  %8751 = vmatmul.msk.f32.gmra.mxu1 %vm4346_vm10, %v6782_v34 }
0x1937   :  { %v6783_v49 = vpop.trf.xlu2 }
0x1938   :  { %8756 = vmatmul.msk.f32.gmra.mxu3 %vm4346_vm10, %v6783_v49  ;;  %8752 = vmatmul.msk.f32.gmra.mxu1 %vm4346_vm10, %v6783_v49  ;;  %vm7018_vm10 = vcmask 253952  }
0x199d   :  { %v6825_v5 = vpop.f32.mrf.mxu1 }
0x199e   :  { %v6826_v41 = vadd.f32 %v6825_v5, %v6760_v57 }
0x19a0   :  { %v6866_v52 = vmax.f32 %v6826_v41, 0.0 }
0x19a2   :  { %6926 = vmatmul.f32.vlgmr.msrb.gmra.mxu0 %v6866_v52 }
0x19a3   :  { %v6854_v43 = vpop.f32.mrf.mxu3 }
0x19a4   :  { %v6855_v45 = vadd.f32 %v6854_v43, %v6761_v8 }
0x19a5   :  { %v6828_v28 = vpop.f32.mrf.mxu1 }
0x19a6   :  { %v6867_v39 = vmax.f32 %v6855_v45, 0.0  ;;  %v6829_v21 = vadd.f32 %v6828_v28, %v6760_v57 }
0x19a8   :  { %6955 = vmatmul.f32.vlgmr.msra.gmra.mxu2 %v6867_v39  ;;  %v6868_v19 = vmax.f32 %v6829_v21, 0.0  ;;  %v6997_v39 = vld [vmem:[#allocation5 + $0x2d] sm:$0x1] }
0x19aa   :  { %6929 = vmatmul.f32.gmra.mxu0 %v6868_v19 }
0x19ab   :  { %v6857_v10 = vpop.f32.mrf.mxu3 }
0x19ac   :  { %v6858_v63 = vadd.f32 %v6857_v10, %v6761_v8 }
0x19ad   :  { %v6831_v12 = vpop.f32.mrf.mxu1 }
0x19ae   :  { %v6869_v40 = vmax.f32 %v6858_v63, 0.0  ;;  %v6832_v46 = vadd.f32 %v6831_v12, %v6760_v57 }
0x19b0   :  { %6958 = vmatmul.f32.gmra.mxu2 %v6869_v40  ;;  %v6870_v4 = vmax.f32 %v6832_v46, 0.0 }
0x19b2   :  { %6932 = vmatmul.f32.gmra.mxu0 %v6870_v4 }
0x19b3   :  { %v6860_v44 = vpop.f32.mrf.mxu3 }
0x19b4   :  { %v6861_v17 = vadd.f32 %v6860_v44, %v6761_v8 }
0x19b5   :  { %v6834_v24 = vpop.f32.mrf.mxu1 }
0x19b6   :  { %v6871_v47 = vmax.f32 %v6861_v17, 0.0  ;;  %v6835_v51 = vadd.f32 %v6834_v24, %v6760_v57 }
0x19b8   :  { %6961 = vmatmul.f32.gmra.mxu2 %v6871_v47  ;;  %v6872_v42 = vmax.f32 %v6835_v51, 0.0 }
0x19ba   :  { %6935 = vmatmul.f32.gmra.mxu0 %v6872_v42 }
0x19bb   :  { %v6863_v59 = vpop.f32.mrf.mxu3 }
0x19bc   :  { %v6864_v15 = vadd.f32 %v6863_v59, %v6761_v8 }
0x19be   :  { %v6873_v20 = vmax.f32 %v6864_v15, 0.0 }
0x19c0   :  { %6964 = vmatmul.f32.gmra.mxu2 %v6873_v20 }
0x1a1f   :  { %v6927_v50 = vpop.f32.mrf.mxu0 }
0x1a20   :  { %v6928_v22 = vadd.f32 %v9311_v37, %v6927_v50 }
0x1a27   :  { %v6930_v18 = vpop.f32.mrf.mxu0 }
0x1a28   :  { %v6931_v26 = vadd.f32 %v9311_v37, %v6930_v18 }
0x1a2b   :  { %v6956_v27 = vpop.f32.mrf.mxu2 }
0x1a2c   :  { %v6957_v49 = vadd.f32 %v6956_v27, %v6928_v22 }
0x1a2e   :  { %v6968_v14 = vmax.f32 %v6957_v49, 0.0 }
0x1a2f   :  { %v6933_v35 = vpop.f32.mrf.mxu0 }
0x1a30   :  { %v6934_v34 = vadd.f32 %v9311_v37, %v6933_v35 }
0x1a33   :  { %v6959_v33 = vpop.f32.mrf.mxu2 }
0x1a34   :  { %v6960_v16 = vadd.f32 %v6959_v33, %v6931_v26 }
0x1a36   :  { %v6969_v61 = vmax.f32 %v6960_v16, 0.0 }
0x1a37   :  { %v6936_v11 = vpop.f32.mrf.mxu0 }
0x1a38   :  { %v6937_v3 = vadd.f32 %v9311_v37, %v6936_v11  ;;  %v6972_v60 = vmax.f32 %v6968_v14, %v6969_v61 }
0x1a3b   :  { %v6962_v23 = vpop.f32.mrf.mxu2 }
0x1a3c   :  { %v6963_v7 = vadd.f32 %v6962_v23, %v6934_v34 }
0x1a3e   :  { %v6970_v6 = vmax.f32 %v6963_v7, 0.0 }
0x1a43   :  { %v6965_v9 = vpop.f32.mrf.mxu2 }
0x1a44   :  { %v6966_v55 = vadd.f32 %v6965_v9, %v6937_v3 }
0x1a46   :  { %v6971_v32 = vmax.f32 %v6966_v55, 0.0 }
0x1a48   :  { %v6973_v57 = vmax.f32 %v6970_v6, %v6971_v32 }
0x1a4a   :  { %v6974_v5 = vmax.f32 %v6972_v60, %v6973_v57 }
0x1a4c   :  { %v6975_v41 = vrot.slane %v6974_v5, 4 }
0x1a4e   :  { %v6976_v8 = vmax.f32 %v6974_v5, %v6975_v41 }
0x1a50   :  { %v6977_v52 = vrot.slane %v6976_v8, 2 }
0x1a52   :  { %v6978_v43 = vmax.f32 %v6976_v8, %v6977_v52 }
0x1a54   :  { %v6979_v45 = vrot.slane %v6978_v43, 1 }
0x1a56   :  { %v6980_v28 = vmax.f32 %v6978_v43, %v6979_v45 }
0x1a58   :  { %7014 = vmatmul.f32.vlgmr.msra.gmra.mxu1 %v6980_v28 }
0x1ad5   :  { %v7015_v21 = vpop.f32.mrf.mxu1 }
0x1ad6   :  { %v7016_v19 = vadd.f32 %v7015_v21, %v6997_v39 }
0x1ad8   :  { %7019 = vst.msk [vmem:[%s11939_s19] sm:$0x1] %vm7018_vm10, %v7016_v19 }
0x1ad9   :  { %7024 = vsyncpa [#allocation6], 1 }
0x1ada   :  { %7025 = vsyncpa [#allocation8], 1 }
0x1adb   :  { %7026 = vsyncpa [#allocation11], 1 }
0x1adc   :  { %7027 = vsyncpa [#allocation14], 1 }
0x1add   :  { %7028 = vsyncpa [#allocation17], 1 }
0x1ade   :  { %7029 = vsyncpa [#allocation20], 1 }
0x1adf   :  { %7030 = vsyncmov [#allocation4] }
0x1ae2   :  { %s7031_s8 = vpop.sfrf %7030 }
0x1ae3   :  { %p8757_p0 = scmp.ne.s32.totalorder %s7031_s8, 0 }
0x1ae5   :  { %7035 = shalt.err (%p8757_p0)  }
0x1ae6   :  { %7037 = vsyncmov [#allocation4 + $0x1] }
0x1ae9   :  { %s7038_s27 = vpop.sfrf %7037 }
0x1aea   :  { %p8758_p1 = scmp.ne.s32.totalorder %s7038_s27, 0 }
0x1aec   :  { %7042 = shalt.err (%p8758_p1)  }

</bundles_post_ra>
